<compile_context>
chip_gen: v7x
topology: tpu7x:2x2x1
jax: 0.10.0
libtpu: 0.0.40
codegen_flags: <defaults>
</compile_context>

<pallas_src>
import functools

import jax
import jax.numpy as jnp
from jax.experimental import pallas as pl
from jax.experimental.pallas import tpu as pltpu

_LANE = 128
_MXU_DTYPE = jnp.bfloat16      # MXU-native on v5e/v6e/v7x; accumulation is f32.
_SCRATCH_DTYPE = jnp.float32   # see TODO above about bf16 scratch


def _round_up(x, m):
    return (x + m - 1) // m * m


# ---------------------------------------------------------------------------
# Kernel
# ---------------------------------------------------------------------------
def _fill_patches_3x3(patch_ref, src_ref, H, W, C):
    """im2col for a 3x3 / stride-1 / pad-1 conv, written straight into the
    (H, W, >=9*C) patch scratch (no intermediate haloed copy of the input).

    src_ref: (1, H, W, C) ref (input block or VMEM scratch).
    For each tap the shifted valid window of src is copied and the thin
    zero-padding border strips are rewritten explicitly, so the scratch never
    needs a full-buffer zero fill and stays correct for any grid scheduling.
    """
    dt = patch_ref.dtype
    for kh in range(3):
        dh = kh - 1
        sh0, sh1 = max(0, dh), H + min(0, dh)       # source rows
        th0, th1 = max(0, -dh), H + min(0, -dh)     # destination rows
        for kw in range(3):
            dw = kw - 1
            sw0, sw1 = max(0, dw), W + min(0, dw)   # source cols
            tw0, tw1 = max(0, -dw), W + min(0, -dw)  # destination cols
            c0 = (kh * 3 + kw) * C                  # lane-aligned slab start
            patch_ref[th0:th1, tw0:tw1, c0:c0 + C] = (
                src_ref[0, sh0:sh1, sw0:sw1, :].astype(dt))
            if dh != 0:  # row that reads outside the image -> zero padding
                r = 0 if dh == -1 else H - 1
                patch_ref[r:r + 1, :, c0:c0 + C] = jnp.zeros((1, W, C), dt)
            if dw != 0:  # column that reads outside the image -> zero padding
                c = 0 if dw == -1 else W - 1
                patch_ref[:, c:c + 1, c0:c0 + C] = jnp.zeros((H, 1, C), dt)


def _basic_block_kernel(x_ref, w1_ref, b1_ref, w2_ref, b2_ref, o_ref,
                        patch1_ref, h1_ref, patch2_ref,
                        *, H, W, Cin, Cout, proj):
    """relu( BN2(conv2(relu(BN1(conv1(x))))) + shortcut(x) ) for one image.

    BN scales are pre-folded into the bf16 weight columns; only biases are
    added here.  For the projection shortcut, x is an extra K slab of the
    conv2 patch matrix and the scaled 1x1 weights are extra rows of w2.
    """
    # ---- conv1 (3x3, s=1, p=1) + BN1 + ReLU -> h1 (kept in VMEM, no HBM trip)
    _fill_patches_3x3(patch1_ref, x_ref, H, W, Cin)
    p1 = patch1_ref[...].reshape(H * W, 9 * Cin).astype(_MXU_DTYPE)
    h1 = jnp.dot(p1, w1_ref[...], preferred_element_type=jnp.float32)
    h1 = jnp.maximum(h1 + b1_ref[...], 0.0)
    h1_ref[...] = h1.reshape(1, H, W, Cout).astype(h1_ref.dtype)

    # ---- conv2 (3x3, s=1, p=1) + BN2 (+ projection shortcut) in ONE matmul
    _fill_patches_3x3(patch2_ref, h1_ref, H, W, Cout)
    if proj:
        # 1x1-conv shortcut: append x as the last Cin columns of the K axis.
        patch2_ref[:, :, 9 * Cout:9 * Cout + Cin] = (
            x_ref[0].astype(patch2_ref.dtype))
    k2 = patch2_ref.shape[-1]
    p2 = patch2_ref[...].reshape(H * W, k2).astype(_MXU_DTYPE)
    out = jnp.dot(p2, w2_ref[...], preferred_element_type=jnp.float32)
    out = out + b2_ref[...]
    if not proj:
        # Identity shortcut (Cin == Cout, asserted in the wrapper); the
        # residual is added in f32, not through the bf16 matmul.
        out = out + x_ref[0].reshape(H * W, Cout)
    o_ref[...] = jnp.maximum(out, 0.0).reshape(1, H, W, Cout).astype(o_ref.dtype)


# ---------------------------------------------------------------------------
# pallas_call wrapper
# ---------------------------------------------------------------------------
def _vmem_capacity_bytes():
    try:
        cap = getattr(pltpu.get_tpu_info(), "vmem_capacity_bytes", None)
        if cap:
            return int(cap)
    except Exception:  # best-effort hardware query
        pass
    return 64 << 20    # conservative default: v7x per-core VMEM


def _vmem_limit_bytes(need):
    # Generation-aware budget: request what we need (+ headroom) but never
    # more than ~85% of this chip's VMEM (128 MiB v5e/v6e, 64 MiB v7x).
    # TODO(synk): when `need` exceeds the cap at real ResNet resolutions,
    # switch to haloed row-strip tiling instead of clamping.
    return int(min(max(need + (8 << 20), 32 << 20),
                   int(_vmem_capacity_bytes() * 0.85)))


def _basic_block_pallas(x_p, w1, b1, w2, b2, proj):
    """x_p: (N, H, W, Cin_p) f32 lane-padded; w1/w2 bf16; b1/b2 (1, Cout_p) f32."""
    N, H, W, Cin_p = x_p.shape
    K2, Cout_p = w2.shape
    kernel = functools.partial(_basic_block_kernel, H=H, W=W,
                               Cin=Cin_p, Cout=Cout_p, proj=proj)

    # VMEM accounting: per-image activation blocks are double-buffered by the
    # pipeliner; weight/bias blocks have constant index_maps (DMA'd once) but
    # are still allocated twice, so count them twice to stay conservative.
    blocks = 2 * 4 * (H * W * Cin_p + H * W * Cout_p)             # x, out (f32)
    blocks += 2 * (2 * (9 * Cin_p * Cout_p + K2 * Cout_p)         # weights (bf16)
                   + 4 * 2 * Cout_p)                              # biases (f32)
    scratch = 4 * (H * W * 9 * Cin_p + H * W * Cout_p + H * W * K2)

    return pl.pallas_call(
        kernel,
        out_shape=jax.ShapeDtypeStruct((N, H, W, Cout_p), x_p.dtype),
        grid=(N,),
        in_specs=[
            pl.BlockSpec((1, H, W, Cin_p), lambda n: (n, 0, 0, 0)),
            pl.BlockSpec((9 * Cin_p, Cout_p), lambda n: (0, 0)),
            pl.BlockSpec((1, Cout_p), lambda n: (0, 0)),
            pl.BlockSpec((K2, Cout_p), lambda n: (0, 0)),
            pl.BlockSpec((1, Cout_p), lambda n: (0, 0)),
        ],
        out_specs=pl.BlockSpec((1, H, W, Cout_p), lambda n: (n, 0, 0, 0)),
        scratch_shapes=[
            pltpu.VMEM((H, W, 9 * Cin_p), _SCRATCH_DTYPE),   # conv1 patches
            pltpu.VMEM((1, H, W, Cout_p), _SCRATCH_DTYPE),   # h1 (stays on-chip)
            pltpu.VMEM((H, W, K2), _SCRATCH_DTYPE),          # conv2(+shortcut) patches
        ],
        compiler_params=pltpu.CompilerParams(
            dimension_semantics=("parallel",),
            vmem_limit_bytes=_vmem_limit_bytes(blocks + scratch)),
    )(x_p, w1, b1, w2, b2)


# ---------------------------------------------------------------------------
# Parameters, weight prep, forward
# ---------------------------------------------------------------------------
def _fold_bn(gamma, beta, mean, var, eps=1e-5):
    scale = gamma * jax.lax.rsqrt(var + eps)
    return scale, beta - mean * scale


def _pad_last(a, target):
    pad = target - a.shape[-1]
    return a if pad == 0 else jnp.pad(a, [(0, 0)] * (a.ndim - 1) + [(0, pad)])


def _prep_conv3_weight(w, scale, cin_p, cout_p):
    """(3,3,Cin,Cout) HWIO * per-out-channel BN scale -> (9*Cin_p, Cout_p) bf16."""
    kh, kw, cin, cout = w.shape
    w = w * scale[None, None, None, :]
    w = jnp.pad(w, ((0, 0), (0, 0), (0, cin_p - cin), (0, cout_p - cout)))
    return w.reshape(kh * kw * cin_p, cout_p).astype(_MXU_DTYPE)


def _prep_bias(b, cout_p):
    return _pad_last(b, cout_p).reshape(1, cout_p).astype(jnp.float32)


def init_basic_block_params(key, input_dim, output_dim, with_shortcut):
    keys = jax.random.split(key, 15)

    def bn_params(k0, k1, k2, k3, c):
        gamma = jax.random.uniform(k0, (c,), jnp.float32, 0.5, 1.5)
        beta = 0.1 * jax.random.normal(k1, (c,), jnp.float32)
        mean = 0.1 * jax.random.normal(k2, (c,), jnp.float32)
        var = jax.random.uniform(k3, (c,), jnp.float32, 0.5, 1.5)
        return gamma, beta, mean, var

    p = {}
    p["w1"] = 0.1 * jax.random.normal(keys[0], (3, 3, input_dim, output_dim),
                                      jnp.float32)
    p["bn1"] = bn_params(*keys[1:5], output_dim)
    p["w2"] = 0.1 * jax.random.normal(keys[5], (3, 3, output_dim, output_dim),
                                      jnp.float32)
    p["bn2"] = bn_params(*keys[6:10], output_dim)
    if with_shortcut:
        p["ws"] = 0.1 * jax.random.normal(keys[10], (input_dim, output_dim),
                                          jnp.float32)
        p["bns"] = bn_params(*keys[11:15], output_dim)
    return p


# ---------------------------------------------------------------------------
# Pure-JAX reference (for correctness check and the stride!=1 fallback)
# ---------------------------------------------------------------------------
def _ref_conv(x, w, stride, padding):
    return jax.lax.conv_general_dilated(
        x, w, window_strides=(stride, stride),
        padding=[(padding, padding), (padding, padding)],
        dimension_numbers=("NHWC", "HWIO", "NHWC"))


def basic_block_reference(x, params, input_dim, output_dim, stride=(1, 1)):
    s0, s1 = stride
    scale1, bias1 = _fold_bn(*params["bn1"])
    scale2, bias2 = _fold_bn(*params["bn2"])
    h = _ref_conv(x, params["w1"], s0, 1) * scale1 + bias1
    h = jnp.maximum(h, 0.0)
    h = _ref_conv(h, params["w2"], s1, 1) * scale2 + bias2
    if s0 != 1 or input_dim != output_dim:
        scale_s, bias_s = _fold_bn(*params["bns"])
        sc = _ref_conv(x, params["ws"][None, None], s0, 0) * scale_s + bias_s
    else:
        sc = x
    return jnp.maximum(h + sc, 0.0)


def basic_block_forward(x, params, input_dim, output_dim, stride=(1, 1)):
    """Pallas forward pass of BasicBlock. x: (N, H, W, Cin) float32, NHWC."""
    s0, s1 = stride
    if s0 != 1 or s1 != 1:
        # TODO(synk): build the im2col patches directly at strided output
        # positions inside the fused kernel (4x fewer MXU flops for stride-2
        # blocks); downsampling blocks currently fall back to plain XLA.
        return basic_block_reference(x, params, input_dim, output_dim, stride)

    N, H, W, Cin = x.shape
    assert Cin == input_dim
    Cin_p = _round_up(input_dim, _LANE)
    Cout_p = _round_up(output_dim, _LANE)
    proj = input_dim != output_dim
    if not proj:
        assert Cin_p == Cout_p, "identity shortcut requires matching padded dims"

    scale1, bias1 = _fold_bn(*params["bn1"])
    scale2, bias2 = _fold_bn(*params["bn2"])

    # One-time, tiny relayouts: BN scales folded into weight columns, channel
    # lane-padding (padded channels stay exactly zero through convs, biases,
    # ReLUs), im2col weight reshape, bf16 cast.
    w1 = _prep_conv3_weight(params["w1"], scale1, Cin_p, Cout_p)
    w2 = _prep_conv3_weight(params["w2"], scale2, Cout_p, Cout_p)
    b1 = _prep_bias(bias1, Cout_p)
    if proj:
        scale_s, bias_s = _fold_bn(*params["bns"])
        ws = params["ws"] * scale_s[None, :]
        ws = jnp.pad(ws, ((0, Cin_p - input_dim), (0, Cout_p - output_dim)))
        w2 = jnp.concatenate([w2, ws.astype(_MXU_DTYPE)], axis=0)
        b2 = _prep_bias(bias2 + bias_s, Cout_p)
    else:
        b2 = _prep_bias(bias2, Cout_p)

    x_p = _pad_last(x, Cin_p)
    out_p = _basic_block_pallas(x_p, w1, b1, w2, b2, proj)
    return out_p[..., :output_dim]


# ---------------------------------------------------------------------------
if __name__ == "__main__":
    def _run_case(case_key, N, H, W, input_dim, output_dim, stride):
        kx, kp = jax.random.split(case_key)
        x = jax.random.normal(kx, (N, H, W, input_dim), jnp.float32)
        with_shortcut = stride[0] != 1 or input_dim != output_dim
        params = init_basic_block_params(kp, input_dim, output_dim,
                                         with_shortcut)
        out = jax.block_until_ready(
            basic_block_forward(x, params, input_dim, output_dim, stride))
        ref = basic_block_reference(x, params, input_dim, output_dim, stride)
        assert out.shape == ref.shape == (N, H, W, output_dim)
        err = float(jnp.max(jnp.abs(out - ref)))
        # bf16 MXU operands vs f32 XLA reference -> loosened tolerance.
        assert jnp.allclose(out, ref, atol=5e-2, rtol=5e-2), err

    key = jax.random.PRNGKey(0)
    k1, k2 = jax.random.split(key)
    _run_case(k1, 2, 16, 16, 4, 8, (1, 1))   # projection-shortcut path
    _run_case(k2, 2, 16, 16, 8, 8, (1, 1))   # identity-shortcut path
    print("KERNEL_OK")
</pallas_src>

<mosaic_0001>
module attributes {stable_mosaic.version = 11 : i64} {
  func.func @_basic_block_kernel(%arg0: i32, %arg1: memref<1x16x16x128xf32, #tpu.memory_space<vmem>>, %arg2: memref<1152x128xbf16, #tpu.memory_space<vmem>>, %arg3: memref<1x128xf32, #tpu.memory_space<vmem>>, %arg4: memref<1280x128xbf16, #tpu.memory_space<vmem>>, %arg5: memref<1x128xf32, #tpu.memory_space<vmem>>, %arg6: memref<1x16x16x128xf32, #tpu.memory_space<vmem>>, %arg7: memref<16x16x1152xf32, #tpu.memory_space<vmem>>, %arg8: memref<1x16x16x128xf32, #tpu.memory_space<vmem>>, %arg9: memref<16x16x1280xf32, #tpu.memory_space<vmem>>) attributes {dimension_semantics = [#tpu.dimension_semantics<parallel>], iteration_bounds = array<i64: 2>, scalar_prefetch = 0 : i64, scratch_operands = 3 : i64, tpu.core_type = #tpu.core_type<tc>, window_params = [{transform_indices = @transform_0, window_bounds = array<i64: 1, 16, 16, 128>}, {pipeline_mode = #tpu.pipeline_mode<synchronous>, transform_indices = @transform_1, window_bounds = array<i64: 1152, 128>}, {pipeline_mode = #tpu.pipeline_mode<synchronous>, transform_indices = @transform_2, window_bounds = array<i64: 1, 128>}, {pipeline_mode = #tpu.pipeline_mode<synchronous>, transform_indices = @transform_3, window_bounds = array<i64: 1280, 128>}, {pipeline_mode = #tpu.pipeline_mode<synchronous>, transform_indices = @transform_4, window_bounds = array<i64: 1, 128>}, {transform_indices = @transform_5, window_bounds = array<i64: 1, 16, 16, 128>}]} {
    %c0 = arith.constant 0 : index
    %c0_0 = arith.constant 0 : index
    %c0_1 = arith.constant 0 : index
    %c0_2 = arith.constant 0 : index
    %0 = vector.load %arg1[%c0, %c0_0, %c0_1, %c0_2] : memref<1x16x16x128xf32, #tpu.memory_space<vmem>>, vector<1x15x15x128xf32>
    %1 = vector.shape_cast %0 : vector<1x15x15x128xf32> to vector<15x15x128xf32>
    %c1 = arith.constant 1 : index
    %c1_3 = arith.constant 1 : index
    %c0_4 = arith.constant 0 : index
    %2 = vector.load %arg7[%c1, %c1_3, %c0_4] : memref<16x16x1152xf32, #tpu.memory_space<vmem>>, vector<15x15x128xf32>
    tpu.vector_store %arg7[%c1, %c1_3, %c0_4], %1 {strides = array<i32>} : memref<16x16x1152xf32, #tpu.memory_space<vmem>>, vector<15x15x128xf32>,
    %cst = arith.constant 0.000000e+00 : f32
    %3 = vector.broadcast %cst : f32 to vector<1x16x128xf32>
    %c0_5 = arith.constant 0 : index
    %c0_6 = arith.constant 0 : index
    %c0_7 = arith.constant 0 : index
    %4 = vector.load %arg7[%c0_5, %c0_6, %c0_7] : memref<16x16x1152xf32, #tpu.memory_space<vmem>>, vector<1x16x128xf32>
    tpu.vector_store %arg7[%c0_5, %c0_6, %c0_7], %3 {strides = array<i32>} : memref<16x16x1152xf32, #tpu.memory_space<vmem>>, vector<1x16x128xf32>,
    %cst_8 = arith.constant 0.000000e+00 : f32
    %5 = vector.broadcast %cst_8 : f32 to vector<16x1x128xf32>
    %c0_9 = arith.constant 0 : index
    %c0_10 = arith.constant 0 : index
    %c0_11 = arith.constant 0 : index
    %6 = vector.load %arg7[%c0_9, %c0_10, %c0_11] : memref<16x16x1152xf32, #tpu.memory_space<vmem>>, vector<16x1x128xf32>
    tpu.vector_store %arg7[%c0_9, %c0_10, %c0_11], %5 {strides = array<i32>} : memref<16x16x1152xf32, #tpu.memory_space<vmem>>, vector<16x1x128xf32>,
    %c0_12 = arith.constant 0 : index
    %c0_13 = arith.constant 0 : index
    %c0_14 = arith.constant 0 : index
    %c0_15 = arith.constant 0 : index
    %7 = vector.load %arg1[%c0_12, %c0_13, %c0_14, %c0_15] : memref<1x16x16x128xf32, #tpu.memory_space<vmem>>, vector<1x15x16x128xf32>
    %8 = vector.shape_cast %7 : vector<1x15x16x128xf32> to vector<15x16x128xf32>
    %c1_16 = arith.constant 1 : index
    %c0_17 = arith.constant 0 : index
    %c128 = arith.constant 128 : index
    %9 = vector.load %arg7[%c1_16, %c0_17, %c128] : memref<16x16x1152xf32, #tpu.memory_space<vmem>>, vector<15x16x128xf32>
    tpu.vector_store %arg7[%c1_16, %c0_17, %c128], %8 {strides = array<i32>} : memref<16x16x1152xf32, #tpu.memory_space<vmem>>, vector<15x16x128xf32>,
    %cst_18 = arith.constant 0.000000e+00 : f32
    %10 = vector.broadcast %cst_18 : f32 to vector<1x16x128xf32>
    %c0_19 = arith.constant 0 : index
    %c0_20 = arith.constant 0 : index
    %c128_21 = arith.constant 128 : index
    %11 = vector.load %arg7[%c0_19, %c0_20, %c128_21] : memref<16x16x1152xf32, #tpu.memory_space<vmem>>, vector<1x16x128xf32>
    tpu.vector_store %arg7[%c0_19, %c0_20, %c128_21], %10 {strides = array<i32>} : memref<16x16x1152xf32, #tpu.memory_space<vmem>>, vector<1x16x128xf32>,
    %c0_22 = arith.constant 0 : index
    %c0_23 = arith.constant 0 : index
    %c1_24 = arith.constant 1 : index
    %c0_25 = arith.constant 0 : index
    %12 = vector.load %arg1[%c0_22, %c0_23, %c1_24, %c0_25] : memref<1x16x16x128xf32, #tpu.memory_space<vmem>>, vector<1x15x15x128xf32>
    %13 = vector.shape_cast %12 : vector<1x15x15x128xf32> to vector<15x15x128xf32>
    %c1_26 = arith.constant 1 : index
    %c0_27 = arith.constant 0 : index
    %c256 = arith.constant 256 : index
    %14 = vector.load %arg7[%c1_26, %c0_27, %c256] : memref<16x16x1152xf32, #tpu.memory_space<vmem>>, vector<15x15x128xf32>
    tpu.vector_store %arg7[%c1_26, %c0_27, %c256], %13 {strides = array<i32>} : memref<16x16x1152xf32, #tpu.memory_space<vmem>>, vector<15x15x128xf32>,
    %cst_28 = arith.constant 0.000000e+00 : f32
    %15 = vector.broadcast %cst_28 : f32 to vector<1x16x128xf32>
    %c0_29 = arith.constant 0 : index
    %c0_30 = arith.constant 0 : index
    %c256_31 = arith.constant 256 : index
    %16 = vector.load %arg7[%c0_29, %c0_30, %c256_31] : memref<16x16x1152xf32, #tpu.memory_space<vmem>>, vector<1x16x128xf32>
    tpu.vector_store %arg7[%c0_29, %c0_30, %c256_31], %15 {strides = array<i32>} : memref<16x16x1152xf32, #tpu.memory_space<vmem>>, vector<1x16x128xf32>,
    %cst_32 = arith.constant 0.000000e+00 : f32
    %17 = vector.broadcast %cst_32 : f32 to vector<16x1x128xf32>
    %c0_33 = arith.constant 0 : index
    %c15 = arith.constant 15 : index
    %c256_34 = arith.constant 256 : index
    %18 = vector.load %arg7[%c0_33, %c15, %c256_34] : memref<16x16x1152xf32, #tpu.memory_space<vmem>>, vector<16x1x128xf32>
    tpu.vector_store %arg7[%c0_33, %c15, %c256_34], %17 {strides = array<i32>} : memref<16x16x1152xf32, #tpu.memory_space<vmem>>, vector<16x1x128xf32>,
    %c0_35 = arith.constant 0 : index
    %c0_36 = arith.constant 0 : index
    %c0_37 = arith.constant 0 : index
    %c0_38 = arith.constant 0 : index
    %19 = vector.load %arg1[%c0_35, %c0_36, %c0_37, %c0_38] : memref<1x16x16x128xf32, #tpu.memory_space<vmem>>, vector<1x16x15x128xf32>
    %20 = vector.shape_cast %19 : vector<1x16x15x128xf32> to vector<16x15x128xf32>
    %c0_39 = arith.constant 0 : index
    %c1_40 = arith.constant 1 : index
    %c384 = arith.constant 384 : index
    %21 = vector.load %arg7[%c0_39, %c1_40, %c384] : memref<16x16x1152xf32, #tpu.memory_space<vmem>>, vector<16x15x128xf32>
    tpu.vector_store %arg7[%c0_39, %c1_40, %c384], %20 {strides = array<i32>} : memref<16x16x1152xf32, #tpu.memory_space<vmem>>, vector<16x15x128xf32>,
    %cst_41 = arith.constant 0.000000e+00 : f32
    %22 = vector.broadcast %cst_41 : f32 to vector<16x1x128xf32>
    %c0_42 = arith.constant 0 : index
    %c0_43 = arith.constant 0 : index
    %c384_44 = arith.constant 384 : index
    %23 = vector.load %arg7[%c0_42, %c0_43, %c384_44] : memref<16x16x1152xf32, #tpu.memory_space<vmem>>, vector<16x1x128xf32>
    tpu.vector_store %arg7[%c0_42, %c0_43, %c384_44], %22 {strides = array<i32>} : memref<16x16x1152xf32, #tpu.memory_space<vmem>>, vector<16x1x128xf32>,
    %c0_45 = arith.constant 0 : index
    %c0_46 = arith.constant 0 : index
    %c0_47 = arith.constant 0 : index
    %c0_48 = arith.constant 0 : index
    %24 = vector.load %arg1[%c0_45, %c0_46, %c0_47, %c0_48] : memref<1x16x16x128xf32, #tpu.memory_space<vmem>>, vector<1x16x16x128xf32>
    %25 = vector.shape_cast %24 : vector<1x16x16x128xf32> to vector<16x16x128xf32>
    %c0_49 = arith.constant 0 : index
    %c0_50 = arith.constant 0 : index
    %c512 = arith.constant 512 : index
    %26 = vector.load %arg7[%c0_49, %c0_50, %c512] : memref<16x16x1152xf32, #tpu.memory_space<vmem>>, vector<16x16x128xf32>
    tpu.vector_store %arg7[%c0_49, %c0_50, %c512], %25 {strides = array<i32>} : memref<16x16x1152xf32, #tpu.memory_space<vmem>>, vector<16x16x128xf32>,
    %c0_51 = arith.constant 0 : index
    %c0_52 = arith.constant 0 : index
    %c1_53 = arith.constant 1 : index
    %c0_54 = arith.constant 0 : index
    %27 = vector.load %arg1[%c0_51, %c0_52, %c1_53, %c0_54] : memref<1x16x16x128xf32, #tpu.memory_space<vmem>>, vector<1x16x15x128xf32>
    %28 = vector.shape_cast %27 : vector<1x16x15x128xf32> to vector<16x15x128xf32>
    %c0_55 = arith.constant 0 : index
    %c0_56 = arith.constant 0 : index
    %c640 = arith.constant 640 : index
    %29 = vector.load %arg7[%c0_55, %c0_56, %c640] : memref<16x16x1152xf32, #tpu.memory_space<vmem>>, vector<16x15x128xf32>
    tpu.vector_store %arg7[%c0_55, %c0_56, %c640], %28 {strides = array<i32>} : memref<16x16x1152xf32, #tpu.memory_space<vmem>>, vector<16x15x128xf32>,
    %cst_57 = arith.constant 0.000000e+00 : f32
    %30 = vector.broadcast %cst_57 : f32 to vector<16x1x128xf32>
    %c0_58 = arith.constant 0 : index
    %c15_59 = arith.constant 15 : index
    %c640_60 = arith.constant 640 : index
    %31 = vector.load %arg7[%c0_58, %c15_59, %c640_60] : memref<16x16x1152xf32, #tpu.memory_space<vmem>>, vector<16x1x128xf32>
    tpu.vector_store %arg7[%c0_58, %c15_59, %c640_60], %30 {strides = array<i32>} : memref<16x16x1152xf32, #tpu.memory_space<vmem>>, vector<16x1x128xf32>,
    %c0_61 = arith.constant 0 : index
    %c1_62 = arith.constant 1 : index
    %c0_63 = arith.constant 0 : index
    %c0_64 = arith.constant 0 : index
    %32 = vector.load %arg1[%c0_61, %c1_62, %c0_63, %c0_64] : memref<1x16x16x128xf32, #tpu.memory_space<vmem>>, vector<1x15x15x128xf32>
    %33 = vector.shape_cast %32 : vector<1x15x15x128xf32> to vector<15x15x128xf32>
    %c0_65 = arith.constant 0 : index
    %c1_66 = arith.constant 1 : index
    %c768 = arith.constant 768 : index
    %34 = vector.load %arg7[%c0_65, %c1_66, %c768] : memref<16x16x1152xf32, #tpu.memory_space<vmem>>, vector<15x15x128xf32>
    tpu.vector_store %arg7[%c0_65, %c1_66, %c768], %33 {strides = array<i32>} : memref<16x16x1152xf32, #tpu.memory_space<vmem>>, vector<15x15x128xf32>,
    %cst_67 = arith.constant 0.000000e+00 : f32
    %35 = vector.broadcast %cst_67 : f32 to vector<1x16x128xf32>
    %c15_68 = arith.constant 15 : index
    %c0_69 = arith.constant 0 : index
    %c768_70 = arith.constant 768 : index
    %36 = vector.load %arg7[%c15_68, %c0_69, %c768_70] : memref<16x16x1152xf32, #tpu.memory_space<vmem>>, vector<1x16x128xf32>
    tpu.vector_store %arg7[%c15_68, %c0_69, %c768_70], %35 {strides = array<i32>} : memref<16x16x1152xf32, #tpu.memory_space<vmem>>, vector<1x16x128xf32>,
    %cst_71 = arith.constant 0.000000e+00 : f32
    %37 = vector.broadcast %cst_71 : f32 to vector<16x1x128xf32>
    %c0_72 = arith.constant 0 : index
    %c0_73 = arith.constant 0 : index
    %c768_74 = arith.constant 768 : index
    %38 = vector.load %arg7[%c0_72, %c0_73, %c768_74] : memref<16x16x1152xf32, #tpu.memory_space<vmem>>, vector<16x1x128xf32>
    tpu.vector_store %arg7[%c0_72, %c0_73, %c768_74], %37 {strides = array<i32>} : memref<16x16x1152xf32, #tpu.memory_space<vmem>>, vector<16x1x128xf32>,
    %c0_75 = arith.constant 0 : index
    %c1_76 = arith.constant 1 : index
    %c0_77 = arith.constant 0 : index
    %c0_78 = arith.constant 0 : index
    %39 = vector.load %arg1[%c0_75, %c1_76, %c0_77, %c0_78] : memref<1x16x16x128xf32, #tpu.memory_space<vmem>>, vector<1x15x16x128xf32>
    %40 = vector.shape_cast %39 : vector<1x15x16x128xf32> to vector<15x16x128xf32>
    %c0_79 = arith.constant 0 : index
    %c0_80 = arith.constant 0 : index
    %c896 = arith.constant 896 : index
    %41 = vector.load %arg7[%c0_79, %c0_80, %c896] : memref<16x16x1152xf32, #tpu.memory_space<vmem>>, vector<15x16x128xf32>
    tpu.vector_store %arg7[%c0_79, %c0_80, %c896], %40 {strides = array<i32>} : memref<16x16x1152xf32, #tpu.memory_space<vmem>>, vector<15x16x128xf32>,
    %cst_81 = arith.constant 0.000000e+00 : f32
    %42 = vector.broadcast %cst_81 : f32 to vector<1x16x128xf32>
    %c15_82 = arith.constant 15 : index
    %c0_83 = arith.constant 0 : index
    %c896_84 = arith.constant 896 : index
    %43 = vector.load %arg7[%c15_82, %c0_83, %c896_84] : memref<16x16x1152xf32, #tpu.memory_space<vmem>>, vector<1x16x128xf32>
    tpu.vector_store %arg7[%c15_82, %c0_83, %c896_84], %42 {strides = array<i32>} : memref<16x16x1152xf32, #tpu.memory_space<vmem>>, vector<1x16x128xf32>,
    %c0_85 = arith.constant 0 : index
    %c1_86 = arith.constant 1 : index
    %c1_87 = arith.constant 1 : index
    %c0_88 = arith.constant 0 : index
    %44 = vector.load %arg1[%c0_85, %c1_86, %c1_87, %c0_88] : memref<1x16x16x128xf32, #tpu.memory_space<vmem>>, vector<1x15x15x128xf32>
    %45 = vector.shape_cast %44 : vector<1x15x15x128xf32> to vector<15x15x128xf32>
    %c0_89 = arith.constant 0 : index
    %c0_90 = arith.constant 0 : index
    %c1024 = arith.constant 1024 : index
    %46 = vector.load %arg7[%c0_89, %c0_90, %c1024] : memref<16x16x1152xf32, #tpu.memory_space<vmem>>, vector<15x15x128xf32>
    tpu.vector_store %arg7[%c0_89, %c0_90, %c1024], %45 {strides = array<i32>} : memref<16x16x1152xf32, #tpu.memory_space<vmem>>, vector<15x15x128xf32>,
    %cst_91 = arith.constant 0.000000e+00 : f32
    %47 = vector.broadcast %cst_91 : f32 to vector<1x16x128xf32>
    %c15_92 = arith.constant 15 : index
    %c0_93 = arith.constant 0 : index
    %c1024_94 = arith.constant 1024 : index
    %48 = vector.load %arg7[%c15_92, %c0_93, %c1024_94] : memref<16x16x1152xf32, #tpu.memory_space<vmem>>, vector<1x16x128xf32>
    tpu.vector_store %arg7[%c15_92, %c0_93, %c1024_94], %47 {strides = array<i32>} : memref<16x16x1152xf32, #tpu.memory_space<vmem>>, vector<1x16x128xf32>,
    %cst_95 = arith.constant 0.000000e+00 : f32
    %49 = vector.broadcast %cst_95 : f32 to vector<16x1x128xf32>
    %c0_96 = arith.constant 0 : index
    %c15_97 = arith.constant 15 : index
    %c1024_98 = arith.constant 1024 : index
    %50 = vector.load %arg7[%c0_96, %c15_97, %c1024_98] : memref<16x16x1152xf32, #tpu.memory_space<vmem>>, vector<16x1x128xf32>
    tpu.vector_store %arg7[%c0_96, %c15_97, %c1024_98], %49 {strides = array<i32>} : memref<16x16x1152xf32, #tpu.memory_space<vmem>>, vector<16x1x128xf32>,
    %c0_99 = arith.constant 0 : index
    %c0_100 = arith.constant 0 : index
    %c0_101 = arith.constant 0 : index
    %51 = vector.load %arg7[%c0_99, %c0_100, %c0_101] : memref<16x16x1152xf32, #tpu.memory_space<vmem>>, vector<16x16x1152xf32>
    %52 = vector.shape_cast %51 : vector<16x16x1152xf32> to vector<256x1152xf32>
    %53 = arith.truncf %52 : vector<256x1152xf32> to vector<256x1152xbf16>
    %c0_102 = arith.constant 0 : index
    %c0_103 = arith.constant 0 : index
    %54 = vector.load %arg2[%c0_102, %c0_103] : memref<1152x128xbf16, #tpu.memory_space<vmem>>, vector<1152x128xbf16>
    %cst_104 = arith.constant dense<0.000000e+00> : vector<256x128xf32>
    %55 = tpu.matmul %53, %54, %cst_104 {dimension_numbers = #tpu.dot_dimension_numbers<[1], [0], [0], [1], [0, 0, 1, 1], [], []>} : vector<256x1152xbf16>, vector<1152x128xbf16>, vector<256x128xf32> -> vector<256x128xf32>
    %c0_105 = arith.constant 0 : index
    %c0_106 = arith.constant 0 : index
    %56 = vector.load %arg3[%c0_105, %c0_106] : memref<1x128xf32, #tpu.memory_space<vmem>>, vector<1x128xf32>
    %57 = vector.broadcast %56 : vector<1x128xf32> to vector<256x128xf32>
    %58 = arith.addf %55, %57 : vector<256x128xf32>
    %cst_107 = arith.constant 0.000000e+00 : f32
    %59 = vector.broadcast %cst_107 : f32 to vector<256x128xf32>
    %60 = arith.maximumf %58, %59 : vector<256x128xf32>
    %61 = vector.shape_cast %60 : vector<256x128xf32> to vector<1x16x16x128xf32>
    %c0_108 = arith.constant 0 : index
    %c0_109 = arith.constant 0 : index
    %c0_110 = arith.constant 0 : index
    %c0_111 = arith.constant 0 : index
    %62 = vector.load %arg8[%c0_108, %c0_109, %c0_110, %c0_111] : memref<1x16x16x128xf32, #tpu.memory_space<vmem>>, vector<1x16x16x128xf32>
    tpu.vector_store %arg8[%c0_108, %c0_109, %c0_110, %c0_111], %61 {strides = array<i32>} : memref<1x16x16x128xf32, #tpu.memory_space<vmem>>, vector<1x16x16x128xf32>,
    %c0_112 = arith.constant 0 : index
    %c0_113 = arith.constant 0 : index
    %c0_114 = arith.constant 0 : index
    %c0_115 = arith.constant 0 : index
    %63 = vector.load %arg8[%c0_112, %c0_113, %c0_114, %c0_115] : memref<1x16x16x128xf32, #tpu.memory_space<vmem>>, vector<1x15x15x128xf32>
    %64 = vector.shape_cast %63 : vector<1x15x15x128xf32> to vector<15x15x128xf32>
    %c1_116 = arith.constant 1 : index
    %c1_117 = arith.constant 1 : index
    %c0_118 = arith.constant 0 : index
    %65 = vector.load %arg9[%c1_116, %c1_117, %c0_118] : memref<16x16x1280xf32, #tpu.memory_space<vmem>>, vector<15x15x128xf32>
    tpu.vector_store %arg9[%c1_116, %c1_117, %c0_118], %64 {strides = array<i32>} : memref<16x16x1280xf32, #tpu.memory_space<vmem>>, vector<15x15x128xf32>,
    %cst_119 = arith.constant 0.000000e+00 : f32
    %66 = vector.broadcast %cst_119 : f32 to vector<1x16x128xf32>
    %c0_120 = arith.constant 0 : index
    %c0_121 = arith.constant 0 : index
    %c0_122 = arith.constant 0 : index
    %67 = vector.load %arg9[%c0_120, %c0_121, %c0_122] : memref<16x16x1280xf32, #tpu.memory_space<vmem>>, vector<1x16x128xf32>
    tpu.vector_store %arg9[%c0_120, %c0_121, %c0_122], %66 {strides = array<i32>} : memref<16x16x1280xf32, #tpu.memory_space<vmem>>, vector<1x16x128xf32>,
    %cst_123 = arith.constant 0.000000e+00 : f32
    %68 = vector.broadcast %cst_123 : f32 to vector<16x1x128xf32>
    %c0_124 = arith.constant 0 : index
    %c0_125 = arith.constant 0 : index
    %c0_126 = arith.constant 0 : index
    %69 = vector.load %arg9[%c0_124, %c0_125, %c0_126] : memref<16x16x1280xf32, #tpu.memory_space<vmem>>, vector<16x1x128xf32>
    tpu.vector_store %arg9[%c0_124, %c0_125, %c0_126], %68 {strides = array<i32>} : memref<16x16x1280xf32, #tpu.memory_space<vmem>>, vector<16x1x128xf32>,
    %c0_127 = arith.constant 0 : index
    %c0_128 = arith.constant 0 : index
    %c0_129 = arith.constant 0 : index
    %c0_130 = arith.constant 0 : index
    %70 = vector.load %arg8[%c0_127, %c0_128, %c0_129, %c0_130] : memref<1x16x16x128xf32, #tpu.memory_space<vmem>>, vector<1x15x16x128xf32>
    %71 = vector.shape_cast %70 : vector<1x15x16x128xf32> to vector<15x16x128xf32>
    %c1_131 = arith.constant 1 : index
    %c0_132 = arith.constant 0 : index
    %c128_133 = arith.constant 128 : index
    %72 = vector.load %arg9[%c1_131, %c0_132, %c128_133] : memref<16x16x1280xf32, #tpu.memory_space<vmem>>, vector<15x16x128xf32>
    tpu.vector_store %arg9[%c1_131, %c0_132, %c128_133], %71 {strides = array<i32>} : memref<16x16x1280xf32, #tpu.memory_space<vmem>>, vector<15x16x128xf32>,
    %cst_134 = arith.constant 0.000000e+00 : f32
    %73 = vector.broadcast %cst_134 : f32 to vector<1x16x128xf32>
    %c0_135 = arith.constant 0 : index
    %c0_136 = arith.constant 0 : index
    %c128_137 = arith.constant 128 : index
    %74 = vector.load %arg9[%c0_135, %c0_136, %c128_137] : memref<16x16x1280xf32, #tpu.memory_space<vmem>>, vector<1x16x128xf32>
    tpu.vector_store %arg9[%c0_135, %c0_136, %c128_137], %73 {strides = array<i32>} : memref<16x16x1280xf32, #tpu.memory_space<vmem>>, vector<1x16x128xf32>,
    %c0_138 = arith.constant 0 : index
    %c0_139 = arith.constant 0 : index
    %c1_140 = arith.constant 1 : index
    %c0_141 = arith.constant 0 : index
    %75 = vector.load %arg8[%c0_138, %c0_139, %c1_140, %c0_141] : memref<1x16x16x128xf32, #tpu.memory_space<vmem>>, vector<1x15x15x128xf32>
    %76 = vector.shape_cast %75 : vector<1x15x15x128xf32> to vector<15x15x128xf32>
    %c1_142 = arith.constant 1 : index
    %c0_143 = arith.constant 0 : index
    %c256_144 = arith.constant 256 : index
    %77 = vector.load %arg9[%c1_142, %c0_143, %c256_144] : memref<16x16x1280xf32, #tpu.memory_space<vmem>>, vector<15x15x128xf32>
    tpu.vector_store %arg9[%c1_142, %c0_143, %c256_144], %76 {strides = array<i32>} : memref<16x16x1280xf32, #tpu.memory_space<vmem>>, vector<15x15x128xf32>,
    %cst_145 = arith.constant 0.000000e+00 : f32
    %78 = vector.broadcast %cst_145 : f32 to vector<1x16x128xf32>
    %c0_146 = arith.constant 0 : index
    %c0_147 = arith.constant 0 : index
    %c256_148 = arith.constant 256 : index
    %79 = vector.load %arg9[%c0_146, %c0_147, %c256_148] : memref<16x16x1280xf32, #tpu.memory_space<vmem>>, vector<1x16x128xf32>
    tpu.vector_store %arg9[%c0_146, %c0_147, %c256_148], %78 {strides = array<i32>} : memref<16x16x1280xf32, #tpu.memory_space<vmem>>, vector<1x16x128xf32>,
    %cst_149 = arith.constant 0.000000e+00 : f32
    %80 = vector.broadcast %cst_149 : f32 to vector<16x1x128xf32>
    %c0_150 = arith.constant 0 : index
    %c15_151 = arith.constant 15 : index
    %c256_152 = arith.constant 256 : index
    %81 = vector.load %arg9[%c0_150, %c15_151, %c256_152] : memref<16x16x1280xf32, #tpu.memory_space<vmem>>, vector<16x1x128xf32>
    tpu.vector_store %arg9[%c0_150, %c15_151, %c256_152], %80 {strides = array<i32>} : memref<16x16x1280xf32, #tpu.memory_space<vmem>>, vector<16x1x128xf32>,
    %c0_153 = arith.constant 0 : index
    %c0_154 = arith.constant 0 : index
    %c0_155 = arith.constant 0 : index
    %c0_156 = arith.constant 0 : index
    %82 = vector.load %arg8[%c0_153, %c0_154, %c0_155, %c0_156] : memref<1x16x16x128xf32, #tpu.memory_space<vmem>>, vector<1x16x15x128xf32>
    %83 = vector.shape_cast %82 : vector<1x16x15x128xf32> to vector<16x15x128xf32>
    %c0_157 = arith.constant 0 : index
    %c1_158 = arith.constant 1 : index
    %c384_159 = arith.constant 384 : index
    %84 = vector.load %arg9[%c0_157, %c1_158, %c384_159] : memref<16x16x1280xf32, #tpu.memory_space<vmem>>, vector<16x15x128xf32>
    tpu.vector_store %arg9[%c0_157, %c1_158, %c384_159], %83 {strides = array<i32>} : memref<16x16x1280xf32, #tpu.memory_space<vmem>>, vector<16x15x128xf32>,
    %cst_160 = arith.constant 0.000000e+00 : f32
    %85 = vector.broadcast %cst_160 : f32 to vector<16x1x128xf32>
    %c0_161 = arith.constant 0 : index
    %c0_162 = arith.constant 0 : index
    %c384_163 = arith.constant 384 : index
    %86 = vector.load %arg9[%c0_161, %c0_162, %c384_163] : memref<16x16x1280xf32, #tpu.memory_space<vmem>>, vector<16x1x128xf32>
    tpu.vector_store %arg9[%c0_161, %c0_162, %c384_163], %85 {strides = array<i32>} : memref<16x16x1280xf32, #tpu.memory_space<vmem>>, vector<16x1x128xf32>,
    %c0_164 = arith.constant 0 : index
    %c0_165 = arith.constant 0 : index
    %c0_166 = arith.constant 0 : index
    %c0_167 = arith.constant 0 : index
    %87 = vector.load %arg8[%c0_164, %c0_165, %c0_166, %c0_167] : memref<1x16x16x128xf32, #tpu.memory_space<vmem>>, vector<1x16x16x128xf32>
    %88 = vector.shape_cast %87 : vector<1x16x16x128xf32> to vector<16x16x128xf32>
    %c0_168 = arith.constant 0 : index
    %c0_169 = arith.constant 0 : index
    %c512_170 = arith.constant 512 : index
    %89 = vector.load %arg9[%c0_168, %c0_169, %c512_170] : memref<16x16x1280xf32, #tpu.memory_space<vmem>>, vector<16x16x128xf32>
    tpu.vector_store %arg9[%c0_168, %c0_169, %c512_170], %88 {strides = array<i32>} : memref<16x16x1280xf32, #tpu.memory_space<vmem>>, vector<16x16x128xf32>,
    %c0_171 = arith.constant 0 : index
    %c0_172 = arith.constant 0 : index
    %c1_173 = arith.constant 1 : index
    %c0_174 = arith.constant 0 : index
    %90 = vector.load %arg8[%c0_171, %c0_172, %c1_173, %c0_174] : memref<1x16x16x128xf32, #tpu.memory_space<vmem>>, vector<1x16x15x128xf32>
    %91 = vector.shape_cast %90 : vector<1x16x15x128xf32> to vector<16x15x128xf32>
    %c0_175 = arith.constant 0 : index
    %c0_176 = arith.constant 0 : index
    %c640_177 = arith.constant 640 : index
    %92 = vector.load %arg9[%c0_175, %c0_176, %c640_177] : memref<16x16x1280xf32, #tpu.memory_space<vmem>>, vector<16x15x128xf32>
    tpu.vector_store %arg9[%c0_175, %c0_176, %c640_177], %91 {strides = array<i32>} : memref<16x16x1280xf32, #tpu.memory_space<vmem>>, vector<16x15x128xf32>,
    %cst_178 = arith.constant 0.000000e+00 : f32
    %93 = vector.broadcast %cst_178 : f32 to vector<16x1x128xf32>
    %c0_179 = arith.constant 0 : index
    %c15_180 = arith.constant 15 : index
    %c640_181 = arith.constant 640 : index
    %94 = vector.load %arg9[%c0_179, %c15_180, %c640_181] : memref<16x16x1280xf32, #tpu.memory_space<vmem>>, vector<16x1x128xf32>
    tpu.vector_store %arg9[%c0_179, %c15_180, %c640_181], %93 {strides = array<i32>} : memref<16x16x1280xf32, #tpu.memory_space<vmem>>, vector<16x1x128xf32>,
    %c0_182 = arith.constant 0 : index
    %c1_183 = arith.constant 1 : index
    %c0_184 = arith.constant 0 : index
    %c0_185 = arith.constant 0 : index
    %95 = vector.load %arg8[%c0_182, %c1_183, %c0_184, %c0_185] : memref<1x16x16x128xf32, #tpu.memory_space<vmem>>, vector<1x15x15x128xf32>
    %96 = vector.shape_cast %95 : vector<1x15x15x128xf32> to vector<15x15x128xf32>
    %c0_186 = arith.constant 0 : index
    %c1_187 = arith.constant 1 : index
    %c768_188 = arith.constant 768 : index
    %97 = vector.load %arg9[%c0_186, %c1_187, %c768_188] : memref<16x16x1280xf32, #tpu.memory_space<vmem>>, vector<15x15x128xf32>
    tpu.vector_store %arg9[%c0_186, %c1_187, %c768_188], %96 {strides = array<i32>} : memref<16x16x1280xf32, #tpu.memory_space<vmem>>, vector<15x15x128xf32>,
    %cst_189 = arith.constant 0.000000e+00 : f32
    %98 = vector.broadcast %cst_189 : f32 to vector<1x16x128xf32>
    %c15_190 = arith.constant 15 : index
    %c0_191 = arith.constant 0 : index
    %c768_192 = arith.constant 768 : index
    %99 = vector.load %arg9[%c15_190, %c0_191, %c768_192] : memref<16x16x1280xf32, #tpu.memory_space<vmem>>, vector<1x16x128xf32>
    tpu.vector_store %arg9[%c15_190, %c0_191, %c768_192], %98 {strides = array<i32>} : memref<16x16x1280xf32, #tpu.memory_space<vmem>>, vector<1x16x128xf32>,
    %cst_193 = arith.constant 0.000000e+00 : f32
    %100 = vector.broadcast %cst_193 : f32 to vector<16x1x128xf32>
    %c0_194 = arith.constant 0 : index
    %c0_195 = arith.constant 0 : index
    %c768_196 = arith.constant 768 : index
    %101 = vector.load %arg9[%c0_194, %c0_195, %c768_196] : memref<16x16x1280xf32, #tpu.memory_space<vmem>>, vector<16x1x128xf32>
    tpu.vector_store %arg9[%c0_194, %c0_195, %c768_196], %100 {strides = array<i32>} : memref<16x16x1280xf32, #tpu.memory_space<vmem>>, vector<16x1x128xf32>,
    %c0_197 = arith.constant 0 : index
    %c1_198 = arith.constant 1 : index
    %c0_199 = arith.constant 0 : index
    %c0_200 = arith.constant 0 : index
    %102 = vector.load %arg8[%c0_197, %c1_198, %c0_199, %c0_200] : memref<1x16x16x128xf32, #tpu.memory_space<vmem>>, vector<1x15x16x128xf32>
    %103 = vector.shape_cast %102 : vector<1x15x16x128xf32> to vector<15x16x128xf32>
    %c0_201 = arith.constant 0 : index
    %c0_202 = arith.constant 0 : index
    %c896_203 = arith.constant 896 : index
    %104 = vector.load %arg9[%c0_201, %c0_202, %c896_203] : memref<16x16x1280xf32, #tpu.memory_space<vmem>>, vector<15x16x128xf32>
    tpu.vector_store %arg9[%c0_201, %c0_202, %c896_203], %103 {strides = array<i32>} : memref<16x16x1280xf32, #tpu.memory_space<vmem>>, vector<15x16x128xf32>,
    %cst_204 = arith.constant 0.000000e+00 : f32
    %105 = vector.broadcast %cst_204 : f32 to vector<1x16x128xf32>
    %c15_205 = arith.constant 15 : index
    %c0_206 = arith.constant 0 : index
    %c896_207 = arith.constant 896 : index
    %106 = vector.load %arg9[%c15_205, %c0_206, %c896_207] : memref<16x16x1280xf32, #tpu.memory_space<vmem>>, vector<1x16x128xf32>
    tpu.vector_store %arg9[%c15_205, %c0_206, %c896_207], %105 {strides = array<i32>} : memref<16x16x1280xf32, #tpu.memory_space<vmem>>, vector<1x16x128xf32>,
    %c0_208 = arith.constant 0 : index
    %c1_209 = arith.constant 1 : index
    %c1_210 = arith.constant 1 : index
    %c0_211 = arith.constant 0 : index
    %107 = vector.load %arg8[%c0_208, %c1_209, %c1_210, %c0_211] : memref<1x16x16x128xf32, #tpu.memory_space<vmem>>, vector<1x15x15x128xf32>
    %108 = vector.shape_cast %107 : vector<1x15x15x128xf32> to vector<15x15x128xf32>
    %c0_212 = arith.constant 0 : index
    %c0_213 = arith.constant 0 : index
    %c1024_214 = arith.constant 1024 : index
    %109 = vector.load %arg9[%c0_212, %c0_213, %c1024_214] : memref<16x16x1280xf32, #tpu.memory_space<vmem>>, vector<15x15x128xf32>
    tpu.vector_store %arg9[%c0_212, %c0_213, %c1024_214], %108 {strides = array<i32>} : memref<16x16x1280xf32, #tpu.memory_space<vmem>>, vector<15x15x128xf32>,
    %cst_215 = arith.constant 0.000000e+00 : f32
    %110 = vector.broadcast %cst_215 : f32 to vector<1x16x128xf32>
    %c15_216 = arith.constant 15 : index
    %c0_217 = arith.constant 0 : index
    %c1024_218 = arith.constant 1024 : index
    %111 = vector.load %arg9[%c15_216, %c0_217, %c1024_218] : memref<16x16x1280xf32, #tpu.memory_space<vmem>>, vector<1x16x128xf32>
    tpu.vector_store %arg9[%c15_216, %c0_217, %c1024_218], %110 {strides = array<i32>} : memref<16x16x1280xf32, #tpu.memory_space<vmem>>, vector<1x16x128xf32>,
    %cst_219 = arith.constant 0.000000e+00 : f32
    %112 = vector.broadcast %cst_219 : f32 to vector<16x1x128xf32>
    %c0_220 = arith.constant 0 : index
    %c15_221 = arith.constant 15 : index
    %c1024_222 = arith.constant 1024 : index
    %113 = vector.load %arg9[%c0_220, %c15_221, %c1024_222] : memref<16x16x1280xf32, #tpu.memory_space<vmem>>, vector<16x1x128xf32>
    tpu.vector_store %arg9[%c0_220, %c15_221, %c1024_222], %112 {strides = array<i32>} : memref<16x16x1280xf32, #tpu.memory_space<vmem>>, vector<16x1x128xf32>,
    %c0_223 = arith.constant 0 : index
    %c0_224 = arith.constant 0 : index
    %c0_225 = arith.constant 0 : index
    %c0_226 = arith.constant 0 : index
    %114 = vector.load %arg1[%c0_223, %c0_224, %c0_225, %c0_226] : memref<1x16x16x128xf32, #tpu.memory_space<vmem>>, vector<1x16x16x128xf32>
    %115 = vector.shape_cast %114 : vector<1x16x16x128xf32> to vector<16x16x128xf32>
    %c0_227 = arith.constant 0 : index
    %c0_228 = arith.constant 0 : index
    %c1152 = arith.constant 1152 : index
    %116 = vector.load %arg9[%c0_227, %c0_228, %c1152] : memref<16x16x1280xf32, #tpu.memory_space<vmem>>, vector<16x16x128xf32>
    tpu.vector_store %arg9[%c0_227, %c0_228, %c1152], %115 {strides = array<i32>} : memref<16x16x1280xf32, #tpu.memory_space<vmem>>, vector<16x16x128xf32>,
    %c0_229 = arith.constant 0 : index
    %c0_230 = arith.constant 0 : index
    %c0_231 = arith.constant 0 : index
    %117 = vector.load %arg9[%c0_229, %c0_230, %c0_231] : memref<16x16x1280xf32, #tpu.memory_space<vmem>>, vector<16x16x1280xf32>
    %118 = vector.shape_cast %117 : vector<16x16x1280xf32> to vector<256x1280xf32>
    %119 = arith.truncf %118 : vector<256x1280xf32> to vector<256x1280xbf16>
    %c0_232 = arith.constant 0 : index
    %c0_233 = arith.constant 0 : index
    %120 = vector.load %arg4[%c0_232, %c0_233] : memref<1280x128xbf16, #tpu.memory_space<vmem>>, vector<1280x128xbf16>
    %cst_234 = arith.constant dense<0.000000e+00> : vector<256x128xf32>
    %121 = tpu.matmul %119, %120, %cst_234 {dimension_numbers = #tpu.dot_dimension_numbers<[1], [0], [0], [1], [0, 0, 1, 1], [], []>} : vector<256x1280xbf16>, vector<1280x128xbf16>, vector<256x128xf32> -> vector<256x128xf32>
    %c0_235 = arith.constant 0 : index
    %c0_236 = arith.constant 0 : index
    %122 = vector.load %arg5[%c0_235, %c0_236] : memref<1x128xf32, #tpu.memory_space<vmem>>, vector<1x128xf32>
    %123 = vector.broadcast %122 : vector<1x128xf32> to vector<256x128xf32>
    %124 = arith.addf %121, %123 : vector<256x128xf32>
    %cst_237 = arith.constant 0.000000e+00 : f32
    %125 = vector.broadcast %cst_237 : f32 to vector<256x128xf32>
    %126 = arith.maximumf %124, %125 : vector<256x128xf32>
    %127 = vector.shape_cast %126 : vector<256x128xf32> to vector<1x16x16x128xf32>
    %c0_238 = arith.constant 0 : index
    %c0_239 = arith.constant 0 : index
    %c0_240 = arith.constant 0 : index
    %c0_241 = arith.constant 0 : index
    %128 = vector.load %arg6[%c0_238, %c0_239, %c0_240, %c0_241] : memref<1x16x16x128xf32, #tpu.memory_space<vmem>>, vector<1x16x16x128xf32>
    tpu.vector_store %arg6[%c0_238, %c0_239, %c0_240, %c0_241], %127 {strides = array<i32>} : memref<1x16x16x128xf32, #tpu.memory_space<vmem>>, vector<1x16x16x128xf32>,
    return
  }
  func.func @transform_0(%arg0: i32) -> (i32, i32, i32, i32) {
    %c0_i32 = arith.constant 0 : i32
    %c0_i32_0 = arith.constant 0 : i32
    %c0_i32_1 = arith.constant 0 : i32
    %c0_i32_2 = arith.constant 0 : i32
    return %arg0, %c0_i32, %c0_i32_0, %c0_i32_1 : i32, i32, i32, i32
  }
  func.func @transform_1(%arg0: i32) -> (i32, i32) {
    %c0_i32 = arith.constant 0 : i32
    %c0_i32_0 = arith.constant 0 : i32
    %c0_i32_1 = arith.constant 0 : i32
    return %c0_i32, %c0_i32_0 : i32, i32
  }
  func.func @transform_2(%arg0: i32) -> (i32, i32) {
    %c0_i32 = arith.constant 0 : i32
    %c0_i32_0 = arith.constant 0 : i32
    %c0_i32_1 = arith.constant 0 : i32
    return %c0_i32, %c0_i32_0 : i32, i32
  }
  func.func @transform_3(%arg0: i32) -> (i32, i32) {
    %c0_i32 = arith.constant 0 : i32
    %c0_i32_0 = arith.constant 0 : i32
    %c0_i32_1 = arith.constant 0 : i32
    return %c0_i32, %c0_i32_0 : i32, i32
  }
  func.func @transform_4(%arg0: i32) -> (i32, i32) {
    %c0_i32 = arith.constant 0 : i32
    %c0_i32_0 = arith.constant 0 : i32
    %c0_i32_1 = arith.constant 0 : i32
    return %c0_i32, %c0_i32_0 : i32, i32
  }
  func.func @transform_5(%arg0: i32) -> (i32, i32, i32, i32) {
    %c0_i32 = arith.constant 0 : i32
    %c0_i32_0 = arith.constant 0 : i32
    %c0_i32_1 = arith.constant 0 : i32
    %c0_i32_2 = arith.constant 0 : i32
    return %arg0, %c0_i32, %c0_i32_0, %c0_i32_1 : i32, i32, i32, i32
  }
}

</mosaic_0001>

<bundles_post_ra>
// kernel: tpu_custom_call.1
= control target key start
LH: loop header
LB: loop body
LE: loop exit
PB: predicated region body
PF: predicated region fallthrough
CT: control target
= control target key end

     0   :  { %10 = vsyncpa [#allocation6], 0  ;;  %s10589_s0 = inlined_call_operand.hbm [shape: f32[2,16,16,128], index: 0, kind: input, shape index: {}]   ;;  %s10590_s1 = inlined_call_operand.hbm [shape: bf16[1152,128], index: 1, kind: input, shape index: {}]   ;;  %s10591_s2 = inlined_call_operand.vmem [shape: f32[1,128], index: 2, kind: input, shape index: {}]   ;;  %s10592_s3 = inlined_call_operand.hbm [shape: bf16[1280,128], index: 3, kind: input, shape index: {}]   ;;  %s10593_s4 = inlined_call_operand.vmem [shape: f32[1,128], index: 4, kind: input, shape index: {}]   ;;  %s10594_s5 = inlined_call_operand.hbm [shape: f32[2,16,16,128], index: 5, kind: output, shape index: {}]  }
   0x1   :  { %12 = vsyncpa [#allocation6 + $0x1], 0 }
   0x2   :  { %13 = vsyncpa [#allocation9], 0 }
   0x3   :  { %14 = vsyncpa [#allocation7], 0 }
   0x4   :  { %16 = vsyncpa [#allocation7 + $0x1], 0  ;;  %s8102_s18 = smov 0   ;;  %s8104_s19 = smov 0  }
   0x5   :  { %s8106_s20 = smov 0   ;;  %s8108_s21 = smov 0  }
   0x6 LB: > { %s8123_s22 = sadd.s32 4294967295, %s8058_s21   ;;  %s6294_s23 = sadd.s32 4294967294, %s8058_s21   ;;  %s8058_s21 = sphi %s8108_s21, %s10630_s21   ;;  %s8054_s20 = sphi %s8106_s20, %s10629_s20   ;;  %s8050_s19 = sphi %s8104_s19, %s10628_s19   ;;  %s8046_s18 = sphi %s8102_s18, %s10627_s18  }
   0x7   : > { %p42_p0 = scmp.ne.s32.totalorder %s8050_s19, %s8046_s18  ;;  %p10595_p1 = scmp.eq.s32.totalorder %s8123_s22, 0 }
   0x8   : > { %p156_p3 = scmp.eq.s32.totalorder %s6294_s23, 1  ;;  %p6295_p5 = scmp.ge.s32.totalorder %s8058_s21, 1 }
   0x9   : > { %p8132_p4 = por %p10595_p1, %p42_p0  ;;  %p163_p7 = scmp.lt.s32.totalorder %s8058_s21, 3 }
   0xa   : > { %p8137_p6 = por %p156_p3, %p42_p0  ;;  %s8060_s27 = smov [#allocation8]  }
   0xb   : > { %s10598_s24 = scalar_select %p8132_p4, 1, 0 }
   0xc   : > { %s10599_s25 = scalar_select %p8137_p6, 1, 0 }
   0xd   : > { %p8142_p8 = pnand %p6295_p5, %p163_p7  ;;  %s175_s28 = sshll.u32 %s8060_s27, 4  ;;  %s8146_s28 = int_to_ptr.vmem [resolvable:$true] %s175_s28 }
   0xe   : > { %s8061_s30 = smov [#allocation10]   ;;  %s7902_s9 = scalar_lea.hbm %s10590_s1, 9216 }
   0xf   : > { %p7666_p9 = pneg %p8142_p8  ;;  %s191_s6 = sshll.u32 %s8061_s30, 4  ;;  %s8157_s6 = int_to_ptr.vmem [resolvable:$true] %s191_s6 }
  0x10   : > { %p7903_p12 = scmp.ne.s32.totalorder %s10590_s1, %s7902_s9  ;;  %p7909_p5 = scmp.lt.u32.totalorder %s7902_s9, %s10590_s1 }
  0x11   : > { %p8153_p11 = pnand %p7666_p9, %p10595_p1 }
  0x13   : > { %p7904_p13 = pneg %p8153_p11 }
  0x15   : > { %p7905_p0 = pnand %p7904_p13, %p7903_p12 }
  0x17   : > { %p7906_p3 = pneg %p7905_p0 }
  0x19   : > { %p7911_p7 = pnand %p7909_p5, %p7906_p3 }
  0x1b   : > { %7914 = shalt.err (!%p7911_p7)
}
  0x1c   : > { %s7915_s14 = scalar_lea.vmem %s8146_s28, 9216  ;;  %p7923_p2 = scmp.lt.s32.totalorder %s8146_s28, %s8146_s28 }
  0x1d   : > { %p7916_p9 = scmp.ne.s32.totalorder %s8146_s28, %s7915_s14  ;;  %p7924_p12 = scmp.lt.s32.totalorder %s7915_s14, %s7915_s14 }
  0x1f   : > { %p7918_p10 = pnand %p7916_p9, %p7904_p13  ;;  %p7925_p0 = por %p7924_p12, %p7923_p2 }
  0x21   : > { %p7919_p1 = pneg %p7918_p10 }
  0x23   : > { %p7926_p6 = pnand %p7925_p0, %p7919_p1 }
  0x25   : > { %7929 = shalt.err (!%p7926_p6)
}
  0x26   : > { %s8062_s15 = smov 64   ;;  %s8063_s16 = smov 4  }
  0x27   : > { %7669 = dma.hbm_to_vmem [thread:$0]  (!%p8153_p11), %s10590_s1, 9216, %s8146_s28, [#allocation9], %s8062_s15, %s8062_s15, %s8063_s16  }
  0x28   : > { %s7930_s7 = scalar_lea.hbm %s10592_s3, 10240 }
  0x29   : > { %p7931_p2 = scmp.ne.s32.totalorder %s10592_s3, %s7930_s7  ;;  %p7937_p10 = scmp.lt.u32.totalorder %s7930_s7, %s10592_s3 }
  0x2b   : > { %p7933_p1 = pnand %p7931_p2, %p7904_p13 }
  0x2d   : > { %p7934_p6 = pneg %p7933_p1 }
  0x2f   : > { %p7939_p3 = pnand %p7937_p10, %p7934_p6 }
  0x31   : > { %7942 = shalt.err (!%p7939_p3)
}
  0x32   : > { %s7943_s28 = scalar_lea.vmem %s8157_s6, 10240  ;;  %p7951_p12 = scmp.lt.s32.totalorder %s8157_s6, %s8157_s6 }
  0x33   : > { %p7944_p5 = scmp.ne.s32.totalorder %s8157_s6, %s7943_s28  ;;  %p7952_p0 = scmp.lt.s32.totalorder %s7943_s28, %s7943_s28 }
  0x35   : > { %p7946_p7 = pnand %p7944_p5, %p7904_p13  ;;  %p7953_p2 = por %p7952_p0, %p7951_p12 }
  0x37   : > { %p7947_p9 = pneg %p7946_p7 }
  0x39   : > { %p7954_p1 = pnand %p7953_p2, %p7947_p9 }
  0x3b   : > { %7957 = shalt.err (!%p7954_p1)
}
  0x3c   : > { %7672 = dma.hbm_to_vmem [thread:$0]  (!%p8153_p11), %s10592_s3, 10240, %s8157_s6, [#allocation9], %s8062_s15, %s8062_s15, %s8063_s16  }
  0x3d   : > { %s8212_s14 = sadd.s32 1, %s8058_s21   ;;  %s29_s29 = sadd.s32 1, %s8054_s20 }
  0x3e   : > { %s26_s17 = ssub.s32 %s8058_s21, %s8212_s14  ;;  %p36_p13 = scmp.ne.s32.totalorder %s8054_s20, %s8050_s19 }
  0x3f   : > { %p27_p6 = scmp.eq.s32.totalorder %s26_s17, 0  ;;  %p37_p10 = scmp.eq.s32.totalorder %s8058_s21, 0 }
  0x40   : > { %p10602_p3 = scmp.eq.s32.totalorder %s8123_s22, 1  ;;  %p7683_p7 = scmp.lt.s32.totalorder %s8058_s21, 2 }
  0x41   : > { %s8228_s27 = scalar_select %p27_p6, %s8054_s20, %s29_s29  }
  0x42   : > { %p8222_p5 = por %p10602_p3, %p36_p13  ;;  %p38_p9 = por %p37_p10, %p36_p13 }
  0x43   : > { %s208_s30 = sand.u32 1, %s8054_s20   ;;  %s6556_s6 = sshll.u32 %s8058_s21, 12 }
  0x44   : > { %s10603_s23 = scalar_select %p8222_p5, 1, 0 }
  0x45   : > { %s6299_s7 = sshll.u32 %s208_s30, 8  ;;  %s8235_s8 = scalar_lea.hbm %s10589_s0, %s6556_s6 }
  0x46   : > { %s212_s9 = scalar_lea.vmem [#allocation5], %s6299_s7  ;;  %p8239_p11 = pnand %p7683_p7, %p38_p9 }
  0x47   : > { %s219_s10 = sshll.u32 %s212_s9, 4  ;;  %s8243_s28 = scalar_lea.sflag [#allocation6], %s208_s30  ;;  %s8237_s10 = int_to_ptr.vmem [resolvable:$true] %s219_s10 }
  0x48   : > { %s7958_s12 = scalar_lea.hbm %s8235_s8, 4096  ;;  %p7960_p0 = pneg %p8239_p11 }
  0x49   : > { %p7959_p12 = scmp.ne.s32.totalorder %s8235_s8, %s7958_s12  ;;  %s7963_s17 = scalar_lea.hbm %s10589_s0, 8192 }
  0x4a   : > { %p7964_p13 = scmp.lt.u32.totalorder %s8235_s8, %s10589_s0  ;;  %p7965_p6 = scmp.lt.u32.totalorder %s7963_s17, %s7958_s12 }
  0x4b   : > { %p7961_p2 = pnand %p7960_p0, %p7959_p12  ;;  %p7967_p3 = scmp.lt.u32.totalorder %s7958_s12, %s8235_s8 }
  0x4c   : > { %p7966_p10 = por %p7965_p6, %p7964_p13 }
  0x4d   : > { %p7962_p1 = pneg %p7961_p2 }
  0x4e   : > { %p7968_p7 = por %p7967_p3, %p7966_p10 }
  0x50   : > { %p7969_p9 = pnand %p7968_p7, %p7962_p1 }
  0x52   : > { %7972 = shalt.err (!%p7969_p9)
}
  0x53   : > { %s7973_s30 = scalar_lea.vmem %s8237_s10, 4096  ;;  %s8064_s15 = smov [#allocation5]  }
  0x54   : > { %p7974_p12 = scmp.ne.s32.totalorder %s8237_s10, %s7973_s30  ;;  %s7978_s16 = sshll.u32 %s8064_s15, 4  ;;  %s7979_s16 = int_to_ptr.vmem [resolvable:$false] %s7978_s16 }
  0x55   : > { %s7980_s9 = scalar_lea.vmem %s7979_s16, 8192  ;;  %p7981_p4 = scmp.lt.s32.totalorder %s8237_s10, %s7979_s16 }
  0x56   : > { %p7976_p2 = pnand %p7974_p12, %p7960_p0  ;;  %p7982_p13 = scmp.lt.s32.totalorder %s7980_s9, %s7973_s30 }
  0x58   : > { %p7977_p5 = pneg %p7976_p2  ;;  %p7983_p6 = por %p7982_p13, %p7981_p4 }
  0x5a   : > { %p7984_p10 = pnand %p7983_p6, %p7977_p5 }
  0x5c   : > { %7987 = shalt.err (!%p7984_p10)
}
  0x5d   : > { %s8065_s12 = smov 128   ;;  %s8066_s13 = smov 8  }
  0x5e   : > { %7676 = dma.hbm_to_vmem [thread:$0]  (!%p8239_p11), %s8235_s8, 4096, %s8237_s10, %s8243_s28, %s8065_s12, %s8065_s12, %s8066_s13  }
  0x5f   : > { %231 = sbr.rel (%p8142_p8) target bundleno = 1385 (0x569), region = 40  ;;  %s8274_s29 = sand.u32 (!%p8142_p8), 1, %s8050_s19  }
  0x60   : > { %s6303_s17 = sshll.u32 (!%p8142_p8), %s8274_s29, 8  ;;  %s234_s7 = scalar_lea.sflag (!%p8142_p8), [#allocation6], %s8274_s29 }
  0x61   : > { %s8280_s6 = scalar_lea.vmem (!%p8142_p8), [#allocation5], %s6303_s17  ;;  %p10605_p4 = scmp.ne.s32.totalorder (!%p8142_p8), %s10598_s24, 0 }
  0x66   : > { %8033 = dma.done.wait (%p10605_p4), %s234_s7, 4096  }
  0x67   : > { %8035 = vsyncadd (%p10605_p4), %s234_s7, 4294963200  ;;  %p10606_p5 = scmp.eq.s32.totalorder %s8123_s22, 0 }
  0x69   : > { %8037 = dma.done.wait (%p10606_p5), [#allocation9], 19456   ;;  %p10607_p8 = pmov %p10606_p5 }
  0x6a   : > { %v8067_v0 = vmov 0.0   ;;  %v8068_v1 = vmov 0.0|0.0   ;;  %v7728_v2 = vld [vmem:[#allocation8 + $0x40] sm:$0xff]   ;;  %v7730_v4 = vld [vmem:[#allocation8 + $0x48] sm:$0xff]   ;;  %v7732_v6 = vld [vmem:[#allocation8 + $0x50] sm:$0xff]   ;;  %vm333_vm0 = vcmask 1040384  }
  0x6b   : > { %8039 = vsyncadd (%p10607_p8), [#allocation9], 4294947840  ;;  %518 = vst [vmem:[#allocation2 + $0x8] sm:$0xff] %v8067_v0  ;;  %2306 = vmatprep.mubr.bf16.mxu0 %v8068_v1  ;;  %v7729_v3 = vld [vmem:[#allocation8] sm:$0xff]   ;;  %6558 = vmatprep.subr.bf16.mxu0 %v7728_v2  ;;  %v7731_v5 = vld [vmem:[#allocation8 + $0x8] sm:$0xff]   ;;  %s10472_s11 = scalar_lea.vmem [#allocation11], %s6303_s17 }
  0x6c   : > { %440 = vst [vmem:[#allocation2] sm:$0xff] %v8067_v0  ;;  %443 = vst [vmem:[#allocation2 + $0x90] sm:$0x1] %v8067_v0  ;;  %6559 = vmatpush3.bf16.msra.mxu0 %v7729_v3  ;;  %v7733_v7 = vld [vmem:[#allocation8 + $0x10] sm:$0xff]   ;;  %v7734_v8 = vld [vmem:[#allocation8 + $0x58] sm:$0xff]   ;;  %s6557_s28 = sshll.u32 %s8123_s22, 12 }
  0x6d   : > { %444 = vst [vmem:[#allocation2 + $0x120] sm:$0x1] %v8067_v0  ;;  %445 = vst [vmem:[#allocation2 + $0x1b0] sm:$0x1] %v8067_v0  ;;  %6560 = vmatprep.subr.bf16.mxu0 %v7730_v4  ;;  %v7735_v9 = vld [vmem:[#allocation8 + $0x18] sm:$0xff]   ;;  %v7736_v10 = vld [vmem:[#allocation8 + $0x60] sm:$0xff]   ;;  %s10541_s9 = scalar_lea.hbm %s10594_s5, %s6557_s28 }
  0x6e   : > { %446 = vst [vmem:[#allocation2 + $0x240] sm:$0x1] %v8067_v0  ;;  %447 = vst [vmem:[#allocation2 + $0x2d0] sm:$0x1] %v8067_v0  ;;  %v7737_v11 = vld [vmem:[#allocation8 + $0x20] sm:$0xff]   ;;  %v7738_v12 = vld [vmem:[#allocation8 + $0x68] sm:$0xff]  }
  0x6f   : > { %448 = vst [vmem:[#allocation2 + $0x360] sm:$0x1] %v8067_v0  ;;  %449 = vst [vmem:[#allocation2 + $0x3f0] sm:$0x1] %v8067_v0  ;;  %v7739_v13 = vld [vmem:[#allocation8 + $0x28] sm:$0xff]   ;;  %v7744_v14 = vld [vmem:[#allocation8 + $0xc0] sm:$0xff]  }
  0x70   : > { %450 = vst [vmem:[#allocation2 + $0x480] sm:$0x1] %v8067_v0  ;;  %451 = vst [vmem:[#allocation2 + $0x510] sm:$0x1] %v8067_v0  ;;  %6561 = vmatpush3.bf16.msra.mxu0 %v7731_v5  ;;  %v7740_v15 = vld [vmem:[#allocation8 + $0x70] sm:$0xff]   ;;  %v7745_v16 = vld [vmem:[#allocation8 + $0x80] sm:$0xff]   ;;  %7638 = vmatprep.subr.bf16.mxu1 %v7744_v14 }
  0x71   : > { %452 = vst [vmem:[#allocation2 + $0x5a0] sm:$0x1] %v8067_v0  ;;  %453 = vst [vmem:[#allocation2 + $0x630] sm:$0x1] %v8067_v0  ;;  %6562 = vmatprep.subr.bf16.mxu0 %v7732_v6  ;;  %v7746_v17 = vld [vmem:[#allocation8 + $0xc8] sm:$0xff]   ;;  %v458_v18 = vld [vmem:[%s8280_s6] sm:$0xff]  ;;  %7646 = vmatpush3.bf16.msra.mxu1 %v7745_v16 }
  0x72   : > { %454 = vst [vmem:[#allocation2 + $0x6c0] sm:$0x1] %v8067_v0  ;;  %455 = vst [vmem:[#allocation2 + $0x750] sm:$0x1] %v8067_v0  ;;  %v459_v19 = vld [vmem:[%s8280_s6 + $0x8] sm:$0xff]  ;;  %v334_v21 = vrot.slane %v458_v18, 7  ;;  %7639 = vmatprep.subr.bf16.mxu1 %v7746_v17 }
  0x73   : > { %456 = vst [vmem:[#allocation2 + $0x7e0] sm:$0x1] %v8067_v0  ;;  %457 = vst [vmem:[#allocation2 + $0x870] sm:$0x1] %v8067_v0  ;;  %v8493_v20 = vld [vmem:[#allocation8 + $0x88] sm:$0xff]   ;;  %v7741_v22 = vld [vmem:[#allocation8 + $0x30] sm:$0xff]   ;;  %v1557_v44 = vpack.c.bf16 %v459_v19, %v458_v18 }
  0x74   : > { %581 = vst [vmem:[#allocation2 + $0x58] sm:$0xff] %v8067_v0  ;;  %583 = vst [vmem:[#allocation2 + $0xef] sm:$0x1] %v8067_v0  ;;  %6563 = vmatpush3.bf16.msra.mxu0 %v7733_v7  ;;  %v274_v23 = vld [vmem:[%s8280_s6 + $0x8] sm:$0x7f]  ;;  %v8496_v25 = vld [vmem:[#allocation8 + $0xd0] sm:$0xff]  }
  0x75   : > { %584 = vst [vmem:[#allocation2 + $0x17f] sm:$0x1] %v8067_v0  ;;  %585 = vst [vmem:[#allocation2 + $0x20f] sm:$0x1] %v8067_v0  ;;  %6564 = vmatprep.subr.bf16.mxu0 %v7734_v8  ;;  %v335_v24 = vrot.slane %v274_v23, 7  ;;  %v7742_v26 = vld [vmem:[#allocation8 + $0x78] sm:$0xff]   ;;  %7647 = vmatpush3.bf16.msra.mxu1 %v8493_v20 }
  0x76   : > { %586 = vst [vmem:[#allocation2 + $0x29f] sm:$0x1] %v8067_v0  ;;  %587 = vst [vmem:[#allocation2 + $0x32f] sm:$0x1] %v8067_v0  ;;  %v8502_v28 = vld [vmem:[#allocation8 + $0x90] sm:$0xff]   ;;  %v8508_v30 = vld [vmem:[%s8280_s6 + $0x18] sm:$0xff]  ;;  %7640 = vmatprep.subr.bf16.mxu1 %v8496_v25 }
  0x77   : > { %588 = vst [vmem:[#allocation2 + $0x3bf] sm:$0x1] %v8067_v0  ;;  %589 = vst [vmem:[#allocation2 + $0x44f] sm:$0x1] %v8067_v0  ;;  %v8500_v27 = vsel %vm333_vm0, %v334_v21, %v335_v24  ;;  %v8505_v29 = vld [vmem:[%s8280_s6 + $0x10] sm:$0xff]  ;;  %v7743_v31 = vld [vmem:[#allocation8 + $0x38] sm:$0xff]  }
  0x78   : > { %590 = vst [vmem:[#allocation2 + $0x4df] sm:$0x1] %v8067_v0  ;;  %591 = vst [vmem:[#allocation2 + $0x56f] sm:$0x1] %v8067_v0  ;;  %6565 = vmatpush3.bf16.msra.mxu0 %v7735_v9  ;;  %v8511_v32 = vld [vmem:[#allocation8 + $0xd8] sm:$0xff]   ;;  %v337_v33 = vrot.slane %v8505_v29, 7  ;;  %v1566_v4 = vpack.c.bf16 %v8508_v30, %v8505_v29 }
  0x79   : > { %592 = vst [vmem:[#allocation2 + $0x5ff] sm:$0x1] %v8067_v0  ;;  %593 = vst [vmem:[#allocation2 + $0x68f] sm:$0x1] %v8067_v0  ;;  %6566 = vmatprep.subr.bf16.mxu0 %v7736_v10  ;;  %v276_v34 = vld [vmem:[%s8280_s6 + $0x18] sm:$0x7f]  ;;  %7648 = vmatpush3.bf16.msra.mxu1 %v8502_v28 }
  0x7a   : > { %594 = vst [vmem:[#allocation2 + $0x71f] sm:$0x1] %v8067_v0  ;;  %595 = vst [vmem:[#allocation2 + $0x7af] sm:$0x1] %v8067_v0  ;;  %v338_v36 = vrot.slane %v276_v34, 7  ;;  %v8516_v37 = vld [vmem:[#allocation8 + $0x98] sm:$0xff]   ;;  %7641 = vmatprep.subr.bf16.mxu1 %v8511_v32 }
  0x7b   : > { %596 = vst [vmem:[#allocation2 + $0x83f] sm:$0x1] %v8067_v0  ;;  %597 = vst [vmem:[#allocation2 + $0x8cf] sm:$0x1] %v8067_v0  ;;  %v8522_v39 = vld [vmem:[#allocation8 + $0xe0] sm:$0xff]   ;;  %v8529_v42 = vld [vmem:[%s8280_s6 + $0x28] sm:$0xff] }
  0x7c   : > { %774 = vst [vmem:[#allocation2 + $0x18] sm:$0x1] %v8067_v0  ;;  %775 = vst [vmem:[#allocation2 + $0xa8] sm:$0x1] %v8067_v0  ;;  %6567 = vmatpush3.bf16.msra.mxu0 %v7737_v11  ;;  %v8520_v38 = vsel %vm333_vm0, %v337_v33, %v338_v36  ;;  %v8525_v40 = vld [vmem:[%s8280_s6 + $0x20] sm:$0xff]  ;;  %v8537_v48 = vld [vmem:[#allocation8 + $0xe8] sm:$0xff]  }
  0x7d   : > { %776 = vst [vmem:[#allocation2 + $0x138] sm:$0x1] %v8067_v0  ;;  %777 = vst [vmem:[#allocation2 + $0x1c8] sm:$0x1] %v8067_v0  ;;  %6568 = vmatprep.subr.bf16.mxu0 %v7738_v12  ;;  %v340_v43 = vrot.slane %v8525_v40, 7  ;;  %7649 = vmatpush3.bf16.msra.mxu1 %v8516_v37  ;;  %v8534_v46 = vld [vmem:[#allocation8 + $0xa0] sm:$0xff]  }
  0x7e   : > { %778 = vst [vmem:[#allocation2 + $0x258] sm:$0x1] %v8067_v0  ;;  %779 = vst [vmem:[#allocation2 + $0x2e8] sm:$0x1] %v8067_v0  ;;  %v278_v45 = vld [vmem:[%s8280_s6 + $0x28] sm:$0x7f]  ;;  %7642 = vmatprep.subr.bf16.mxu1 %v8522_v39 }
  0x7f   : > { %780 = vst [vmem:[#allocation2 + $0x378] sm:$0x1] %v8067_v0  ;;  %781 = vst [vmem:[#allocation2 + $0x408] sm:$0x1] %v8067_v0  ;;  %v341_v47 = vrot.slane %v278_v45, 7  ;;  %v8539_v50 = vld [vmem:[#allocation8 + $0xa8] sm:$0xff]  }
  0x80   : > { %782 = vst [vmem:[#allocation2 + $0x498] sm:$0x1] %v8067_v0  ;;  %783 = vst [vmem:[#allocation2 + $0x528] sm:$0x1] %v8067_v0  ;;  %6569 = vmatpush3.bf16.msra.mxu0 %v7739_v13  ;;  %v8545_v52 = vld [vmem:[%s8280_s6 + $0x30] sm:$0xff]  ;;  %v8548_v53 = vld [vmem:[%s8280_s6 + $0x38] sm:$0xff] }
  0x81   : > { %784 = vst [vmem:[#allocation2 + $0x5b8] sm:$0x1] %v8067_v0  ;;  %785 = vst [vmem:[#allocation2 + $0x648] sm:$0x1] %v8067_v0  ;;  %6570 = vmatprep.subr.bf16.mxu0 %v7740_v15  ;;  %v8542_v51 = vsel %vm333_vm0, %v340_v43, %v341_v47  ;;  %7650 = vmatpush3.bf16.msra.mxu1 %v8534_v46  ;;  %v8551_v54 = vld [vmem:[#allocation8 + $0xf0] sm:$0xff]   ;;  %v343_v56 = vrot.slane %v8545_v52, 7 }
  0x82   : > { %786 = vst [vmem:[#allocation2 + $0x6d8] sm:$0x1] %v8067_v0  ;;  %787 = vst [vmem:[#allocation2 + $0x768] sm:$0x1] %v8067_v0  ;;  %v280_v55 = vld [vmem:[%s8280_s6 + $0x38] sm:$0x7f]  ;;  %7643 = vmatprep.subr.bf16.mxu1 %v8537_v48 }
  0x83   : > { %788 = vst [vmem:[#allocation2 + $0x7f8] sm:$0x1] %v8067_v0  ;;  %789 = vst [vmem:[#allocation2 + $0x888] sm:$0x1] %v8067_v0  ;;  %v344_v57 = vrot.slane %v280_v55, 7  ;;  %v8557_v58 = vld [vmem:[%s8280_s6 + $0x40] sm:$0xff] }
  0x84   : > { %918 = vst [vmem:[#allocation2 + $0x77] sm:$0x1] %v8067_v0  ;;  %919 = vst [vmem:[#allocation2 + $0x107] sm:$0x1] %v8067_v0  ;;  %6571 = vmatpush3.bf16.msra.mxu0 %v7741_v22  ;;  %v607_v59 = vld [vmem:[%s8280_s6 + $0x48] sm:$0x7f] }
  0x85   : > { %920 = vst [vmem:[#allocation2 + $0x197] sm:$0x1] %v8067_v0  ;;  %921 = vst [vmem:[#allocation2 + $0x227] sm:$0x1] %v8067_v0  ;;  %6572 = vmatprep.subr.bf16.mxu0 %v7742_v26  ;;  %v8561_v60 = vld [vmem:[%s8280_s6 + $0x31] sm:$0xff]  ;;  %v674_v63 = vrot.slane %v8557_v58, 7  ;;  %v8580_v6 = vsel %vm333_vm0, %v343_v56, %v344_v57  ;;  %7651 = vmatpush3.bf16.msra.mxu1 %v8539_v50 }
  0x86   : > { %922 = vst [vmem:[#allocation2 + $0x2b7] sm:$0x1] %v8067_v0  ;;  %923 = vst [vmem:[#allocation2 + $0x347] sm:$0x1] %v8067_v0  ;;  %v8564_v62 = vld [vmem:[#allocation8 + $0xb0] sm:$0xff]   ;;  %v8569_v2 = vld [vmem:[%s8280_s6 + $0x48] sm:$0xff]  ;;  %7644 = vmatprep.subr.bf16.mxu1 %v8551_v54 }
  0x87   : > { %924 = vst [vmem:[#allocation2 + $0x3d7] sm:$0x1] %v8067_v0  ;;  %925 = vst [vmem:[#allocation2 + $0x467] sm:$0x1] %v8067_v0  ;;  %v527_v1 = vld [vmem:[%s8280_s6 + $0x39] sm:$0x7f] }
  0x88   : > { %926 = vst [vmem:[#allocation2 + $0x4f7] sm:$0x1] %v8067_v0  ;;  %927 = vst [vmem:[#allocation2 + $0x587] sm:$0x1] %v8067_v0  ;;  %6573 = vmatpush3.bf16.msra.mxu0 %v7743_v31  ;;  %v8572_v3 = vld [vmem:[%s8280_s6 + $0x50] sm:$0xff]  ;;  %v8577_v5 = vld [vmem:[#allocation8 + $0xf8] sm:$0xff]  }
  0x89   : > { %928 = vst [vmem:[#allocation2 + $0x617] sm:$0x1] %v8067_v0  ;;  %929 = vst [vmem:[#allocation2 + $0x6a7] sm:$0x1] %v8067_v0  ;;  %6670 = vmatprep.subr.bf16.mxu0 %v7744_v14  ;;  %v282_v7 = vld [vmem:[%s8280_s6 + $0x48] sm:$0x7f]  ;;  %7652 = vmatpush3.bf16.msra.mxu1 %v8564_v62 }
  0x8a   : > { %930 = vst [vmem:[#allocation2 + $0x737] sm:$0x1] %v8067_v0  ;;  %931 = vst [vmem:[#allocation2 + $0x7c7] sm:$0x1] %v8067_v0  ;;  %v609_v8 = vld [vmem:[%s8280_s6 + $0x58] sm:$0x7f]  ;;  %7645 = vmatprep.subr.bf16.mxu1 %v8577_v5 }
  0x8b   : > { %932 = vst [vmem:[#allocation2 + $0x857] sm:$0x1] %v8067_v0  ;;  %933 = vst [vmem:[#allocation2 + $0x8e7] sm:$0x1] %v8067_v0  ;;  %v677_v9 = vrot.slane %v8572_v3, 7  ;;  %v347_v11 = vrot.slane %v282_v7, 7 }
  0x8c   : > { %1101 = vst [vmem:[#allocation2 + $0x8a0] sm:$0xff] %v8067_v0  ;;  %1103 = vst [vmem:[#allocation2 + $0x30] sm:$0x1] %v8067_v0  ;;  %v678_v12 = vrot.slane %v609_v8, 7  ;;  %v8591_v13 = vld [vmem:[%s8280_s6 + $0x41] sm:$0xff]  ;;  %v8595_v15 = vld [vmem:[%s8280_s6 + $0x58] sm:$0xff] }
  0x8d   : > { %1104 = vst [vmem:[#allocation2 + $0xc0] sm:$0x1] %v8067_v0  ;;  %1105 = vst [vmem:[#allocation2 + $0x150] sm:$0x1] %v8067_v0  ;;  %v529_v14 = vld [vmem:[%s8280_s6 + $0x49] sm:$0x7f] }
  0x8e   : > { %1106 = vst [vmem:[#allocation2 + $0x1e0] sm:$0x1] %v8067_v0  ;;  %1107 = vst [vmem:[#allocation2 + $0x270] sm:$0x1] %v8067_v0  ;;  %v8602_v18 = vld [vmem:[%s8280_s6 + $0x60] sm:$0xff]  ;;  %v8611_v22 = vsel %vm333_vm0, %v677_v9, %v678_v12  ;;  %v8624_v31 = vld [vmem:[%s8280_s6 + $0x70] sm:$0xff] }
  0x8f   : > { %1108 = vst [vmem:[#allocation2 + $0x300] sm:$0x1] %v8067_v0  ;;  %1109 = vst [vmem:[#allocation2 + $0x390] sm:$0x1] %v8067_v0  ;;  %v611_v19 = vld [vmem:[%s8280_s6 + $0x68] sm:$0x7f] }
  0x90   : > { %1110 = vst [vmem:[#allocation2 + $0x420] sm:$0x1] %v8067_v0  ;;  %1111 = vst [vmem:[#allocation2 + $0x4b0] sm:$0x1] %v8067_v0  ;;  %v680_v24 = vrot.slane %v8602_v18, 7  ;;  %v681_v29 = vrot.slane %v611_v19, 7 }
  0x91   : > { %1112 = vst [vmem:[#allocation2 + $0x540] sm:$0x1] %v8067_v0  ;;  %1113 = vst [vmem:[#allocation2 + $0x5d0] sm:$0x1] %v8067_v0  ;;  %v531_v26 = vld [vmem:[%s8280_s6 + $0x59] sm:$0x7f] }
  0x92   : > { %1114 = vst [vmem:[#allocation2 + $0x660] sm:$0x1] %v8067_v0  ;;  %1115 = vst [vmem:[#allocation2 + $0x6f0] sm:$0x1] %v8067_v0  ;;  %v286_v30 = vld [vmem:[%s8280_s6 + $0x68] sm:$0x7f] }
  0x93   : > { %1116 = vst [vmem:[#allocation2 + $0x780] sm:$0x1] %v8067_v0  ;;  %1117 = vst [vmem:[#allocation2 + $0x810] sm:$0x1] %v8067_v0  ;;  %v8642_v45 = vld [vmem:[%s8280_s6 + $0x78] sm:$0xff]  ;;  %v8681_v12 = vld [vmem:[%s8280_s6 + $0x90] sm:$0xff] }
  0x94   : > { %1242 = vst [vmem:[#allocation2 + $0x8f8] sm:$0xff] %v8067_v0  ;;  %1243 = vst [vmem:[#allocation2 + $0x8f] sm:$0x1] %v8067_v0  ;;  %s6202_s30 = sshll.u32 %s10472_s11, 4  ;;  %s6189_s12 = scalar_lea.sflag [#allocation7], %s8274_s29  ;;  %s10543_s30 = int_to_ptr.vmem [resolvable:$true] %s6202_s30 }
  0x95   : > { %1244 = vst [vmem:[#allocation2 + $0x11f] sm:$0x1] %v8067_v0  ;;  %1245 = vst [vmem:[#allocation2 + $0x1af] sm:$0x1] %v8067_v0  ;;  %s7988_s13 = scalar_lea.vmem %s10543_s30, 4096  ;;  %p10624_p0 = scmp.ne.s32.totalorder %s10603_s23, 0 }
  0x96   : > { %1246 = vst [vmem:[#allocation2 + $0x23f] sm:$0x1] %v8067_v0  ;;  %1247 = vst [vmem:[#allocation2 + $0x2cf] sm:$0x1] %v8067_v0  ;;  %p7989_p11 = scmp.ne.s32.totalorder %s10543_s30, %s7988_s13  ;;  %s8069_s22 = smov [#allocation11]  }
  0x97   : > { %1248 = vst [vmem:[#allocation2 + $0x35f] sm:$0x1] %v8067_v0  ;;  %1249 = vst [vmem:[#allocation2 + $0x3ef] sm:$0x1] %v8067_v0  ;;  %s7992_s17 = sshll.u32 %s8069_s22, 4  ;;  %s7993_s17 = int_to_ptr.vmem [resolvable:$false] %s7992_s17 }
  0x98   : > { %1250 = vst [vmem:[#allocation2 + $0x47f] sm:$0x1] %v8067_v0  ;;  %1251 = vst [vmem:[#allocation2 + $0x50f] sm:$0x1] %v8067_v0  ;;  %p7990_p1 = pnand %p7989_p11, %p10624_p0  ;;  %s7994_s7 = scalar_lea.vmem %s7993_s17, 8192 }
  0x99   : > { %1252 = vst [vmem:[#allocation2 + $0x59f] sm:$0x1] %v8067_v0  ;;  %1253 = vst [vmem:[#allocation2 + $0x62f] sm:$0x1] %v8067_v0  ;;  %p7995_p7 = scmp.lt.s32.totalorder %s10543_s30, %s7993_s17  ;;  %p7996_p9 = scmp.lt.s32.totalorder %s7994_s7, %s7988_s13 }
  0x9a   : > { %1254 = vst [vmem:[#allocation2 + $0x6bf] sm:$0x1] %v8067_v0  ;;  %1255 = vst [vmem:[#allocation2 + $0x74f] sm:$0x1] %v8067_v0  ;;  %p7991_p3 = pneg %p7990_p1 }
  0x9b   : > { %1256 = vst [vmem:[#allocation2 + $0x7df] sm:$0x1] %v8067_v0  ;;  %1257 = vst [vmem:[#allocation2 + $0x86f] sm:$0x1] %v8067_v0  ;;  %p7997_p12 = por %p7996_p9, %p7995_p7 }
  0x9c   : > { %3309 = vst [vmem:[#allocation4] sm:$0xff] %v8067_v0  ;;  %3312 = vst [vmem:[#allocation4 + $0xa0] sm:$0x1] %v8067_v0 }
  0x9d   : > { %3313 = vst [vmem:[#allocation4 + $0x140] sm:$0x1] %v8067_v0  ;;  %3314 = vst [vmem:[#allocation4 + $0x1e0] sm:$0x1] %v8067_v0  ;;  %p7998_p2 = pnand %p7997_p12, %p7991_p3 }
  0x9e   : > { %3315 = vst [vmem:[#allocation4 + $0x280] sm:$0x1] %v8067_v0  ;;  %3316 = vst [vmem:[#allocation4 + $0x320] sm:$0x1] %v8067_v0 }
  0x9f   : > { %3317 = vst [vmem:[#allocation4 + $0x3c0] sm:$0x1] %v8067_v0  ;;  %3318 = vst [vmem:[#allocation4 + $0x460] sm:$0x1] %v8067_v0 }
  0xa0   : > { %3319 = vst [vmem:[#allocation4 + $0x500] sm:$0x1] %v8067_v0  ;;  %3320 = vst [vmem:[#allocation4 + $0x5a0] sm:$0x1] %v8067_v0 }
  0xa1   : > { %3321 = vst [vmem:[#allocation4 + $0x640] sm:$0x1] %v8067_v0  ;;  %3322 = vst [vmem:[#allocation4 + $0x6e0] sm:$0x1] %v8067_v0 }
  0xa2   : > { %3323 = vst [vmem:[#allocation4 + $0x780] sm:$0x1] %v8067_v0  ;;  %3324 = vst [vmem:[#allocation4 + $0x820] sm:$0x1] %v8067_v0 }
  0xa3   : > { %3325 = vst [vmem:[#allocation4 + $0x8c0] sm:$0x1] %v8067_v0  ;;  %3326 = vst [vmem:[#allocation4 + $0x960] sm:$0x1] %v8067_v0 }
  0xa4   : > { %3450 = vst [vmem:[#allocation4 + $0x60] sm:$0xff] %v8067_v0  ;;  %3452 = vst [vmem:[#allocation4 + $0x107] sm:$0x1] %v8067_v0 }
  0xa5   : > { %3453 = vst [vmem:[#allocation4 + $0x1a7] sm:$0x1] %v8067_v0  ;;  %3454 = vst [vmem:[#allocation4 + $0x247] sm:$0x1] %v8067_v0 }
  0xa6   : > { %3455 = vst [vmem:[#allocation4 + $0x2e7] sm:$0x1] %v8067_v0  ;;  %3456 = vst [vmem:[#allocation4 + $0x387] sm:$0x1] %v8067_v0 }
  0xa7   : > { %3457 = vst [vmem:[#allocation4 + $0x427] sm:$0x1] %v8067_v0  ;;  %3458 = vst [vmem:[#allocation4 + $0x4c7] sm:$0x1] %v8067_v0 }
  0xa8   : > { %3459 = vst [vmem:[#allocation4 + $0x567] sm:$0x1] %v8067_v0  ;;  %3460 = vst [vmem:[#allocation4 + $0x607] sm:$0x1] %v8067_v0 }
  0xa9   : > { %3461 = vst [vmem:[#allocation4 + $0x6a7] sm:$0x1] %v8067_v0  ;;  %3462 = vst [vmem:[#allocation4 + $0x747] sm:$0x1] %v8067_v0 }
  0xaa   : > { %3463 = vst [vmem:[#allocation4 + $0x7e7] sm:$0x1] %v8067_v0  ;;  %3464 = vst [vmem:[#allocation4 + $0x887] sm:$0x1] %v8067_v0 }
  0xab   : > { %3465 = vst [vmem:[#allocation4 + $0x927] sm:$0x1] %v8067_v0  ;;  %3466 = vst [vmem:[#allocation4 + $0x9c7] sm:$0x1] %v8067_v0 }
  0xac   : > { %3643 = vst [vmem:[#allocation4 + $0x18] sm:$0x1] %v8067_v0  ;;  %3644 = vst [vmem:[#allocation4 + $0xb8] sm:$0x1] %v8067_v0 }
  0xad   : > { %3645 = vst [vmem:[#allocation4 + $0x158] sm:$0x1] %v8067_v0  ;;  %3646 = vst [vmem:[#allocation4 + $0x1f8] sm:$0x1] %v8067_v0 }
  0xae   : > { %3647 = vst [vmem:[#allocation4 + $0x298] sm:$0x1] %v8067_v0  ;;  %3648 = vst [vmem:[#allocation4 + $0x338] sm:$0x1] %v8067_v0 }
  0xaf   : > { %3649 = vst [vmem:[#allocation4 + $0x3d8] sm:$0x1] %v8067_v0  ;;  %3650 = vst [vmem:[#allocation4 + $0x478] sm:$0x1] %v8067_v0 }
  0xb0   : > { %3651 = vst [vmem:[#allocation4 + $0x518] sm:$0x1] %v8067_v0  ;;  %3652 = vst [vmem:[#allocation4 + $0x5b8] sm:$0x1] %v8067_v0 }
  0xb1   : > { %3653 = vst [vmem:[#allocation4 + $0x658] sm:$0x1] %v8067_v0  ;;  %3654 = vst [vmem:[#allocation4 + $0x6f8] sm:$0x1] %v8067_v0 }
  0xb2   : > { %3655 = vst [vmem:[#allocation4 + $0x798] sm:$0x1] %v8067_v0  ;;  %3656 = vst [vmem:[#allocation4 + $0x838] sm:$0x1] %v8067_v0 }
  0xb3   : > { %3657 = vst [vmem:[#allocation4 + $0x8d8] sm:$0x1] %v8067_v0  ;;  %3658 = vst [vmem:[#allocation4 + $0x978] sm:$0x1] %v8067_v0 }
  0xb4   : > { %3787 = vst [vmem:[#allocation4 + $0x7f] sm:$0x1] %v8067_v0  ;;  %3788 = vst [vmem:[#allocation4 + $0x11f] sm:$0x1] %v8067_v0 }
  0xb5   : > { %3789 = vst [vmem:[#allocation4 + $0x1bf] sm:$0x1] %v8067_v0  ;;  %3790 = vst [vmem:[#allocation4 + $0x25f] sm:$0x1] %v8067_v0 }
  0xb6   : > { %3791 = vst [vmem:[#allocation4 + $0x2ff] sm:$0x1] %v8067_v0  ;;  %3792 = vst [vmem:[#allocation4 + $0x39f] sm:$0x1] %v8067_v0 }
  0xb7   : > { %3793 = vst [vmem:[#allocation4 + $0x43f] sm:$0x1] %v8067_v0  ;;  %3794 = vst [vmem:[#allocation4 + $0x4df] sm:$0x1] %v8067_v0 }
  0xb8   : > { %3795 = vst [vmem:[#allocation4 + $0x57f] sm:$0x1] %v8067_v0  ;;  %3796 = vst [vmem:[#allocation4 + $0x61f] sm:$0x1] %v8067_v0 }
  0xb9   : > { %3797 = vst [vmem:[#allocation4 + $0x6bf] sm:$0x1] %v8067_v0  ;;  %3798 = vst [vmem:[#allocation4 + $0x75f] sm:$0x1] %v8067_v0 }
  0xba   : > { %3799 = vst [vmem:[#allocation4 + $0x7ff] sm:$0x1] %v8067_v0  ;;  %3800 = vst [vmem:[#allocation4 + $0x89f] sm:$0x1] %v8067_v0 }
  0xbb   : > { %3801 = vst [vmem:[#allocation4 + $0x93f] sm:$0x1] %v8067_v0  ;;  %3802 = vst [vmem:[#allocation4 + $0x9df] sm:$0x1] %v8067_v0 }
  0xbc   : > { %3970 = vst [vmem:[#allocation4 + $0x990] sm:$0xff] %v8067_v0  ;;  %3972 = vst [vmem:[#allocation4 + $0x30] sm:$0x1] %v8067_v0 }
  0xbd   : > { %3973 = vst [vmem:[#allocation4 + $0xd0] sm:$0x1] %v8067_v0  ;;  %3974 = vst [vmem:[#allocation4 + $0x170] sm:$0x1] %v8067_v0 }
  0xbe   : > { %3975 = vst [vmem:[#allocation4 + $0x210] sm:$0x1] %v8067_v0  ;;  %3976 = vst [vmem:[#allocation4 + $0x2b0] sm:$0x1] %v8067_v0 }
  0xbf   : > { %3977 = vst [vmem:[#allocation4 + $0x350] sm:$0x1] %v8067_v0  ;;  %3978 = vst [vmem:[#allocation4 + $0x3f0] sm:$0x1] %v8067_v0 }
  0xc0   : > { %3979 = vst [vmem:[#allocation4 + $0x490] sm:$0x1] %v8067_v0  ;;  %3980 = vst [vmem:[#allocation4 + $0x530] sm:$0x1] %v8067_v0 }
  0xc1   : > { %3981 = vst [vmem:[#allocation4 + $0x5d0] sm:$0x1] %v8067_v0  ;;  %3982 = vst [vmem:[#allocation4 + $0x670] sm:$0x1] %v8067_v0 }
  0xc2   : > { %3983 = vst [vmem:[#allocation4 + $0x710] sm:$0x1] %v8067_v0  ;;  %3984 = vst [vmem:[#allocation4 + $0x7b0] sm:$0x1] %v8067_v0 }
  0xc3   : > { %3985 = vst [vmem:[#allocation4 + $0x850] sm:$0x1] %v8067_v0  ;;  %3986 = vst [vmem:[#allocation4 + $0x8f0] sm:$0x1] %v8067_v0 }
  0xc4   : > { %4111 = vst [vmem:[#allocation4 + $0x9f0] sm:$0xff] %v8067_v0  ;;  %4112 = vst [vmem:[#allocation4 + $0x97] sm:$0x1] %v8067_v0 }
  0xc5   : > { %4113 = vst [vmem:[#allocation4 + $0x137] sm:$0x1] %v8067_v0  ;;  %4114 = vst [vmem:[#allocation4 + $0x1d7] sm:$0x1] %v8067_v0 }
  0xc6   : > { %4115 = vst [vmem:[#allocation4 + $0x277] sm:$0x1] %v8067_v0  ;;  %4116 = vst [vmem:[#allocation4 + $0x317] sm:$0x1] %v8067_v0 }
  0xc7   : > { %4117 = vst [vmem:[#allocation4 + $0x3b7] sm:$0x1] %v8067_v0  ;;  %4118 = vst [vmem:[#allocation4 + $0x457] sm:$0x1] %v8067_v0 }
  0xc8   : > { %4119 = vst [vmem:[#allocation4 + $0x4f7] sm:$0x1] %v8067_v0  ;;  %4120 = vst [vmem:[#allocation4 + $0x597] sm:$0x1] %v8067_v0 }
  0xc9   : > { %4121 = vst [vmem:[#allocation4 + $0x637] sm:$0x1] %v8067_v0  ;;  %4122 = vst [vmem:[#allocation4 + $0x6d7] sm:$0x1] %v8067_v0 }
  0xca   : > { %4123 = vst [vmem:[#allocation4 + $0x777] sm:$0x1] %v8067_v0  ;;  %4124 = vst [vmem:[#allocation4 + $0x817] sm:$0x1] %v8067_v0 }
  0xcb   : > { %4125 = vst [vmem:[#allocation4 + $0x8b7] sm:$0x1] %v8067_v0  ;;  %4126 = vst [vmem:[#allocation4 + $0x957] sm:$0x1] %v8067_v0 }
  0xcc   : > { %442 = vst [vmem:[#allocation2] sm:$0x1] %v8067_v0  ;;  %582 = vst [vmem:[#allocation2 + $0x5f] sm:$0x1] %v8067_v0 }
  0xcd   : > { %1118 = vst [vmem:[#allocation2 + $0x8a0] sm:$0x1] %v8067_v0  ;;  %1258 = vst [vmem:[#allocation2 + $0x8ff] sm:$0x1] %v8067_v0 }
  0xce   : > { %3311 = vst [vmem:[#allocation4] sm:$0x1] %v8067_v0  ;;  %3451 = vst [vmem:[#allocation4 + $0x67] sm:$0x1] %v8067_v0 }
  0xcf   : > { %3987 = vst [vmem:[#allocation4 + $0x990] sm:$0x1] %v8067_v0  ;;  %4127 = vst [vmem:[#allocation4 + $0x9f7] sm:$0x1] %v8067_v0 }
  0xd0   : > { %410 = vst [vmem:[#allocation2 + $0x90] sm:$0xfe] %v334_v21  ;;  %412 = vst [vmem:[#allocation2 + $0x120] sm:$0xfe] %v337_v33  ;;  %v8608_v21 = vsel %vm333_vm0, %v674_v63, %v347_v11  ;;  %v613_v33 = vld [vmem:[%s8280_s6 + $0x78] sm:$0x7f] }
  0xd1   : > { %414 = vst [vmem:[#allocation2 + $0x1b0] sm:$0xfe] %v340_v43  ;;  %416 = vst [vmem:[#allocation2 + $0x240] sm:$0xfe] %v343_v56  ;;  %v684_v36 = vrot.slane %v613_v33, 7 }
  0xd2   : > { %557 = vst [vmem:[#allocation2 + $0x298] sm:$0x7f] %v527_v1  ;;  %750 = vst [vmem:[#allocation2 + $0x258] sm:$0xfe] %v674_v63  ;;  %v533_v43 = vld [vmem:[%s8280_s6 + $0x69] sm:$0x7f] }
  0xd3   : > { %v1259_v35 = vld [vmem:[#allocation2] sm:$0xff]  ;;  %418 = vst [vmem:[#allocation2 + $0x2d0] sm:$0xfe] %v674_v63  ;;  %752 = vst [vmem:[#allocation2 + $0x2e8] sm:$0xfe] %v677_v9  ;;  %v8663_v1 = vld [vmem:[%s8280_s6 + $0x71] sm:$0xff] }
  0xd4   : > { %v1547_v41 = vpack.c.bf16 %v8067_v0, %v1259_v35  ;;  %v675_v0 = vrot.slane %v607_v59, 7  ;;  %559 = vst [vmem:[#allocation2 + $0x328] sm:$0x7f] %v529_v14  ;;  %420 = vst [vmem:[#allocation2 + $0x360] sm:$0xfe] %v677_v9  ;;  %v353_v35 = vrot.slane %v286_v30, 7 }
  0xd5   : > { %561 = vst [vmem:[#allocation2 + $0x3b8] sm:$0x7f] %v531_v26  ;;  %754 = vst [vmem:[#allocation2 + $0x378] sm:$0xfe] %v680_v24  ;;  %v8656_v59 = vld [vmem:[%s8280_s6 + $0x80] sm:$0xff] }
  0xd6   : > { %2307 = vmatmul.mubr.bf16.vlgmr.msra.gmra.mrb[0].mxu0 %v1547_v41  ;;  %v8588_v10 = vsel %vm333_vm0, %v674_v63, %v675_v0  ;;  %422 = vst [vmem:[#allocation2 + $0x3f0] sm:$0xfe] %v680_v24  ;;  %v8634_v41 = vld [vmem:[%s8280_s6 + $0x61] sm:$0xff]  ;;  %563 = vst [vmem:[#allocation2 + $0x448] sm:$0x7f] %v533_v43  ;;  %v8650_v56 = vsel %vm333_vm0, %v680_v24, %v353_v35 }
  0xd7   : > { %v1277_v49 = vld [vmem:[#allocation2 + $0x90] sm:$0xff]  ;;  %6671 = vmatpush3.bf16.msra.mxu0 %v7745_v16  ;;  %2314 = vmatprep.mubr.bf16.mxu0 %v1557_v44  ;;  %v8597_v16 = vld [vmem:[#allocation2 + $0x120] sm:$0xff]  ;;  %v8639_v44 = vsel %vm333_vm0, %v680_v24, %v681_v29  ;;  %v290_v11 = vld [vmem:[%s8280_s6 + $0x88] sm:$0x7f] }
  0xd8   : > { %6672 = vmatprep.subr.bf16.mxu0 %v7746_v17  ;;  %v1556_v61 = vpack.c.bf16 %v8500_v27, %v1277_v49  ;;  %v284_v17 = vld [vmem:[%s8280_s6 + $0x58] sm:$0x7f]  ;;  %v8619_v27 = vld [vmem:[%s8280_s6 + $0x68] sm:$0xff]  ;;  %v1565_v47 = vpack.c.bf16 %v8520_v38, %v8597_v16  ;;  %v1575_v49 = vpack.c.bf16 %v8529_v42, %v8525_v40  ;;  %v686_v42 = vrot.slane %v8656_v59, 7  ;;  %v1313_v16 = vld [vmem:[#allocation2 + $0x1b0] sm:$0xff] }
  0xd9   : > { %v350_v23 = vrot.slane %v284_v17, 7  ;;  %v1342_v55 = vld [vmem:[#allocation2 + $0x298] sm:$0xff]  ;;  %v689_v17 = vrot.slane %v8681_v12, 7  ;;  %v537_v26 = vld [vmem:[%s8280_s6 + $0x89] sm:$0x7f] }
  0xda   : > { %v1334_v63 = vld [vmem:[#allocation2 + $0x258] sm:$0xff]  ;;  %v1585_v38 = vpack.c.bf16 %v1342_v55, %v8561_v60  ;;  %v1352_v7 = vld [vmem:[#allocation2 + $0x2e8] sm:$0xff]  ;;  %758 = vst [vmem:[#allocation2 + $0x498] sm:$0xfe] %v686_v42  ;;  %426 = vst [vmem:[#allocation2 + $0x510] sm:$0xfe] %v686_v42 }
  0xdb   : > { %6673 = vmatpush3.bf16.msra.mxu0 %v8493_v20  ;;  %v8605_v20 = vld [vmem:[#allocation8 + $0xb8] sm:$0xff]   ;;  %v8629_v34 = vsel %vm333_vm0, %v677_v9, %v350_v23  ;;  %v1595_v8 = vpack.c.bf16 %v8611_v22, %v1352_v7  ;;  %v8674_v9 = vld [vmem:[%s8280_s6 + $0x88] sm:$0xff]  ;;  %760 = vst [vmem:[#allocation2 + $0x528] sm:$0xfe] %v689_v17  ;;  %567 = vst [vmem:[#allocation2 + $0x568] sm:$0x7f] %v537_v26 }
  0xdc   : > { %6674 = vmatprep.subr.bf16.mxu0 %v8496_v25  ;;  %v8615_v25 = vld [vmem:[%s8280_s6 + $0x51] sm:$0xff]  ;;  %7653 = vmatpush3.bf16.msra.mxu1 %v8605_v20  ;;  %v8686_v22 = vld [vmem:[%s8280_s6 + $0x81] sm:$0xff]  ;;  %428 = vst [vmem:[#allocation2 + $0x5a0] sm:$0xfe] %v689_v17  ;;  %v541_v7 = vld [vmem:[%s8280_s6 + $0xa9] sm:$0x7f] }
  0xdd   : > { %v617_v14 = vld [vmem:[%s8280_s6 + $0x98] sm:$0x7f]  ;;  %v1360_v23 = vld [vmem:[#allocation2 + $0x328] sm:$0xff]  ;;  %571 = vst [vmem:[#allocation2 + $0x688] sm:$0x7f] %v541_v7 }
  0xde   : > { %2315 = vmatmul.mubr.bf16.gmra.mrb[4].mxu0 %v1556_v61  ;;  %v615_v61 = vld [vmem:[%s8280_s6 + $0x88] sm:$0x7f]  ;;  %v690_v19 = vrot.slane %v617_v14, 7  ;;  %v8694_v29 = vld [vmem:[%s8280_s6 + $0x98] sm:$0xff]  ;;  %v8746_v14 = vld [vmem:[%s8280_s6 + $0xc0] sm:$0xff] }
  0xdf   : > { %2322 = vmatprep.mubr.bf16.mxu0 %v1566_v4  ;;  %6675 = vmatpush3.bf16.msra.mxu0 %v8502_v28  ;;  %v683_v28 = vrot.slane %v8624_v31, 7  ;;  %v687_v0 = vrot.slane %v615_v61, 7  ;;  %v1586_v4 = vpack.c.bf16 %v8588_v10, %v1334_v63  ;;  %v1370_v30 = vld [vmem:[#allocation2 + $0x378] sm:$0xff]  ;;  %v619_v43 = vld [vmem:[%s8280_s6 + $0xa8] sm:$0x7f]  ;;  %v698_v26 = vrot.slane %v8746_v14, 7 }
  0xe0   : > { %6676 = vmatprep.subr.bf16.mxu0 %v8511_v32  ;;  %v288_v32 = vld [vmem:[%s8280_s6 + $0x78] sm:$0x7f]  ;;  %v8697_v33 = vsel %vm333_vm0, %v689_v17, %v690_v19  ;;  %v693_v61 = vrot.slane %v619_v43, 7  ;;  %v8715_v63 = vld [vmem:[%s8280_s6 + $0xa8] sm:$0xff] }
  0xe1   : > { %v8653_v57 = vsel %vm333_vm0, %v683_v28, %v684_v36  ;;  %756 = vst [vmem:[#allocation2 + $0x408] sm:$0xfe] %v683_v28  ;;  %424 = vst [vmem:[#allocation2 + $0x480] sm:$0xfe] %v683_v28  ;;  %v356_v40 = vrot.slane %v288_v32, 7  ;;  %2499 = vmatprep.mubr.bf16.mxu1 %v1586_v4  ;;  %v8678_v10 = vsel %vm333_vm0, %v686_v42, %v687_v0  ;;  %v8703_v36 = vld [vmem:[%s8280_s6 + $0xa0] sm:$0xff] }
  0xe2   : > { %2500 = vmatmul.mubr.bf16.vlgmr.msra.gmra.mrb[0].mxu1 %v1585_v38  ;;  %v292_v35 = vld [vmem:[%s8280_s6 + $0x98] sm:$0x7f]  ;;  %v692_v55 = vrot.slane %v8703_v36, 7  ;;  %v1604_v38 = vpack.c.bf16 %v8639_v44, %v1370_v30  ;;  %v8734_v4 = vld [vmem:[%s8280_s6 + $0xa1] sm:$0xff]  ;;  %766 = vst [vmem:[#allocation2 + $0x6d8] sm:$0xfe] %v698_v26 }
  0xe3   : > { %6677 = vmatpush3.bf16.msra.mxu0 %v8516_v37  ;;  %v8670_v60 = vsel %vm333_vm0, %v683_v28, %v356_v40  ;;  %v535_v37 = vld [vmem:[%s8280_s6 + $0x79] sm:$0x7f]  ;;  %2507 = vmatprep.mubr.bf16.mxu1 %v1595_v8  ;;  %v362_v28 = vrot.slane %v292_v35, 7  ;;  %v8707_v32 = vld [vmem:[%s8280_s6 + $0x91] sm:$0xff]  ;;  %v298_v43 = vld [vmem:[%s8280_s6 + $0xc8] sm:$0x7f] }
  0xe4   : > { %6678 = vmatprep.subr.bf16.mxu0 %v8522_v39  ;;  %565 = vst [vmem:[#allocation2 + $0x4d8] sm:$0x7f] %v535_v37  ;;  %v359_v39 = vrot.slane %v290_v11, 7  ;;  %762 = vst [vmem:[#allocation2 + $0x5b8] sm:$0xfe] %v692_v55  ;;  %v8739_v8 = vld [vmem:[%s8280_s6 + $0xb8] sm:$0xff] }
  0xe5   : > { %v8722_v40 = vsel %vm333_vm0, %v689_v17, %v362_v28  ;;  %430 = vst [vmem:[#allocation2 + $0x630] sm:$0xfe] %v692_v55  ;;  %v621_v44 = vld [vmem:[%s8280_s6 + $0xb8] sm:$0x7f]  ;;  %v8762_v28 = vld [vmem:[%s8280_s6 + $0xc8] sm:$0xff] }
  0xe6   : > { %2323 = vmatmul.mubr.bf16.gmra.mrb[8].mxu0 %v1565_v47  ;;  %v8690_v24 = vsel %vm333_vm0, %v686_v42, %v359_v39  ;;  %v1584_v47 = vpack.c.bf16 %v8548_v53, %v8545_v52  ;;  %v294_v52 = vld [vmem:[%s8280_s6 + $0xa8] sm:$0x7f]  ;;  %v8730_v42 = vsel %vm333_vm0, %v692_v55, %v693_v61  ;;  %v296_v37 = vld [vmem:[%s8280_s6 + $0xb8] sm:$0x7f]  ;;  %434 = vst [vmem:[#allocation2 + $0x750] sm:$0xfe] %v698_v26 }
  0xe7   : > { %2330 = vmatprep.mubr.bf16.mxu0 %v1575_v49  ;;  %6679 = vmatpush3.bf16.msra.mxu0 %v8534_v46  ;;  %v1574_v46 = vpack.c.bf16 %v8542_v51, %v1313_v16  ;;  %v1594_v49 = vpack.c.bf16 %v1360_v23, %v8591_v13  ;;  %v8718_v51 = vld [vmem:[%s8280_s6 + $0xb0] sm:$0xff]  ;;  %v8727_v13 = vld [vmem:[#allocation2 + $0x240] sm:$0xff]  ;;  %v365_v0 = vrot.slane %v294_v52, 7  ;;  %v368_v39 = vrot.slane %v296_v37, 7  ;;  %v1378_v17 = vld [vmem:[#allocation2 + $0x3b8] sm:$0xff] }
  0xe8   : > { %6680 = vmatprep.subr.bf16.mxu0 %v8537_v48  ;;  %v539_v48 = vld [vmem:[%s8280_s6 + $0x99] sm:$0x7f]  ;;  %v695_v53 = vrot.slane %v8718_v51, 7  ;;  %v8750_v16 = vld [vmem:[%s8280_s6 + $0xb1] sm:$0xff]  ;;  %v1388_v19 = vld [vmem:[#allocation2 + $0x408] sm:$0xff] }
  0xe9   : > { %569 = vst [vmem:[#allocation2 + $0x5f8] sm:$0x7f] %v539_v48  ;;  %v8743_v11 = vsel %vm333_vm0, %v692_v55, %v365_v0  ;;  %v371_v55 = vrot.slane %v298_v43, 7  ;;  %v8774_v61 = vld [vmem:[%s8280_s6 + $0xd0] sm:$0xff]  ;;  %v625_v48 = vld [vmem:[%s8280_s6 + $0xd8] sm:$0x7f] }
  0xea   : > { %764 = vst [vmem:[#allocation2 + $0x648] sm:$0xfe] %v695_v53  ;;  %432 = vst [vmem:[#allocation2 + $0x6c0] sm:$0xfe] %v695_v53  ;;  %2508 = vmatmul.mubr.bf16.gmra.mrb[4].mxu1 %v1594_v49  ;;  %v8758_v35 = vsel %vm333_vm0, %v695_v53, %v368_v39  ;;  %v701_v52 = vrot.slane %v8774_v61, 7  ;;  %v8786_v0 = vld [vmem:[%s8280_s6 + $0xd8] sm:$0xff] }
  0xeb   : > { %6681 = vmatpush3.bf16.msra.mxu0 %v8539_v50  ;;  %v696_v50 = vrot.slane %v621_v44, 7  ;;  %2515 = vmatprep.mubr.bf16.mxu1 %v1604_v38  ;;  %v8778_v38 = vld [vmem:[%s8280_s6 + $0xc1] sm:$0xff]  ;;  %v1613_v44 = vpack.c.bf16 %v8653_v57, %v1388_v19 }
  0xec   : > { %6682 = vmatprep.subr.bf16.mxu0 %v8551_v54  ;;  %v623_v54 = vld [vmem:[%s8280_s6 + $0xc8] sm:$0x7f]  ;;  %768 = vst [vmem:[#allocation2 + $0x768] sm:$0xfe] %v701_v52  ;;  %436 = vst [vmem:[#allocation2 + $0x7e0] sm:$0xfe] %v701_v52 }
  0xed   : > { %v8753_v23 = vsel %vm333_vm0, %v695_v53, %v696_v50  ;;  %v699_v30 = vrot.slane %v623_v54, 7  ;;  %v702_v53 = vrot.slane %v625_v48, 7  ;;  %v8790_v50 = vsel %vm333_vm0, %v698_v26, %v371_v55  ;;  %v8800_v37 = vld [vmem:[%s8280_s6 + $0xe0] sm:$0xff]  ;;  %v1396_v39 = vld [vmem:[#allocation2 + $0x448] sm:$0xff]  ;;  %v628_v48 = vld [vmem:[%s8280_s6 + $0xf0] sm:$0xff] }
  0xee   : > { %2331 = vmatmul.mubr.bf16.gmra.mrb[12].mxu0 %v1574_v46  ;;  %v543_v46 = vld [vmem:[%s8280_s6 + $0xb9] sm:$0x7f]  ;;  %v627_v54 = vld [vmem:[%s8280_s6 + $0xe8] sm:$0x7f] }
  0xef   : > { %2338 = vmatprep.mubr.bf16.mxu0 %v1584_v47  ;;  %6683 = vmatpush3.bf16.msra.mxu0 %v8564_v62  ;;  %v1583_v47 = vpack.c.bf16 %v8580_v6, %v8727_v13  ;;  %v8769_v62 = vsel %vm333_vm0, %v698_v26, %v699_v30  ;;  %573 = vst [vmem:[#allocation2 + $0x718] sm:$0x7f] %v543_v46  ;;  %v545_v13 = vld [vmem:[%s8280_s6 + $0xc9] sm:$0x7f]  ;;  %v705_v26 = vrot.slane %v627_v54, 7 }
  0xf0   : > { %6684 = vmatprep.subr.bf16.mxu0 %v8577_v5  ;;  %v1593_v5 = vpack.c.bf16 %v8569_v2, %v8557_v58  ;;  %v1603_v6 = vpack.c.bf16 %v1378_v17, %v8615_v25  ;;  %575 = vst [vmem:[#allocation2 + $0x7a8] sm:$0x7f] %v545_v13  ;;  %v300_v2 = vld [vmem:[%s8280_s6 + $0xd8] sm:$0x7f]  ;;  %v1349_v25 = vld [vmem:[#allocation2 + $0x2d0] sm:$0xff]  ;;  %v8797_v7 = vsel %vm333_vm0, %v701_v52, %v702_v53  ;;  %v704_v17 = vrot.slane %v8800_v37, 7 }
  0xf1   : > { %v374_v57 = vrot.slane %v300_v2, 7  ;;  %v547_v30 = vld [vmem:[%s8280_s6 + $0xd9] sm:$0x7f]  ;;  %v8812_v46 = vld [vmem:[%s8280_s6 + $0xe8] sm:$0xff]  ;;  %v707_v13 = vrot.slane %v628_v48, 7  ;;  %v1592_v2 = vpack.c.bf16 %v8608_v21, %v1349_v25  ;;  %v1612_v58 = vpack.c.bf16 %v1396_v39, %v8634_v41  ;;  %v7763_v48 = vld [vmem:[#allocation8 + $0x180] sm:$0xff]  }
  0xf2   : > { %2516 = vmatmul.mubr.bf16.gmra.mrb[8].mxu1 %v1603_v6  ;;  %v302_v43 = vld [vmem:[%s8280_s6 + $0xe8] sm:$0x7f]  ;;  %770 = vst [vmem:[#allocation2 + $0x7f8] sm:$0xfe] %v704_v17  ;;  %577 = vst [vmem:[#allocation2 + $0x838] sm:$0x7f] %v547_v30  ;;  %v8823_v53 = vsel %vm333_vm0, %v704_v17, %v705_v26 }
  0xf3   : > { %6685 = vmatpush3.bf16.msra.mxu0 %v8605_v20  ;;  %v8805_v20 = vld [vmem:[%s8280_s6 + $0xd1] sm:$0xff]  ;;  %v8808_v19 = vsel %vm333_vm0, %v701_v52, %v374_v57  ;;  %2523 = vmatprep.mubr.bf16.mxu1 %v1613_v44  ;;  %v377_v55 = vrot.slane %v302_v43, 7  ;;  %438 = vst [vmem:[#allocation2 + $0x870] sm:$0xfe] %v704_v17  ;;  %v8820_v6 = vld [vmem:[%s8280_s6 + $0xe1] sm:$0xff]  ;;  %v1602_v57 = vpack.c.bf16 %v8595_v15, %v8572_v3 }
  0xf4   : > { %v1406_v52 = vld [vmem:[#allocation2 + $0x498] sm:$0xff]  ;;  %v549_v30 = vld [vmem:[%s8280_s6 + $0xe9] sm:$0x7f]  ;;  %v8833_v43 = vld [vmem:[%s8280_s6] sm:$0xff]  ;;  %772 = vst [vmem:[#allocation2 + $0x888] sm:$0xfe] %v707_v13 }
  0xf5   : > { %v8829_v54 = vsel %vm333_vm0, %v704_v17, %v377_v55  ;;  %579 = vst [vmem:[#allocation2 + $0x8c8] sm:$0x7f] %v549_v30  ;;  %v662_v26 = vrot.slane %v8833_v43, 7  ;;  %v1622_v25 = vpack.c.bf16 %v8678_v10, %v1406_v52  ;;  %v7760_v15 = vld [vmem:[#allocation8 + $0x140] sm:$0xff]   ;;  %v1414_v41 = vld [vmem:[#allocation2 + $0x4d8] sm:$0xff]  ;;  %v1424_v39 = vld [vmem:[#allocation2 + $0x528] sm:$0xff]  ;;  %v1611_v10 = vpack.c.bf16 %v8619_v27, %v8602_v18 }
  0xf6   : > { %2339 = vmatmul.mubr.bf16.gmra.mrb[16].mxu0 %v1583_v47  ;;  %v599_v47 = vld [vmem:[%s8280_s6 + $0x8] sm:$0x7f]  ;;  %v1367_v17 = vld [vmem:[#allocation2 + $0x360] sm:$0xff]  ;;  %6782 = vmatprep.subr.bf16.mxu0 %v7760_v15  ;;  %v1385_v52 = vld [vmem:[#allocation2 + $0x3f0] sm:$0xff]  ;;  %v1620_v15 = vpack.c.bf16 %v8642_v45, %v8624_v31 }
  0xf7   : > { %2346 = vmatprep.mubr.bf16.mxu0 %v1593_v5  ;;  %v629_v5 = vld [vmem:[%s8280_s6 + $0xf8] sm:$0x7f]  ;;  %v663_v21 = vrot.slane %v599_v47, 7  ;;  %742 = vst [vmem:[#allocation2 + $0x18] sm:$0xfe] %v662_v26  ;;  %v7762_v55 = vld [vmem:[#allocation8 + $0x1c0] sm:$0xff]   ;;  %v1601_v47 = vpack.c.bf16 %v8629_v34, %v1367_v17 }
  0xf8   : > { %v708_v44 = vrot.slane %v629_v5, 7  ;;  %6894 = vmatprep.subr.bf16.mxu1 %v7762_v55  ;;  %v1621_v5 = vpack.c.bf16 %v1414_v41, %v8663_v1  ;;  %v7767_v30 = vld [vmem:[#allocation8 + $0x188] sm:$0xff]   ;;  %v7771_v41 = vld [vmem:[#allocation8 + $0x190] sm:$0xff]   ;;  %v1403_v55 = vld [vmem:[#allocation2 + $0x480] sm:$0xff] }
  0xf9   : > { %v8843_v3 = vsel %vm333_vm0, %v662_v26, %v663_v21  ;;  %6895 = vmatpush3.bf16.msra.mxu1 %v7763_v48  ;;  %v8858_v26 = vld [vmem:[%s8280_s6 + $0x1] sm:$0xff]  ;;  %v521_v18 = vld [vmem:[%s8280_s6 + $0x9] sm:$0x7f]  ;;  %v1610_v21 = vpack.c.bf16 %v8650_v56, %v1385_v52  ;;  %v7774_v48 = vld [vmem:[#allocation8 + $0x1d8] sm:$0xff]   ;;  %v1619_v52 = vpack.c.bf16 %v8670_v60, %v1403_v55 }
  0xfa   : > { %v8838_v49 = vsel %vm333_vm0, %v707_v13, %v708_v44  ;;  %2524 = vmatmul.mubr.bf16.gmra.mrb[12].mxu1 %v1612_v58  ;;  %v1631_v58 = vpack.c.bf16 %v8697_v33, %v1424_v39  ;;  %v7766_v13 = vld [vmem:[#allocation8 + $0x1c8] sm:$0xff]   ;;  %v8851_v44 = vld [vmem:[%s8280_s6 + $0x10] sm:$0xff]  ;;  %550 = vst [vmem:[#allocation2 + $0xa0] sm:$0xff] %v8858_v26  ;;  %551 = vst [vmem:[#allocation2 + $0xe8] sm:$0x7f] %v521_v18 }
  0xfb   : > { %2531 = vmatprep.mubr.bf16.mxu1 %v1622_v25  ;;  %v1432_v27 = vld [vmem:[#allocation2 + $0x568] sm:$0xff]  ;;  %6896 = vmatprep.subr.bf16.mxu1 %v7766_v13  ;;  %v1442_v33 = vld [vmem:[#allocation2 + $0x5b8] sm:$0xff]  ;;  %v7770_v25 = vld [vmem:[#allocation8 + $0x1d0] sm:$0xff]   ;;  %v1629_v13 = vpack.c.bf16 %v8674_v9, %v8656_v59 }
  0xfc   : > { %v1630_v17 = vpack.c.bf16 %v1432_v27, %v8686_v22  ;;  %v1640_v39 = vpack.c.bf16 %v8730_v42, %v1442_v33  ;;  %v1450_v56 = vld [vmem:[#allocation2 + $0x5f8] sm:$0xff]  ;;  %v603_v31 = vld [vmem:[%s8280_s6 + $0x28] sm:$0x7f]  ;;  %v7779_v18 = vld [vmem:[#allocation8 + $0x1a0] sm:$0xff]  }
  0xfd   : > { %6897 = vmatpush3.bf16.msra.mxu1 %v7767_v30  ;;  %v7775_v22 = vld [vmem:[#allocation8 + $0x198] sm:$0xff]   ;;  %v669_v42 = vrot.slane %v603_v31, 7  ;;  %v7778_v30 = vld [vmem:[#allocation8 + $0x1e0] sm:$0xff]   ;;  %v1421_v27 = vld [vmem:[#allocation2 + $0x510] sm:$0xff] }
  0xfe   : > { %2347 = vmatmul.mubr.bf16.gmra.mrb[20].mxu0 %v1592_v2  ;;  %v601_v2 = vld [vmem:[%s8280_s6 + $0x18] sm:$0x7f]  ;;  %6898 = vmatprep.subr.bf16.mxu1 %v7770_v25  ;;  %v1468_v59 = vld [vmem:[#allocation2 + $0x688] sm:$0xff]  ;;  %v8897_v33 = vld [vmem:[%s8280_s6 + $0x30] sm:$0xff] }
  0xff   : > { %2354 = vmatprep.mubr.bf16.mxu0 %v1602_v57  ;;  %v8855_v57 = vrot.slane %v8851_v44, 7  ;;  %v666_v34 = vrot.slane %v601_v2, 7  ;;  %v1639_v2 = vpack.c.bf16 %v1450_v56, %v8707_v32  ;;  %v7782_v9 = vld [vmem:[#allocation8 + $0x1e8] sm:$0xff]   ;;  %v1478_v32 = vld [vmem:[#allocation2 + $0x6d8] sm:$0xff]  ;;  %v8902_v25 = vrot.slane %v8897_v33, 7 }
 0x100   : > { %v8908_v55 = vld [vmem:[%s8280_s6 + $0x21] sm:$0xff]  ;;  %v1658_v56 = vpack.c.bf16 %v8769_v62, %v1478_v32  ;;  %v1486_v62 = vld [vmem:[#allocation2 + $0x718] sm:$0xff] }
 0x101   : > { %v8863_v1 = vsel %vm333_vm0, %v8855_v57, %v666_v34  ;;  %744 = vst [vmem:[#allocation2 + $0xa8] sm:$0xfe] %v8855_v57  ;;  %1070 = vst [vmem:[#allocation2 + $0x30] sm:$0xfe] %v8855_v57  ;;  %6899 = vmatpush3.bf16.msra.mxu1 %v7771_v41  ;;  %v1648_v41 = vpack.c.bf16 %v1468_v59, %v8734_v4  ;;  %v7787_v4 = vld [vmem:[#allocation8 + $0x1b0] sm:$0xff]   ;;  %v1514_v32 = vld [vmem:[#allocation2 + $0x7f8] sm:$0xff] }
 0x102   : > { %2532 = vmatmul.mubr.bf16.gmra.mrb[16].mxu1 %v1621_v5  ;;  %6900 = vmatprep.subr.bf16.mxu1 %v7774_v48  ;;  %v8881_v5 = vld [vmem:[%s8280_s6 + $0x11] sm:$0xff]  ;;  %v525_v48 = vld [vmem:[%s8280_s6 + $0x29] sm:$0x7f]  ;;  %748 = vst [vmem:[#allocation2 + $0x1c8] sm:$0xfe] %v8902_v25  ;;  %554 = vst [vmem:[#allocation2 + $0x1c0] sm:$0xff] %v8908_v55 }
 0x103   : > { %2539 = vmatprep.mubr.bf16.mxu1 %v1631_v58  ;;  %v523_v58 = vld [vmem:[%s8280_s6 + $0x19] sm:$0x7f]  ;;  %552 = vst [vmem:[#allocation2 + $0x130] sm:$0xff] %v8881_v5  ;;  %555 = vst [vmem:[#allocation2 + $0x208] sm:$0x7f] %v525_v48 }
 0x104   : > { %553 = vst [vmem:[#allocation2 + $0x178] sm:$0x7f] %v523_v58  ;;  %1074 = vst [vmem:[#allocation2 + $0x150] sm:$0xfe] %v8902_v25  ;;  %v1657_v58 = vpack.c.bf16 %v1486_v62, %v8750_v16  ;;  %v1457_v16 = vld [vmem:[#allocation2 + $0x630] sm:$0xff]  ;;  %v8963_v62 = vld [vmem:[%s8280_s6 + $0x48] sm:$0xff] }
 0x105   : > { %6901 = vmatpush3.bf16.msra.mxu1 %v7775_v22  ;;  %v7790_v22 = vld [vmem:[#allocation8 + $0x1f8] sm:$0xff]   ;;  %v6310_v59 = vld [vmem:[%s8280_s6 + $0x28] sm:$0x7f] }
 0x106   : > { %2355 = vmatmul.mubr.bf16.gmra.mrb[24].mxu0 %v1601_v47  ;;  %v1460_v47 = vld [vmem:[#allocation2 + $0x648] sm:$0xff]  ;;  %6902 = vmatprep.subr.bf16.mxu1 %v7778_v30  ;;  %v857_v30 = vld [vmem:[%s8280_s6 + $0x19] sm:$0x7f] }
 0x107   : > { %2362 = vmatprep.mubr.bf16.mxu0 %v1611_v10  ;;  %v8874_v10 = vld [vmem:[%s8280_s6 + $0x20] sm:$0xff]  ;;  %v1649_v60 = vpack.c.bf16 %v8753_v23, %v1460_v47  ;;  %v605_v23 = vld [vmem:[%s8280_s6 + $0x38] sm:$0x7f]  ;;  %v1496_v47 = vld [vmem:[#allocation2 + $0x768] sm:$0xff]  ;;  %889 = vst [vmem:[#allocation2 + $0x100] sm:$0x7f] %v857_v30 }
 0x108   : > { %v8878_v45 = vrot.slane %v8874_v10, 7  ;;  %v8987_v30 = vld [vmem:[%s8280_s6 + $0x60] sm:$0xff] }
 0x109   : > { %6903 = vmatpush3.bf16.msra.mxu1 %v7779_v18  ;;  %v8936_v18 = vld [vmem:[%s8280_s6 + $0x28] sm:$0xff] }
 0x10a   : > { %2540 = vmatmul.mubr.bf16.gmra.mrb[20].mxu1 %v1630_v17  ;;  %746 = vst [vmem:[#allocation2 + $0x138] sm:$0xfe] %v8878_v45  ;;  %1072 = vst [vmem:[#allocation2 + $0xc0] sm:$0xfe] %v8878_v45  ;;  %v8893_v34 = vsel %vm333_vm0, %v8878_v45, %v669_v42  ;;  %6904 = vmatprep.subr.bf16.mxu1 %v7782_v9  ;;  %v1638_v17 = vpack.c.bf16 %v8694_v29, %v8681_v12  ;;  %v7786_v29 = vld [vmem:[#allocation8 + $0x1f0] sm:$0xff]  }
 0x10b   : > { %2547 = vmatprep.mubr.bf16.mxu1 %v1640_v39  ;;  %v672_v39 = vrot.slane %v605_v23, 7  ;;  %v1647_v42 = vpack.c.bf16 %v8715_v63, %v8703_v36  ;;  %v8931_v36 = vld [vmem:[%s8280_s6 + $0x18] sm:$0xff]  ;;  %v859_v9 = vld [vmem:[%s8280_s6 + $0x29] sm:$0x7f]  ;;  %v999_v23 = vrot.slane %v6310_v59, 7 }
 0x10c   : > { %v6308_v63 = vld [vmem:[%s8280_s6 + $0x18] sm:$0x7f]  ;;  %891 = vst [vmem:[#allocation2 + $0x190] sm:$0x7f] %v859_v9  ;;  %v6318_v59 = vld [vmem:[%s8280_s6 + $0x68] sm:$0x7f] }
 0x10d   : > { %v8917_v12 = vsel %vm333_vm0, %v8902_v25, %v672_v39  ;;  %v1656_v39 = vpack.c.bf16 %v8739_v8, %v8718_v51  ;;  %v6314_v51 = vld [vmem:[%s8280_s6 + $0x48] sm:$0x7f]  ;;  %v1475_v8 = vld [vmem:[#allocation2 + $0x6c0] sm:$0xff] }
 0x10e   : > { %2363 = vmatmul.mubr.bf16.gmra.mrb[28].mxu0 %v1610_v21  ;;  %v1628_v21 = vpack.c.bf16 %v8690_v24, %v1421_v27  ;;  %v1439_v24 = vld [vmem:[#allocation2 + $0x5a0] sm:$0xff]  ;;  %v1504_v27 = vld [vmem:[#allocation2 + $0x7a8] sm:$0xff]  ;;  %v1655_v9 = vpack.c.bf16 %v8758_v35, %v1475_v8 }
 0x10f   : > { %2370 = vmatprep.mubr.bf16.mxu0 %v1620_v15  ;;  %v7783_v15 = vld [vmem:[#allocation8 + $0x1a8] sm:$0xff]   ;;  %v1637_v31 = vpack.c.bf16 %v8722_v40, %v1439_v24  ;;  %v1666_v48 = vpack.c.bf16 %v1504_v27, %v8778_v38  ;;  %v860_v24 = vld [vmem:[%s8280_s6 + $0x31] sm:$0xff] }
 0x110   : > { %6905 = vmatpush3.bf16.msra.mxu1 %v7783_v15  ;;  %v1646_v15 = vpack.c.bf16 %v8743_v11, %v1457_v16  ;;  %v1676_v11 = vpack.c.bf16 %v8823_v53, %v1514_v32  ;;  %892 = vst [vmem:[#allocation2 + $0x1d8] sm:$0xff] %v860_v24  ;;  %v8974_v53 = vld [vmem:[%s8280_s6 + $0x50] sm:$0xff]  ;;  %v8990_v27 = vld [vmem:[%s8280_s6 + $0x68] sm:$0xff] }
 0x111   : > { %6906 = vmatprep.subr.bf16.mxu1 %v7786_v29  ;;  %v861_v29 = vld [vmem:[%s8280_s6 + $0x39] sm:$0x7f]  ;;  %v864_v16 = vld [vmem:[%s8280_s6 + $0x51] sm:$0xff] }
 0x112   : > { %2548 = vmatmul.mubr.bf16.gmra.mrb[24].mxu1 %v1639_v2  ;;  %v7791_v2 = vld [vmem:[#allocation8 + $0x1b8] sm:$0xff]   ;;  %893 = vst [vmem:[#allocation2 + $0x220] sm:$0x7f] %v861_v29  ;;  %896 = vst [vmem:[#allocation2 + $0x2f8] sm:$0xff] %v864_v16  ;;  %v9006_v24 = vld [vmem:[%s8280_s6 + $0x70] sm:$0xff] }
 0x113   : > { %2555 = vmatprep.mubr.bf16.mxu1 %v1649_v60  ;;  %v8926_v60 = vld [vmem:[%s8280_s6 + $0x8] sm:$0xff]  ;;  %v9009_v29 = vld [vmem:[%s8280_s6 + $0x78] sm:$0xff] }
 0x114   : > { %6907 = vmatpush3.bf16.msra.mxu1 %v7787_v4  ;;  %v1551_v40 = vpack.c.bf16 %v8926_v60, %v8833_v43  ;;  %v8960_v4 = vld [vmem:[%s8280_s6 + $0x40] sm:$0xff]  ;;  %v871_v16 = vld [vmem:[%s8280_s6 + $0x89] sm:$0x7f] }
 0x115   : > { %6908 = vmatprep.subr.bf16.mxu1 %v7790_v22  ;;  %v863_v22 = vld [vmem:[%s8280_s6 + $0x49] sm:$0x7f]  ;;  %903 = vst [vmem:[#allocation2 + $0x4f0] sm:$0x7f] %v871_v16  ;;  %v1265_v16 = vld [vmem:[#allocation2 + $0x30] sm:$0xff]  ;;  %v9200_v43 = vld [vmem:[%s8280_s6 + $0x41] sm:$0xff] }
 0x116   : > { %2371 = vmatmul.mubr.bf16.gmra.mrb[32].mxu0 %v1619_v52  ;;  %v855_v52 = vld [vmem:[%s8280_s6 + $0x9] sm:$0x7f]  ;;  %895 = vst [vmem:[#allocation2 + $0x2b0] sm:$0x7f] %v863_v22  ;;  %v10608_v22 = vpack.c.bf16 %v8762_v28, %v8746_v14  ;;  %v6353_v28 = vld [vmem:[%s8280_s6 + $0x90] sm:$0xff] }
 0x117   : > { %2378 = vmatprep.mubr.bf16.mxu0 %v1629_v13  ;;  %v1667_v13 = vpack.c.bf16 %v8797_v7, %v1496_v47  ;;  %887 = vst [vmem:[#allocation2 + $0x70] sm:$0x7f] %v855_v52  ;;  %v996_v7 = vrot.slane %v6308_v63, 7  ;;  %v1005_v47 = vrot.slane %v6314_v51, 7  ;;  %v6316_v52 = vld [vmem:[%s8280_s6 + $0x58] sm:$0x7f] }
 0x118   : > { %6909 = vmatpush3.bf16.msra.mxu1 %v7791_v2  ;;  %v1532_v2 = vld [vmem:[#allocation2 + $0x888] sm:$0xff]  ;;  %v1008_v63 = vrot.slane %v6316_v52, 7  ;;  %v1013_v51 = vrot.slane %v9006_v24, 7 }
 0x119   : > { %v6378_v60 = vld [vmem:[%s8280_s6 + $0x69] sm:$0x7f] }
 0x11a   : > { %2556 = vmatmul.mubr.bf16.gmra.mrb[28].mxu1 %v1648_v41  ;;  %v6312_v41 = vld [vmem:[%s8280_s6 + $0x38] sm:$0x7f]  ;;  %1082 = vst [vmem:[#allocation2 + $0x390] sm:$0xfe] %v1013_v51  ;;  %1222 = vst [vmem:[#allocation2 + $0x358] sm:$0x7f] %v6378_v60 }
 0x11b   : > { %2563 = vmatprep.mubr.bf16.mxu1 %v1658_v56  ;;  %v1002_v56 = vrot.slane %v6312_v41, 7  ;;  %v866_v41 = vld [vmem:[%s8280_s6 + $0x61] sm:$0xff] }
 0x11c   : > { %898 = vst [vmem:[#allocation2 + $0x388] sm:$0xff] %v866_v41  ;;  %v1019_v41 = vrot.slane %v6353_v28, 7 }
 0x11d   : > { %v8968_v38 = vsel %vm333_vm0, %v8902_v25, %v1002_v56  ;;  %v1685_v56 = vpack.c.bf16 %v8838_v49, %v1532_v2  ;;  %v6351_v49 = vld [vmem:[%s8280_s6 + $0x80] sm:$0xff] }
 0x11e   : > { %2379 = vmatmul.mubr.bf16.gmra.mrb[36].mxu0 %v1628_v21  ;;  %v8942_v21 = vsel %vm333_vm0, %v8855_v57, %v996_v7  ;;  %v8954_v57 = vsel %vm333_vm0, %v8878_v45, %v999_v23  ;;  %v1004_v45 = vrot.slane %v8960_v4, 7  ;;  %v865_v7 = vld [vmem:[%s8280_s6 + $0x59] sm:$0x7f]  ;;  %v1010_v23 = vrot.slane %v8987_v30, 7  ;;  %1086 = vst [vmem:[#allocation2 + $0x4b0] sm:$0xfe] %v1019_v41 }
 0x11f   : > { %2386 = vmatprep.mubr.bf16.mxu0 %v1638_v17  ;;  %v8946_v17 = vld [vmem:[%s8280_s6 + $0x38] sm:$0xff]  ;;  %897 = vst [vmem:[#allocation2 + $0x340] sm:$0x7f] %v865_v7  ;;  %v1016_v2 = vrot.slane %v6351_v49, 7  ;;  %v1540_v7 = vld [vmem:[#allocation2 + $0x8c8] sm:$0xff] }
 0x120   : > { %v8977_v25 = vsel %vm333_vm0, %v1004_v45, %v1005_v47  ;;  %1076 = vst [vmem:[#allocation2 + $0x1e0] sm:$0xfe] %v1004_v45  ;;  %1080 = vst [vmem:[#allocation2 + $0x300] sm:$0xfe] %v1010_v23  ;;  %v869_v45 = vld [vmem:[%s8280_s6 + $0x79] sm:$0x7f] }
 0x121   : > { %v1493_v47 = vld [vmem:[#allocation2 + $0x750] sm:$0xff]  ;;  %901 = vst [vmem:[#allocation2 + $0x460] sm:$0x7f] %v869_v45  ;;  %1084 = vst [vmem:[#allocation2 + $0x420] sm:$0xfe] %v1016_v2 }
 0x122   : > { %2564 = vmatmul.mubr.bf16.gmra.mrb[32].mxu1 %v1657_v58  ;;  %v8980_v58 = vld [vmem:[%s8280_s6 + $0x58] sm:$0xff]  ;;  %v6326_v45 = vld [vmem:[%s8280_s6 + $0xa8] sm:$0x7f] }
 0x123   : > { %2571 = vmatprep.mubr.bf16.mxu1 %v1667_v13  ;;  %v1007_v13 = vrot.slane %v8974_v53, 7 }
 0x125   : > { %1078 = vst [vmem:[#allocation2 + $0x270] sm:$0xfe] %v1007_v13  ;;  %v8995_v32 = vsel %vm333_vm0, %v1007_v13, %v1008_v63  ;;  %v6322_v13 = vld [vmem:[%s8280_s6 + $0x88] sm:$0x7f] }
 0x126   : > { %2387 = vmatmul.mubr.bf16.gmra.mrb[40].mxu0 %v1637_v31  ;;  %v862_v31 = vld [vmem:[%s8280_s6 + $0x41] sm:$0xff]  ;;  %v1017_v14 = vrot.slane %v6322_v13, 7  ;;  %v6357_v13 = vld [vmem:[%s8280_s6 + $0xb0] sm:$0xff] }
 0x127   : > { %2394 = vmatprep.mubr.bf16.mxu0 %v1647_v42  ;;  %894 = vst [vmem:[#allocation2 + $0x268] sm:$0xff] %v862_v31  ;;  %v1522_v42 = vld [vmem:[#allocation2 + $0x838] sm:$0xff]  ;;  %v6352_v31 = vld [vmem:[%s8280_s6 + $0x88] sm:$0xff] }
 0x128   : > { %v9023_v52 = vpack.c.bf16 %v6352_v31, %v6351_v49  ;;  %v870_v63 = vld [vmem:[%s8280_s6 + $0x81] sm:$0xff]  ;;  %v1023_v31 = vrot.slane %v6326_v45, 7 }
 0x129   : > { %902 = vst [vmem:[#allocation2 + $0x4a8] sm:$0xff] %v870_v63 }
 0x12a   : > { %2572 = vmatmul.mubr.bf16.gmra.mrb[36].mxu1 %v1666_v48  ;;  %v1675_v48 = vpack.c.bf16 %v1522_v42, %v8805_v20  ;;  %v868_v20 = vld [vmem:[%s8280_s6 + $0x71] sm:$0xff] }
 0x12b   : > { %2579 = vmatprep.mubr.bf16.mxu1 %v1676_v11  ;;  %v6320_v11 = vld [vmem:[%s8280_s6 + $0x78] sm:$0x7f]  ;;  %900 = vst [vmem:[#allocation2 + $0x418] sm:$0xff] %v868_v20  ;;  %v6356_v20 = vld [vmem:[%s8280_s6 + $0xa8] sm:$0xff] }
 0x12c   : > { %v1014_v8 = vrot.slane %v6320_v11, 7  ;;  %v872_v11 = vld [vmem:[%s8280_s6 + $0x91] sm:$0xff] }
 0x12d   : > { %904 = vst [vmem:[#allocation2 + $0x538] sm:$0xff] %v872_v11  ;;  %v1262_v11 = vld [vmem:[#allocation2 + $0x18] sm:$0xff] }
 0x12e   : > { %2395 = vmatmul.mubr.bf16.gmra.mrb[44].mxu0 %v1646_v15  ;;  %v1011_v15 = vrot.slane %v6318_v59, 7  ;;  %v9021_v42 = vsel %vm333_vm0, %v1013_v51, %v1014_v8  ;;  %v1664_v59 = vpack.c.bf16 %v8790_v50, %v1493_v47  ;;  %v873_v51 = vld [vmem:[%s8280_s6 + $0x99] sm:$0x7f]  ;;  %v9042_v8 = vpack.c.bf16 %v8931_v36, %v8851_v44  ;;  %v6355_v50 = vld [vmem:[%s8280_s6 + $0xa0] sm:$0xff] }
 0x12f   : > { %2402 = vmatprep.mubr.bf16.mxu0 %v1656_v39  ;;  %v867_v39 = vld [vmem:[%s8280_s6 + $0x69] sm:$0x7f]  ;;  %905 = vst [vmem:[#allocation2 + $0x580] sm:$0x7f] %v873_v51  ;;  %v1022_v49 = vrot.slane %v6355_v50, 7  ;;  %v1025_v44 = vrot.slane %v6357_v13, 7  ;;  %v10609_v36 = vpack.c.bf16 %v8786_v0, %v8774_v61  ;;  %v1553_v61 = vpack.c.bf16 %v8942_v21, %v1265_v16 }
 0x130   : > { %899 = vst [vmem:[#allocation2 + $0x3d0] sm:$0x7f] %v867_v39  ;;  %v9003_v35 = vsel %vm333_vm0, %v1010_v23, %v1011_v15  ;;  %v6354_v23 = vld [vmem:[%s8280_s6 + $0x98] sm:$0xff]  ;;  %v1684_v39 = vpack.c.bf16 %v1540_v7, %v8820_v6  ;;  %v9050_v6 = vpack.c.bf16 %v6356_v20, %v6355_v50  ;;  %v1529_v21 = vld [vmem:[#allocation2 + $0x870] sm:$0xff]  ;;  %v10610_v51 = vpack.c.bf16 %v8812_v46, %v8800_v37  ;;  %v6330_v20 = vld [vmem:[%s8280_s6 + $0xc8] sm:$0x7f] }
 0x131   : > { %v6324_v15 = vld [vmem:[%s8280_s6 + $0x98] sm:$0x7f]  ;;  %v9058_v63 = vsel %vm333_vm0, %v1022_v49, %v1023_v31  ;;  %1088 = vst [vmem:[#allocation2 + $0x540] sm:$0xfe] %v1022_v49  ;;  %1090 = vst [vmem:[#allocation2 + $0x5d0] sm:$0xfe] %v1025_v44  ;;  %v1550_v45 = vpack.c.bf16 %v8843_v3, %v1262_v11  ;;  %v9096_v37 = vpack.c.bf16 %v8946_v17, %v8897_v33 }
 0x132   : > { %2580 = vmatmul.mubr.bf16.gmra.mrb[40].mxu1 %v1675_v48  ;;  %v9036_v48 = vpack.c.bf16 %v6354_v23, %v6353_v28  ;;  %v6328_v28 = vld [vmem:[%s8280_s6 + $0xb8] sm:$0x7f]  ;;  %v6359_v23 = vld [vmem:[%s8280_s6 + $0xc0] sm:$0xff]  ;;  %v1029_v31 = vrot.slane %v6330_v20, 7  ;;  %v6360_v46 = vld [vmem:[%s8280_s6 + $0xc8] sm:$0xff] }
 0x133   : > { %2587 = vmatprep.mubr.bf16.mxu1 %v1685_v56  ;;  %v1020_v56 = vrot.slane %v6324_v15, 7  ;;  %v1026_v0 = vrot.slane %v6328_v28, 7  ;;  %v9072_v15 = vpack.c.bf16 %v8936_v18, %v8874_v10  ;;  %v1283_v10 = vld [vmem:[#allocation2 + $0xc0] sm:$0xff]  ;;  %v1682_v18 = vpack.c.bf16 %v8829_v54, %v1529_v21  ;;  %v9086_v50 = vld [vmem:[%s8280_s6 + $0xb1] sm:$0xff] }
 0x134   : > { %v1562_v49 = vpack.c.bf16 %v8954_v57, %v1283_v10  ;;  %908 = vst [vmem:[#allocation2 + $0x658] sm:$0xff] %v9086_v50  ;;  %v1280_v57 = vld [vmem:[#allocation2 + $0xa8] sm:$0xff]  ;;  %v1301_v33 = vld [vmem:[#allocation2 + $0x150] sm:$0xff]  ;;  %v7761_v17 = vld [vmem:[#allocation8 + $0x100] sm:$0xff]  }
 0x135   : > { %v9048_v47 = vsel %vm333_vm0, %v1019_v41, %v1020_v56  ;;  %v6358_v41 = vld [vmem:[%s8280_s6 + $0xb8] sm:$0xff]  ;;  %v9078_v56 = vsel %vm333_vm0, %v1025_v44, %v1026_v0  ;;  %v1559_v0 = vpack.c.bf16 %v8863_v1, %v1280_v57  ;;  %v1288_v10 = vld [vmem:[#allocation2 + $0xe8] sm:$0xff]  ;;  %v6365_v57 = vld [vmem:[%s8280_s6 + $0xf0] sm:$0xff] }
 0x136   : > { %2403 = vmatmul.mubr.bf16.gmra.mrb[48].mxu0 %v1655_v9  ;;  %v9031_v9 = vsel %vm333_vm0, %v1016_v2, %v1017_v14  ;;  %v1511_v2 = vld [vmem:[#allocation2 + $0x7e0] sm:$0xff]  ;;  %v1270_v44 = vld [vmem:[#allocation2 + $0x58] sm:$0xff] }
 0x137   : > { %2410 = vmatprep.mubr.bf16.mxu0 %v10608_v22  ;;  %v875_v22 = vld [vmem:[%s8280_s6 + $0xa9] sm:$0x7f]  ;;  %v1673_v7 = vpack.c.bf16 %v8808_v19, %v1511_v2  ;;  %v9063_v14 = vld [vmem:[%s8280_s6 + $0xa1] sm:$0xff]  ;;  %v9075_v19 = vpack.c.bf16 %v6358_v41, %v6357_v13  ;;  %v6361_v13 = vld [vmem:[%s8280_s6 + $0xd0] sm:$0xff] }
 0x138   : > { %907 = vst [vmem:[#allocation2 + $0x610] sm:$0x7f] %v875_v22  ;;  %906 = vst [vmem:[#allocation2 + $0x5c8] sm:$0xff] %v9063_v14  ;;  %v879_v22 = vld [vmem:[%s8280_s6 + $0xc9] sm:$0x7f]  ;;  %v1031_v54 = vrot.slane %v6361_v13, 7 }
 0x139   : > { %911 = vst [vmem:[#allocation2 + $0x730] sm:$0x7f] %v879_v22  ;;  %v9105_v2 = vld [vmem:[#allocation2 + $0x8] sm:$0xff]  ;;  %v6332_v28 = vld [vmem:[%s8280_s6 + $0xd8] sm:$0x7f]  ;;  %v6363_v41 = vld [vmem:[%s8280_s6 + $0xe0] sm:$0xff] }
 0x13a   : > { %2588 = vmatmul.mubr.bf16.gmra.mrb[44].mxu1 %v1684_v39  ;;  %v1028_v39 = vrot.slane %v6359_v23, 7  ;;  %1094 = vst [vmem:[#allocation2 + $0x6f0] sm:$0xfe] %v1031_v54  ;;  %v1549_v16 = vpack.c.bf16 %v1270_v44, %v9105_v2  ;;  %v6362_v21 = vld [vmem:[%s8280_s6 + $0xd8] sm:$0xff]  ;;  %v1034_v11 = vrot.slane %v6363_v41, 7 }
 0x13b   : > { %2789 = vmatprep.mubr.bf16.mxu1 %v9042_v8  ;;  %v9122_v20 = vpack.c.bf16 %v6362_v21, %v6361_v13  ;;  %v9130_v22 = vld [vmem:[%s8280_s6 + $0xd1] sm:$0xff]  ;;  %v6334_v13 = vld [vmem:[%s8280_s6 + $0xe8] sm:$0x7f]  ;;  %v885_v21 = vld [vmem:[%s8280_s6 + $0xf9] sm:$0x7f] }
 0x13c   : > { %1092 = vst [vmem:[#allocation2 + $0x660] sm:$0xfe] %v1028_v39  ;;  %v9102_v3 = vsel %vm333_vm0, %v1028_v39, %v1029_v31  ;;  %v1571_v39 = vpack.c.bf16 %v8968_v38, %v1301_v33  ;;  %1096 = vst [vmem:[#allocation2 + $0x780] sm:$0xfe] %v1034_v11  ;;  %v1319_v38 = vld [vmem:[#allocation2 + $0x1e0] sm:$0xff]  ;;  %v7772_v31 = vld [vmem:[#allocation8 + $0x158] sm:$0xff]  }
 0x13d   : > { %912 = vst [vmem:[#allocation2 + $0x778] sm:$0xff] %v9130_v22  ;;  %v883_v44 = vld [vmem:[%s8280_s6 + $0xe9] sm:$0x7f]  ;;  %v1580_v33 = vpack.c.bf16 %v8977_v25, %v1319_v38  ;;  %917 = vst [vmem:[#allocation2 + $0x8e0] sm:$0x7f] %v885_v21 }
 0x13e   : > { %2411 = vmatmul.mubr.bf16.gmra.mrb[52].mxu0 %v1664_v59  ;;  %v877_v59 = vld [vmem:[%s8280_s6 + $0xb9] sm:$0x7f]  ;;  %915 = vst [vmem:[#allocation2 + $0x850] sm:$0x7f] %v883_v44  ;;  %v1316_v25 = vld [vmem:[#allocation2 + $0x1c8] sm:$0xff] }
 0x13f   : > { %2418 = vmatprep.mubr.bf16.mxu0 %v10609_v36  ;;  %909 = vst [vmem:[#allocation2 + $0x6a0] sm:$0x7f] %v877_v59  ;;  %v9099_v36 = vpack.c.bf16 %v6360_v46, %v6359_v23  ;;  %v881_v59 = vld [vmem:[%s8280_s6 + $0xd9] sm:$0x7f]  ;;  %v1032_v23 = vrot.slane %v6332_v28, 7  ;;  %v7781_v38 = vld [vmem:[#allocation8 + $0x128] sm:$0xff]  }
 0x140   : > { %913 = vst [vmem:[#allocation2 + $0x7c0] sm:$0x7f] %v881_v59  ;;  %v7773_v28 = vld [vmem:[#allocation8 + $0x118] sm:$0xff]   ;;  %v9141_v59 = vpack.c.bf16 %v8980_v58, %v8974_v53  ;;  %v9151_v58 = vld [vmem:[%s8280_s6 + $0xe1] sm:$0xff] }
 0x141   : > { %v9125_v1 = vsel %vm333_vm0, %v1031_v54, %v1032_v23  ;;  %v1035_v54 = vrot.slane %v6334_v13, 7  ;;  %v1337_v23 = vld [vmem:[#allocation2 + $0x270] sm:$0xff]  ;;  %914 = vst [vmem:[#allocation2 + $0x808] sm:$0xff] %v9151_v58  ;;  %v6368_v44 = vld [vmem:[%s8280_s6 + $0x19] sm:$0x7f] }
 0x142   : > { %2790 = vmatmul.mubr.bf16.vlgmr.msra.gmra.mrb[48].mxu1 %v1553_v61  ;;  %v7764_v61 = vld [vmem:[#allocation8 + $0x148] sm:$0xff]   ;;  %v1273_v13 = vld [vmem:[#allocation2 + $0x70] sm:$0xff]  ;;  %1212 = vst [vmem:[#allocation2 + $0x88] sm:$0x7f] %v6368_v44 }
 0x143   : > { %2797 = vmatprep.mubr.bf16.mxu1 %v9072_v15 }
 0x146   : > { %2419 = vmatmul.mubr.bf16.gmra.mrb[56].mxu0 %v1673_v7  ;;  %v9109_v7 = vld [vmem:[%s8280_s6 + $0xc1] sm:$0xff] }
 0x147   : > { %2426 = vmatprep.mubr.bf16.mxu0 %v10610_v51  ;;  %910 = vst [vmem:[#allocation2 + $0x6e8] sm:$0xff] %v9109_v7  ;;  %v7765_v51 = vld [vmem:[#allocation8 + $0x108] sm:$0xff]  }
 0x14a   : > { %2798 = vmatmul.mubr.bf16.gmra.mrb[52].mxu1 %v1562_v49  ;;  %v1298_v49 = vld [vmem:[#allocation2 + $0x138] sm:$0xff] }
 0x14b   : > { %2805 = vmatprep.mubr.bf16.mxu1 %v9096_v37  ;;  %v1568_v46 = vpack.c.bf16 %v8893_v34, %v1298_v49  ;;  %v6366_v49 = vld [vmem:[%s8280_s6 + $0xf8] sm:$0xff] }
 0x14e   : > { %2427 = vmatmul.mubr.bf16.gmra.mrb[60].mxu0 %v1682_v18  ;;  %v9120_v18 = vpack.c.bf16 %v8963_v62, %v8960_v4  ;;  %v7769_v4 = vld [vmem:[#allocation8 + $0x110] sm:$0xff]   ;;  %v1558_v62 = vpack.c.bf16 %v1288_v10, %v8858_v26  ;;  %v1306_v26 = vld [vmem:[#allocation2 + $0x178] sm:$0xff] }
 0x14f   : > { %2467 = vmatprep.mubr.bf16.mxu0 %v1550_v45  ;;  %v7768_v45 = vld [vmem:[#allocation8 + $0x150] sm:$0xff]   ;;  %v1567_v53 = vpack.c.bf16 %v1306_v26, %v8881_v5  ;;  %v9161_v5 = vpack.c.bf16 %v8990_v27, %v8987_v30  ;;  %v7788_v27 = vld [vmem:[#allocation8 + $0x178] sm:$0xff]   ;;  %v7792_v26 = vld [vmem:[#allocation8 + $0x200] sm:$0xff]  }
 0x152   : > { %2806 = vmatmul.mubr.bf16.gmra.mrb[56].mxu1 %v1571_v39  ;;  %v7777_v39 = vld [vmem:[#allocation8 + $0x120] sm:$0xff]  }
 0x153   : > { %2813 = vmatprep.mubr.bf16.mxu1 %v9120_v18 }
 0x156   : > { %2468 = vmatmul.mubr.bf16.vlgmr.msra.gmra.mrb[64].mxu0 %v1549_v16  ;;  %v1037_v16 = vrot.slane %v6365_v57, 7 }
 0x157   : > { %6783 = vmatpush3.bf16.msra.mxu0 %v7761_v17  ;;  %2475 = vmatprep.mubr.bf16.mxu0 %v1559_v0  ;;  %v6364_v17 = vld [vmem:[%s8280_s6 + $0xe8] sm:$0xff]  ;;  %v7776_v0 = vld [vmem:[#allocation8 + $0x160] sm:$0xff]  }
 0x158   : > { %6784 = vmatprep.subr.bf16.mxu0 %v7764_v61  ;;  %v9143_v34 = vpack.c.bf16 %v6364_v17, %v6363_v41  ;;  %v9146_v61 = vsel %vm333_vm0, %v1034_v11, %v1035_v54  ;;  %1098 = vst [vmem:[#allocation2 + $0x810] sm:$0xfe] %v1037_v16  ;;  %v6336_v41 = vld [vmem:[%s8280_s6 + $0xf8] sm:$0x7f]  ;;  %v7780_v11 = vld [vmem:[#allocation8 + $0x168] sm:$0xff]  }
 0x159   : > { %v1038_v10 = vrot.slane %v6336_v41, 7  ;;  %v9171_v54 = vld [vmem:[%s8280_s6 + $0xf1] sm:$0xff]  ;;  %v6370_v17 = vld [vmem:[%s8280_s6 + $0x29] sm:$0x7f] }
 0x15a   : > { %2814 = vmatmul.mubr.bf16.gmra.mrb[60].mxu1 %v1580_v33  ;;  %916 = vst [vmem:[#allocation2 + $0x898] sm:$0xff] %v9171_v54  ;;  %1214 = vst [vmem:[#allocation2 + $0x118] sm:$0x7f] %v6370_v17  ;;  %v6374_v41 = vld [vmem:[%s8280_s6 + $0x49] sm:$0x7f]  ;;  %v1345_v17 = vld [vmem:[#allocation2 + $0x2b0] sm:$0xff] }
 0x15b   : > { %6785 = vmatpush3.bf16.msra.mxu0 %v7765_v51  ;;  %2821 = vmatprep.mubr.bf16.mxu1 %v9141_v59  ;;  %v1577_v51 = vpack.c.bf16 %v8917_v12, %v1316_v25  ;;  %v9166_v12 = vsel %vm333_vm0, %v1037_v16, %v1038_v10  ;;  %v1373_v25 = vld [vmem:[#allocation2 + $0x390] sm:$0xff]  ;;  %1218 = vst [vmem:[#allocation2 + $0x238] sm:$0x7f] %v6374_v41  ;;  %v1391_v10 = vld [vmem:[#allocation2 + $0x420] sm:$0xff]  ;;  %v6388_v41 = vld [vmem:[%s8280_s6 + $0xb9] sm:$0x7f] }
 0x15c   : > { %6786 = vmatprep.subr.bf16.mxu0 %v7768_v45  ;;  %v1589_v45 = vpack.c.bf16 %v8995_v32, %v1337_v23  ;;  %v1355_v32 = vld [vmem:[#allocation2 + $0x300] sm:$0xff]  ;;  %v9183_v23 = vld [vmem:[%s8280_s6 + $0x11] sm:$0xff]  ;;  %v1607_v21 = vpack.c.bf16 %v9021_v42, %v1373_v25  ;;  %v7885_v25 = vld [vmem:[#allocation2 + $0x268] sm:$0xff]  ;;  %1232 = vst [vmem:[#allocation2 + $0x628] sm:$0x7f] %v6388_v41 }
 0x15d   : > { %v1598_v16 = vpack.c.bf16 %v9003_v35, %v1355_v32  ;;  %v6372_v35 = vld [vmem:[%s8280_s6 + $0x39] sm:$0x7f]  ;;  %v7883_v42 = vld [vmem:[#allocation2 + $0x1c0] sm:$0xff]  ;;  %v1409_v32 = vld [vmem:[#allocation2 + $0x4b0] sm:$0xff] }
 0x15e   : > { %2476 = vmatmul.mubr.bf16.gmra.mrb[68].mxu0 %v1558_v62  ;;  %v9163_v62 = vpack.c.bf16 %v6366_v49, %v6365_v57  ;;  %v7881_v57 = vld [vmem:[#allocation2 + $0xa0] sm:$0xff]  ;;  %1216 = vst [vmem:[#allocation2 + $0x1a8] sm:$0x7f] %v6372_v35  ;;  %v6376_v49 = vld [vmem:[%s8280_s6 + $0x59] sm:$0x7f]  ;;  %v1588_v35 = vpack.c.bf16 %v1345_v17, %v7885_v25  ;;  %v1453_v41 = vld [vmem:[#allocation2 + $0x610] sm:$0xff] }
 0x15f   : > { %6787 = vmatpush3.bf16.msra.mxu0 %v7769_v4  ;;  %2483 = vmatprep.mubr.bf16.mxu0 %v1568_v46  ;;  %v1324_v4 = vld [vmem:[#allocation2 + $0x208] sm:$0xff]  ;;  %v7785_v46 = vld [vmem:[#allocation8 + $0x130] sm:$0xff]   ;;  %v1552_v33 = vpack.c.bf16 %v1273_v13, %v7881_v57  ;;  %1220 = vst [vmem:[#allocation2 + $0x2c8] sm:$0x7f] %v6376_v49  ;;  %v7796_v13 = vld [vmem:[#allocation8 + $0x220] sm:$0xff]  }
 0x160   : > { %6788 = vmatprep.subr.bf16.mxu0 %v7772_v31  ;;  %v7784_v31 = vld [vmem:[#allocation8 + $0x170] sm:$0xff]   ;;  %v1576_v30 = vpack.c.bf16 %v1324_v4, %v8908_v55  ;;  %v9179_v55 = vpack.c.bf16 %v9009_v29, %v9006_v24  ;;  %v7793_v24 = vld [vmem:[#allocation8 + $0x208] sm:$0xff]   ;;  %v7795_v4 = vld [vmem:[#allocation8 + $0x218] sm:$0xff]  }
 0x161   : > { %v9187_v29 = vld [vmem:[%s8280_s6 + $0x21] sm:$0xff]  ;;  %v6392_v49 = vld [vmem:[%s8280_s6 + $0xd9] sm:$0x7f] }
 0x162   : > { %2822 = vmatmul.mubr.bf16.gmra.mrb[64].mxu1 %v1589_v45  ;;  %v9196_v45 = vld [vmem:[%s8280_s6 + $0x31] sm:$0xff]  ;;  %v9211_v57 = vld [vmem:[%s8280_s6 + $0x61] sm:$0xff]  ;;  %1236 = vst [vmem:[#allocation2 + $0x748] sm:$0x7f] %v6392_v49 }
 0x163   : > { %6789 = vmatpush3.bf16.msra.mxu0 %v7773_v28  ;;  %2829 = vmatprep.mubr.bf16.mxu1 %v9161_v5  ;;  %v7789_v28 = vld [vmem:[#allocation8 + $0x138] sm:$0xff]  }
 0x164   : > { %6790 = vmatprep.subr.bf16.mxu0 %v7776_v0  ;;  %v1291_v0 = vld [vmem:[#allocation2 + $0x100] sm:$0xff] }
 0x166   : > { %2484 = vmatmul.mubr.bf16.gmra.mrb[72].mxu0 %v1567_v53 }
 0x167   : > { %6791 = vmatpush3.bf16.msra.mxu0 %v7777_v39  ;;  %2491 = vmatprep.mubr.bf16.mxu0 %v1577_v51  ;;  %v7882_v39 = vld [vmem:[#allocation2 + $0x130] sm:$0xff] }
 0x168   : > { %6792 = vmatprep.subr.bf16.mxu0 %v7780_v11  ;;  %v1561_v53 = vpack.c.bf16 %v1291_v0, %v7882_v39  ;;  %v1309_v11 = vld [vmem:[#allocation2 + $0x190] sm:$0xff]  ;;  %v6384_v0 = vld [vmem:[%s8280_s6 + $0x99] sm:$0x7f] }
 0x169   : > { %v7794_v51 = vld [vmem:[#allocation8 + $0x210] sm:$0xff]   ;;  %1228 = vst [vmem:[#allocation2 + $0x508] sm:$0x7f] %v6384_v0 }
 0x16a   : > { %2830 = vmatmul.mubr.bf16.gmra.mrb[68].mxu1 %v1598_v16  ;;  %v7798_v16 = vld [vmem:[#allocation8 + $0x230] sm:$0xff]  }
 0x16b   : > { %6793 = vmatpush3.bf16.msra.mxu0 %v7781_v38  ;;  %2837 = vmatprep.mubr.bf16.mxu1 %v9179_v55  ;;  %v1570_v38 = vpack.c.bf16 %v1309_v11, %v7883_v42  ;;  %v7887_v42 = vld [vmem:[#allocation2 + $0x388] sm:$0xff]  ;;  %v1517_v0 = vld [vmem:[#allocation2 + $0x810] sm:$0xff] }
 0x16c   : > { %6794 = vmatprep.subr.bf16.mxu0 %v7784_v31  ;;  %v1327_v31 = vld [vmem:[#allocation2 + $0x220] sm:$0xff] }
 0x16e   : > { %2492 = vmatmul.mubr.bf16.gmra.mrb[76].mxu0 %v1576_v30  ;;  %v6380_v30 = vld [vmem:[%s8280_s6 + $0x79] sm:$0x7f] }
 0x16f   : > { %6795 = vmatpush3.bf16.msra.mxu0 %v7785_v46  ;;  %2628 = vmatprep.mubr.bf16.mxu0 %v1552_v33  ;;  %v9207_v46 = vld [vmem:[%s8280_s6 + $0x51] sm:$0xff]  ;;  %1224 = vst [vmem:[#allocation2 + $0x3e8] sm:$0x7f] %v6380_v30  ;;  %v1625_v33 = vpack.c.bf16 %v9048_v47, %v1409_v32 }
 0x170   : > { %6796 = vmatprep.subr.bf16.mxu0 %v7788_v27  ;;  %v7884_v27 = vld [vmem:[#allocation2 + $0x1d8] sm:$0xff]  ;;  %v1417_v30 = vld [vmem:[#allocation2 + $0x4f0] sm:$0xff] }
 0x171   : > { %v1579_v44 = vpack.c.bf16 %v1327_v31, %v7884_v27  ;;  %v7799_v47 = vld [vmem:[#allocation8 + $0x238] sm:$0xff]  }
 0x172   : > { %2838 = vmatmul.mubr.bf16.gmra.mrb[72].mxu1 %v1607_v21  ;;  %v7886_v21 = vld [vmem:[#allocation2 + $0x2f8] sm:$0xff] }
 0x173   : > { %6797 = vmatpush3.bf16.msra.mxu0 %v7789_v28  ;;  %2845 = vmatprep.mubr.bf16.mxu1 %v9023_v52  ;;  %v1427_v28 = vld [vmem:[#allocation2 + $0x540] sm:$0xff]  ;;  %v7888_v31 = vld [vmem:[#allocation2 + $0x418] sm:$0xff] }
 0x174   : > { %7590 = vmatprep.subr.bf16.mxu0 %v7792_v26  ;;  %v1634_v39 = vpack.c.bf16 %v9058_v63, %v1427_v28  ;;  %v6390_v63 = vld [vmem:[%s8280_s6 + $0xc9] sm:$0x7f] }
 0x175   : > { %1234 = vst [vmem:[#allocation2 + $0x6b8] sm:$0x7f] %v6390_v63 }
 0x176   : > { %2629 = vmatmul.mubr.bf16.vlgmr.msra.gmra.mrb[80].mxu0 %v1551_v40  ;;  %v1616_v40 = vpack.c.bf16 %v9031_v9, %v1391_v10  ;;  %v7797_v9 = vld [vmem:[#allocation8 + $0x228] sm:$0xff]   ;;  %v1463_v10 = vld [vmem:[#allocation2 + $0x660] sm:$0xff] }
 0x177   : > { %7591 = vmatpush3.bf16.msra.mxu0 %v7792_v26  ;;  %2636 = vmatprep.mubr.bf16.mxu0 %v1561_v53  ;;  %v9218_v26 = vld [vmem:[%s8280_s6 + $0x71] sm:$0xff]  ;;  %v1363_v53 = vld [vmem:[#allocation2 + $0x340] sm:$0xff]  ;;  %v1652_v60 = vpack.c.bf16 %v9102_v3, %v1463_v10 }
 0x178   : > { %7592 = vmatprep.subr.bf16.mxu0 %v7793_v24  ;;  %v1597_v11 = vpack.c.bf16 %v1363_v53, %v7886_v21  ;;  %v1679_v53 = vpack.c.bf16 %v9166_v12, %v1517_v0  ;;  %v1642_v12 = vpack.c.bf16 %v1453_v41, %v9063_v14 }
 0x17a   : > { %2846 = vmatmul.mubr.bf16.gmra.mrb[76].mxu1 %v1616_v40  ;;  %v6396_v40 = vld [vmem:[%s8280_s6 + $0xf9] sm:$0x7f] }
 0x17b   : > { %7593 = vmatpush3.bf16.msra.mxu0 %v7793_v24  ;;  %2853 = vmatprep.mubr.bf16.mxu1 %v9036_v48  ;;  %v1445_v24 = vld [vmem:[#allocation2 + $0x5d0] sm:$0xff]  ;;  %1240 = vst [vmem:[#allocation2 + $0x868] sm:$0x7f] %v6396_v40  ;;  %v1471_v40 = vld [vmem:[#allocation2 + $0x6a0] sm:$0xff] }
 0x17c   : > { %7594 = vmatprep.subr.bf16.mxu0 %v7794_v51 }
 0x17e   : > { %2637 = vmatmul.mubr.bf16.gmra.mrb[84].mxu0 %v9042_v8  ;;  %v6382_v8 = vld [vmem:[%s8280_s6 + $0x89] sm:$0x7f] }
 0x17f   : > { %2644 = vmatprep.mubr.bf16.mxu0 %v1570_v38  ;;  %7595 = vmatpush3.bf16.msra.mxu0 %v7794_v51  ;;  %1226 = vst [vmem:[#allocation2 + $0x478] sm:$0x7f] %v6382_v8  ;;  %v1643_v51 = vpack.c.bf16 %v9078_v56, %v1445_v24  ;;  %v1399_v56 = vld [vmem:[#allocation2 + $0x460] sm:$0xff]  ;;  %v9241_v8 = vld [vmem:[#allocation2 + $0x4a8] sm:$0xff] }
 0x180   : > { %7596 = vmatprep.subr.bf16.mxu0 %v7795_v4 }
 0x182   : > { %2854 = vmatmul.mubr.bf16.gmra.mrb[80].mxu1 %v1625_v33  ;;  %v1624_v33 = vpack.c.bf16 %v1417_v30, %v9241_v8 }
 0x183   : > { %7597 = vmatpush3.bf16.msra.mxu0 %v7795_v4  ;;  %2861 = vmatprep.mubr.bf16.mxu1 %v9050_v6  ;;  %v6394_v4 = vld [vmem:[%s8280_s6 + $0xe9] sm:$0x7f] }
 0x184   : > { %7598 = vmatprep.subr.bf16.mxu0 %v7796_v13  ;;  %1238 = vst [vmem:[#allocation2 + $0x7d8] sm:$0x7f] %v6394_v4 }
 0x186   : > { %2645 = vmatmul.mubr.bf16.gmra.mrb[88].mxu0 %v9072_v15  ;;  %v6386_v15 = vld [vmem:[%s8280_s6 + $0xa9] sm:$0x7f] }
 0x187   : > { %2652 = vmatprep.mubr.bf16.mxu0 %v1579_v44  ;;  %7599 = vmatpush3.bf16.msra.mxu0 %v7796_v13  ;;  %1230 = vst [vmem:[#allocation2 + $0x598] sm:$0x7f] %v6386_v15  ;;  %v1615_v13 = vpack.c.bf16 %v1399_v56, %v7888_v31  ;;  %v9251_v15 = vld [vmem:[#allocation2 + $0x538] sm:$0xff] }
 0x188   : > { %7600 = vmatprep.subr.bf16.mxu0 %v7797_v9 }
 0x18a   : > { %2862 = vmatmul.mubr.bf16.gmra.mrb[84].mxu1 %v1634_v39 }
 0x18b   : > { %7601 = vmatpush3.bf16.msra.mxu0 %v7797_v9  ;;  %2869 = vmatprep.mubr.bf16.mxu1 %v9075_v19 }
 0x18c   : > { %7602 = vmatprep.subr.bf16.mxu0 %v7798_v16 }
 0x18e   : > { %2653 = vmatmul.mubr.bf16.gmra.mrb[92].mxu0 %v9096_v37  ;;  %v1381_v37 = vld [vmem:[#allocation2 + $0x3d0] sm:$0xff] }
 0x18f   : > { %2660 = vmatprep.mubr.bf16.mxu0 %v1588_v35  ;;  %7603 = vmatpush3.bf16.msra.mxu0 %v7798_v16  ;;  %v1606_v38 = vpack.c.bf16 %v1381_v37, %v7887_v42 }
 0x190   : > { %7604 = vmatprep.subr.bf16.mxu0 %v7799_v47 }
 0x192   : > { %2870 = vmatmul.mubr.bf16.gmra.mrb[88].mxu1 %v1643_v51 }
 0x193   : > { %7605 = vmatpush3.bf16.msra.mxu0 %v7799_v47  ;;  %2877 = vmatprep.mubr.bf16.mxu1 %v9099_v36 }
 0x196   : > { %2661 = vmatmul.mubr.bf16.gmra.mrb[96].mxu0 %v9120_v18  ;;  %v1481_v18 = vld [vmem:[#allocation2 + $0x6f0] sm:$0xff] }
 0x197   : > { %2668 = vmatprep.mubr.bf16.mxu0 %v1597_v11  ;;  %v1661_v32 = vpack.c.bf16 %v9125_v1, %v1481_v18  ;;  %v1535_v11 = vld [vmem:[#allocation2 + $0x8a0] sm:$0xff] }
 0x19a   : > { %2878 = vmatmul.mubr.bf16.gmra.mrb[92].mxu1 %v1652_v60  ;;  %v1688_v60 = vpack.c.bf16 %v9105_v2, %v1535_v11 }
 0x19b   : > { %2885 = vmatprep.mubr.bf16.mxu1 %v9122_v20 }
 0x19e   : > { %2669 = vmatmul.mubr.bf16.gmra.mrb[100].mxu0 %v9141_v59  ;;  %v1499_v59 = vld [vmem:[#allocation2 + $0x780] sm:$0xff] }
 0x19f   : > { %2676 = vmatprep.mubr.bf16.mxu0 %v1606_v38  ;;  %v1670_v1 = vpack.c.bf16 %v9146_v61, %v1499_v59 }
 0x1a2   : > { %2886 = vmatmul.mubr.bf16.gmra.mrb[96].mxu1 %v1661_v32 }
 0x1a3   : > { %2893 = vmatprep.mubr.bf16.mxu1 %v9143_v34 }
 0x1a6   : > { %2677 = vmatmul.mubr.bf16.gmra.mrb[104].mxu0 %v9161_v5  ;;  %v1435_v5 = vld [vmem:[#allocation2 + $0x580] sm:$0xff] }
 0x1a7   : > { %2684 = vmatprep.mubr.bf16.mxu0 %v1615_v13  ;;  %v1633_v39 = vpack.c.bf16 %v1435_v5, %v9251_v15 }
 0x1a9   : > { %v6574_v3 = vpop.f32.mrb[0].mxu0 }
 0x1aa   : > { %v6575_v27 = vpop.f32.mrb[1].mxu0  ;;  %2894 = vmatmul.mubr.bf16.gmra.mrb[100].mxu1 %v1670_v1  ;;  %v1489_v1 = vld [vmem:[#allocation2 + $0x730] sm:$0xff] }
 0x1ab   : > { %v9239_v44 = vadd.f32 %v6575_v27, %v6574_v3  ;;  %v6577_v9 = vpop.f32.mrb[2].mxu0  ;;  %2901 = vmatprep.mubr.bf16.mxu1 %v9163_v62  ;;  %v1651_v3 = vpack.c.bf16 %v1471_v40, %v9086_v50 }
 0x1ac   : > { %v6578_v17 = vpop.f32.mrb[3].mxu0 }
 0x1ad   : > { %v9245_v16 = vadd.f32 %v6578_v17, %v6577_v9 }
 0x1ae   : > { %2685 = vmatmul.mubr.bf16.gmra.mrb[108].mxu0 %v9179_v55  ;;  %v1689_v55 = vpack.c.bf16 %v9105_v2, %v9105_v2 }
 0x1af   : > { %2692 = vmatprep.mubr.bf16.mxu0 %v1624_v33 }
 0x1b1   : > { %v6580_v28 = vpop.f32.mrb[4].mxu0 }
 0x1b2   : > { %v6581_v25 = vpop.f32.mrb[5].mxu0  ;;  %2902 = vmatmul.mubr.bf16.gmra.mrb[104].mxu1 %v1679_v53 }
 0x1b3   : > { %v9249_v35 = vadd.f32 %v6581_v25, %v6580_v28  ;;  %v6583_v47 = vpop.f32.mrb[6].mxu0  ;;  %2909 = vmatprep.mubr.bf16.mxu1 %v1689_v55 }
 0x1b4   : > { %v6584_v61 = vpop.f32.mrb[7].mxu0 }
 0x1b5   : > { %v9255_v24 = vadd.f32 %v6584_v61, %v6583_v47  ;;  %v6710_v51 = vpop.f32.mrb[0].mxu1  ;;  %v9277_v61 = vld [vmem:[%s10591_s2] ss:$0 sm:$0xff] }
 0x1b6   : > { %2693 = vmatmul.mubr.bf16.gmra.mrb[112].mxu0 %v9023_v52  ;;  %v6711_v49 = vpop.f32.mrb[1].mxu1 }
 0x1b7   : > { %2700 = vmatprep.mubr.bf16.mxu0 %v1633_v39  ;;  %v6712_v38 = vadd.f32 %v6711_v49, %v6710_v51  ;;  %v6713_v4 = vpop.f32.mrb[2].mxu1  ;;  %v1660_v39 = vpack.c.bf16 %v1489_v1, %v9109_v7 }
 0x1b8   : > { %v6714_v56 = vpop.f32.mrb[3].mxu1 }
 0x1b9   : > { %v6586_v21 = vpop.f32.mrb[8].mxu0  ;;  %v6715_v18 = vadd.f32 %v6714_v56, %v6713_v4 }
 0x1ba   : > { %v6587_v63 = vpop.f32.mrb[9].mxu0  ;;  %2910 = vmatmul.mubr.bf16.gmra.mrb[108].mxu1 %v1688_v60 }
 0x1bb   : > { %v9260_v37 = vadd.f32 %v6587_v63, %v6586_v21  ;;  %v6589_v10 = vpop.f32.mrb[10].mxu0 }
 0x1bc   : > { %v6590_v42 = vpop.f32.mrb[11].mxu0 }
 0x1bd   : > { %v9264_v52 = vadd.f32 %v6590_v42, %v6589_v10  ;;  %v6716_v32 = vpop.f32.mrb[4].mxu1  ;;  %v1507_v10 = vld [vmem:[#allocation2 + $0x7c0] sm:$0xff] }
 0x1be   : > { %2701 = vmatmul.mubr.bf16.gmra.mrb[116].mxu0 %v9036_v48  ;;  %v6717_v59 = vpop.f32.mrb[5].mxu1  ;;  %v1669_v40 = vpack.c.bf16 %v1507_v10, %v9130_v22  ;;  %v1543_v10 = vld [vmem:[#allocation2 + $0x8e0] sm:$0xff] }
 0x1bf   : > { %2708 = vmatprep.mubr.bf16.mxu0 %v1642_v12  ;;  %v6718_v2 = vadd.f32 %v6717_v59, %v6716_v32  ;;  %v6719_v9 = vpop.f32.mrb[6].mxu1 }
 0x1c0   : > { %v6720_v17 = vpop.f32.mrb[7].mxu1 }
 0x1c1   : > { %v6592_v31 = vpop.f32.mrb[12].mxu0  ;;  %v6721_v48 = vadd.f32 %v6720_v17, %v6719_v9  ;;  %v1525_v9 = vld [vmem:[#allocation2 + $0x850] sm:$0xff] }
 0x1c2   : > { %v6593_v13 = vpop.f32.mrb[13].mxu0 }
 0x1c3   : > { %v9267_v30 = vadd.f32 %v6593_v13, %v6592_v31  ;;  %v6595_v14 = vpop.f32.mrb[14].mxu0 }
 0x1c4   : > { %v6596_v27 = vpop.f32.mrb[15].mxu0 }
 0x1c5   : > { %v9270_v33 = vadd.f32 %v6596_v27, %v6595_v14  ;;  %v6722_v0 = vpop.f32.mrb[8].mxu1 }
 0x1c6   : > { %2709 = vmatmul.mubr.bf16.gmra.mrb[120].mxu0 %v9050_v6  ;;  %v6723_v50 = vpop.f32.mrb[9].mxu1 }
 0x1c7   : > { %2716 = vmatprep.mubr.bf16.mxu0 %v1651_v3  ;;  %v6724_v55 = vadd.f32 %v6723_v50, %v6722_v0  ;;  %v6725_v41 = vpop.f32.mrb[10].mxu1 }
 0x1c8   : > { %v6726_v11 = vpop.f32.mrb[11].mxu1 }
 0x1c9   : > { %v6598_v5 = vpop.f32.mrb[16].mxu0  ;;  %v6727_v63 = vadd.f32 %v6726_v11, %v6725_v41  ;;  %v7801_v11 = vld [vmem:[#allocation10] sm:$0xff]  }
 0x1ca   : > { %v6599_v28 = vpop.f32.mrb[17].mxu0 }
 0x1cb   : > { %v6600_v25 = vadd.f32 %v6599_v28, %v6598_v5  ;;  %v6601_v47 = vpop.f32.mrb[18].mxu0 }
 0x1cc   : > { %v6602_v53 = vpop.f32.mrb[19].mxu0 }
 0x1cd   : > { %v2341_v6 = vadd.f32 %v6600_v25, %v9277_v61  ;;  %v6603_v21 = vadd.f32 %v6602_v53, %v6601_v47  ;;  %v6728_v4 = vpop.f32.mrb[12].mxu1  ;;  %v1678_v25 = vpack.c.bf16 %v1525_v9, %v9151_v58  ;;  %v1276_v9 = vld [vmem:[#allocation2 + $0x88] sm:$0xff] }
 0x1ce   : > { %2717 = vmatmul.mubr.bf16.gmra.mrb[124].mxu0 %v9075_v19  ;;  %v6729_v31 = vpop.f32.mrb[13].mxu1 }
 0x1cf   : > { %v2344_v51 = vadd.f32 %v6603_v21, %v9277_v61  ;;  %2724 = vmatprep.mubr.bf16.mxu0 %v1660_v39  ;;  %v9282_v7 = vadd.f32 %v6712_v38, %v2341_v6  ;;  %v6730_v32 = vadd.f32 %v6729_v31, %v6728_v4  ;;  %v6731_v19 = vpop.f32.mrb[14].mxu1  ;;  %v7800_v21 = vld [vmem:[#allocation10 + $0x40] sm:$0xff]  }
 0x1d0   : > { %v6732_v59 = vpop.f32.mrb[15].mxu1  ;;  %7030 = vmatprep.subr.bf16.mxu1 %v7800_v21  ;;  %v7802_v21 = vld [vmem:[#allocation10 + $0x48] sm:$0xff]  }
 0x1d1   : > { %v6604_v12 = vpop.f32.mrb[20].mxu0  ;;  %v9284_v49 = vadd.f32 %v6715_v18, %v2344_v51  ;;  %v6733_v38 = vadd.f32 %v6732_v59, %v6731_v19  ;;  %7031 = vmatpush3.bf16.msra.mxu1 %v7801_v11  ;;  %v7803_v11 = vld [vmem:[#allocation10 + $0x8] sm:$0xff]  }
 0x1d2   : > { %v6605_v42 = vpop.f32.mrb[21].mxu0  ;;  %7032 = vmatprep.subr.bf16.mxu1 %v7802_v21 }
 0x1d3   : > { %v6606_v60 = vadd.f32 %v6605_v42, %v6604_v12  ;;  %v6607_v56 = vpop.f32.mrb[22].mxu0 }
 0x1d4   : > { %v6608_v13 = vpop.f32.mrb[23].mxu0 }
 0x1d5   : > { %v2349_v14 = vadd.f32 %v6606_v60, %v9277_v61  ;;  %v6609_v3 = vadd.f32 %v6608_v13, %v6607_v56  ;;  %v6734_v5 = vpop.f32.mrb[16].mxu1  ;;  %7033 = vmatpush3.bf16.msra.mxu1 %v7803_v11 }
 0x1d6   : > { %2725 = vmatmul.mubr.bf16.gmra.mrb[128].mxu0 %v9099_v36  ;;  %v6735_v47 = vpop.f32.mrb[17].mxu1 }
 0x1d7   : > { %v2352_v18 = vadd.f32 %v6609_v3, %v9277_v61  ;;  %2732 = vmatprep.mubr.bf16.mxu0 %v1669_v40  ;;  %v9290_v27 = vadd.f32 %v6718_v2, %v2349_v14  ;;  %v6736_v50 = vadd.f32 %v6735_v47, %v6734_v5  ;;  %v6737_v36 = vpop.f32.mrb[18].mxu1 }
 0x1d8   : > { %v6738_v6 = vpop.f32.mrb[19].mxu1 }
 0x1d9   : > { %v6610_v17 = vpop.f32.mrb[24].mxu0  ;;  %v9292_v1 = vadd.f32 %v6721_v48, %v2352_v18  ;;  %v6739_v2 = vadd.f32 %v6738_v6, %v6737_v36 }
 0x1da   : > { %v6611_v22 = vpop.f32.mrb[25].mxu0 }
 0x1db   : > { %v6612_v28 = vadd.f32 %v6611_v22, %v6610_v17  ;;  %v6613_v0 = vpop.f32.mrb[26].mxu0 }
 0x1dc   : > { %v6614_v39 = vpop.f32.mrb[27].mxu0 }
 0x1dd   : > { %v2357_v53 = vadd.f32 %v6612_v28, %v9277_v61  ;;  %v6615_v41 = vadd.f32 %v6614_v39, %v6613_v0  ;;  %v6740_v4 = vpop.f32.mrb[20].mxu1 }
 0x1de   : > { %2733 = vmatmul.mubr.bf16.gmra.mrb[132].mxu0 %v9122_v20  ;;  %v1687_v20 = vpack.c.bf16 %v1543_v10, %v9171_v54  ;;  %v6741_v40 = vpop.f32.mrb[21].mxu1 }
 0x1df   : > { %v2360_v48 = vadd.f32 %v6615_v41, %v9277_v61  ;;  %2740 = vmatprep.mubr.bf16.mxu0 %v1678_v25  ;;  %v9298_v51 = vadd.f32 %v6724_v55, %v2357_v53  ;;  %v6742_v13 = vadd.f32 %v6741_v40, %v6740_v4  ;;  %v6743_v19 = vpop.f32.mrb[22].mxu1  ;;  %v1555_v25 = vpack.c.bf16 %v1276_v9, %v9183_v23  ;;  %v1312_v23 = vld [vmem:[#allocation2 + $0x1a8] sm:$0xff] }
 0x1e0   : > { %v6744_v3 = vpop.f32.mrb[23].mxu1  ;;  %v1573_v40 = vpack.c.bf16 %v1312_v23, %v9196_v45  ;;  %v1366_v23 = vld [vmem:[#allocation2 + $0x358] sm:$0xff] }
 0x1e1   : > { %v6616_v58 = vpop.f32.mrb[28].mxu0  ;;  %v9300_v12 = vadd.f32 %v6727_v63, %v2360_v48  ;;  %v6745_v59 = vadd.f32 %v6744_v3, %v6743_v19  ;;  %v1294_v48 = vld [vmem:[#allocation2 + $0x118] sm:$0xff] }
 0x1e2   : > { %v6617_v42 = vpop.f32.mrb[29].mxu0 }
 0x1e3   : > { %v6618_v60 = vadd.f32 %v6617_v42, %v6616_v58  ;;  %v6619_v56 = vpop.f32.mrb[30].mxu0 }
 0x1e4   : > { %v6620_v31 = vpop.f32.mrb[31].mxu0 }
 0x1e5   : > { %v2365_v14 = vadd.f32 %v6618_v60, %v9277_v61  ;;  %v6621_v55 = vadd.f32 %v6620_v31, %v6619_v56  ;;  %v6746_v5 = vpop.f32.mrb[24].mxu1  ;;  %v1564_v60 = vpack.c.bf16 %v1294_v48, %v9187_v29  ;;  %v1330_v29 = vld [vmem:[#allocation2 + $0x238] sm:$0xff] }
 0x1e6   : > { %2741 = vmatmul.mubr.bf16.gmra.mrb[136].mxu0 %v9143_v34  ;;  %v6747_v47 = vpop.f32.mrb[25].mxu1 }
 0x1e7   : > { %v2368_v63 = vadd.f32 %v6621_v55, %v9277_v61  ;;  %2748 = vmatprep.mubr.bf16.mxu0 %v1687_v20  ;;  %v9306_v18 = vadd.f32 %v6730_v32, %v2365_v14  ;;  %v6748_v36 = vadd.f32 %v6747_v47, %v6746_v5  ;;  %v6749_v34 = vpop.f32.mrb[26].mxu1 }
 0x1e8   : > { %v6750_v6 = vpop.f32.mrb[27].mxu1 }
 0x1e9   : > { %v6622_v17 = vpop.f32.mrb[32].mxu0  ;;  %v9308_v22 = vadd.f32 %v6733_v38, %v2368_v63  ;;  %v6751_v32 = vadd.f32 %v6750_v6, %v6749_v34 }
 0x1ea   : > { %v6623_v54 = vpop.f32.mrb[33].mxu0 }
 0x1eb   : > { %v6624_v28 = vadd.f32 %v6623_v54, %v6622_v17  ;;  %v6625_v0 = vpop.f32.mrb[34].mxu0  ;;  %v1348_v54 = vld [vmem:[#allocation2 + $0x2c8] sm:$0xff] }
 0x1ec   : > { %v6626_v39 = vpop.f32.mrb[35].mxu0  ;;  %v1591_v34 = vpack.c.bf16 %v1348_v54, %v9207_v46 }
 0x1ed   : > { %v2373_v53 = vadd.f32 %v6624_v28, %v9277_v61  ;;  %v6627_v41 = vadd.f32 %v6626_v39, %v6625_v0  ;;  %v6752_v56 = vpop.f32.mrb[28].mxu1  ;;  %v1582_v0 = vpack.c.bf16 %v1330_v29, %v9200_v43  ;;  %v7804_v43 = vld [vmem:[#allocation10 + $0x50] sm:$0xff]  }
 0x1ee   : > { %2749 = vmatmul.mubr.bf16.gmra.mrb[140].mxu0 %v9163_v62  ;;  %v6753_v31 = vpop.f32.mrb[29].mxu1  ;;  %7034 = vmatprep.subr.bf16.mxu1 %v7804_v43 }
 0x1ef   : > { %v2376_v38 = vadd.f32 %v6627_v41, %v9277_v61  ;;  %7606 = vmatprep.mubr.bf16.mxu0 %v1555_v25  ;;  %v9314_v10 = vadd.f32 %v6736_v50, %v2373_v53  ;;  %v6754_v14 = vadd.f32 %v6753_v31, %v6752_v56  ;;  %v6755_v55 = vpop.f32.mrb[30].mxu1 }
 0x1f0   : > { %v6756_v63 = vpop.f32.mrb[31].mxu1 }
 0x1f1   : > { %v6628_v58 = vpop.f32.mrb[36].mxu0  ;;  %v9316_v42 = vadd.f32 %v6739_v2, %v2376_v38  ;;  %v6757_v2 = vadd.f32 %v6756_v63, %v6755_v55 }
 0x1f2   : > { %v6629_v4 = vpop.f32.mrb[37].mxu0 }
 0x1f3   : > { %v6630_v62 = vadd.f32 %v6629_v4, %v6628_v58  ;;  %v6631_v20 = vpop.f32.mrb[38].mxu0  ;;  %v7805_v58 = vld [vmem:[#allocation10 + $0x10] sm:$0xff]  }
 0x1f4   : > { %v6632_v19 = vpop.f32.mrb[39].mxu0  ;;  %7035 = vmatpush3.bf16.msra.mxu1 %v7805_v58 }
 0x1f5   : > { %v2381_v50 = vadd.f32 %v6630_v62, %v9277_v61  ;;  %v6633_v3 = vadd.f32 %v6632_v19, %v6631_v20  ;;  %v6758_v25 = vpop.f32.mrb[32].mxu1  ;;  %v1600_v20 = vpack.c.bf16 %v1366_v23, %v9211_v57  ;;  %v1402_v57 = vld [vmem:[#allocation2 + $0x478] sm:$0xff] }
 0x1f6   : > { %7607 = vmatmul.mubr.bf16.vlgmr.msra.gmra.mrb[144].mxu0 %v1564_v60  ;;  %v6759_v53 = vpop.f32.mrb[33].mxu1  ;;  %v1384_v60 = vld [vmem:[#allocation2 + $0x3e8] sm:$0xff] }
 0x1f7   : > { %v2384_v9 = vadd.f32 %v6633_v3, %v9277_v61  ;;  %7610 = vmatprep.mubr.bf16.mxu0 %v1573_v40  ;;  %v9322_v17 = vadd.f32 %v6742_v13, %v2381_v50  ;;  %v6760_v6 = vadd.f32 %v6759_v53, %v6758_v25  ;;  %v6761_v38 = vpop.f32.mrb[34].mxu1  ;;  %v1609_v55 = vpack.c.bf16 %v1384_v60, %v9218_v26  ;;  %v7806_v60 = vld [vmem:[#allocation10 + $0x58] sm:$0xff]  }
 0x1f8   : > { %v6762_v21 = vpop.f32.mrb[35].mxu1  ;;  %7036 = vmatprep.subr.bf16.mxu1 %v7806_v60 }
 0x1f9   : > { %v6634_v5 = vpop.f32.mrb[40].mxu0  ;;  %v9324_v28 = vadd.f32 %v6745_v59, %v2384_v9  ;;  %v6763_v11 = vadd.f32 %v6762_v21, %v6761_v38 }
 0x1fa   : > { %v6635_v45 = vpop.f32.mrb[41].mxu0 }
 0x1fb   : > { %v6636_v47 = vadd.f32 %v6635_v45, %v6634_v5  ;;  %v6637_v39 = vpop.f32.mrb[42].mxu0 }
 0x1fc   : > { %v6638_v41 = vpop.f32.mrb[43].mxu0 }
 0x1fd   : > { %v2389_v48 = vadd.f32 %v6636_v47, %v9277_v61  ;;  %v6639_v13 = vadd.f32 %v6638_v41, %v6637_v39  ;;  %v6764_v40 = vpop.f32.mrb[36].mxu1  ;;  %v1618_v39 = vpack.c.bf16 %v1402_v57, %v9241_v8  ;;  %v1438_v8 = vld [vmem:[#allocation2 + $0x598] sm:$0xff] }
 0x1fe   : > { %7611 = vmatmul.mubr.bf16.gmra.mrb[148].mxu0 %v1582_v0  ;;  %v6765_v50 = vpop.f32.mrb[37].mxu1  ;;  %v1420_v0 = vld [vmem:[#allocation2 + $0x508] sm:$0xff] }
 0x1ff   : > { %v2392_v59 = vadd.f32 %v6639_v13, %v9277_v61  ;;  %7614 = vmatprep.mubr.bf16.mxu0 %v1591_v34  ;;  %v9330_v4 = vadd.f32 %v6748_v36, %v2389_v48  ;;  %v6766_v63 = vadd.f32 %v6765_v50, %v6764_v40  ;;  %v6767_v9 = vpop.f32.mrb[38].mxu1  ;;  %v1627_v38 = vpack.c.bf16 %v1420_v0, %v9251_v15  ;;  %v1456_v15 = vld [vmem:[#allocation2 + $0x628] sm:$0xff] }
 0x200   : > { %v6768_v54 = vpop.f32.mrb[39].mxu1 }
 0x201   : > { %v6640_v46 = vpop.f32.mrb[44].mxu0  ;;  %v9332_v56 = vadd.f32 %v6751_v32, %v2392_v59  ;;  %v6769_v32 = vadd.f32 %v6768_v54, %v6767_v9 }
 0x202   : > { %v6641_v62 = vpop.f32.mrb[45].mxu0 }
 0x203   : > { %v6642_v31 = vadd.f32 %v6641_v62, %v6640_v46  ;;  %v6643_v19 = vpop.f32.mrb[46].mxu0  ;;  %v7807_v46 = vld [vmem:[#allocation10 + $0x18] sm:$0xff]  }
 0x204   : > { %v6644_v3 = vpop.f32.mrb[47].mxu0  ;;  %7037 = vmatpush3.bf16.msra.mxu1 %v7807_v46 }
 0x205   : > { %v2397_v36 = vadd.f32 %v6642_v31, %v9277_v61  ;;  %v6645_v29 = vadd.f32 %v6644_v3, %v6643_v19  ;;  %v6770_v34 = vpop.f32.mrb[40].mxu1  ;;  %v7891_v19 = vld [vmem:[#allocation2 + $0x5c8] sm:$0xff] }
 0x206   : > { %7615 = vmatmul.mubr.bf16.gmra.mrb[152].mxu0 %v1600_v20  ;;  %v6771_v48 = vpop.f32.mrb[41].mxu1 }
 0x207   : > { %v2400_v5 = vadd.f32 %v6645_v29, %v9277_v61  ;;  %7618 = vmatprep.mubr.bf16.mxu0 %v1609_v55  ;;  %v9338_v45 = vadd.f32 %v6754_v14, %v2397_v36  ;;  %v9344_v21 = vadd.f32 %v6771_v48, %v6770_v34  ;;  %v6773_v59 = vpop.f32.mrb[42].mxu1  ;;  %v1636_v55 = vpack.c.bf16 %v1438_v8, %v7891_v19  ;;  %v7892_v36 = vld [vmem:[#allocation2 + $0x658] sm:$0xff] }
 0x208   : > { %v6774_v43 = vpop.f32.mrb[43].mxu1  ;;  %v1645_v29 = vpack.c.bf16 %v1456_v15, %v7892_v36  ;;  %v1474_v34 = vld [vmem:[#allocation2 + $0x6b8] sm:$0xff]  ;;  %v7809_v36 = vld [vmem:[#allocation10 + $0x20] sm:$0xff]  }
 0x209   : > { %v6646_v25 = vpop.f32.mrb[48].mxu0  ;;  %v9340_v47 = vadd.f32 %v6757_v2, %v2400_v5  ;;  %v6775_v2 = vadd.f32 %v6774_v43, %v6773_v59  ;;  %v7893_v59 = vld [vmem:[#allocation2 + $0x6e8] sm:$0xff]  ;;  %v7894_v8 = vld [vmem:[#allocation2 + $0x778] sm:$0xff] }
 0x20a   : > { %v6647_v26 = vpop.f32.mrb[49].mxu0 }
 0x20b   : > { %v6648_v53 = vadd.f32 %v6647_v26, %v6646_v25  ;;  %v6649_v41 = vpop.f32.mrb[50].mxu0 }
 0x20c   : > { %v6650_v13 = vpop.f32.mrb[51].mxu0 }
 0x20d   : > { %v2405_v14 = vadd.f32 %v6648_v53, %v9277_v61  ;;  %v6651_v23 = vadd.f32 %v6650_v13, %v6649_v41  ;;  %v6776_v50 = vpop.f32.mrb[44].mxu1  ;;  %v1492_v41 = vld [vmem:[#allocation2 + $0x748] sm:$0xff] }
 0x20e   : > { %7619 = vmatmul.mubr.bf16.gmra.mrb[156].mxu0 %v1618_v39  ;;  %v6777_v54 = vpop.f32.mrb[45].mxu1  ;;  %v1663_v60 = vpack.c.bf16 %v1492_v41, %v7894_v8 }
 0x20f   : > { %v2408_v58 = vadd.f32 %v6651_v23, %v9277_v61  ;;  %7622 = vmatprep.mubr.bf16.mxu0 %v1627_v38  ;;  %v9348_v62 = vadd.f32 %v6760_v6, %v2405_v14  ;;  %v6778_v57 = vadd.f32 %v6777_v54, %v6776_v50  ;;  %v6779_v0 = vpop.f32.mrb[46].mxu1  ;;  %v1654_v14 = vpack.c.bf16 %v1474_v34, %v7893_v59  ;;  %v1528_v54 = vld [vmem:[#allocation2 + $0x868] sm:$0xff] }
 0x210   : > { %v6780_v26 = vpop.f32.mrb[47].mxu1 }
 0x211   : > { %v6652_v20 = vpop.f32.mrb[52].mxu0  ;;  %v9350_v40 = vadd.f32 %v6763_v11, %v2408_v58  ;;  %v6781_v11 = vadd.f32 %v6780_v26, %v6779_v0 }
 0x212   : > { %v6653_v31 = vpop.f32.mrb[53].mxu0 }
 0x213   : > { %v6654_v3 = vadd.f32 %v6653_v31, %v6652_v20  ;;  %v6655_v9 = vpop.f32.mrb[54].mxu0 }
 0x214   : > { %v6656_v5 = vpop.f32.mrb[55].mxu0 }
 0x215   : > { %v2413_v6 = vadd.f32 %v6654_v3, %v9277_v61  ;;  %v6657_v25 = vadd.f32 %v6656_v5, %v6655_v9  ;;  %v6910_v23 = vpop.f32.mrb[48].mxu1  ;;  %v1510_v3 = vld [vmem:[#allocation2 + $0x7d8] sm:$0xff]  ;;  %v7808_v9 = vld [vmem:[#allocation10 + $0x60] sm:$0xff]  }
 0x216   : > { %7623 = vmatmul.mubr.bf16.gmra.mrb[160].mxu0 %v1636_v55  ;;  %v6911_v46 = vpop.f32.mrb[49].mxu1  ;;  %7038 = vmatprep.subr.bf16.mxu1 %v7808_v9 }
 0x217   : > { %v2416_v39 = vadd.f32 %v6657_v25, %v9277_v61  ;;  %7626 = vmatprep.mubr.bf16.mxu0 %v1645_v29  ;;  %v9354_v53 = vadd.f32 %v6766_v63, %v2413_v6  ;;  %v9358_v20 = vadd.f32 %v6911_v46, %v6910_v23  ;;  %v6913_v31 = vpop.f32.mrb[50].mxu1  ;;  %v7895_v25 = vld [vmem:[#allocation2 + $0x808] sm:$0xff]  ;;  %7039 = vmatpush3.bf16.msra.mxu1 %v7809_v36  ;;  %v1546_v46 = vld [vmem:[#allocation2 + $0x8f8] sm:$0xff] }
 0x218   : > { %v6914_v55 = vpop.f32.mrb[51].mxu1  ;;  %v1672_v26 = vpack.c.bf16 %v1510_v3, %v7895_v25  ;;  %v2309_v3 = vadd.f32 %v9239_v44, %v9277_v61  ;;  %v7810_v44 = vld [vmem:[#allocation10 + $0x68] sm:$0xff]  }
 0x219   : > { %v6658_v38 = vpop.f32.mrb[56].mxu0  ;;  %v9356_v48 = vadd.f32 %v6769_v32, %v2416_v39  ;;  %v9361_v32 = vadd.f32 %v6914_v55, %v6913_v31  ;;  %v9379_v55 = vld [vmem:[#allocation2 + $0x8] sm:$0xff]  ;;  %7040 = vmatprep.subr.bf16.mxu1 %v7810_v44 }
 0x21a   : > { %v6659_v13 = vpop.f32.mrb[57].mxu0 }
 0x21b   : > { %v6660_v43 = vadd.f32 %v6659_v13, %v6658_v38  ;;  %v6661_v58 = vpop.f32.mrb[58].mxu0  ;;  %v7896_v38 = vld [vmem:[#allocation2 + $0x898] sm:$0xff] }
 0x21c   : > { %v6662_v15 = vpop.f32.mrb[59].mxu0  ;;  %v1681_v13 = vpack.c.bf16 %v1528_v54, %v7896_v38 }
 0x21d   : > { %v2421_v63 = vadd.f32 %v6660_v43, %v9277_v61  ;;  %v6663_v19 = vadd.f32 %v6662_v15, %v6661_v58  ;;  %v6916_v39 = vpop.f32.mrb[52].mxu1 }
 0x21e   : > { %7627 = vmatmul.mubr.bf16.gmra.mrb[164].mxu0 %v1654_v14  ;;  %v6917_v59 = vpop.f32.mrb[53].mxu1 }
 0x21f   : > { %v2424_v50 = vadd.f32 %v6663_v19, %v9277_v61  ;;  %7630 = vmatprep.mubr.bf16.mxu0 %v1663_v60  ;;  %v9365_v29 = vadd.f32 %v9344_v21, %v2421_v63  ;;  %v9369_v23 = vadd.f32 %v6917_v59, %v6916_v39  ;;  %v6919_v21 = vpop.f32.mrb[54].mxu1 }
 0x220   : > { %v6920_v8 = vpop.f32.mrb[55].mxu1 }
 0x221   : > { %v6664_v5 = vpop.f32.mrb[60].mxu0  ;;  %v9367_v0 = vadd.f32 %v6775_v2, %v2424_v50  ;;  %v9372_v2 = vadd.f32 %v6920_v8, %v6919_v21  ;;  %v1690_v50 = vpack.c.bf16 %v1546_v46, %v9379_v55  ;;  %v2317_v21 = vadd.f32 %v9249_v35, %v9277_v61 }
 0x222   : > { %v6665_v6 = vpop.f32.mrb[61].mxu0 }
 0x223   : > { %v6666_v34 = vadd.f32 %v6665_v6, %v6664_v5  ;;  %v6667_v41 = vpop.f32.mrb[62].mxu0 }
 0x224   : > { %v6668_v14 = vpop.f32.mrb[63].mxu0 }
 0x225   : > { %v2429_v43 = vadd.f32 %v6666_v34, %v9277_v61  ;;  %v6669_v58 = vadd.f32 %v6668_v14, %v6667_v41  ;;  %v6922_v54 = vpop.f32.mrb[56].mxu1 }
 0x226   : > { %7631 = vmatmul.mubr.bf16.gmra.mrb[168].mxu0 %v1672_v26  ;;  %v6923_v6 = vpop.f32.mrb[57].mxu1 }
 0x227   : > { %v2432_v60 = vadd.f32 %v6669_v58, %v9277_v61  ;;  %7634 = vmatprep.mubr.bf16.mxu0 %v1681_v13  ;;  %v9375_v15 = vadd.f32 %v6778_v57, %v2429_v43  ;;  %v2312_v57 = vadd.f32 %v9245_v16, %v9277_v61  ;;  %v9388_v26 = vadd.f32 %v6923_v6, %v6922_v54  ;;  %v6925_v39 = vpop.f32.mrb[58].mxu1  ;;  %v7811_v13 = vld [vmem:[#allocation10 + $0x28] sm:$0xff]  }
 0x228   : > { %v6926_v34 = vpop.f32.mrb[59].mxu1  ;;  %7041 = vmatpush3.bf16.msra.mxu1 %v7811_v13  ;;  %v2325_v6 = vadd.f32 %v9260_v37, %v9277_v61  ;;  %v2328_v13 = vadd.f32 %v9264_v52, %v9277_v61  ;;  %v2333_v52 = vadd.f32 %v9267_v30, %v9277_v61 }
 0x229   : > { %v6686_v31 = vpop.f32.mrb[64].mxu0  ;;  %v9377_v63 = vadd.f32 %v6781_v11, %v2432_v60  ;;  %v9392_v38 = vadd.f32 %v6926_v34, %v6925_v39 }
 0x22a   : > { %v6687_v19 = vpop.f32.mrb[65].mxu0 }
 0x22b   : > { %v6688_v9 = vadd.f32 %v6687_v19, %v6686_v31  ;;  %v6689_v36 = vpop.f32.mrb[66].mxu0  ;;  %v2320_v31 = vadd.f32 %v9255_v24, %v9277_v61 }
 0x22c   : > { %v6690_v5 = vpop.f32.mrb[67].mxu0 }
 0x22d   : > { %v9384_v25 = vadd.f32 %v6688_v9, %v2309_v3  ;;  %v6691_v11 = vadd.f32 %v6690_v5, %v6689_v36  ;;  %v6928_v58 = vpop.f32.mrb[60].mxu1 }
 0x22e   : > { %7635 = vmatmul.mubr.bf16.gmra.mrb[172].mxu0 %v1690_v50  ;;  %v6929_v60 = vpop.f32.mrb[61].mxu1 }
 0x22f   : > { %v9390_v41 = vadd.f32 %v6691_v11, %v2312_v57  ;;  %v9400_v50 = vadd.f32 %v6929_v60, %v6928_v58  ;;  %v6931_v3 = vpop.f32.mrb[62].mxu1  ;;  %v7815_v58 = vld [vmem:[#allocation10 + $0x80] sm:$0xff]   ;;  %v7812_v60 = vld [vmem:[#allocation10 + $0x70] sm:$0xff]  }
 0x230   : > { %v6932_v9 = vpop.f32.mrb[63].mxu1  ;;  %7042 = vmatprep.subr.bf16.mxu1 %v7812_v60 }
 0x231   : > { %v6692_v59 = vpop.f32.mrb[68].mxu0  ;;  %v9404_v54 = vadd.f32 %v6932_v9, %v6931_v3 }
 0x232   : > { %v6693_v14 = vpop.f32.mrb[69].mxu0 }
 0x233   : > { %v6694_v16 = vadd.f32 %v6693_v14, %v6692_v59  ;;  %v6695_v43 = vpop.f32.mrb[70].mxu0 }
 0x234   : > { %v6696_v8 = vpop.f32.mrb[71].mxu0 }
 0x235   : > { %v9396_v46 = vadd.f32 %v6694_v16, %v2317_v21  ;;  %v6697_v19 = vadd.f32 %v6696_v8, %v6695_v43  ;;  %v6934_v39 = vpop.f32.mrb[64].mxu1  ;;  %v7814_v16 = vld [vmem:[#allocation10 + $0xc0] sm:$0xff]  }
 0x236   : > { %v6935_v44 = vpop.f32.mrb[65].mxu1  ;;  %7142 = vmatprep.subr.bf16.mxu0 %v7814_v16 }
 0x237   : > { %v9402_v36 = vadd.f32 %v6697_v19, %v2320_v31  ;;  %v9412_v14 = vadd.f32 %v6935_v44, %v6934_v39  ;;  %v6937_v21 = vpop.f32.mrb[66].mxu1  ;;  %v7813_v31 = vld [vmem:[#allocation10 + $0x30] sm:$0xff]   ;;  %7143 = vmatpush3.bf16.msra.mxu0 %v7815_v58 }
 0x238   : > { %v6938_v43 = vpop.f32.mrb[67].mxu1  ;;  %7043 = vmatpush3.bf16.msra.mxu1 %v7813_v31  ;;  %v7820_v58 = vld [vmem:[#allocation10 + $0xd0] sm:$0xff]  }
 0x239   : > { %v6698_v35 = vpop.f32.mrb[72].mxu0  ;;  %v9416_v37 = vadd.f32 %v6938_v43, %v6937_v21  ;;  %v7817_v21 = vld [vmem:[#allocation10 + $0x88] sm:$0xff]   ;;  %v7821_v31 = vld [vmem:[#allocation10 + $0x90] sm:$0xff]  }
 0x23a   : > { %v6699_v5 = vpop.f32.mrb[73].mxu0 }
 0x23b   : > { %v6700_v57 = vadd.f32 %v6699_v5, %v6698_v35  ;;  %v6701_v11 = vpop.f32.mrb[74].mxu0 }
 0x23c   : > { %v6702_v34 = vpop.f32.mrb[75].mxu0 }
 0x23d   : > { %v9408_v24 = vadd.f32 %v6700_v57, %v2325_v6  ;;  %v6703_v59 = vadd.f32 %v6702_v34, %v6701_v11  ;;  %v6940_v5 = vpop.f32.mrb[68].mxu1  ;;  %v7816_v6 = vld [vmem:[#allocation10 + $0xc8] sm:$0xff]   ;;  %v2336_v34 = vadd.f32 %v9270_v33, %v9277_v61 }
 0x23e   : > { %v6941_v11 = vpop.f32.mrb[69].mxu1  ;;  %7144 = vmatprep.subr.bf16.mxu0 %v7816_v6 }
 0x23f   : > { %v9414_v8 = vadd.f32 %v6703_v59, %v2328_v13  ;;  %v9424_v13 = vadd.f32 %v6941_v11, %v6940_v5  ;;  %v6943_v59 = vpop.f32.mrb[70].mxu1  ;;  %7145 = vmatpush3.bf16.msra.mxu0 %v7817_v21 }
 0x240   : > { %v6944_v16 = vpop.f32.mrb[71].mxu1  ;;  %7146 = vmatprep.subr.bf16.mxu0 %v7820_v58  ;;  %v7818_v58 = vld [vmem:[#allocation10 + $0x78] sm:$0xff]  }
 0x241   : > { %v6704_v19 = vpop.f32.mrb[76].mxu0  ;;  %v9428_v30 = vadd.f32 %v6944_v16, %v6943_v59  ;;  %7044 = vmatprep.subr.bf16.mxu1 %v7818_v58 }
 0x242   : > { %v6705_v3 = vpop.f32.mrb[77].mxu0 }
 0x243   : > { %v6706_v9 = vadd.f32 %v6705_v3, %v6704_v19  ;;  %v6707_v35 = vpop.f32.mrb[78].mxu0  ;;  %7147 = vmatpush3.bf16.msra.mxu0 %v7821_v31 }
 0x244   : > { %v6708_v57 = vpop.f32.mrb[79].mxu0 }
 0x245   : > { %v9420_v39 = vadd.f32 %v6706_v9, %v2333_v52  ;;  %v6709_v44 = vadd.f32 %v6708_v57, %v6707_v35  ;;  %v6946_v33 = vpop.f32.mrb[72].mxu1  ;;  %v7822_v35 = vld [vmem:[#allocation10 + $0xd8] sm:$0xff]  }
 0x246   : > { %v6947_v9 = vpop.f32.mrb[73].mxu1  ;;  %7148 = vmatprep.subr.bf16.mxu0 %v7822_v35 }
 0x247   : > { %v9426_v43 = vadd.f32 %v6709_v44, %v2336_v34  ;;  %v9431_v57 = vadd.f32 %v6947_v9, %v6946_v33  ;;  %v6949_v11 = vpop.f32.mrb[74].mxu1  ;;  %v7823_v44 = vld [vmem:[#allocation10 + $0x98] sm:$0xff]  }
 0x248   : > { %v6950_v34 = vpop.f32.mrb[75].mxu1  ;;  %7149 = vmatpush3.bf16.msra.mxu0 %v7823_v44  ;;  %v7826_v44 = vld [vmem:[#allocation10 + $0xe8] sm:$0xff]  }
 0x249   : > { %v6798_v60 = vpop.f32.mrb[80].mxu0  ;;  %v9434_v21 = vadd.f32 %v6950_v34, %v6949_v11 }
 0x24a   : > { %v6799_v19 = vpop.f32.mrb[81].mxu0 }
 0x24b   : > { %v6800_v3 = vadd.f32 %v6799_v19, %v6798_v60  ;;  %v6801_v52 = vpop.f32.mrb[82].mxu0  ;;  %v7819_v60 = vld [vmem:[#allocation10 + $0x38] sm:$0xff]   ;;  %v7824_v19 = vld [vmem:[#allocation10 + $0xe0] sm:$0xff]  }
 0x24c   : > { %v6802_v61 = vpop.f32.mrb[83].mxu0  ;;  %7045 = vmatpush3.bf16.msra.mxu1 %v7819_v60  ;;  %7150 = vmatprep.subr.bf16.mxu0 %v7824_v19 }
 0x24d   : > { %v2631_v5 = vadd.f32 %v6800_v3, %v9384_v25  ;;  %v6803_v6 = vadd.f32 %v6802_v61, %v6801_v52  ;;  %v7825_v52 = vld [vmem:[#allocation10 + $0xa0] sm:$0xff]  }
 0x24e   : > { %7151 = vmatpush3.bf16.msra.mxu0 %v7825_v52  ;;  %v7827_v52 = vld [vmem:[#allocation10 + $0xa8] sm:$0xff]  }
 0x24f   : > { %v2634_v59 = vadd.f32 %v6803_v6, %v9390_v41  ;;  %v9437_v16 = vadd.f32 %v9358_v20, %v2631_v5  ;;  %v6952_v41 = vpop.f32.mrb[76].mxu1  ;;  %v4513_v20 = vpack.c.bf16 %v9379_v55, %v9379_v55  ;;  %7152 = vmatprep.subr.bf16.mxu0 %v7826_v44 }
 0x250   : > { %v6953_v35 = vpop.f32.mrb[77].mxu1 }
 0x251   : > { %v6804_v31 = vpop.f32.mrb[84].mxu0  ;;  %v9440_v25 = vadd.f32 %v9361_v32, %v2634_v59  ;;  %v9445_v32 = vadd.f32 %v6953_v35, %v6952_v41  ;;  %v6955_v11 = vpop.f32.mrb[78].mxu1  ;;  %5351 = vmatprep.mubr.bf16.mxu1 %v4513_v20  ;;  %v4192_v59 = vld [vmem:[#allocation4] sm:$0xff]  ;;  %v7829_v20 = vld [vmem:[#allocation10 + $0xf0] sm:$0xff]  }
 0x252   : > { %v6805_v3 = vpop.f32.mrb[85].mxu0  ;;  %v6956_v34 = vpop.f32.mrb[79].mxu1  ;;  %v4512_v19 = vpack.c.bf16 %v9379_v55, %v4192_v59  ;;  %7153 = vmatpush3.bf16.msra.mxu0 %v7827_v52 }
 0x253   : > { %v6806_v33 = vadd.f32 %v6805_v3, %v6804_v31  ;;  %v6807_v61 = vpop.f32.mrb[86].mxu0  ;;  %v9448_v60 = vadd.f32 %v6956_v34, %v6955_v11  ;;  %v7831_v34 = vld [vmem:[#allocation10 + $0xb0] sm:$0xff]   ;;  %7154 = vmatprep.subr.bf16.mxu0 %v7829_v20 }
 0x254   : > { %v6808_v9 = vpop.f32.mrb[87].mxu0  ;;  %5352 = vmatmul.mubr.bf16.vlgmr.msra.gmra.mrb[112].mxu1 %v4512_v19  ;;  %v7832_v19 = vld [vmem:[#allocation10 + $0xf8] sm:$0xff]  }
 0x255   : > { %v2639_v5 = vadd.f32 %v6806_v33, %v9396_v46  ;;  %v6809_v6 = vadd.f32 %v6808_v9, %v6807_v61  ;;  %v6958_v9 = vpop.f32.mrb[80].mxu1 }
 0x256   : > { %v6959_v35 = vpop.f32.mrb[81].mxu1  ;;  %7155 = vmatpush3.bf16.msra.mxu0 %v7831_v34 }
 0x257   : > { %v2642_v58 = vadd.f32 %v6809_v6, %v9402_v36  ;;  %v9451_v31 = vadd.f32 %v9369_v23, %v2639_v5  ;;  %v9458_v6 = vadd.f32 %v6959_v35, %v6958_v9  ;;  %v6961_v11 = vpop.f32.mrb[82].mxu1  ;;  %7156 = vmatprep.subr.bf16.mxu0 %v7832_v19 }
 0x258   : > { %v6962_v44 = vpop.f32.mrb[83].mxu1 }
 0x259   : > { %v6810_v3 = vpop.f32.mrb[88].mxu0  ;;  %v9455_v46 = vadd.f32 %v9372_v2, %v2642_v58  ;;  %v9461_v59 = vadd.f32 %v6962_v44, %v6961_v11 }
 0x25a   : > { %v6811_v33 = vpop.f32.mrb[89].mxu0 }
 0x25b   : > { %v6812_v61 = vadd.f32 %v6811_v33, %v6810_v3  ;;  %v6813_v41 = vpop.f32.mrb[90].mxu0 }
 0x25c   : > { %v6814_v36 = vpop.f32.mrb[91].mxu0 }
 0x25d   : > { %v2647_v23 = vadd.f32 %v6812_v61, %v9408_v24  ;;  %v6815_v5 = vadd.f32 %v6814_v36, %v6813_v41  ;;  %v7833_v24 = vld [vmem:[#allocation10 + $0xb8] sm:$0xff]   ;;  %v6964_v9 = vpop.f32.mrb[84].mxu1 }
 0x25e   : > { %7157 = vmatpush3.bf16.msra.mxu0 %v7833_v24 }
 0x25f   : > { %v2650_v2 = vadd.f32 %v6815_v5, %v9414_v8  ;;  %v9464_v58 = vadd.f32 %v9388_v26, %v2647_v23  ;;  %v6965_v8 = vpop.f32.mrb[85].mxu1 }
 0x260   : > { %v9470_v26 = vadd.f32 %v6965_v8, %v6964_v9  ;;  %v6967_v23 = vpop.f32.mrb[86].mxu1 }
 0x261   : > { %v6816_v3 = vpop.f32.mrb[92].mxu0  ;;  %v9467_v52 = vadd.f32 %v9392_v38, %v2650_v2  ;;  %v6968_v5 = vpop.f32.mrb[87].mxu1 }
 0x262   : > { %v6817_v33 = vpop.f32.mrb[93].mxu0  ;;  %v9473_v38 = vadd.f32 %v6968_v5, %v6967_v23  ;;  %v7830_v23 = vld [vmem:[#allocation10 + $0x100] sm:$0xff]  }
 0x263   : > { %v6818_v61 = vadd.f32 %v6817_v33, %v6816_v3  ;;  %v6819_v41 = vpop.f32.mrb[94].mxu0 }
 0x264   : > { %v6820_v36 = vpop.f32.mrb[95].mxu0 }
 0x265   : > { %v2655_v35 = vadd.f32 %v6818_v61, %v9420_v39  ;;  %v6821_v20 = vadd.f32 %v6820_v36, %v6819_v41  ;;  %v6970_v39 = vpop.f32.mrb[88].mxu1 }
 0x266   : > { %v6971_v61 = vpop.f32.mrb[89].mxu1 }
 0x267   : > { %v2658_v11 = vadd.f32 %v6821_v20, %v9426_v43  ;;  %v9476_v34 = vadd.f32 %v9400_v50, %v2655_v35  ;;  %v9482_v36 = vadd.f32 %v6971_v61, %v6970_v39  ;;  %v6973_v43 = vpop.f32.mrb[90].mxu1  ;;  %v7828_v20 = vld [vmem:[#allocation10 + $0x140] sm:$0xff]  }
 0x268   : > { %v6974_v8 = vpop.f32.mrb[91].mxu1  ;;  %7254 = vmatprep.subr.bf16.mxu1 %v7828_v20 }
 0x269   : > { %v6822_v44 = vpop.f32.mrb[96].mxu0  ;;  %v9479_v2 = vadd.f32 %v9404_v54, %v2658_v11  ;;  %v9485_v35 = vadd.f32 %v6974_v8, %v6973_v43  ;;  %7255 = vmatpush3.bf16.msra.mxu1 %v7830_v23 }
 0x26a   : > { %v6823_v19 = vpop.f32.mrb[97].mxu0 }
 0x26b   : > { %v6824_v3 = vadd.f32 %v6823_v19, %v6822_v44  ;;  %v6825_v24 = vpop.f32.mrb[98].mxu0 }
 0x26c   : > { %v6826_v33 = vpop.f32.mrb[99].mxu0 }
 0x26d   : > { %v2663_v41 = vadd.f32 %v6824_v3, %v9282_v7  ;;  %v6827_v9 = vadd.f32 %v6826_v33, %v6825_v24  ;;  %v6976_v3 = vpop.f32.mrb[92].mxu1 }
 0x26e   : > { %v6977_v39 = vpop.f32.mrb[93].mxu1 }
 0x26f   : > { %v2666_v50 = vadd.f32 %v6827_v9, %v9284_v49  ;;  %v9488_v54 = vadd.f32 %v9412_v14, %v2663_v41  ;;  %v9494_v61 = vadd.f32 %v6977_v39, %v6976_v3  ;;  %v6979_v14 = vpop.f32.mrb[94].mxu1 }
 0x270   : > { %v6980_v41 = vpop.f32.mrb[95].mxu1 }
 0x271   : > { %v6828_v5 = vpop.f32.mrb[100].mxu0  ;;  %v9491_v11 = vadd.f32 %v9416_v37, %v2666_v50  ;;  %v9497_v43 = vadd.f32 %v6980_v41, %v6979_v14 }
 0x272   : > { %v6829_v44 = vpop.f32.mrb[101].mxu0 }
 0x273   : > { %v6830_v7 = vadd.f32 %v6829_v44, %v6828_v5  ;;  %v6831_v19 = vpop.f32.mrb[102].mxu0 }
 0x274   : > { %v6832_v24 = vpop.f32.mrb[103].mxu0 }
 0x275   : > { %v2671_v49 = vadd.f32 %v6830_v7, %v9290_v27  ;;  %v6833_v33 = vadd.f32 %v6832_v24, %v6831_v19  ;;  %v6982_v27 = vpop.f32.mrb[96].mxu1 }
 0x276   : > { %v6983_v7 = vpop.f32.mrb[97].mxu1 }
 0x277   : > { %v2674_v9 = vadd.f32 %v6833_v33, %v9292_v1  ;;  %v9500_v37 = vadd.f32 %v9424_v13, %v2671_v49  ;;  %v9506_v24 = vadd.f32 %v6983_v7, %v6982_v27  ;;  %v6985_v1 = vpop.f32.mrb[98].mxu1 }
 0x278   : > { %v6986_v39 = vpop.f32.mrb[99].mxu1 }
 0x279   : > { %v6834_v8 = vpop.f32.mrb[104].mxu0  ;;  %v9503_v50 = vadd.f32 %v9428_v30, %v2674_v9  ;;  %v9509_v49 = vadd.f32 %v6986_v39, %v6985_v1  ;;  %v7835_v1 = vld [vmem:[#allocation10 + $0x108] sm:$0xff]  }
 0x27a   : > { %v6835_v20 = vpop.f32.mrb[105].mxu0 }
 0x27b   : > { %v6836_v23 = vadd.f32 %v6835_v20, %v6834_v8  ;;  %v6837_v5 = vpop.f32.mrb[106].mxu0 }
 0x27c   : > { %v6838_v44 = vpop.f32.mrb[107].mxu0 }
 0x27d   : > { %v2679_v19 = vadd.f32 %v6836_v23, %v9298_v51  ;;  %v6839_v3 = vadd.f32 %v6838_v44, %v6837_v5  ;;  %v6988_v51 = vpop.f32.mrb[100].mxu1 }
 0x27e   : > { %v6989_v23 = vpop.f32.mrb[101].mxu1 }
 0x27f   : > { %v2682_v13 = vadd.f32 %v6839_v3, %v9300_v12  ;;  %v9512_v30 = vadd.f32 %v9431_v57, %v2679_v19  ;;  %v9518_v44 = vadd.f32 %v6989_v23, %v6988_v51  ;;  %v6991_v12 = vpop.f32.mrb[102].mxu1  ;;  %v7834_v3 = vld [vmem:[#allocation10 + $0x148] sm:$0xff]  }
 0x280   : > { %v6992_v7 = vpop.f32.mrb[103].mxu1  ;;  %7256 = vmatprep.subr.bf16.mxu1 %v7834_v3 }
 0x281   : > { %v6840_v33 = vpop.f32.mrb[108].mxu0  ;;  %v9515_v14 = vadd.f32 %v9434_v21, %v2682_v13  ;;  %v9521_v19 = vadd.f32 %v6992_v7, %v6991_v12  ;;  %7257 = vmatpush3.bf16.msra.mxu1 %v7835_v1 }
 0x282   : > { %v6841_v41 = vpop.f32.mrb[109].mxu0 }
 0x283   : > { %v6842_v9 = vadd.f32 %v6841_v41, %v6840_v33  ;;  %v6843_v8 = vpop.f32.mrb[110].mxu0 }
 0x284   : > { %v6844_v20 = vpop.f32.mrb[111].mxu0 }
 0x285   : > { %v2687_v5 = vadd.f32 %v6842_v9, %v9306_v18  ;;  %v6845_v27 = vadd.f32 %v6844_v20, %v6843_v8  ;;  %v6994_v9 = vpop.f32.mrb[104].mxu1 }
 0x286   : > { %v6995_v51 = vpop.f32.mrb[105].mxu1 }
 0x287   : > { %v2690_v57 = vadd.f32 %v6845_v27, %v9308_v22  ;;  %v9524_v21 = vadd.f32 %v9445_v32, %v2687_v5  ;;  %v9530_v23 = vadd.f32 %v6995_v51, %v6994_v9  ;;  %v6997_v32 = vpop.f32.mrb[106].mxu1 }
 0x288   : > { %v6998_v5 = vpop.f32.mrb[107].mxu1 }
 0x289   : > { %v6846_v39 = vpop.f32.mrb[112].mxu0  ;;  %v9527_v13 = vadd.f32 %v9448_v60, %v2690_v57  ;;  %v9533_v12 = vadd.f32 %v6998_v5, %v6997_v32 }
 0x28a   : > { %v6847_v18 = vpop.f32.mrb[113].mxu0 }
 0x28b   : > { %v6848_v33 = vadd.f32 %v6847_v18, %v6846_v39  ;;  %v6849_v41 = vpop.f32.mrb[114].mxu0 }
 0x28c   : > { %v6850_v8 = vpop.f32.mrb[115].mxu0 }
 0x28d   : > { %v2695_v22 = vadd.f32 %v6848_v33, %v9314_v10  ;;  %v6851_v20 = vadd.f32 %v6850_v8, %v6849_v41  ;;  %v7000_v10 = vpop.f32.mrb[108].mxu1 }
 0x28e   : > { %v7001_v33 = vpop.f32.mrb[109].mxu1 }
 0x28f   : > { %v2698_v27 = vadd.f32 %v6851_v20, %v9316_v42  ;;  %v9536_v60 = vadd.f32 %v9458_v6, %v2695_v22  ;;  %v9542_v8 = vadd.f32 %v7001_v33, %v7000_v10  ;;  %v7003_v42 = vpop.f32.mrb[110].mxu1  ;;  %v7836_v20 = vld [vmem:[#allocation10 + $0x150] sm:$0xff]  }
 0x290   : > { %v7004_v51 = vpop.f32.mrb[111].mxu1  ;;  %v7837_v6 = vld [vmem:[#allocation10 + $0x110] sm:$0xff]   ;;  %7258 = vmatprep.subr.bf16.mxu1 %v7836_v20 }
 0x291   : > { %v6852_v7 = vpop.f32.mrb[116].mxu0  ;;  %v9539_v57 = vadd.f32 %v9461_v59, %v2698_v27  ;;  %v9545_v32 = vadd.f32 %v7004_v51, %v7003_v42  ;;  %7259 = vmatpush3.bf16.msra.mxu1 %v7837_v6 }
 0x292   : > { %v6853_v3 = vpop.f32.mrb[117].mxu0 }
 0x293   : > { %v6854_v1 = vadd.f32 %v6853_v3, %v6852_v7  ;;  %v6855_v39 = vpop.f32.mrb[118].mxu0 }
 0x294   : > { %v6856_v18 = vpop.f32.mrb[119].mxu0 }
 0x295   : > { %v2703_v41 = vadd.f32 %v6854_v1, %v9322_v17  ;;  %v6857_v9 = vadd.f32 %v6856_v18, %v6855_v39 }
 0x297   : > { %v2706_v22 = vadd.f32 %v6857_v9, %v9324_v28  ;;  %v9548_v59 = vadd.f32 %v9470_v26, %v2703_v41  ;;  %v7838_v41 = vld [vmem:[#allocation10 + $0x158] sm:$0xff]   ;;  %v7840_v9 = vld [vmem:[#allocation10 + $0x160] sm:$0xff]  }
 0x298   : > { %7260 = vmatprep.subr.bf16.mxu1 %v7838_v41 }
 0x299   : > { %v6858_v5 = vpop.f32.mrb[120].mxu0  ;;  %v9551_v27 = vadd.f32 %v9473_v38, %v2706_v22  ;;  %v7839_v38 = vld [vmem:[#allocation10 + $0x118] sm:$0xff]  }
 0x29a   : > { %v6859_v17 = vpop.f32.mrb[121].mxu0  ;;  %7261 = vmatpush3.bf16.msra.mxu1 %v7839_v38 }
 0x29b   : > { %v6860_v7 = vadd.f32 %v6859_v17, %v6858_v5  ;;  %v6861_v3 = vpop.f32.mrb[122].mxu0  ;;  %7262 = vmatprep.subr.bf16.mxu1 %v7840_v9 }
 0x29c   : > { %v6862_v1 = vpop.f32.mrb[123].mxu0 }
 0x29d   : > { %v2711_v39 = vadd.f32 %v6860_v7, %v9330_v4  ;;  %v6863_v10 = vadd.f32 %v6862_v1, %v6861_v3  ;;  %v7841_v4 = vld [vmem:[#allocation10 + $0x120] sm:$0xff]   ;;  %v7843_v1 = vld [vmem:[#allocation10 + $0x128] sm:$0xff]  }
 0x29e   : > { %7263 = vmatpush3.bf16.msra.mxu1 %v7841_v4 }
 0x29f   : > { %v2714_v28 = vadd.f32 %v6863_v10, %v9332_v56  ;;  %v9556_v18 = vadd.f32 %v9482_v36, %v2711_v39 }
 0x2a1   : > { %v6864_v26 = vpop.f32.mrb[124].mxu0  ;;  %v9559_v33 = vadd.f32 %v9485_v35, %v2714_v28  ;;  %v7842_v35 = vld [vmem:[#allocation10 + $0x168] sm:$0xff]  }
 0x2a2   : > { %v6865_v42 = vpop.f32.mrb[125].mxu0  ;;  %7264 = vmatprep.subr.bf16.mxu1 %v7842_v35 }
 0x2a3   : > { %v6866_v51 = vadd.f32 %v6865_v42, %v6864_v26  ;;  %v6867_v20 = vpop.f32.mrb[126].mxu0  ;;  %7265 = vmatpush3.bf16.msra.mxu1 %v7843_v1 }
 0x2a4   : > { %v6868_v6 = vpop.f32.mrb[127].mxu0 }
 0x2a5   : > { %v2719_v22 = vadd.f32 %v6866_v51, %v9338_v45  ;;  %v6869_v56 = vadd.f32 %v6868_v6, %v6867_v20 }
 0x2a7   : > { %v2722_v36 = vadd.f32 %v6869_v56, %v9340_v47  ;;  %v9564_v5 = vadd.f32 %v9494_v61, %v2719_v22 }
 0x2a9   : > { %v6870_v17 = vpop.f32.mrb[128].mxu0  ;;  %v9567_v7 = vadd.f32 %v9497_v43, %v2722_v36 }
 0x2aa   : > { %v6871_v3 = vpop.f32.mrb[129].mxu0 }
 0x2ab   : > { %v6872_v39 = vadd.f32 %v6871_v3, %v6870_v17  ;;  %v6873_v10 = vpop.f32.mrb[130].mxu0 }
 0x2ac   : > { %v6874_v28 = vpop.f32.mrb[131].mxu0 }
 0x2ad   : > { %v2727_v45 = vadd.f32 %v6872_v39, %v9348_v62  ;;  %v6875_v26 = vadd.f32 %v6874_v28, %v6873_v10  ;;  %v7846_v10 = vld [vmem:[#allocation10 + $0x1c0] sm:$0xff]  }
 0x2ae   : > { %7366 = vmatprep.subr.bf16.mxu0 %v7846_v10 }
 0x2af   : > { %v2730_v47 = vadd.f32 %v6875_v26, %v9350_v40  ;;  %v9572_v61 = vadd.f32 %v9506_v24, %v2727_v45  ;;  %v7844_v40 = vld [vmem:[#allocation10 + $0x170] sm:$0xff]  }
 0x2b0   : > { %7266 = vmatprep.subr.bf16.mxu1 %v7844_v40 }
 0x2b1   : > { %v6876_v41 = vpop.f32.mrb[132].mxu0  ;;  %v9575_v38 = vadd.f32 %v9509_v49, %v2730_v47  ;;  %v7845_v49 = vld [vmem:[#allocation10 + $0x130] sm:$0xff]  }
 0x2b2   : > { %v6877_v43 = vpop.f32.mrb[133].mxu0  ;;  %7267 = vmatpush3.bf16.msra.mxu1 %v7845_v49 }
 0x2b3   : > { %v6878_v9 = vadd.f32 %v6877_v43, %v6876_v41  ;;  %v6879_v42 = vpop.f32.mrb[134].mxu0 }
 0x2b4   : > { %v6880_v51 = vpop.f32.mrb[135].mxu0 }
 0x2b5   : > { %v2735_v20 = vadd.f32 %v6878_v9, %v9354_v53  ;;  %v6881_v6 = vadd.f32 %v6880_v51, %v6879_v42  ;;  %v7851_v51 = vld [vmem:[#allocation10 + $0x138] sm:$0xff]  }
 0x2b7   : > { %v2738_v4 = vadd.f32 %v6881_v6, %v9356_v48  ;;  %v9580_v62 = vadd.f32 %v9518_v44, %v2735_v20 }
 0x2b9   : > { %v6882_v22 = vpop.f32.mrb[136].mxu0  ;;  %v9583_v24 = vadd.f32 %v9521_v19, %v2738_v4 }
 0x2ba   : > { %v6883_v56 = vpop.f32.mrb[137].mxu0 }
 0x2bb   : > { %v6884_v36 = vadd.f32 %v6883_v56, %v6882_v22  ;;  %v6885_v35 = vpop.f32.mrb[138].mxu0 }
 0x2bc   : > { %v6886_v17 = vpop.f32.mrb[139].mxu0 }
 0x2bd   : > { %v2743_v53 = vadd.f32 %v6884_v36, %v9365_v29  ;;  %v6887_v3 = vadd.f32 %v6886_v17, %v6885_v35 }
 0x2bf   : > { %v2746_v48 = vadd.f32 %v6887_v3, %v9367_v0  ;;  %v9588_v44 = vadd.f32 %v9530_v23, %v2743_v53  ;;  %v7850_v23 = vld [vmem:[#allocation10 + $0x178] sm:$0xff]  }
 0x2c0   : > { %7268 = vmatprep.subr.bf16.mxu1 %v7850_v23 }
 0x2c1   : > { %v6888_v1 = vpop.f32.mrb[140].mxu0  ;;  %v9591_v39 = vadd.f32 %v9533_v12, %v2746_v48  ;;  %7269 = vmatpush3.bf16.msra.mxu1 %v7851_v51 }
 0x2c2   : > { %v6889_v19 = vpop.f32.mrb[141].mxu0 }
 0x2c3   : > { %v6890_v28 = vadd.f32 %v6889_v19, %v6888_v1  ;;  %v6891_v45 = vpop.f32.mrb[142].mxu0 }
 0x2c4   : > { %v6892_v26 = vpop.f32.mrb[143].mxu0 }
 0x2c5   : > { %v2751_v47 = vadd.f32 %v6890_v28, %v9375_v15  ;;  %v6893_v41 = vadd.f32 %v6892_v26, %v6891_v45 }
 0x2c7   : > { %v2754_v29 = vadd.f32 %v6893_v41, %v9377_v63  ;;  %v9596_v0 = vadd.f32 %v9542_v8, %v2751_v47 }
 0x2c9   : > { %v7608_v43 = vpop.f32.mrb[144].mxu0  ;;  %v9599_v9 = vadd.f32 %v9545_v32, %v2754_v29  ;;  %v9644_v29 = vld [vmem:[#allocation4 + $0x60] sm:$0xff] }
 0x2ca   : > { %v2961_v12 = vadd.f32 %v7608_v43, %v9451_v31  ;;  %v2952_v42 = vpop.f32.mrb[145].mxu0 }
 0x2cb   : > { %v2953_v20 = vadd.f32 %v2952_v42, %v9437_v16  ;;  %v7609_v6 = vpop.f32.mrb[146].mxu0 }
 0x2cc   : > { %v9603_v15 = vmax.f32 %v2961_v12, 0.0  ;;  %v2964_v63 = vadd.f32 %v7609_v6, %v9455_v46  ;;  %v2955_v4 = vpop.f32.mrb[147].mxu0 }
 0x2cd   : > { %v3079_v8 = vmax.f32 %v2953_v20, 0.0  ;;  %v2956_v40 = vadd.f32 %v2955_v4, %v9440_v25 }
 0x2ce   : > { %3113 = vst [vmem:[#allocation3 + $0x10] sm:$0xff] %v9603_v15  ;;  %v9609_v32 = vrot.slane %v9603_v15, 7  ;;  %3693 = vst [vmem:[#allocation4 + $0xc0] sm:$0xff] %v9603_v15  ;;  %v9613_v16 = vmax.f32 %v2964_v63, 0.0 }
 0x2cf   : > { %4018 = vst [vmem:[#allocation4 + $0x38] sm:$0xff] %v9603_v15  ;;  %3111 = vst [vmem:[#allocation3] sm:$0xff] %v3079_v8  ;;  %v9615_v31 = vrot.slane %v3079_v8, 7  ;;  %v3080_v46 = vmax.f32 %v2956_v40, 0.0 }
 0x2d0   : > { %3691 = vst [vmem:[#allocation4 + $0x20] sm:$0xff] %v3079_v8  ;;  %3939 = vst [vmem:[#allocation4 + $0x30] sm:$0xfe] %v9609_v32  ;;  %v4533_v25 = vpack.c.bf16 %v9613_v16, %v9603_v15  ;;  %v7852_v15 = vld [vmem:[#allocation10 + $0x1d0] sm:$0xff]  }
 0x2d1   : > { %3281 = vst [vmem:[#allocation4 + $0x140] sm:$0xfe] %v9609_v32  ;;  %3613 = vst [vmem:[#allocation4 + $0xb8] sm:$0xfe] %v9609_v32  ;;  %v7612_v22 = vpop.f32.mrb[148].mxu0  ;;  %v4523_v56 = vpack.c.bf16 %v3080_v46, %v3079_v8 }
 0x2d2   : > { %3114 = vst [vmem:[#allocation3 + $0x18] sm:$0xff] %v9613_v16  ;;  %3694 = vst [vmem:[#allocation4 + $0x110] sm:$0xff] %v9613_v16  ;;  %v2977_v49 = vadd.f32 %v7612_v22, %v9476_v34  ;;  %v2968_v36 = vpop.f32.mrb[149].mxu0 }
 0x2d3   : > { %4019 = vst [vmem:[#allocation4 + $0x88] sm:$0xff] %v9613_v16  ;;  %3279 = vst [vmem:[#allocation4 + $0xa0] sm:$0xfe] %v9615_v31  ;;  %v2969_v35 = vadd.f32 %v2968_v36, %v9464_v58  ;;  %v7613_v17 = vpop.f32.mrb[150].mxu0  ;;  %5359 = vmatprep.mubr.bf16.mxu1 %v4523_v56 }
 0x2d4   : > { %3611 = vst [vmem:[#allocation4 + $0x18] sm:$0xfe] %v9615_v31  ;;  %3112 = vst [vmem:[#allocation3 + $0x8] sm:$0xff] %v3080_v46  ;;  %v3085_v53 = vmax.f32 %v2977_v49, 0.0  ;;  %v2980_v3 = vadd.f32 %v7613_v17, %v9479_v2  ;;  %v2971_v48 = vpop.f32.mrb[151].mxu0 }
 0x2d5   : > { %3692 = vst [vmem:[#allocation4 + $0x70] sm:$0xff] %v3080_v46  ;;  %v9630_v1 = vmax.f32 %v2969_v35, 0.0  ;;  %v2972_v19 = vadd.f32 %v2971_v48, %v9467_v52 }
 0x2d6   : > { %3117 = vst [vmem:[#allocation3 + $0x30] sm:$0xff] %v3085_v53  ;;  %v9633_v10 = vrot.slane %v3085_v53, 7  ;;  %3363 = vst [vmem:[#allocation4 + $0x288] sm:$0xff] %v3085_v53  ;;  %v3086_v34 = vmax.f32 %v2980_v3, 0.0 }
 0x2d7   : > { %3697 = vst [vmem:[#allocation4 + $0x200] sm:$0xff] %v3085_v53  ;;  %4022 = vst [vmem:[#allocation4 + $0x178] sm:$0xff] %v3085_v53  ;;  %v9637_v26 = vrot.slane %v9630_v1, 7  ;;  %v9649_v42 = vmax.f32 %v2972_v19, 0.0 }
 0x2d8   : > { %3115 = vst [vmem:[#allocation3 + $0x20] sm:$0xff] %v9630_v1  ;;  %3695 = vst [vmem:[#allocation4 + $0x160] sm:$0xff] %v9630_v1 }
 0x2d9   : > { %v3146_v28 = vld [vmem:[#allocation3 + $0x18] sm:$0x7f]  ;;  %4020 = vst [vmem:[#allocation4 + $0xd8] sm:$0xff] %v9630_v1  ;;  %3285 = vst [vmem:[#allocation4 + $0x280] sm:$0xfe] %v9633_v10  ;;  %v7616_v63 = vpop.f32.mrb[152].mxu0  ;;  %v4543_v36 = vpack.c.bf16 %v9649_v42, %v9630_v1 }
 0x2da   : > { %v3391_v45 = vld [vmem:[#allocation3 + $0x11] sm:$0xff]  ;;  %v3392_v58 = vld [vmem:[#allocation3 + $0x19] sm:$0x7f]  ;;  %v3207_v52 = vrot.slane %v3146_v28, 7  ;;  %3617 = vst [vmem:[#allocation4 + $0x1f8] sm:$0xfe] %v9633_v10  ;;  %v2993_v22 = vadd.f32 %v7616_v63, %v9500_v37 }
 0x2db   : > { %3421 = vst [vmem:[#allocation4 + $0x150] sm:$0xff] %v3391_v45  ;;  %3422 = vst [vmem:[#allocation4 + $0x1a0] sm:$0x7f] %v3392_v58  ;;  %v3470_v2 = vld [vmem:[#allocation3 + $0x18] sm:$0x7f]  ;;  %v3389_v41 = vld [vmem:[#allocation3 + $0x1] sm:$0xff] }
 0x2dc   : > { %v3726_v47 = vld [vmem:[#allocation3 + $0x19] sm:$0x7f]  ;;  %3757 = vst [vmem:[#allocation4 + $0xc8] sm:$0xff] %v3391_v45  ;;  %4080 = vst [vmem:[#allocation4 + $0x40] sm:$0xff] %v3391_v45  ;;  %v3535_v23 = vrot.slane %v3470_v2, 7  ;;  %v9653_v4 = vsel %vm333_vm0, %v9609_v32, %v3207_v52  ;;  %v2984_v56 = vpop.f32.mrb[153].mxu0  ;;  %v4514_v45 = vpack.c.bf16 %v9644_v29, %v9379_v55 }
 0x2dd   : > { %3943 = vst [vmem:[#allocation4 + $0x170] sm:$0xfe] %v9633_v10  ;;  %3118 = vst [vmem:[#allocation3 + $0x38] sm:$0xff] %v3086_v34  ;;  %v3805_v43 = vld [vmem:[#allocation3 + $0x18] sm:$0x7f]  ;;  %v2985_v53 = vadd.f32 %v2984_v56, %v9488_v54  ;;  %v7617_v3 = vpop.f32.mrb[154].mxu0 }
 0x2de   : > { %3364 = vst [vmem:[#allocation4 + $0x2d8] sm:$0xff] %v3086_v34  ;;  %3698 = vst [vmem:[#allocation4 + $0x250] sm:$0xff] %v3086_v34  ;;  %v4051_v12 = vld [vmem:[#allocation3 + $0x19] sm:$0x7f]  ;;  %v3865_v51 = vrot.slane %v3805_v43, 7  ;;  %v9661_v49 = vsel %vm333_vm0, %v9609_v32, %v3535_v23  ;;  %v3089_v48 = vmax.f32 %v2993_v22, 0.0  ;;  %v2996_v37 = vadd.f32 %v7617_v3, %v9503_v50 }
 0x2df   : > { %4023 = vst [vmem:[#allocation4 + $0x1c8] sm:$0xff] %v3086_v34  ;;  %3758 = vst [vmem:[#allocation4 + $0x118] sm:$0x7f] %v3726_v47  ;;  %v3144_v20 = vld [vmem:[#allocation3 + $0x8] sm:$0x7f]  ;;  %v2987_v19 = vpop.f32.mrb[155].mxu0 }
 0x2e0   : > { %3419 = vst [vmem:[#allocation4 + $0xb0] sm:$0xff] %v3389_v41  ;;  %3755 = vst [vmem:[#allocation4 + $0x28] sm:$0xff] %v3389_v41  ;;  %v3390_v6 = vld [vmem:[#allocation3 + $0x9] sm:$0x7f]  ;;  %v3204_v8 = vrot.slane %v3144_v20, 7  ;;  %v3866_v35 = vsel %vm333_vm0, %v9609_v32, %v3865_v51  ;;  %v4212_v28 = vld [vmem:[#allocation4 + $0xa0] sm:$0xff]  ;;  %v9676_v52 = vadd.f32 %v2987_v19, %v9491_v11 }
 0x2e1   : > { %3283 = vst [vmem:[#allocation4 + $0x1e0] sm:$0xfe] %v9637_v26  ;;  %3615 = vst [vmem:[#allocation4 + $0x158] sm:$0xfe] %v9637_v26  ;;  %v3468_v40 = vld [vmem:[#allocation3 + $0x8] sm:$0x7f] }
 0x2e2   : > { %3941 = vst [vmem:[#allocation4 + $0xd0] sm:$0xfe] %v9637_v26  ;;  %4081 = vst [vmem:[#allocation4 + $0x90] sm:$0x7f] %v4051_v12  ;;  %v3724_v46 = vld [vmem:[#allocation3 + $0x9] sm:$0x7f]  ;;  %v3205_v34 = vsel %vm333_vm0, %v9615_v31, %v3204_v8 }
 0x2e3   : > { %3420 = vst [vmem:[#allocation4 + $0x100] sm:$0x7f] %v3390_v6  ;;  %3116 = vst [vmem:[#allocation3 + $0x28] sm:$0xff] %v9649_v42  ;;  %v3532_v17 = vrot.slane %v3468_v40, 7  ;;  %v9673_v58 = vld [vmem:[#allocation10 + $0x180] sm:$0xff]   ;;  %v3087_v32 = vmax.f32 %v2985_v53, 0.0  ;;  %v4522_v54 = vpack.c.bf16 %v3205_v34, %v4212_v28 }
 0x2e4   : > { %3696 = vst [vmem:[#allocation4 + $0x1b0] sm:$0xff] %v9649_v42  ;;  %4021 = vst [vmem:[#allocation4 + $0x128] sm:$0xff] %v9649_v42  ;;  %v4195_v47 = vld [vmem:[#allocation4 + $0x18] sm:$0xff]  ;;  %v9680_v41 = vld [vmem:[#allocation10 + $0x1c8] sm:$0xff]   ;;  %v9682_v55 = vrot.slane %v3089_v48, 7 }
 0x2e5   : > { %3756 = vst [vmem:[#allocation4 + $0x78] sm:$0x7f] %v3724_v46  ;;  %3940 = vst [vmem:[#allocation4 + $0x80] sm:$0xff] %v3866_v35  ;;  %v3533_v2 = vsel %vm333_vm0, %v9615_v31, %v3532_v17  ;;  %v4215_v50 = vld [vmem:[#allocation4 + $0xb8] sm:$0xff]  ;;  %v7860_v23 = vld [vmem:[#allocation10 + $0x240] sm:$0xff]   ;;  %v9684_v6 = vrot.slane %v3087_v32, 7  ;;  %5360 = vmatmul.mubr.bf16.gmra.mrb[116].mxu1 %v4522_v54 }
 0x2e6   : > { %v3150_v43 = vld [vmem:[#allocation3 + $0x38] sm:$0x7f]  ;;  %3121 = vst [vmem:[#allocation3 + $0x50] sm:$0xff] %v3089_v48  ;;  %3367 = vst [vmem:[#allocation4 + $0x3c8] sm:$0xff] %v3089_v48  ;;  %v4515_v11 = vpack.c.bf16 %v3533_v2, %v4195_v47  ;;  %7478 = vmatprep.subr.bf16.mxu1 %v7860_v23  ;;  %v3090_v46 = vmax.f32 %v2996_v37, 0.0  ;;  %5367 = vmatprep.mubr.bf16.mxu1 %v4533_v25  ;;  %v4525_v22 = vpack.c.bf16 %v9661_v49, %v4215_v50  ;;  %v7849_v56 = vld [vmem:[#allocation10 + $0x188] sm:$0xff]  }
 0x2e7   : > { %v3395_v12 = vld [vmem:[#allocation3 + $0x31] sm:$0xff]  ;;  %v3396_v51 = vld [vmem:[#allocation3 + $0x39] sm:$0x7f]  ;;  %3701 = vst [vmem:[#allocation4 + $0x340] sm:$0xff] %v3089_v48  ;;  %4026 = vst [vmem:[#allocation4 + $0x2b8] sm:$0xff] %v3089_v48  ;;  %v3213_v29 = vrot.slane %v3150_v43, 7 }
 0x2e8   : > { %3425 = vst [vmem:[#allocation4 + $0x290] sm:$0xff] %v3395_v12  ;;  %3426 = vst [vmem:[#allocation4 + $0x2e0] sm:$0x7f] %v3396_v51  ;;  %v3474_v20 = vld [vmem:[#allocation3 + $0x38] sm:$0x7f]  ;;  %5512 = vmatprep.mubr.bf16.mxu0 %v4515_v11  ;;  %v3088_v37 = vmax.f32 %v9676_v52, 0.0 }
 0x2e9   : > { %v3730_v31 = vld [vmem:[#allocation3 + $0x39] sm:$0x7f]  ;;  %3761 = vst [vmem:[#allocation4 + $0x208] sm:$0xff] %v3395_v12  ;;  %4084 = vst [vmem:[#allocation4 + $0x180] sm:$0xff] %v3395_v12  ;;  %v3541_v63 = vrot.slane %v3474_v20, 7  ;;  %5513 = vmatmul.mubr.bf16.vlgmr.msra.gmra.mrb[176].mxu0 %v4514_v45  ;;  %v9698_v48 = vsel %vm333_vm0, %v9633_v10, %v3213_v29  ;;  %v4232_v47 = vld [vmem:[#allocation4 + $0x140] sm:$0xff] }
 0x2ea   : > { %3119 = vst [vmem:[#allocation3 + $0x40] sm:$0xff] %v3087_v32  ;;  %3365 = vst [vmem:[#allocation4 + $0x328] sm:$0xff] %v3087_v32  ;;  %v3809_v8 = vld [vmem:[#allocation3 + $0x38] sm:$0x7f]  ;;  %v3148_v17 = vld [vmem:[#allocation3 + $0x28] sm:$0x7f]  ;;  %5520 = vmatprep.mubr.bf16.mxu0 %v4525_v22  ;;  %7367 = vmatpush3.bf16.msra.mxu0 %v9673_v58  ;;  %v4532_v12 = vpack.c.bf16 %v9653_v4, %v4232_v47 }
 0x2eb   : > { %3699 = vst [vmem:[#allocation4 + $0x2a0] sm:$0xff] %v3087_v32  ;;  %4024 = vst [vmem:[#allocation4 + $0x218] sm:$0xff] %v3087_v32  ;;  %v4055_v40 = vld [vmem:[#allocation3 + $0x39] sm:$0x7f]  ;;  %v3871_v35 = vrot.slane %v3809_v8, 7  ;;  %v3393_v53 = vld [vmem:[#allocation3 + $0x21] sm:$0xff]  ;;  %v9703_v19 = vsel %vm333_vm0, %v9633_v10, %v3541_v63  ;;  %7368 = vmatprep.subr.bf16.mxu0 %v9680_v41 }
 0x2ec   : > { %3762 = vst [vmem:[#allocation4 + $0x258] sm:$0x7f] %v3730_v31  ;;  %3947 = vst [vmem:[#allocation4 + $0x2b0] sm:$0xfe] %v9682_v55  ;;  %v3394_v3 = vld [vmem:[#allocation3 + $0x29] sm:$0x7f] }
 0x2ed   : > { %3289 = vst [vmem:[#allocation4 + $0x3c0] sm:$0xfe] %v9682_v55  ;;  %3621 = vst [vmem:[#allocation4 + $0x338] sm:$0xfe] %v9682_v55  ;;  %v3210_v16 = vrot.slane %v3148_v17, 7  ;;  %v7620_v32 = vpop.f32.mrb[156].mxu0  ;;  %v3872_v54 = vsel %vm333_vm0, %v9633_v10, %v3871_v35  ;;  %5368 = vmatmul.mubr.bf16.gmra.mrb[120].mxu1 %v4532_v12 }
 0x2ee   : > { %4085 = vst [vmem:[#allocation4 + $0x1d0] sm:$0x7f] %v4055_v40  ;;  %3287 = vst [vmem:[#allocation4 + $0x320] sm:$0xfe] %v9684_v6  ;;  %v3472_v25 = vld [vmem:[#allocation3 + $0x28] sm:$0x7f]  ;;  %v3009_v52 = vadd.f32 %v7620_v32, %v9524_v21  ;;  %7369 = vmatpush3.bf16.msra.mxu0 %v7849_v56  ;;  %5375 = vmatprep.mubr.bf16.mxu1 %v4543_v36 }
 0x2ef   : > { %3619 = vst [vmem:[#allocation4 + $0x298] sm:$0xfe] %v9684_v6  ;;  %3945 = vst [vmem:[#allocation4 + $0x210] sm:$0xfe] %v9684_v6  ;;  %v3728_v49 = vld [vmem:[#allocation3 + $0x29] sm:$0x7f]  ;;  %v9712_v23 = vsel %vm333_vm0, %v9637_v26, %v3210_v16  ;;  %7370 = vmatprep.subr.bf16.mxu0 %v7852_v15 }
 0x2f0   : > { %3423 = vst [vmem:[#allocation4 + $0x1f0] sm:$0xff] %v3393_v53  ;;  %3424 = vst [vmem:[#allocation4 + $0x240] sm:$0x7f] %v3394_v3  ;;  %v3538_v34 = vrot.slane %v3472_v25, 7  ;;  %v3807_v28 = vld [vmem:[#allocation3 + $0x28] sm:$0x7f] }
 0x2f1   : > { %3759 = vst [vmem:[#allocation4 + $0x168] sm:$0xff] %v3393_v53  ;;  %4082 = vst [vmem:[#allocation4 + $0xe0] sm:$0xff] %v3393_v53  ;;  %v4053_v45 = vld [vmem:[#allocation3 + $0x29] sm:$0x7f]  ;;  %v3000_v2 = vpop.f32.mrb[157].mxu0  ;;  %v4214_v58 = vld [vmem:[#allocation4 + $0xb0] sm:$0xff] }
 0x2f2   : > { %3122 = vst [vmem:[#allocation3 + $0x58] sm:$0xff] %v3090_v46  ;;  %3368 = vst [vmem:[#allocation4 + $0x418] sm:$0xff] %v3090_v46  ;;  %v4224_v50 = vld [vmem:[#allocation4 + $0x100] sm:$0xff]  ;;  %v3868_v41 = vrot.slane %v3807_v28, 7  ;;  %v3001_v43 = vadd.f32 %v3000_v2, %v9512_v30  ;;  %v7621_v10 = vpop.f32.mrb[158].mxu0  ;;  %v3539_v51 = vsel %vm333_vm0, %v9637_v26, %v3538_v34  ;;  %v3093_v11 = vmax.f32 %v3009_v52, 0.0 }
 0x2f3   : > { %3702 = vst [vmem:[#allocation4 + $0x390] sm:$0xff] %v3090_v46  ;;  %4027 = vst [vmem:[#allocation4 + $0x308] sm:$0xff] %v3090_v46  ;;  %v3012_v21 = vadd.f32 %v7621_v10, %v9527_v13  ;;  %v3003_v29 = vpop.f32.mrb[159].mxu0  ;;  %v7853_v20 = vld [vmem:[#allocation10 + $0x190] sm:$0xff]   ;;  %v4524_v8 = vpack.c.bf16 %v4224_v50, %v4214_v58  ;;  %v4235_v40 = vld [vmem:[#allocation4 + $0x158] sm:$0xff] }
 0x2f4   : > { %3760 = vst [vmem:[#allocation4 + $0x1b8] sm:$0x7f] %v3728_v49  ;;  %4083 = vst [vmem:[#allocation4 + $0x130] sm:$0x7f] %v4053_v45  ;;  %v3091_v31 = vmax.f32 %v3001_v43, 0.0  ;;  %v3004_v63 = vadd.f32 %v3003_v29, %v9515_v14  ;;  %v7854_v30 = vld [vmem:[#allocation10 + $0x1d8] sm:$0xff]   ;;  %v4535_v13 = vpack.c.bf16 %v3539_v51, %v4235_v40  ;;  %v3869_v1 = vsel %vm333_vm0, %v9637_v26, %v3868_v41 }
 0x2f5   : > { %3120 = vst [vmem:[#allocation3 + $0x48] sm:$0xff] %v3088_v37  ;;  %3366 = vst [vmem:[#allocation4 + $0x378] sm:$0xff] %v3088_v37  ;;  %v9720_v46 = vrot.slane %v3093_v11, 7  ;;  %v3094_v4 = vmax.f32 %v3012_v21, 0.0  ;;  %v7624_v22 = vpop.f32.mrb[160].mxu0  ;;  %v9725_v56 = vld [vmem:[#allocation4 + $0x2d8] sm:$0xff]  ;;  %5521 = vmatmul.mubr.bf16.gmra.mrb[180].mxu0 %v4524_v8 }
 0x2f6   : > { %3700 = vst [vmem:[#allocation4 + $0x2f0] sm:$0xff] %v3088_v37  ;;  %4025 = vst [vmem:[#allocation4 + $0x268] sm:$0xff] %v3088_v37  ;;  %v9727_v14 = vld [vmem:[#allocation10 + $0x198] sm:$0xff]   ;;  %v9729_v3 = vrot.slane %v3091_v31, 7  ;;  %v3025_v15 = vadd.f32 %v7624_v22, %v9548_v59  ;;  %v9732_v16 = vld [vmem:[#allocation10 + $0x1e0] sm:$0xff]   ;;  %v3092_v59 = vmax.f32 %v3004_v63, 0.0  ;;  %5528 = vmatprep.mubr.bf16.mxu0 %v4535_v13  ;;  %7371 = vmatpush3.bf16.msra.mxu0 %v7853_v20 }
 0x2f7   : > { %3944 = vst [vmem:[#allocation4 + $0x1c0] sm:$0xff] %v3872_v54  ;;  %3125 = vst [vmem:[#allocation3 + $0x70] sm:$0xff] %v3093_v11  ;;  %v4252_v26 = vld [vmem:[#allocation4 + $0x1e0] sm:$0xff]  ;;  %v9739_v49 = vld [vmem:[#allocation4 + $0x288] sm:$0xff]  ;;  %7372 = vmatprep.subr.bf16.mxu0 %v7854_v30  ;;  %v3016_v51 = vpop.f32.mrb[161].mxu0 }
 0x2f8   : > { %3371 = vst [vmem:[#allocation4 + $0x508] sm:$0xff] %v3093_v11  ;;  %3705 = vst [vmem:[#allocation4 + $0x480] sm:$0xff] %v3093_v11  ;;  %v9741_v37 = vld [vmem:[#allocation4 + $0x150] sm:$0xff]  ;;  %v9743_v34 = vld [vmem:[#allocation4 + $0x1a0] sm:$0xff]  ;;  %v3097_v58 = vmax.f32 %v3025_v15, 0.0  ;;  %v4553_v21 = vpack.c.bf16 %v9725_v56, %v9739_v49 }
 0x2f9   : > { %4030 = vst [vmem:[#allocation4 + $0x3f8] sm:$0xff] %v3093_v11  ;;  %v3154_v35 = vld [vmem:[#allocation3 + $0x58] sm:$0x7f]  ;;  %3123 = vst [vmem:[#allocation3 + $0x60] sm:$0xff] %v3091_v31  ;;  %v9752_v41 = vld [vmem:[#allocation10 + $0x1a0] sm:$0xff]   ;;  %v4542_v11 = vpack.c.bf16 %v9712_v23, %v4252_v26  ;;  %v3017_v23 = vadd.f32 %v3016_v51, %v9536_v60 }
 0x2fa   : > { %v3399_v17 = vld [vmem:[#allocation3 + $0x51] sm:$0xff]  ;;  %v3400_v53 = vld [vmem:[#allocation3 + $0x59] sm:$0x7f]  ;;  %3369 = vst [vmem:[#allocation4 + $0x468] sm:$0xff] %v3091_v31  ;;  %3703 = vst [vmem:[#allocation4 + $0x3e0] sm:$0xff] %v3091_v31  ;;  %v3219_v42 = vrot.slane %v3154_v35, 7  ;;  %7373 = vmatpush3.bf16.msra.mxu0 %v9727_v14 }
 0x2fb   : > { %4028 = vst [vmem:[#allocation4 + $0x358] sm:$0xff] %v3091_v31  ;;  %3429 = vst [vmem:[#allocation4 + $0x3d0] sm:$0xff] %v3399_v17  ;;  %v3478_v36 = vld [vmem:[#allocation3 + $0x58] sm:$0x7f]  ;;  %v9765_v40 = vrot.slane %v3097_v58, 7  ;;  %5376 = vmatmul.mubr.bf16.gmra.mrb[124].mxu1 %v4542_v11  ;;  %7374 = vmatprep.subr.bf16.mxu0 %v9732_v16  ;;  %v7858_v56 = vld [vmem:[#allocation10 + $0x1e8] sm:$0xff]  }
 0x2fc   : > { %3430 = vst [vmem:[#allocation4 + $0x420] sm:$0x7f] %v3400_v53  ;;  %v3734_v25 = vld [vmem:[#allocation3 + $0x59] sm:$0x7f]  ;;  %3765 = vst [vmem:[#allocation4 + $0x348] sm:$0xff] %v3399_v17  ;;  %v3547_v28 = vrot.slane %v3478_v36, 7  ;;  %v9750_v50 = vsel %vm333_vm0, %v9682_v55, %v3219_v42  ;;  %5383 = vmatprep.mubr.bf16.mxu1 %v4553_v21 }
 0x2fd   : > { %4088 = vst [vmem:[#allocation4 + $0x2c0] sm:$0xff] %v3399_v17  ;;  %3951 = vst [vmem:[#allocation4 + $0x3f0] sm:$0xfe] %v9720_v46  ;;  %v3813_v45 = vld [vmem:[#allocation3 + $0x58] sm:$0x7f]  ;;  %v3397_v54 = vld [vmem:[#allocation3 + $0x41] sm:$0xff] }
 0x2fe   : > { %3293 = vst [vmem:[#allocation4 + $0x500] sm:$0xfe] %v9720_v46  ;;  %3625 = vst [vmem:[#allocation4 + $0x478] sm:$0xfe] %v9720_v46  ;;  %v4059_v32 = vld [vmem:[#allocation3 + $0x59] sm:$0x7f]  ;;  %v9759_v29 = vsel %vm333_vm0, %v9682_v55, %v3547_v28  ;;  %7375 = vmatpush3.bf16.msra.mxu0 %v9752_v41 }
 0x2ff   : > { %3126 = vst [vmem:[#allocation3 + $0x78] sm:$0xff] %v3094_v4  ;;  %3372 = vst [vmem:[#allocation4 + $0x558] sm:$0xff] %v3094_v4  ;;  %v3877_v52 = vrot.slane %v3813_v45, 7  ;;  %v3152_v2 = vld [vmem:[#allocation3 + $0x48] sm:$0x7f]  ;;  %v4255_v22 = vld [vmem:[#allocation4 + $0x1f8] sm:$0xff]  ;;  %7376 = vmatprep.subr.bf16.mxu0 %v7858_v56 }
 0x300   : > { %3706 = vst [vmem:[#allocation4 + $0x4d0] sm:$0xff] %v3094_v4  ;;  %4031 = vst [vmem:[#allocation4 + $0x448] sm:$0xff] %v3094_v4  ;;  %v3398_v47 = vld [vmem:[#allocation3 + $0x49] sm:$0x7f]  ;;  %v3216_v43 = vrot.slane %v3152_v2, 7  ;;  %v4534_v4 = vpack.c.bf16 %v9743_v34, %v9741_v37  ;;  %v3095_v60 = vmax.f32 %v3017_v23, 0.0  ;;  %v4545_v17 = vpack.c.bf16 %v9703_v19, %v4255_v22 }
 0x301   : > { %3942 = vst [vmem:[#allocation4 + $0x120] sm:$0xff] %v3869_v1  ;;  %3766 = vst [vmem:[#allocation4 + $0x398] sm:$0x7f] %v3734_v25  ;;  %v3476_v10 = vld [vmem:[#allocation3 + $0x48] sm:$0x7f]  ;;  %v3878_v20 = vsel %vm333_vm0, %v9682_v55, %v3877_v52  ;;  %v7625_v55 = vpop.f32.mrb[162].mxu0 }
 0x302   : > { %3949 = vst [vmem:[#allocation4 + $0x350] sm:$0xfe] %v9729_v3  ;;  %3291 = vst [vmem:[#allocation4 + $0x460] sm:$0xfe] %v9729_v3  ;;  %v3732_v12 = vld [vmem:[#allocation3 + $0x49] sm:$0x7f]  ;;  %v9774_v13 = vsel %vm333_vm0, %v9684_v6, %v3216_v43  ;;  %v3028_v14 = vadd.f32 %v7625_v55, %v9551_v27  ;;  %5529 = vmatmul.mubr.bf16.gmra.mrb[184].mxu0 %v4534_v4 }
 0x303   : > { %3623 = vst [vmem:[#allocation4 + $0x3d8] sm:$0xfe] %v9729_v3  ;;  %4089 = vst [vmem:[#allocation4 + $0x310] sm:$0x7f] %v4059_v32  ;;  %v3544_v31 = vrot.slane %v3476_v10, 7  ;;  %v3019_v35 = vpop.f32.mrb[163].mxu0  ;;  %5536 = vmatprep.mubr.bf16.mxu0 %v4545_v17 }
 0x304   : > { %3427 = vst [vmem:[#allocation4 + $0x330] sm:$0xff] %v3397_v54  ;;  %3763 = vst [vmem:[#allocation4 + $0x2a8] sm:$0xff] %v3397_v54  ;;  %v9763_v63 = vld [vmem:[#allocation3 + $0x48] sm:$0x7f]  ;;  %v3020_v16 = vadd.f32 %v3019_v35, %v9539_v57  ;;  %v7628_v36 = vpop.f32.mrb[164].mxu0  ;;  %v9785_v25 = vld [vmem:[#allocation4 + $0x378] sm:$0xff] }
 0x305   : > { %4086 = vst [vmem:[#allocation4 + $0x220] sm:$0xff] %v3397_v54  ;;  %3124 = vst [vmem:[#allocation3 + $0x68] sm:$0xff] %v3092_v59  ;;  %v4057_v8 = vld [vmem:[#allocation3 + $0x49] sm:$0x7f]  ;;  %v3874_v30 = vrot.slane %v9763_v63, 7  ;;  %v9791_v27 = vld [vmem:[#allocation10 + $0x1f0] sm:$0xff]   ;;  %v3041_v57 = vadd.f32 %v7628_v36, %v9564_v5 }
 0x306   : > { %3370 = vst [vmem:[#allocation4 + $0x4b8] sm:$0xff] %v3092_v59  ;;  %3704 = vst [vmem:[#allocation4 + $0x430] sm:$0xff] %v3092_v59  ;;  %v9782_v53 = vld [vmem:[#allocation10 + $0x1a8] sm:$0xff]   ;;  %v3158_v15 = vld [vmem:[#allocation3 + $0x78] sm:$0x7f]  ;;  %v9793_v37 = vrot.slane %v3095_v60, 7 }
 0x307   : > { %4029 = vst [vmem:[#allocation4 + $0x3a8] sm:$0xff] %v3092_v59  ;;  %3428 = vst [vmem:[#allocation4 + $0x380] sm:$0x7f] %v3398_v47  ;;  %v3403_v1 = vld [vmem:[#allocation3 + $0x71] sm:$0xff]  ;;  %v3404_v42 = vld [vmem:[#allocation3 + $0x79] sm:$0x7f]  ;;  %v9789_v59 = vsel %vm333_vm0, %v9684_v6, %v3544_v31  ;;  %7377 = vmatpush3.bf16.msra.mxu0 %v9782_v53 }
 0x308   : > { %3764 = vst [vmem:[#allocation4 + $0x2f8] sm:$0x7f] %v3732_v12  ;;  %3129 = vst [vmem:[#allocation3 + $0x90] sm:$0xff] %v3097_v58  ;;  %v3225_v26 = vrot.slane %v3158_v15, 7  ;;  %v3482_v19 = vld [vmem:[#allocation3 + $0x78] sm:$0x7f]  ;;  %7378 = vmatprep.subr.bf16.mxu0 %v9791_v27 }
 0x309   : > { %3375 = vst [vmem:[#allocation4 + $0x648] sm:$0xff] %v3097_v58  ;;  %3709 = vst [vmem:[#allocation4 + $0x5c0] sm:$0xff] %v3097_v58  ;;  %v3738_v49 = vld [vmem:[#allocation3 + $0x79] sm:$0x7f]  ;;  %v4272_v34 = vld [vmem:[#allocation4 + $0x280] sm:$0xff]  ;;  %v3553_v32 = vrot.slane %v3482_v19, 7 }
 0x30a   : > { %4034 = vst [vmem:[#allocation4 + $0x538] sm:$0xff] %v3097_v58  ;;  %3948 = vst [vmem:[#allocation4 + $0x300] sm:$0xff] %v3878_v20  ;;  %v9796_v28 = vld [vmem:[#allocation4 + $0x1f0] sm:$0xff]  ;;  %v9798_v45 = vld [vmem:[#allocation4 + $0x240] sm:$0xff]  ;;  %v3875_v58 = vsel %vm333_vm0, %v9684_v6, %v3874_v30  ;;  %v3098_v41 = vmax.f32 %v3028_v14, 0.0  ;;  %v9808_v12 = vsel %vm333_vm0, %v9720_v46, %v3225_v26  ;;  %v9810_v21 = vmax.f32 %v3020_v16, 0.0 }
 0x30b   : > { %4087 = vst [vmem:[#allocation4 + $0x270] sm:$0x7f] %v4057_v8  ;;  %3955 = vst [vmem:[#allocation4 + $0x530] sm:$0xfe] %v9765_v40  ;;  %v3817_v54 = vld [vmem:[#allocation3 + $0x78] sm:$0x7f]  ;;  %v4552_v20 = vpack.c.bf16 %v9698_v48, %v4272_v34  ;;  %v9815_v31 = vsel %vm333_vm0, %v9720_v46, %v3553_v32  ;;  %v4544_v22 = vpack.c.bf16 %v9798_v45, %v9796_v28 }
 0x30c   : > { %3297 = vst [vmem:[#allocation4 + $0x640] sm:$0xfe] %v9765_v40  ;;  %3629 = vst [vmem:[#allocation4 + $0x5b8] sm:$0xfe] %v9765_v40  ;;  %v4063_v52 = vld [vmem:[#allocation3 + $0x79] sm:$0x7f] }
 0x30d   : > { %3433 = vst [vmem:[#allocation4 + $0x510] sm:$0xff] %v3403_v1  ;;  %3434 = vst [vmem:[#allocation4 + $0x560] sm:$0x7f] %v3404_v42  ;;  %v3401_v2 = vld [vmem:[#allocation3 + $0x61] sm:$0xff]  ;;  %v3883_v43 = vrot.slane %v3817_v54, 7  ;;  %v9819_v55 = vmax.f32 %v3041_v57, 0.0  ;;  %5384 = vmatmul.mubr.bf16.gmra.mrb[128].mxu1 %v4552_v20  ;;  %5537 = vmatmul.mubr.bf16.gmra.mrb[188].mxu0 %v4544_v22 }
 0x30e   : > { %3769 = vst [vmem:[#allocation4 + $0x488] sm:$0xff] %v3403_v1  ;;  %4092 = vst [vmem:[#allocation4 + $0x400] sm:$0xff] %v3403_v1  ;;  %v4293_v47 = vld [vmem:[#allocation4 + $0x328] sm:$0xff]  ;;  %v4275_v56 = vld [vmem:[#allocation4 + $0x298] sm:$0xff] }
 0x30f   : > { %3127 = vst [vmem:[#allocation3 + $0x80] sm:$0xff] %v3095_v60  ;;  %3373 = vst [vmem:[#allocation4 + $0x5a8] sm:$0xff] %v3095_v60  ;;  %v3156_v5 = vld [vmem:[#allocation3 + $0x68] sm:$0x7f]  ;;  %v3884_v63 = vsel %vm333_vm0, %v9720_v46, %v3883_v43  ;;  %v4563_v4 = vpack.c.bf16 %v9785_v25, %v4293_v47  ;;  %v3032_v46 = vpop.f32.mrb[165].mxu0  ;;  %v9835_v14 = vrot.slane %v9819_v55, 7  ;;  %v4555_v53 = vpack.c.bf16 %v9789_v59, %v4275_v56 }
 0x310   : > { %3707 = vst [vmem:[#allocation4 + $0x520] sm:$0xff] %v3095_v60  ;;  %4032 = vst [vmem:[#allocation4 + $0x498] sm:$0xff] %v3095_v60  ;;  %v3402_v10 = vld [vmem:[#allocation3 + $0x69] sm:$0x7f]  ;;  %v3222_v6 = vrot.slane %v3156_v5, 7  ;;  %v3033_v35 = vadd.f32 %v3032_v46, %v9556_v18  ;;  %v7629_v17 = vpop.f32.mrb[166].mxu0 }
 0x311   : > { %3770 = vst [vmem:[#allocation4 + $0x4d8] sm:$0x7f] %v3738_v49  ;;  %4093 = vst [vmem:[#allocation4 + $0x450] sm:$0x7f] %v4063_v52  ;;  %v3480_v51 = vld [vmem:[#allocation3 + $0x68] sm:$0x7f]  ;;  %5391 = vmatprep.mubr.bf16.mxu1 %v4563_v4  ;;  %v3044_v42 = vadd.f32 %v7629_v17, %v9567_v7  ;;  %5544 = vmatprep.mubr.bf16.mxu0 %v4555_v53 }
 0x312   : > { %3431 = vst [vmem:[#allocation4 + $0x470] sm:$0xff] %v3401_v2  ;;  %3767 = vst [vmem:[#allocation4 + $0x3e8] sm:$0xff] %v3401_v2  ;;  %v3736_v11 = vld [vmem:[#allocation3 + $0x69] sm:$0x7f]  ;;  %v3550_v8 = vrot.slane %v3480_v51, 7  ;;  %v9830_v60 = vsel %vm333_vm0, %v9729_v3, %v3222_v6  ;;  %v3035_v16 = vpop.f32.mrb[167].mxu0 }
 0x313   : > { %4090 = vst [vmem:[#allocation4 + $0x360] sm:$0xff] %v3401_v2  ;;  %3953 = vst [vmem:[#allocation4 + $0x490] sm:$0xfe] %v9793_v37  ;;  %v3815_v23 = vld [vmem:[#allocation3 + $0x68] sm:$0x7f]  ;;  %v9851_v18 = vmax.f32 %v3033_v35, 0.0  ;;  %v3036_v36 = vadd.f32 %v3035_v16, %v9559_v33 }
 0x314   : > { %3295 = vst [vmem:[#allocation4 + $0x5a0] sm:$0xfe] %v9793_v37  ;;  %3627 = vst [vmem:[#allocation4 + $0x518] sm:$0xfe] %v9793_v37  ;;  %v4061_v30 = vld [vmem:[#allocation3 + $0x69] sm:$0x7f]  ;;  %v9843_v15 = vsel %vm333_vm0, %v9729_v3, %v3550_v8 }
 0x315   : > { %3946 = vst [vmem:[#allocation4 + $0x260] sm:$0xff] %v3875_v58  ;;  %3432 = vst [vmem:[#allocation4 + $0x4c0] sm:$0x7f] %v3402_v10  ;;  %v3880_v48 = vrot.slane %v3815_v23, 7  ;;  %v7632_v25 = vpop.f32.mrb[168].mxu0  ;;  %v9854_v59 = vmax.f32 %v3044_v42, 0.0 }
 0x316   : > { %3768 = vst [vmem:[#allocation4 + $0x438] sm:$0x7f] %v3736_v11  ;;  %3130 = vst [vmem:[#allocation3 + $0x98] sm:$0xff] %v3098_v41  ;;  %v3048_v7 = vpop.f32.mrb[169].mxu0  ;;  %v4313_v27 = vld [vmem:[#allocation4 + $0x3c8] sm:$0xff]  ;;  %v4323_v26 = vld [vmem:[#allocation4 + $0x418] sm:$0xff] }
 0x317   : > { %3376 = vst [vmem:[#allocation4 + $0x698] sm:$0xff] %v3098_v41  ;;  %3710 = vst [vmem:[#allocation4 + $0x610] sm:$0xff] %v3098_v41  ;;  %v3881_v1 = vsel %vm333_vm0, %v9729_v3, %v3880_v48  ;;  %v3057_v3 = vadd.f32 %v7632_v25, %v9580_v62  ;;  %v9859_v19 = vrot.slane %v9851_v18, 7  ;;  %v9863_v49 = vmax.f32 %v3036_v36, 0.0  ;;  %v7633_v57 = vpop.f32.mrb[170].mxu0  ;;  %v4292_v34 = vld [vmem:[#allocation4 + $0x320] sm:$0xff] }
 0x318   : > { %4035 = vst [vmem:[#allocation4 + $0x588] sm:$0xff] %v3098_v41  ;;  %3952 = vst [vmem:[#allocation4 + $0x440] sm:$0xff] %v3884_v63  ;;  %v3049_v33 = vadd.f32 %v3048_v7, %v9572_v61  ;;  %v4274_v28 = vld [vmem:[#allocation4 + $0x290] sm:$0xff]  ;;  %v4284_v62 = vld [vmem:[#allocation4 + $0x2e0] sm:$0xff]  ;;  %v3060_v2 = vadd.f32 %v7633_v57, %v9583_v24  ;;  %v4562_v47 = vpack.c.bf16 %v9774_v13, %v4292_v34 }
 0x319   : > { %4091 = vst [vmem:[#allocation4 + $0x3b0] sm:$0x7f] %v4061_v30  ;;  %3128 = vst [vmem:[#allocation3 + $0x88] sm:$0xff] %v9810_v21  ;;  %v9869_v52 = vmax.f32 %v3057_v3, 0.0  ;;  %v4295_v61 = vld [vmem:[#allocation4 + $0x338] sm:$0xff]  ;;  %v4573_v24 = vpack.c.bf16 %v4323_v26, %v4313_v27  ;;  %v4623_v13 = vpack.c.bf16 %v9863_v49, %v9851_v18  ;;  %v4633_v41 = vpack.c.bf16 %v9854_v59, %v9819_v55  ;;  %v4312_v25 = vld [vmem:[#allocation4 + $0x3c0] sm:$0xff] }
 0x31a   : > { %3708 = vst [vmem:[#allocation4 + $0x570] sm:$0xff] %v9810_v21  ;;  %4033 = vst [vmem:[#allocation4 + $0x4e8] sm:$0xff] %v9810_v21  ;;  %5392 = vmatmul.mubr.bf16.gmra.mrb[132].mxu1 %v4562_v47  ;;  %v4554_v63 = vpack.c.bf16 %v4284_v62, %v4274_v28  ;;  %v9889_v4 = vmax.f32 %v3049_v33, 0.0  ;;  %v4565_v48 = vpack.c.bf16 %v9759_v29, %v4295_v61  ;;  %v9899_v17 = vmax.f32 %v3060_v2, 0.0  ;;  %v4333_v7 = vld [vmem:[#allocation4 + $0x468] sm:$0xff]  ;;  %v4343_v27 = vld [vmem:[#allocation4 + $0x4b8] sm:$0xff] }
 0x31b   : > { %3133 = vst [vmem:[#allocation3 + $0xb0] sm:$0xff] %v9819_v55  ;;  %3713 = vst [vmem:[#allocation4 + $0x700] sm:$0xff] %v9819_v55  ;;  %v9885_v20 = vrot.slane %v9869_v52, 7  ;;  %5399 = vmatprep.mubr.bf16.mxu1 %v4573_v24  ;;  %v9916_v26 = vld [vmem:[#allocation4 + $0x330] sm:$0xff]  ;;  %v4304_v33 = vld [vmem:[#allocation4 + $0x380] sm:$0xff] }
 0x31c   : > { %4038 = vst [vmem:[#allocation4 + $0x678] sm:$0xff] %v9819_v55  ;;  %3950 = vst [vmem:[#allocation4 + $0x3a0] sm:$0xff] %v3881_v1  ;;  %5545 = vmatmul.mubr.bf16.gmra.mrb[192].mxu0 %v4554_v63  ;;  %v9909_v36 = vrot.slane %v9889_v4, 7  ;;  %v4653_v34 = vpack.c.bf16 %v9899_v17, %v9869_v52  ;;  %v4315_v24 = vld [vmem:[#allocation4 + $0x3d8] sm:$0xff]  ;;  %v4583_v63 = vpack.c.bf16 %v4343_v27, %v4333_v7 }
 0x31d   : > { %3959 = vst [vmem:[#allocation4 + $0x670] sm:$0xfe] %v9835_v14  ;;  %3301 = vst [vmem:[#allocation4 + $0x780] sm:$0xfe] %v9835_v14  ;;  %v3162_v45 = vld [vmem:[#allocation3 + $0x98] sm:$0x7f]  ;;  %5552 = vmatprep.mubr.bf16.mxu0 %v4565_v48 }
 0x31e   : > { %3633 = vst [vmem:[#allocation4 + $0x6f8] sm:$0xfe] %v9835_v14  ;;  %3131 = vst [vmem:[#allocation3 + $0xa0] sm:$0xff] %v9851_v18  ;;  %v3407_v32 = vld [vmem:[#allocation3 + $0x91] sm:$0xff]  ;;  %v3408_v54 = vld [vmem:[#allocation3 + $0x99] sm:$0x7f] }
 0x31f   : > { %3711 = vst [vmem:[#allocation4 + $0x660] sm:$0xff] %v9851_v18  ;;  %4036 = vst [vmem:[#allocation4 + $0x5d8] sm:$0xff] %v9851_v18  ;;  %v3231_v58 = vrot.slane %v3162_v45, 7  ;;  %v3486_v43 = vld [vmem:[#allocation3 + $0x98] sm:$0x7f] }
 0x320   : > { %3134 = vst [vmem:[#allocation3 + $0xb8] sm:$0xff] %v9854_v59  ;;  %3714 = vst [vmem:[#allocation4 + $0x750] sm:$0xff] %v9854_v59  ;;  %v3742_v5 = vld [vmem:[#allocation3 + $0x99] sm:$0x7f]  ;;  %v3405_v10 = vld [vmem:[#allocation3 + $0x81] sm:$0xff]  ;;  %v3559_v6 = vrot.slane %v3486_v43, 7 }
 0x321   : > { %4039 = vst [vmem:[#allocation4 + $0x6c8] sm:$0xff] %v9854_v59  ;;  %3437 = vst [vmem:[#allocation4 + $0x650] sm:$0xff] %v3407_v32  ;;  %v3821_v51 = vld [vmem:[#allocation3 + $0x98] sm:$0x7f]  ;;  %v3160_v23 = vld [vmem:[#allocation3 + $0x88] sm:$0x7f]  ;;  %v9894_v46 = vsel %vm333_vm0, %v9765_v40, %v3231_v58 }
 0x322   : > { %3438 = vst [vmem:[#allocation4 + $0x6a0] sm:$0x7f] %v3408_v54  ;;  %3773 = vst [vmem:[#allocation4 + $0x5c8] sm:$0xff] %v3407_v32  ;;  %v4067_v11 = vld [vmem:[#allocation3 + $0x99] sm:$0x7f]  ;;  %v3889_v8 = vrot.slane %v3821_v51, 7  ;;  %v9903_v29 = vsel %vm333_vm0, %v9765_v40, %v3559_v6 }
 0x323   : > { %4096 = vst [vmem:[#allocation4 + $0x540] sm:$0xff] %v3407_v32  ;;  %3957 = vst [vmem:[#allocation4 + $0x5d0] sm:$0xfe] %v9859_v19  ;;  %v3406_v30 = vld [vmem:[#allocation3 + $0x89] sm:$0x7f]  ;;  %v3228_v22 = vrot.slane %v3160_v23, 7 }
 0x324   : > { %3299 = vst [vmem:[#allocation4 + $0x6e0] sm:$0xfe] %v9859_v19  ;;  %3631 = vst [vmem:[#allocation4 + $0x658] sm:$0xfe] %v9859_v19  ;;  %v3484_v56 = vld [vmem:[#allocation3 + $0x88] sm:$0x7f]  ;;  %v3890_v53 = vsel %vm333_vm0, %v9765_v40, %v3889_v8 }
 0x325   : > { %3132 = vst [vmem:[#allocation3 + $0xa8] sm:$0xff] %v9863_v49  ;;  %3712 = vst [vmem:[#allocation4 + $0x6b0] sm:$0xff] %v9863_v49  ;;  %v3740_v35 = vld [vmem:[#allocation3 + $0x89] sm:$0x7f]  ;;  %v3556_v1 = vrot.slane %v3484_v56, 7  ;;  %v3051_v40 = vpop.f32.mrb[171].mxu0  ;;  %v9920_v57 = vsel %vm333_vm0, %v9793_v37, %v3228_v22 }
 0x326   : > { %4037 = vst [vmem:[#allocation4 + $0x628] sm:$0xff] %v9863_v49  ;;  %3774 = vst [vmem:[#allocation4 + $0x618] sm:$0x7f] %v3742_v5  ;;  %v3819_v42 = vld [vmem:[#allocation3 + $0x88] sm:$0x7f]  ;;  %v3052_v32 = vadd.f32 %v3051_v40, %v9575_v38  ;;  %v7636_v54 = vpop.f32.mrb[172].mxu0 }
 0x327   : > { %3435 = vst [vmem:[#allocation4 + $0x5b0] sm:$0xff] %v3405_v10  ;;  %3771 = vst [vmem:[#allocation4 + $0x528] sm:$0xff] %v3405_v10  ;;  %v4065_v16 = vld [vmem:[#allocation3 + $0x89] sm:$0x7f]  ;;  %v3886_v3 = vrot.slane %v3819_v42, 7  ;;  %v9924_v62 = vld [vmem:[#allocation3 + $0xb1] sm:$0xff]  ;;  %v9932_v2 = vsel %vm333_vm0, %v9793_v37, %v3556_v1  ;;  %v3073_v38 = vadd.f32 %v7636_v54, %v9596_v0  ;;  %v4575_v1 = vpack.c.bf16 %v9843_v15, %v4315_v24 }
 0x328   : > { %4094 = vst [vmem:[#allocation4 + $0x4a0] sm:$0xff] %v3405_v10  ;;  %3137 = vst [vmem:[#allocation3 + $0xd0] sm:$0xff] %v9869_v52  ;;  %v3166_v28 = vld [vmem:[#allocation3 + $0xb8] sm:$0x7f]  ;;  %v4572_v10 = vpack.c.bf16 %v9750_v50, %v4312_v25  ;;  %v4564_v50 = vpack.c.bf16 %v4304_v33, %v9916_v26  ;;  %v4332_v26 = vld [vmem:[#allocation4 + $0x460] sm:$0xff] }
 0x329   : > { %3717 = vst [vmem:[#allocation4 + $0x840] sm:$0xff] %v9869_v52  ;;  %4042 = vst [vmem:[#allocation4 + $0x7b8] sm:$0xff] %v9869_v52  ;;  %v3412_v45 = vld [vmem:[#allocation3 + $0xb9] sm:$0x7f]  ;;  %v3887_v47 = vsel %vm333_vm0, %v9793_v37, %v3886_v3  ;;  %v3237_v61 = vrot.slane %v3166_v28, 7  ;;  %v3109_v0 = vmax.f32 %v3073_v38, 0.0 }
 0x32a   : > { %4097 = vst [vmem:[#allocation4 + $0x590] sm:$0x7f] %v4067_v11  ;;  %3436 = vst [vmem:[#allocation4 + $0x600] sm:$0x7f] %v3406_v30  ;;  %v3490_v58 = vld [vmem:[#allocation3 + $0xb8] sm:$0x7f]  ;;  %5400 = vmatmul.mubr.bf16.gmra.mrb[136].mxu1 %v4572_v10  ;;  %5553 = vmatmul.mubr.bf16.gmra.mrb[196].mxu0 %v4564_v50 }
 0x32b   : > { %3963 = vst [vmem:[#allocation4 + $0x7b0] sm:$0xfe] %v9885_v20  ;;  %3305 = vst [vmem:[#allocation4 + $0x8c0] sm:$0xfe] %v9885_v20  ;;  %v3746_v43 = vld [vmem:[#allocation3 + $0xb9] sm:$0x7f]  ;;  %v9949_v48 = vsel %vm333_vm0, %v9835_v14, %v3237_v61  ;;  %5407 = vmatprep.mubr.bf16.mxu1 %v4583_v63  ;;  %5560 = vmatprep.mubr.bf16.mxu0 %v4575_v1 }
 0x32c   : > { %3637 = vst [vmem:[#allocation4 + $0x838] sm:$0xfe] %v9885_v20  ;;  %3772 = vst [vmem:[#allocation4 + $0x578] sm:$0x7f] %v3740_v35  ;;  %v9938_v5 = vld [vmem:[#allocation3 + $0xa1] sm:$0xff]  ;;  %v3565_v6 = vrot.slane %v3490_v58, 7 }
 0x32d   : > { %3135 = vst [vmem:[#allocation3 + $0xc0] sm:$0xff] %v9889_v4  ;;  %3715 = vst [vmem:[#allocation4 + $0x7a0] sm:$0xff] %v9889_v4  ;;  %v3825_v51 = vld [vmem:[#allocation3 + $0xb8] sm:$0x7f]  ;;  %v9944_v11 = vmax.f32 %v3052_v32, 0.0  ;;  %v9963_v27 = vrot.slane %v3109_v0, 7 }
 0x32e   : > { %4040 = vst [vmem:[#allocation4 + $0x718] sm:$0xff] %v9889_v4  ;;  %3956 = vst [vmem:[#allocation4 + $0x580] sm:$0xff] %v3890_v53  ;;  %v4071_v37 = vld [vmem:[#allocation3 + $0xb9] sm:$0x7f]  ;;  %v3895_v8 = vrot.slane %v3825_v51, 7  ;;  %v3064_v53 = vpop.f32.mrb[173].mxu0  ;;  %v9957_v42 = vsel %vm333_vm0, %v9835_v14, %v3565_v6 }
 0x32f   : > { %4095 = vst [vmem:[#allocation4 + $0x4f0] sm:$0x7f] %v4065_v16  ;;  %3138 = vst [vmem:[#allocation3 + $0xd8] sm:$0xff] %v9899_v17  ;;  %v3164_v23 = vld [vmem:[#allocation3 + $0xa8] sm:$0x7f]  ;;  %v4643_v16 = vpack.c.bf16 %v9944_v11, %v9889_v4  ;;  %v3065_v15 = vadd.f32 %v3064_v53, %v9588_v44  ;;  %v4363_v33 = vld [vmem:[#allocation4 + $0x558] sm:$0xff] }
 0x330   : > { %3718 = vst [vmem:[#allocation4 + $0x890] sm:$0xff] %v9899_v17  ;;  %4043 = vst [vmem:[#allocation4 + $0x808] sm:$0xff] %v9899_v17  ;;  %v3410_v30 = vld [vmem:[#allocation3 + $0xa9] sm:$0x7f]  ;;  %v3234_v22 = vrot.slane %v3164_v23, 7  ;;  %v3896_v25 = vsel %vm333_vm0, %v9835_v14, %v3895_v8  ;;  %v4314_v54 = vld [vmem:[#allocation4 + $0x3d0] sm:$0xff]  ;;  %v4582_v8 = vpack.c.bf16 %v9830_v60, %v4332_v26 }
 0x331   : > { %3961 = vst [vmem:[#allocation4 + $0x710] sm:$0xfe] %v9909_v36  ;;  %3303 = vst [vmem:[#allocation4 + $0x820] sm:$0xfe] %v9909_v36  ;;  %v3488_v56 = vld [vmem:[#allocation3 + $0xa8] sm:$0x7f] }
 0x332   : > { %3635 = vst [vmem:[#allocation4 + $0x798] sm:$0xfe] %v9909_v36  ;;  %3442 = vst [vmem:[#allocation4 + $0x7e0] sm:$0x7f] %v3412_v45  ;;  %v3744_v35 = vld [vmem:[#allocation3 + $0xa9] sm:$0x7f]  ;;  %v9970_v61 = vsel %vm333_vm0, %v9859_v19, %v3234_v22  ;;  %5408 = vmatmul.mubr.bf16.gmra.mrb[140].mxu1 %v4582_v8 }
 0x333   : > { %3777 = vst [vmem:[#allocation4 + $0x708] sm:$0xff] %v9924_v62  ;;  %4100 = vst [vmem:[#allocation4 + $0x680] sm:$0xff] %v9924_v62  ;;  %v3562_v3 = vrot.slane %v3488_v56, 7  ;;  %v3823_v40 = vld [vmem:[#allocation3 + $0xa8] sm:$0x7f]  ;;  %v9976_v38 = vmax.f32 %v3065_v15, 0.0 }
 0x334   : > { %3954 = vst [vmem:[#allocation4 + $0x4e0] sm:$0xff] %v3887_v47  ;;  %3778 = vst [vmem:[#allocation4 + $0x758] sm:$0x7f] %v3746_v43  ;;  %v4069_v7 = vld [vmem:[#allocation3 + $0xa9] sm:$0x7f]  ;;  %v3892_v28 = vrot.slane %v3823_v40, 7 }
 0x335   : > { %3775 = vst [vmem:[#allocation4 + $0x668] sm:$0xff] %v9938_v5  ;;  %4098 = vst [vmem:[#allocation4 + $0x5e0] sm:$0xff] %v9938_v5  ;;  %v4324_v47 = vld [vmem:[#allocation4 + $0x420] sm:$0xff]  ;;  %v9980_v10 = vsel %vm333_vm0, %v9859_v19, %v3562_v3  ;;  %v7637_v63 = vpop.f32.mrb[174].mxu0  ;;  %v4353_v50 = vld [vmem:[#allocation4 + $0x508] sm:$0xff] }
 0x336   : > { %4101 = vst [vmem:[#allocation4 + $0x6d0] sm:$0x7f] %v4071_v37  ;;  %3440 = vst [vmem:[#allocation4 + $0x740] sm:$0x7f] %v3410_v30  ;;  %v3170_v45 = vld [vmem:[#allocation3 + $0xd8] sm:$0x7f]  ;;  %v3893_v24 = vsel %vm333_vm0, %v9859_v19, %v3892_v28  ;;  %v3076_v19 = vadd.f32 %v7637_v63, %v9599_v9  ;;  %v4593_v56 = vpack.c.bf16 %v4363_v33, %v4353_v50 }
 0x337   : > { %3136 = vst [vmem:[#allocation3 + $0xc8] sm:$0xff] %v9944_v11  ;;  %3716 = vst [vmem:[#allocation4 + $0x7f0] sm:$0xff] %v9944_v11  ;;  %v9966_v32 = vld [vmem:[#allocation3 + $0xd1] sm:$0xff]  ;;  %v3416_v14 = vld [vmem:[#allocation3 + $0xd9] sm:$0x7f]  ;;  %v3243_v58 = vrot.slane %v3170_v45, 7  ;;  %v4574_v40 = vpack.c.bf16 %v4324_v47, %v4314_v54 }
 0x338   : > { %4041 = vst [vmem:[#allocation4 + $0x768] sm:$0xff] %v9944_v11  ;;  %3776 = vst [vmem:[#allocation4 + $0x6b8] sm:$0x7f] %v3744_v35  ;;  %v3494_v44 = vld [vmem:[#allocation3 + $0xd8] sm:$0x7f]  ;;  %v9987_v30 = vrot.slane %v9976_v38, 7  ;;  %5415 = vmatprep.mubr.bf16.mxu1 %v4593_v56 }
 0x339   : > { %3141 = vst [vmem:[#allocation3 + $0xf0] sm:$0xff] %v3109_v0  ;;  %3721 = vst [vmem:[#allocation4 + $0x980] sm:$0xff] %v3109_v0  ;;  %v3750_v43 = vld [vmem:[#allocation3 + $0xd9] sm:$0x7f]  ;;  %v3571_v6 = vrot.slane %v3494_v44, 7  ;;  %v9994_v22 = vsel %vm333_vm0, %v9885_v20, %v3243_v58  ;;  %5561 = vmatmul.mubr.bf16.gmra.mrb[200].mxu0 %v4574_v40  ;;  %v4373_v58 = vld [vmem:[#allocation4 + $0x5a8] sm:$0xff] }
 0x33a   : > { %4046 = vst [vmem:[#allocation4 + $0x8f8] sm:$0xff] %v3109_v0  ;;  %3960 = vst [vmem:[#allocation4 + $0x6c0] sm:$0xff] %v3896_v25  ;;  %v3829_v51 = vld [vmem:[#allocation3 + $0xd8] sm:$0x7f]  ;;  %v3067_v0 = vpop.f32.mrb[175].mxu0  ;;  %v4603_v63 = vpack.c.bf16 %v9810_v21, %v4373_v58  ;;  %v7863_v40 = vld [vmem:[#allocation10 + $0x1b0] sm:$0xff]  }
 0x33b   : > { %4099 = vst [vmem:[#allocation4 + $0x630] sm:$0x7f] %v4069_v7  ;;  %3446 = vst [vmem:[#allocation4 + $0x920] sm:$0x7f] %v3416_v14  ;;  %v4075_v37 = vld [vmem:[#allocation3 + $0xd9] sm:$0x7f]  ;;  %v3068_v60 = vadd.f32 %v3067_v0, %v9591_v39  ;;  %v9999_v53 = vsel %vm333_vm0, %v9885_v20, %v3571_v6  ;;  %7379 = vmatpush3.bf16.msra.mxu0 %v7863_v40 }
 0x33c   : > { %3781 = vst [vmem:[#allocation4 + $0x848] sm:$0xff] %v9966_v32  ;;  %4104 = vst [vmem:[#allocation4 + $0x7c0] sm:$0xff] %v9966_v32  ;;  %v3901_v23 = vrot.slane %v3829_v51, 7  ;;  %v4335_v35 = vld [vmem:[#allocation4 + $0x478] sm:$0xff]  ;;  %v3110_v39 = vmax.f32 %v3076_v19, 0.0  ;;  %v4334_v6 = vld [vmem:[#allocation4 + $0x470] sm:$0xff] }
 0x33d   : > { %3967 = vst [vmem:[#allocation4 + $0x8f0] sm:$0xfe] %v9963_v27  ;;  %3641 = vst [vmem:[#allocation4 + $0x978] sm:$0xfe] %v9963_v27  ;;  %v4585_v33 = vpack.c.bf16 %v9815_v31, %v4335_v35  ;;  %v4344_v51 = vld [vmem:[#allocation4 + $0x4c0] sm:$0xff]  ;;  %v4197_v52 = vld [vmem:[#allocation4 + $0x28] sm:$0xff] }
 0x33e   : > { %3782 = vst [vmem:[#allocation4 + $0x898] sm:$0x7f] %v3750_v43  ;;  %3958 = vst [vmem:[#allocation4 + $0x620] sm:$0xff] %v3893_v24  ;;  %v3902_v1 = vsel %vm333_vm0, %v9885_v20, %v3901_v23  ;;  %v3168_v25 = vld [vmem:[#allocation3 + $0xc8] sm:$0x7f]  ;;  %v10010_v20 = vmax.f32 %v3068_v60, 0.0  ;;  %v4584_v8 = vpack.c.bf16 %v4344_v51, %v4334_v6 }
 0x33f   : > { %4105 = vst [vmem:[#allocation4 + $0x810] sm:$0x7f] %v4075_v37  ;;  %3139 = vst [vmem:[#allocation3 + $0xe0] sm:$0xff] %v9976_v38  ;;  %v10003_v3 = vld [vmem:[#allocation3 + $0xc1] sm:$0xff]  ;;  %v3414_v9 = vld [vmem:[#allocation3 + $0xc9] sm:$0x7f]  ;;  %5568 = vmatprep.mubr.bf16.mxu0 %v4585_v33 }
 0x340   : > { %3719 = vst [vmem:[#allocation4 + $0x8e0] sm:$0xff] %v9976_v38  ;;  %4044 = vst [vmem:[#allocation4 + $0x858] sm:$0xff] %v9976_v38  ;;  %v3240_v7 = vrot.slane %v3168_v25, 7  ;;  %v3492_v15 = vld [vmem:[#allocation3 + $0xc8] sm:$0x7f]  ;;  %v4663_v47 = vpack.c.bf16 %v10010_v20, %v9976_v38  ;;  %v4352_v24 = vld [vmem:[#allocation4 + $0x500] sm:$0xff] }
 0x341   : > { %3965 = vst [vmem:[#allocation4 + $0x850] sm:$0xfe] %v9987_v30  ;;  %3307 = vst [vmem:[#allocation4 + $0x960] sm:$0xfe] %v9987_v30  ;;  %v3748_v26 = vld [vmem:[#allocation3 + $0xc9] sm:$0x7f]  ;;  %v4592_v37 = vpack.c.bf16 %v9808_v12, %v4352_v24  ;;  %5569 = vmatmul.mubr.bf16.gmra.mrb[204].mxu0 %v4584_v8 }
 0x342   : > { %3639 = vst [vmem:[#allocation4 + $0x8d8] sm:$0xfe] %v9987_v30  ;;  %3964 = vst [vmem:[#allocation4 + $0x800] sm:$0xff] %v3902_v1  ;;  %v3568_v28 = vrot.slane %v3492_v15, 7  ;;  %v3827_v45 = vld [vmem:[#allocation3 + $0xc8] sm:$0x7f]  ;;  %v10018_v31 = vsel %vm333_vm0, %v9909_v36, %v3240_v7 }
 0x343   : > { %3444 = vst [vmem:[#allocation4 + $0x880] sm:$0x7f] %v3414_v9  ;;  %3779 = vst [vmem:[#allocation4 + $0x7a8] sm:$0xff] %v10003_v3  ;;  %v4073_v14 = vld [vmem:[#allocation3 + $0xc9] sm:$0x7f]  ;;  %v3898_v54 = vrot.slane %v3827_v45, 7  ;;  %5416 = vmatmul.mubr.bf16.gmra.mrb[144].mxu1 %v4592_v37 }
 0x344   : > { %4102 = vst [vmem:[#allocation4 + $0x720] sm:$0xff] %v10003_v3  ;;  %3780 = vst [vmem:[#allocation4 + $0x7f8] sm:$0x7f] %v3748_v26  ;;  %v10024_v44 = vsel %vm333_vm0, %v9909_v36, %v3568_v28  ;;  %v4355_v23 = vld [vmem:[#allocation4 + $0x518] sm:$0xff]  ;;  %5423 = vmatprep.mubr.bf16.mxu1 %v4603_v63  ;;  %v4364_v33 = vld [vmem:[#allocation4 + $0x560] sm:$0xff] }
 0x345   : > { %3142 = vst [vmem:[#allocation3 + $0xf8] sm:$0xff] %v3110_v39  ;;  %3722 = vst [vmem:[#allocation4 + $0x9d0] sm:$0xff] %v3110_v39  ;;  %v3899_v43 = vsel %vm333_vm0, %v9909_v36, %v3898_v54  ;;  %v4595_v60 = vpack.c.bf16 %v9932_v2, %v4355_v23  ;;  %v4403_v12 = vld [vmem:[#allocation4 + $0x698] sm:$0xff]  ;;  %v4372_v2 = vld [vmem:[#allocation4 + $0x5a0] sm:$0xff] }
 0x346   : > { %4047 = vst [vmem:[#allocation4 + $0x948] sm:$0xff] %v3110_v39  ;;  %4103 = vst [vmem:[#allocation4 + $0x770] sm:$0x7f] %v4073_v14  ;;  %v4354_v39 = vld [vmem:[#allocation4 + $0x510] sm:$0xff]  ;;  %v4602_v6 = vpack.c.bf16 %v9920_v57, %v4372_v2  ;;  %v4393_v51 = vld [vmem:[#allocation4 + $0x648] sm:$0xff] }
 0x347   : > { %3140 = vst [vmem:[#allocation3 + $0xe8] sm:$0xff] %v10010_v20  ;;  %3720 = vst [vmem:[#allocation4 + $0x930] sm:$0xff] %v10010_v20  ;;  %5576 = vmatprep.mubr.bf16.mxu0 %v4595_v60  ;;  %v7865_v63 = vld [vmem:[#allocation10 + $0x1b8] sm:$0xff]   ;;  %v4613_v8 = vpack.c.bf16 %v4403_v12, %v4393_v51  ;;  %v4374_v60 = vld [vmem:[#allocation4 + $0x5b0] sm:$0xff] }
 0x348   : > { %4045 = vst [vmem:[#allocation4 + $0x8a8] sm:$0xff] %v10010_v20  ;;  %3962 = vst [vmem:[#allocation4 + $0x760] sm:$0xff] %v3899_v43  ;;  %v7864_v43 = vld [vmem:[#allocation10 + $0x1f8] sm:$0xff]   ;;  %v4452_v55 = vld [vmem:[#allocation4 + $0x820] sm:$0xff] }
 0x349   : > { %7380 = vmatprep.subr.bf16.mxu0 %v7864_v43  ;;  %v4395_v12 = vld [vmem:[#allocation4 + $0x658] sm:$0xff]  ;;  %v4444_v59 = vld [vmem:[#allocation4 + $0x7e0] sm:$0xff]  ;;  %v4206_v38 = vld [vmem:[#allocation4 + $0x70] sm:$0xff] }
 0x34a   : > { %7381 = vmatpush3.bf16.msra.mxu0 %v7865_v63  ;;  %v4472_v4 = vld [vmem:[#allocation4 + $0x8c0] sm:$0xff]  ;;  %v4207_v17 = vld [vmem:[#allocation4 + $0x78] sm:$0xff]  ;;  %v4217_v20 = vld [vmem:[#allocation4 + $0xc8] sm:$0xff] }
 0x34b   : > { %5424 = vmatmul.mubr.bf16.gmra.mrb[148].mxu1 %v4602_v6  ;;  %v4464_v11 = vld [vmem:[#allocation4 + $0x880] sm:$0xff] }
 0x34c   : > { %v3498_v19 = vld [vmem:[#allocation3 + $0xf8] sm:$0x7f]  ;;  %5431 = vmatprep.mubr.bf16.mxu1 %v4613_v8  ;;  %v7862_v51 = vld [vmem:[#allocation10 + $0x200] sm:$0xff]   ;;  %v4209_v8 = vld [vmem:[#allocation4 + $0x88] sm:$0xff] }
 0x34d   : > { %v3753_v0 = vld [vmem:[#allocation3 + $0xf1] sm:$0xff]  ;;  %v3754_v50 = vld [vmem:[#allocation3 + $0xf9] sm:$0x7f]  ;;  %v3577_v56 = vrot.slane %v3498_v19, 7  ;;  %v4594_v19 = vpack.c.bf16 %v4364_v33, %v4354_v39 }
 0x34e   : > { %3785 = vst [vmem:[#allocation4 + $0x988] sm:$0xff] %v3753_v0  ;;  %3786 = vst [vmem:[#allocation4 + $0x9d8] sm:$0x7f] %v3754_v50  ;;  %v3833_v36 = vld [vmem:[#allocation3 + $0xf8] sm:$0x7f]  ;;  %v10031_v1 = vld [vmem:[#allocation3 + $0xe1] sm:$0xff] }
 0x34f   : > { %v4079_v35 = vld [vmem:[#allocation3 + $0xf9] sm:$0x7f]  ;;  %4108 = vst [vmem:[#allocation4 + $0x900] sm:$0xff] %v3753_v0  ;;  %v3907_v21 = vrot.slane %v3833_v36, 7  ;;  %v3172_v25 = vld [vmem:[#allocation3 + $0xe8] sm:$0x7f]  ;;  %v10037_v28 = vsel %vm333_vm0, %v9963_v27, %v3577_v56  ;;  %5577 = vmatmul.mubr.bf16.gmra.mrb[208].mxu0 %v4594_v19 }
 0x350   : > { %4109 = vst [vmem:[#allocation4 + $0x950] sm:$0x7f] %v4079_v35  ;;  %v3418_v9 = vld [vmem:[#allocation3 + $0xe9] sm:$0x7f]  ;;  %3783 = vst [vmem:[#allocation4 + $0x8e8] sm:$0xff] %v10031_v1  ;;  %v3246_v7 = vrot.slane %v3172_v25, 7 }
 0x351   : > { %4106 = vst [vmem:[#allocation4 + $0x860] sm:$0xff] %v10031_v1  ;;  %3448 = vst [vmem:[#allocation4 + $0x9c0] sm:$0x7f] %v3418_v9  ;;  %v3496_v15 = vld [vmem:[#allocation3 + $0xe8] sm:$0x7f]  ;;  %v3908_v45 = vsel %vm333_vm0, %v9963_v27, %v3907_v21  ;;  %v4375_v0 = vld [vmem:[#allocation4 + $0x5b8] sm:$0xff] }
 0x352   : > { %v3752_v26 = vld [vmem:[#allocation3 + $0xe9] sm:$0x7f]  ;;  %v3574_v14 = vrot.slane %v3496_v15, 7  ;;  %3968 = vst [vmem:[#allocation4 + $0x940] sm:$0xff] %v3908_v45  ;;  %v10044_v37 = vsel %vm333_vm0, %v9987_v30, %v3246_v7  ;;  %v4605_v57 = vpack.c.bf16 %v9903_v29, %v4375_v0  ;;  %v4392_v50 = vld [vmem:[#allocation4 + $0x640] sm:$0xff]  ;;  %v7046_v29 = vpop.f32.mrb[112].mxu1 }
 0x353   : > { %3784 = vst [vmem:[#allocation4 + $0x938] sm:$0x7f] %v3752_v26  ;;  %v3831_v54 = vld [vmem:[#allocation3 + $0xe8] sm:$0x7f]  ;;  %v4384_v56 = vld [vmem:[#allocation4 + $0x600] sm:$0xff]  ;;  %v4612_v36 = vpack.c.bf16 %v9894_v46, %v4392_v50  ;;  %v4394_v25 = vld [vmem:[#allocation4 + $0x650] sm:$0xff] }
 0x354   : > { %v4077_v58 = vld [vmem:[#allocation3 + $0xe9] sm:$0x7f]  ;;  %v3904_v24 = vrot.slane %v3831_v54, 7  ;;  %v10048_v27 = vsel %vm333_vm0, %v9987_v30, %v3574_v14  ;;  %5584 = vmatprep.mubr.bf16.mxu0 %v4605_v57  ;;  %v4604_v35 = vpack.c.bf16 %v4384_v56, %v4374_v60  ;;  %v4412_v21 = vld [vmem:[#allocation4 + $0x6e0] sm:$0xff]  ;;  %v7047_v2 = vpop.f32.mrb[113].mxu1  ;;  %v4415_v26 = vld [vmem:[#allocation4 + $0x6f8] sm:$0xff] }
 0x355   : > { %4107 = vst [vmem:[#allocation4 + $0x8b0] sm:$0x7f] %v4077_v58  ;;  %5432 = vmatmul.mubr.bf16.gmra.mrb[152].mxu1 %v4612_v36  ;;  %v4404_v9 = vld [vmem:[#allocation4 + $0x6a0] sm:$0xff]  ;;  %v4622_v39 = vpack.c.bf16 %v9970_v61, %v4412_v21  ;;  %v10059_v40 = vadd.f32 %v7047_v2, %v7046_v29  ;;  %v7049_v46 = vpop.f32.mrb[114].mxu1  ;;  %v4625_v49 = vpack.c.bf16 %v9957_v42, %v4415_v26  ;;  %v4435_v45 = vld [vmem:[#allocation4 + $0x798] sm:$0xff]  ;;  %v7867_v19 = vld [vmem:[#allocation10 + $0x208] sm:$0xff]  }
 0x356   : > { %v3905_v23 = vsel %vm333_vm0, %v9987_v30, %v3904_v24  ;;  %5439 = vmatprep.mubr.bf16.mxu1 %v4623_v13  ;;  %v4615_v30 = vpack.c.bf16 %v9980_v10, %v4395_v12  ;;  %v7050_v7 = vpop.f32.mrb[115].mxu1  ;;  %v4614_v15 = vpack.c.bf16 %v4404_v9, %v4394_v25  ;;  %v4432_v13 = vld [vmem:[#allocation4 + $0x780] sm:$0xff]  ;;  %v4635_v14 = vpack.c.bf16 %v10024_v44, %v4435_v45  ;;  %v7868_v0 = vld [vmem:[#allocation10 + $0x250] sm:$0xff]   ;;  %v10093_v60 = vld [vmem:[%s8280_s6 + $0x8] sm:$0xff] }
 0x357   : > { %3966 = vst [vmem:[#allocation4 + $0x8a0] sm:$0xff] %v3905_v23  ;;  %5585 = vmatmul.mubr.bf16.gmra.mrb[212].mxu0 %v4604_v35  ;;  %v10061_v18 = vadd.f32 %v7050_v7, %v7049_v46  ;;  %v4424_v10 = vld [vmem:[#allocation4 + $0x740] sm:$0xff]  ;;  %v4632_v61 = vpack.c.bf16 %v9949_v48, %v4432_v13  ;;  %v4634_v42 = vpack.c.bf16 %v4444_v59, %v9924_v62  ;;  %v4455_v48 = vld [vmem:[#allocation4 + $0x838] sm:$0xff]  ;;  %v4226_v57 = vld [vmem:[#allocation4 + $0x110] sm:$0xff] }
 0x358   : > { %5592 = vmatprep.mubr.bf16.mxu0 %v4615_v30  ;;  %v4624_v33 = vpack.c.bf16 %v4424_v10, %v9938_v5  ;;  %v4645_v5 = vpack.c.bf16 %v9999_v53, %v4455_v48  ;;  %v4644_v44 = vpack.c.bf16 %v4464_v11, %v10003_v3  ;;  %v4484_v53 = vld [vmem:[#allocation4 + $0x920] sm:$0xff]  ;;  %v4517_v58 = vpack.c.bf16 %v4207_v17, %v4197_v52  ;;  %v4495_v3 = vld [vmem:[#allocation4 + $0x978] sm:$0xff]  ;;  %v4237_v56 = vld [vmem:[#allocation4 + $0x168] sm:$0xff] }
 0x359   : > { %v4665_v43 = vpack.c.bf16 %v10037_v28, %v4495_v3  ;;  %v4196_v24 = vld [vmem:[#allocation4 + $0x20] sm:$0xff]  ;;  %v4199_v23 = vld [vmem:[#allocation4 + $0x38] sm:$0xff]  ;;  %v7869_v30 = vld [vmem:[#allocation10 + $0x210] sm:$0xff]  }
 0x35a   : > { %v4504_v6 = vld [vmem:[#allocation4 + $0x9c0] sm:$0xff]  ;;  %v4516_v63 = vpack.c.bf16 %v4206_v38, %v4196_v24  ;;  %v4519_v28 = vpack.c.bf16 %v4209_v8, %v4199_v23  ;;  %v4247_v36 = vld [vmem:[#allocation4 + $0x1b8] sm:$0xff]  ;;  %v4229_v21 = vld [vmem:[#allocation4 + $0x128] sm:$0xff] }
 0x35b   : > { %v10090_v50 = vld [vmem:[%s8280_s6] sm:$0xff]  ;;  %v7870_v25 = vld [vmem:[#allocation10 + $0x258] sm:$0xff]   ;;  %v4537_v9 = vpack.c.bf16 %v4247_v36, %v4237_v56  ;;  %v4198_v2 = vld [vmem:[#allocation4 + $0x30] sm:$0xff] }
 0x35c   : > { %v4521_v35 = vpack.c.bf16 %v10093_v60, %v10090_v50  ;;  %v4208_v12 = vld [vmem:[#allocation4 + $0x80] sm:$0xff]  ;;  %v4219_v46 = vld [vmem:[#allocation4 + $0xd8] sm:$0xff]  ;;  %v10098_v13 = vld [vmem:[%s8280_s6 + $0x10] sm:$0xff] }
 0x35d   : > { %5440 = vmatmul.mubr.bf16.gmra.mrb[156].mxu1 %v4622_v39  ;;  %v4518_v39 = vpack.c.bf16 %v4208_v12, %v4198_v2  ;;  %v4529_v7 = vpack.c.bf16 %v4229_v21, %v4219_v46  ;;  %v7872_v26 = vld [vmem:[#allocation10 + $0x260] sm:$0xff]   ;;  %v10101_v10 = vld [vmem:[%s8280_s6 + $0x18] sm:$0xff]  ;;  %v4266_v52 = vld [vmem:[#allocation4 + $0x250] sm:$0xff] }
 0x35e   : > { %5447 = vmatprep.mubr.bf16.mxu1 %v4633_v41  ;;  %v4642_v41 = vpack.c.bf16 %v10018_v31, %v4452_v55  ;;  %v4475_v31 = vld [vmem:[#allocation4 + $0x8d8] sm:$0xff]  ;;  %v4531_v45 = vpack.c.bf16 %v10101_v10, %v10098_v13  ;;  %v7873_v55 = vld [vmem:[#allocation10 + $0x220] sm:$0xff]   ;;  %v7877_v3 = vld [vmem:[#allocation10 + $0x230] sm:$0xff]  }
 0x35f   : > { %5593 = vmatmul.mubr.bf16.gmra.mrb[216].mxu0 %v4614_v15  ;;  %v4655_v62 = vpack.c.bf16 %v10048_v27, %v4475_v31  ;;  %v7871_v15 = vld [vmem:[#allocation10 + $0x218] sm:$0xff]   ;;  %v7875_v31 = vld [vmem:[#allocation10 + $0x228] sm:$0xff]   ;;  %v10106_v17 = vld [vmem:[%s8280_s6 + $0x20] sm:$0xff] }
 0x360   : > { %5600 = vmatprep.mubr.bf16.mxu0 %v4625_v49  ;;  %v4246_v49 = vld [vmem:[#allocation4 + $0x1b0] sm:$0xff]  ;;  %v4269_v38 = vld [vmem:[#allocation4 + $0x268] sm:$0xff]  ;;  %v10117_v23 = vld [vmem:[%s8280_s6 + $0x38] sm:$0xff] }
 0x361   : > { %v4238_v24 = vld [vmem:[#allocation4 + $0x170] sm:$0xff]  ;;  %v4289_v36 = vld [vmem:[#allocation4 + $0x308] sm:$0xff]  ;;  %v4279_v21 = vld [vmem:[#allocation4 + $0x2b8] sm:$0xff] }
 0x362   : > { %v4258_v12 = vld [vmem:[#allocation4 + $0x210] sm:$0xff]  ;;  %v10122_v2 = vld [vmem:[%s8280_s6 + $0x40] sm:$0xff]  ;;  %v4317_v46 = vld [vmem:[#allocation4 + $0x3e8] sm:$0xff] }
 0x365   : > { %5448 = vmatmul.mubr.bf16.gmra.mrb[160].mxu1 %v4632_v61  ;;  %v4257_v61 = vld [vmem:[#allocation4 + $0x208] sm:$0xff] }
 0x366   : > { %5455 = vmatprep.mubr.bf16.mxu1 %v4643_v16  ;;  %v4652_v16 = vpack.c.bf16 %v9994_v22, %v4472_v4  ;;  %v4654_v22 = vpack.c.bf16 %v4484_v53, %v9966_v32  ;;  %v4664_v32 = vpack.c.bf16 %v4504_v6, %v10031_v1  ;;  %v4216_v1 = vld [vmem:[#allocation4 + $0xc0] sm:$0xff]  ;;  %v4277_v53 = vld [vmem:[#allocation4 + $0x2a8] sm:$0xff] }
 0x367   : > { %5601 = vmatmul.mubr.bf16.gmra.mrb[220].mxu0 %v4624_v33  ;;  %v4526_v29 = vpack.c.bf16 %v4226_v57, %v4216_v1  ;;  %v4267_v33 = vld [vmem:[#allocation4 + $0x258] sm:$0xff]  ;;  %v7898_v4 = vld [vmem:[#allocation4 + $0x120] sm:$0xff] }
 0x368   : > { %5608 = vmatprep.mubr.bf16.mxu0 %v4635_v14  ;;  %v4236_v14 = vld [vmem:[#allocation4 + $0x160] sm:$0xff]  ;;  %v4547_v48 = vpack.c.bf16 %v4267_v33, %v4257_v61  ;;  %v4309_v33 = vld [vmem:[#allocation4 + $0x3a8] sm:$0xff] }
 0x369   : > { %v4536_v59 = vpack.c.bf16 %v4246_v49, %v4236_v14  ;;  %v7899_v6 = vld [vmem:[#allocation4 + $0x1c0] sm:$0xff] }
 0x36a   : > { %v4276_v57 = vld [vmem:[#allocation4 + $0x2a0] sm:$0xff] }
 0x36b   : > { %v4288_v49 = vld [vmem:[#allocation4 + $0x300] sm:$0xff] }
 0x36d   : > { %5456 = vmatmul.mubr.bf16.gmra.mrb[164].mxu1 %v4642_v41  ;;  %v4249_v41 = vld [vmem:[#allocation4 + $0x1c8] sm:$0xff] }
 0x36e   : > { %5463 = vmatprep.mubr.bf16.mxu1 %v4653_v34  ;;  %v4492_v34 = vld [vmem:[#allocation4 + $0x960] sm:$0xff] }
 0x36f   : > { %5609 = vmatmul.mubr.bf16.gmra.mrb[224].mxu0 %v4634_v42  ;;  %v4662_v54 = vpack.c.bf16 %v10044_v37, %v4492_v34  ;;  %v7866_v37 = vld [vmem:[#allocation10 + $0x248] sm:$0xff]  }
 0x370   : > { %5616 = vmatprep.mubr.bf16.mxu0 %v4645_v5  ;;  %v7874_v42 = vld [vmem:[#allocation10 + $0x268] sm:$0xff]   ;;  %v4218_v5 = vld [vmem:[#allocation4 + $0xd0] sm:$0xff] }
 0x371   : > { %v4528_v11 = vpack.c.bf16 %v7898_v4, %v4218_v5  ;;  %v10109_v34 = vld [vmem:[%s8280_s6 + $0x28] sm:$0xff]  ;;  %v10130_v5 = vld [vmem:[%s8280_s6 + $0x50] sm:$0xff]  ;;  %v10133_v4 = vld [vmem:[%s8280_s6 + $0x58] sm:$0xff] }
 0x375   : > { %5464 = vmatmul.mubr.bf16.gmra.mrb[168].mxu1 %v4652_v16  ;;  %v4239_v16 = vld [vmem:[#allocation4 + $0x178] sm:$0xff] }
 0x376   : > { %5471 = vmatprep.mubr.bf16.mxu1 %v4663_v47  ;;  %v4227_v47 = vld [vmem:[#allocation4 + $0x118] sm:$0xff] }
 0x377   : > { %5617 = vmatmul.mubr.bf16.gmra.mrb[228].mxu0 %v4644_v44  ;;  %v4527_v27 = vpack.c.bf16 %v4227_v47, %v4217_v20  ;;  %v4539_v44 = vpack.c.bf16 %v4249_v41, %v4239_v16  ;;  %v7878_v20 = vld [vmem:[#allocation10 + $0x278] sm:$0xff]  }
 0x378   : > { %5624 = vmatprep.mubr.bf16.mxu0 %v4655_v62  ;;  %v7876_v62 = vld [vmem:[#allocation10 + $0x270] sm:$0xff]   ;;  %v4299_v41 = vld [vmem:[#allocation4 + $0x358] sm:$0xff] }
 0x379   : > { %v4347_v16 = vld [vmem:[#allocation4 + $0x4d8] sm:$0xff] }
 0x37d   : > { %5472 = vmatmul.mubr.bf16.gmra.mrb[172].mxu1 %v4662_v54  ;;  %v4287_v54 = vld [vmem:[#allocation4 + $0x2f8] sm:$0xff] }
 0x37e   : > { %5673 = vmatprep.mubr.bf16.mxu1 %v4517_v58  ;;  %v4541_v58 = vpack.c.bf16 %v10109_v34, %v10106_v17  ;;  %v4557_v47 = vpack.c.bf16 %v4287_v54, %v4277_v53  ;;  %v4329_v53 = vld [vmem:[#allocation4 + $0x448] sm:$0xff] }
 0x37f   : > { %5625 = vmatmul.mubr.bf16.gmra.mrb[232].mxu0 %v4654_v22  ;;  %v4256_v22 = vld [vmem:[#allocation4 + $0x200] sm:$0xff] }
 0x380   : > { %5632 = vmatprep.mubr.bf16.mxu0 %v4665_v43  ;;  %v4546_v43 = vpack.c.bf16 %v4266_v52, %v4256_v22  ;;  %v4298_v22 = vld [vmem:[#allocation4 + $0x350] sm:$0xff] }
 0x385   : > { %5674 = vmatmul.mubr.bf16.vlgmr.msra.gmra.mrb[176].mxu1 %v4516_v63  ;;  %v4259_v63 = vld [vmem:[#allocation4 + $0x218] sm:$0xff] }
 0x386   : > { %5681 = vmatprep.mubr.bf16.mxu1 %v4527_v27  ;;  %7479 = vmatpush3.bf16.msra.mxu1 %v7862_v51  ;;  %v4538_v51 = vpack.c.bf16 %v7899_v6, %v4238_v24  ;;  %v4549_v8 = vpack.c.bf16 %v4269_v38, %v4259_v63  ;;  %v4286_v27 = vld [vmem:[#allocation4 + $0x2f0] sm:$0xff]  ;;  %v10141_v24 = vld [vmem:[%s8280_s6 + $0x68] sm:$0xff] }
 0x387   : > { %5633 = vmatmul.mubr.bf16.gmra.mrb[236].mxu0 %v4664_v32  ;;  %7480 = vmatprep.subr.bf16.mxu1 %v7866_v37  ;;  %v7879_v37 = vld [vmem:[#allocation10 + $0x238] sm:$0xff]   ;;  %v10114_v32 = vld [vmem:[%s8280_s6 + $0x30] sm:$0xff]  ;;  %v4556_v56 = vpack.c.bf16 %v4286_v27, %v4276_v57  ;;  %v4357_v6 = vld [vmem:[#allocation4 + $0x528] sm:$0xff] }
 0x388   : > { %5834 = vmatprep.mubr.bf16.mxu0 %v4519_v28  ;;  %v4297_v28 = vld [vmem:[#allocation4 + $0x348] sm:$0xff]  ;;  %v4318_v57 = vld [vmem:[#allocation4 + $0x3f0] sm:$0xff] }
 0x38a   : > { %7481 = vmatpush3.bf16.msra.mxu1 %v7867_v19  ;;  %v4307_v19 = vld [vmem:[#allocation4 + $0x398] sm:$0xff] }
 0x38b   : > { %7482 = vmatprep.subr.bf16.mxu1 %v7868_v0  ;;  %v4567_v1 = vpack.c.bf16 %v4307_v19, %v4297_v28  ;;  %v4349_v28 = vld [vmem:[#allocation4 + $0x4e8] sm:$0xff] }
 0x38d   : > { %5682 = vmatmul.mubr.bf16.gmra.mrb[180].mxu1 %v4526_v29 }
 0x38e   : > { %5689 = vmatprep.mubr.bf16.mxu1 %v4537_v9  ;;  %7483 = vmatpush3.bf16.msra.mxu1 %v7869_v30  ;;  %v7900_v30 = vld [vmem:[#allocation4 + $0x260] sm:$0xff]  ;;  %v4306_v9 = vld [vmem:[#allocation4 + $0x390] sm:$0xff] }
 0x38f   : > { %5835 = vmatmul.mubr.bf16.vlgmr.msra.gmra.mrb[240].mxu0 %v4518_v39  ;;  %7484 = vmatprep.subr.bf16.mxu1 %v7870_v25  ;;  %v4548_v29 = vpack.c.bf16 %v7900_v30, %v4258_v12  ;;  %v4559_v25 = vpack.c.bf16 %v4289_v36, %v4279_v21  ;;  %v10125_v39 = vld [vmem:[%s8280_s6 + $0x48] sm:$0xff]  ;;  %v4339_v36 = vld [vmem:[#allocation4 + $0x498] sm:$0xff]  ;;  %v4366_v12 = vld [vmem:[#allocation4 + $0x570] sm:$0xff] }
 0x390   : > { %5842 = vmatprep.mubr.bf16.mxu0 %v4529_v7  ;;  %v4327_v7 = vld [vmem:[#allocation4 + $0x438] sm:$0xff]  ;;  %v10146_v30 = vld [vmem:[%s8280_s6 + $0x70] sm:$0xff]  ;;  %v4377_v21 = vld [vmem:[#allocation4 + $0x5c8] sm:$0xff] }
 0x391   : > { %v4577_v14 = vpack.c.bf16 %v4327_v7, %v4317_v46  ;;  %v4356_v46 = vld [vmem:[#allocation4 + $0x520] sm:$0xff] }
 0x392   : > { %7485 = vmatpush3.bf16.msra.mxu1 %v7871_v15  ;;  %v4348_v7 = vld [vmem:[#allocation4 + $0x4e0] sm:$0xff] }
 0x393   : > { %7486 = vmatprep.subr.bf16.mxu1 %v7872_v26  ;;  %v4296_v26 = vld [vmem:[#allocation4 + $0x340] sm:$0xff] }
 0x394   : > { %v4566_v61 = vpack.c.bf16 %v4306_v9, %v4296_v26  ;;  %v4596_v26 = vpack.c.bf16 %v4366_v12, %v4356_v46  ;;  %v4378_v12 = vld [vmem:[#allocation4 + $0x5d0] sm:$0xff] }
 0x395   : > { %5690 = vmatmul.mubr.bf16.gmra.mrb[184].mxu1 %v4536_v59 }
 0x396   : > { %5697 = vmatprep.mubr.bf16.mxu1 %v4547_v48  ;;  %7487 = vmatpush3.bf16.msra.mxu1 %v7873_v55  ;;  %v4278_v55 = vld [vmem:[#allocation4 + $0x2b0] sm:$0xff] }
 0x397   : > { %5843 = vmatmul.mubr.bf16.gmra.mrb[244].mxu0 %v4528_v11  ;;  %7488 = vmatprep.subr.bf16.mxu1 %v7874_v42  ;;  %v4558_v59 = vpack.c.bf16 %v4288_v49, %v4278_v55  ;;  %v4569_v42 = vpack.c.bf16 %v4309_v33, %v4299_v41  ;;  %v4326_v48 = vld [vmem:[#allocation4 + $0x430] sm:$0xff]  ;;  %v4337_v11 = vld [vmem:[#allocation4 + $0x488] sm:$0xff]  ;;  %v4359_v55 = vld [vmem:[#allocation4 + $0x538] sm:$0xff] }
 0x398   : > { %5850 = vmatprep.mubr.bf16.mxu0 %v4539_v44  ;;  %v4587_v54 = vpack.c.bf16 %v4347_v16, %v4337_v11  ;;  %v4369_v49 = vld [vmem:[#allocation4 + $0x588] sm:$0xff]  ;;  %v4338_v33 = vld [vmem:[#allocation4 + $0x490] sm:$0xff]  ;;  %v4407_v16 = vld [vmem:[#allocation4 + $0x6b8] sm:$0xff] }
 0x399   : > { %v4386_v41 = vld [vmem:[#allocation4 + $0x610] sm:$0xff]  ;;  %v4397_v11 = vld [vmem:[#allocation4 + $0x668] sm:$0xff] }
 0x39a   : > { %7489 = vmatpush3.bf16.msra.mxu1 %v7875_v31  ;;  %v4316_v31 = vld [vmem:[#allocation4 + $0x3e0] sm:$0xff] }
 0x39b   : > { %7490 = vmatprep.subr.bf16.mxu1 %v7876_v62  ;;  %v4308_v62 = vld [vmem:[#allocation4 + $0x3a0] sm:$0xff]  ;;  %v4576_v52 = vpack.c.bf16 %v4326_v48, %v4316_v31  ;;  %v10157_v48 = vld [vmem:[%s8280_s6 + $0x88] sm:$0xff]  ;;  %v4458_v31 = vld [vmem:[#allocation4 + $0x850] sm:$0xff] }
 0x39d   : > { %5698 = vmatmul.mubr.bf16.gmra.mrb[188].mxu1 %v4546_v43  ;;  %v4319_v43 = vld [vmem:[#allocation4 + $0x3f8] sm:$0xff] }
 0x39e   : > { %5705 = vmatprep.mubr.bf16.mxu1 %v4557_v47  ;;  %7491 = vmatpush3.bf16.msra.mxu1 %v7877_v3  ;;  %v4568_v3 = vpack.c.bf16 %v4308_v62, %v4298_v22  ;;  %v4579_v38 = vpack.c.bf16 %v4329_v53, %v4319_v43  ;;  %v10138_v47 = vld [vmem:[%s8280_s6 + $0x60] sm:$0xff]  ;;  %v4617_v22 = vpack.c.bf16 %v4407_v16, %v4397_v11  ;;  %v4429_v11 = vld [vmem:[#allocation4 + $0x768] sm:$0xff] }
 0x39f   : > { %5851 = vmatmul.mubr.bf16.gmra.mrb[248].mxu0 %v4538_v51  ;;  %7492 = vmatprep.subr.bf16.mxu1 %v7878_v20  ;;  %v4346_v20 = vld [vmem:[#allocation4 + $0x4d0] sm:$0xff]  ;;  %v4367_v51 = vld [vmem:[#allocation4 + $0x578] sm:$0xff]  ;;  %v4376_v62 = vld [vmem:[#allocation4 + $0x5c0] sm:$0xff] }
 0x3a0   : > { %5858 = vmatprep.mubr.bf16.mxu0 %v4549_v8  ;;  %v4336_v8 = vld [vmem:[#allocation4 + $0x480] sm:$0xff]  ;;  %v4597_v19 = vpack.c.bf16 %v4367_v51, %v4357_v6  ;;  %v4606_v53 = vpack.c.bf16 %v4386_v41, %v4376_v62  ;;  %v4406_v6 = vld [vmem:[#allocation4 + $0x6b0] sm:$0xff] }
 0x3a1   : > { %v4586_v27 = vpack.c.bf16 %v4346_v20, %v4336_v8  ;;  %v10162_v51 = vld [vmem:[%s8280_s6 + $0x90] sm:$0xff]  ;;  %v10165_v8 = vld [vmem:[%s8280_s6 + $0x98] sm:$0xff] }
 0x3a2   : > { %7493 = vmatpush3.bf16.msra.mxu1 %v7879_v37  ;;  %v4328_v37 = vld [vmem:[#allocation4 + $0x440] sm:$0xff]  ;;  %v4398_v62 = vld [vmem:[#allocation4 + $0x670] sm:$0xff] }
 0x3a5   : > { %5706 = vmatmul.mubr.bf16.gmra.mrb[192].mxu1 %v4556_v56  ;;  %v4578_v56 = vpack.c.bf16 %v4328_v37, %v4318_v57  ;;  %v4417_v37 = vld [vmem:[#allocation4 + $0x708] sm:$0xff]  ;;  %v4388_v57 = vld [vmem:[#allocation4 + $0x620] sm:$0xff] }
 0x3a6   : > { %5713 = vmatprep.mubr.bf16.mxu1 %v4567_v1  ;;  %v4589_v1 = vpack.c.bf16 %v4349_v28, %v4339_v36  ;;  %v4409_v36 = vld [vmem:[#allocation4 + $0x6c8] sm:$0xff] }
 0x3a7   : > { %5859 = vmatmul.mubr.bf16.gmra.mrb[252].mxu0 %v4548_v29  ;;  %v10149_v29 = vld [vmem:[%s8280_s6 + $0x78] sm:$0xff] }
 0x3a8   : > { %5866 = vmatprep.mubr.bf16.mxu0 %v4559_v25  ;;  %v4387_v25 = vld [vmem:[#allocation4 + $0x618] sm:$0xff] }
 0x3ad   : > { %5714 = vmatmul.mubr.bf16.gmra.mrb[196].mxu1 %v4566_v61  ;;  %v4607_v61 = vpack.c.bf16 %v4387_v25, %v4377_v21  ;;  %v4608_v21 = vpack.c.bf16 %v4388_v57, %v4378_v12  ;;  %v4399_v25 = vld [vmem:[#allocation4 + $0x678] sm:$0xff]  ;;  %v4428_v12 = vld [vmem:[#allocation4 + $0x760] sm:$0xff] }
 0x3ae   : > { %5721 = vmatprep.mubr.bf16.mxu1 %v4577_v14  ;;  %v4588_v14 = vpack.c.bf16 %v4348_v7, %v4338_v33  ;;  %v4619_v46 = vpack.c.bf16 %v4409_v36, %v4399_v25  ;;  %v4426_v7 = vld [vmem:[#allocation4 + $0x750] sm:$0xff]  ;;  %v4447_v33 = vld [vmem:[#allocation4 + $0x7f8] sm:$0xff] }
 0x3af   : > { %5867 = vmatmul.mubr.bf16.gmra.mrb[0].mxu0 %v4558_v59  ;;  %v4599_v59 = vpack.c.bf16 %v4369_v49, %v4359_v55  ;;  %v10173_v49 = vld [vmem:[%s8280_s6 + $0xa8] sm:$0xff]  ;;  %v4416_v55 = vld [vmem:[#allocation4 + $0x700] sm:$0xff] }
 0x3b0   : > { %5874 = vmatprep.mubr.bf16.mxu0 %v4569_v42  ;;  %v10154_v42 = vld [vmem:[%s8280_s6 + $0x80] sm:$0xff]  ;;  %v4626_v41 = vpack.c.bf16 %v4426_v7, %v4416_v55  ;;  %v4449_v7 = vld [vmem:[#allocation4 + $0x808] sm:$0xff] }
 0x3b5   : > { %5722 = vmatmul.mubr.bf16.gmra.mrb[200].mxu1 %v4576_v52  ;;  %v4368_v52 = vld [vmem:[#allocation4 + $0x580] sm:$0xff] }
 0x3b6   : > { %5729 = vmatprep.mubr.bf16.mxu1 %v4587_v54  ;;  %v4389_v54 = vld [vmem:[#allocation4 + $0x628] sm:$0xff] }
 0x3b7   : > { %5875 = vmatmul.mubr.bf16.gmra.mrb[4].mxu0 %v4568_v3  ;;  %v4358_v3 = vld [vmem:[#allocation4 + $0x530] sm:$0xff] }
 0x3b8   : > { %5882 = vmatprep.mubr.bf16.mxu0 %v4579_v38  ;;  %v4598_v43 = vpack.c.bf16 %v4368_v52, %v4358_v3  ;;  %v4379_v38 = vld [vmem:[#allocation4 + $0x5d8] sm:$0xff]  ;;  %v4446_v3 = vld [vmem:[#allocation4 + $0x7f0] sm:$0xff] }
 0x3b9   : > { %v4609_v20 = vpack.c.bf16 %v4389_v54, %v4379_v38  ;;  %v10181_v38 = vld [vmem:[%s8280_s6 + $0xb8] sm:$0xff] }
 0x3bd   : > { %5730 = vmatmul.mubr.bf16.gmra.mrb[204].mxu1 %v4586_v27  ;;  %v4427_v27 = vld [vmem:[#allocation4 + $0x758] sm:$0xff] }
 0x3be   : > { %5737 = vmatprep.mubr.bf16.mxu1 %v4597_v19  ;;  %v4396_v19 = vld [vmem:[#allocation4 + $0x660] sm:$0xff] }
 0x3bf   : > { %5883 = vmatmul.mubr.bf16.gmra.mrb[8].mxu0 %v4578_v56  ;;  %v4616_v56 = vpack.c.bf16 %v4406_v6, %v4396_v19 }
 0x3c0   : > { %5890 = vmatprep.mubr.bf16.mxu0 %v4589_v1  ;;  %v4627_v1 = vpack.c.bf16 %v4427_v27, %v4417_v37  ;;  %v4457_v37 = vld [vmem:[#allocation4 + $0x848] sm:$0xff]  ;;  %v4467_v27 = vld [vmem:[#allocation4 + $0x898] sm:$0xff] }
 0x3c5   : > { %5738 = vmatmul.mubr.bf16.gmra.mrb[208].mxu1 %v4596_v26  ;;  %v10170_v26 = vld [vmem:[%s8280_s6 + $0xa0] sm:$0xff] }
 0x3c6   : > { %5745 = vmatprep.mubr.bf16.mxu1 %v4607_v61  ;;  %v4437_v61 = vld [vmem:[#allocation4 + $0x7a8] sm:$0xff] }
 0x3c7   : > { %5891 = vmatmul.mubr.bf16.gmra.mrb[12].mxu0 %v4588_v14  ;;  %v4637_v16 = vpack.c.bf16 %v4447_v33, %v4437_v61 }
 0x3c8   : > { %5898 = vmatprep.mubr.bf16.mxu0 %v4599_v59  ;;  %v4408_v59 = vld [vmem:[#allocation4 + $0x6c0] sm:$0xff] }
 0x3c9   : > { %v4618_v52 = vpack.c.bf16 %v4408_v59, %v4398_v62 }
 0x3cd   : > { %5746 = vmatmul.mubr.bf16.gmra.mrb[212].mxu1 %v4606_v53  ;;  %v4419_v53 = vld [vmem:[#allocation4 + $0x718] sm:$0xff] }
 0x3ce   : > { %5753 = vmatprep.mubr.bf16.mxu1 %v4617_v22  ;;  %v4629_v54 = vpack.c.bf16 %v4429_v11, %v4419_v53  ;;  %v7052_v22 = vpop.f32.mrb[116].mxu1  ;;  %v4418_v11 = vld [vmem:[#allocation4 + $0x710] sm:$0xff] }
 0x3cf   : > { %5899 = vmatmul.mubr.bf16.gmra.mrb[16].mxu0 %v4598_v43  ;;  %v10178_v43 = vld [vmem:[%s8280_s6 + $0xb0] sm:$0xff]  ;;  %v7053_v6 = vpop.f32.mrb[117].mxu1  ;;  %v4628_v62 = vpack.c.bf16 %v4428_v12, %v4418_v11  ;;  %v4487_v12 = vld [vmem:[#allocation4 + $0x938] sm:$0xff]  ;;  %v4469_v11 = vld [vmem:[#allocation4 + $0x8a8] sm:$0xff] }
 0x3d0   : > { %5906 = vmatprep.mubr.bf16.mxu0 %v4609_v20  ;;  %v10186_v20 = vld [vmem:[%s10593_s4] ss:$0 sm:$0xff]  ;;  %v7054_v57 = vadd.f32 %v7053_v6, %v7052_v22  ;;  %v7055_v36 = vpop.f32.mrb[118].mxu1 }
 0x3d1   : > { %v7056_v25 = vpop.f32.mrb[119].mxu1  ;;  %v5354_v61 = vadd.f32 %v10059_v40, %v10186_v20  ;;  %v5357_v53 = vadd.f32 %v10061_v18, %v10186_v20 }
 0x3d2   : > { %v7057_v55 = vadd.f32 %v7056_v25, %v7055_v36  ;;  %v7058_v6 = vpop.f32.mrb[120].mxu1 }
 0x3d3   : > { %v7059_v36 = vpop.f32.mrb[121].mxu1 }
 0x3d4   : > { %v5365_v18 = vadd.f32 %v7057_v55, %v10186_v20 }
 0x3d5   : > { %5754 = vmatmul.mubr.bf16.gmra.mrb[216].mxu1 %v4616_v56  ;;  %v7158_v56 = vpop.f32.mrb[176].mxu0 }
 0x3d6   : > { %5761 = vmatprep.mubr.bf16.mxu1 %v4627_v1  ;;  %v4436_v1 = vld [vmem:[#allocation4 + $0x7a0] sm:$0xff] }
 0x3d7   : > { %5907 = vmatmul.mubr.bf16.gmra.mrb[20].mxu0 %v4608_v21  ;;  %v7159_v21 = vpop.f32.mrb[177].mxu0 }
 0x3d8   : > { %5914 = vmatprep.mubr.bf16.mxu0 %v4619_v46  ;;  %v4636_v46 = vpack.c.bf16 %v4446_v3, %v4436_v1  ;;  %v7160_v33 = vadd.f32 %v7159_v21, %v7158_v56  ;;  %v7161_v59 = vpop.f32.mrb[178].mxu0  ;;  %v10202_v56 = vld [vmem:[%s8280_s6 + $0xc8] sm:$0xff]  ;;  %v7060_v21 = vadd.f32 %v7059_v36, %v7058_v6  ;;  %v4459_v36 = vld [vmem:[#allocation4 + $0x858] sm:$0xff] }
 0x3d9   : > { %v4477_v1 = vld [vmem:[#allocation4 + $0x8e8] sm:$0xff] }
 0x3dd   : > { %5762 = vmatmul.mubr.bf16.gmra.mrb[220].mxu1 %v4626_v41  ;;  %v4647_v41 = vpack.c.bf16 %v4467_v27, %v4457_v37  ;;  %v4466_v37 = vld [vmem:[#allocation4 + $0x890] sm:$0xff]  ;;  %v10199_v27 = vld [vmem:[%s8280_s6 + $0xc0] sm:$0xff] }
 0x3de   : > { %5769 = vmatprep.mubr.bf16.mxu1 %v4637_v16  ;;  %v7162_v16 = vpop.f32.mrb[179].mxu0 }
 0x3df   : > { %5915 = vmatmul.mubr.bf16.gmra.mrb[24].mxu0 %v4618_v52  ;;  %v4439_v52 = vld [vmem:[#allocation4 + $0x7b8] sm:$0xff]  ;;  %v7163_v22 = vadd.f32 %v7162_v16, %v7161_v59  ;;  %v7164_v25 = vpop.f32.mrb[180].mxu0  ;;  %v5362_v16 = vadd.f32 %v7054_v57, %v10186_v20 }
 0x3e0   : > { %5922 = vmatprep.mubr.bf16.mxu0 %v4629_v54  ;;  %v10194_v54 = vadd.f32 %v7160_v33, %v5354_v61  ;;  %v4639_v3 = vpack.c.bf16 %v4449_v7, %v4439_v52  ;;  %v4456_v7 = vld [vmem:[#allocation4 + $0x840] sm:$0xff]  ;;  %v7165_v33 = vpop.f32.mrb[181].mxu0 }
 0x3e1   : > { %v10196_v40 = vadd.f32 %v7163_v22, %v5357_v53  ;;  %v4448_v61 = vld [vmem:[#allocation4 + $0x800] sm:$0xff]  ;;  %v7167_v53 = vpop.f32.mrb[182].mxu0  ;;  %v4657_v22 = vpack.c.bf16 %v4487_v12, %v4477_v1  ;;  %v4486_v1 = vld [vmem:[#allocation4 + $0x930] sm:$0xff] }
 0x3e2   : > { %v7168_v19 = vpop.f32.mrb[183].mxu0  ;;  %v10213_v12 = vld [vmem:[%s8280_s6 + $0xd0] sm:$0xff] }
 0x3e3   : > { %v7169_v28 = vadd.f32 %v7168_v19, %v7167_v53  ;;  %v7170_v19 = vpop.f32.mrb[184].mxu0  ;;  %v4489_v53 = vld [vmem:[#allocation4 + $0x948] sm:$0xff] }
 0x3e5   : > { %5770 = vmatmul.mubr.bf16.gmra.mrb[224].mxu1 %v4636_v46  ;;  %v7061_v46 = vpop.f32.mrb[122].mxu1  ;;  %v10210_v57 = vadd.f32 %v7169_v28, %v5365_v18  ;;  %v7171_v28 = vpop.f32.mrb[185].mxu0 }
 0x3e6   : > { %5777 = vmatprep.mubr.bf16.mxu1 %v4647_v41  ;;  %v7062_v59 = vpop.f32.mrb[123].mxu1  ;;  %v4646_v41 = vpack.c.bf16 %v4466_v37, %v4456_v7  ;;  %v4649_v37 = vpack.c.bf16 %v4469_v11, %v4459_v36  ;;  %v4476_v11 = vld [vmem:[#allocation4 + $0x8e0] sm:$0xff]  ;;  %v7173_v36 = vpop.f32.mrb[186].mxu0 }
 0x3e7   : > { %5923 = vmatmul.mubr.bf16.gmra.mrb[28].mxu0 %v4628_v62  ;;  %v7166_v62 = vadd.f32 %v7165_v33, %v7164_v25  ;;  %v7063_v52 = vadd.f32 %v7062_v59, %v7061_v46  ;;  %v7064_v25 = vpop.f32.mrb[124].mxu1  ;;  %v10216_v46 = vld [vmem:[%s8280_s6 + $0xd8] sm:$0xff]  ;;  %v7174_v9 = vpop.f32.mrb[187].mxu0 }
 0x3e8   : > { %5930 = vmatprep.mubr.bf16.mxu0 %v4639_v3  ;;  %v4438_v3 = vld [vmem:[#allocation4 + $0x7b0] sm:$0xff]  ;;  %v7065_v7 = vpop.f32.mrb[125].mxu1  ;;  %v4507_v33 = vld [vmem:[#allocation4 + $0x9d8] sm:$0xff]  ;;  %v7175_v44 = vadd.f32 %v7174_v9, %v7173_v36  ;;  %v4496_v9 = vld [vmem:[#allocation4 + $0x980] sm:$0xff] }
 0x3e9   : > { %v4638_v6 = vpack.c.bf16 %v4448_v61, %v4438_v3  ;;  %v10208_v14 = vadd.f32 %v7166_v62, %v5362_v16  ;;  %v4497_v61 = vld [vmem:[#allocation4 + $0x988] sm:$0xff]  ;;  %v7066_v59 = vadd.f32 %v7065_v7, %v7064_v25  ;;  %v4468_v16 = vld [vmem:[#allocation4 + $0x8a0] sm:$0xff]  ;;  %v4656_v62 = vpack.c.bf16 %v4486_v1, %v4476_v11  ;;  %v4479_v7 = vld [vmem:[#allocation4 + $0x8f8] sm:$0xff] }
 0x3ea   : > { %v7172_v3 = vadd.f32 %v7171_v28, %v7170_v19  ;;  %v4648_v25 = vpack.c.bf16 %v4468_v16, %v4458_v31  ;;  %v5373_v55 = vadd.f32 %v7063_v52, %v10186_v20  ;;  %v4659_v1 = vpack.c.bf16 %v4489_v53, %v4479_v7  ;;  %v7176_v16 = vpop.f32.mrb[188].mxu0 }
 0x3ed   : > { %5778 = vmatmul.mubr.bf16.gmra.mrb[228].mxu1 %v4646_v41  ;;  %v7067_v41 = vpop.f32.mrb[126].mxu1 }
 0x3ee   : > { %5785 = vmatprep.mubr.bf16.mxu1 %v4657_v22  ;;  %v7068_v18 = vpop.f32.mrb[127].mxu1  ;;  %v5370_v22 = vadd.f32 %v7060_v21, %v10186_v20  ;;  %v10224_v21 = vadd.f32 %v7175_v44, %v5373_v55  ;;  %v5378_v55 = vadd.f32 %v7066_v59, %v10186_v20  ;;  %v4200_v59 = vld [vmem:[#allocation4 + $0x40] sm:$0xff] }
 0x3ef   : > { %5931 = vmatmul.mubr.bf16.gmra.mrb[32].mxu0 %v4638_v6  ;;  %v7069_v6 = vadd.f32 %v7068_v18, %v7067_v41  ;;  %v7070_v19 = vpop.f32.mrb[128].mxu1  ;;  %v10230_v41 = vld [vmem:[%s8280_s6 + $0xe8] sm:$0xff]  ;;  %v4488_v18 = vld [vmem:[#allocation4 + $0x940] sm:$0xff] }
 0x3f0   : > { %5938 = vmatprep.mubr.bf16.mxu0 %v4649_v37  ;;  %v4667_v37 = vpack.c.bf16 %v4507_v33, %v4497_v61  ;;  %v10222_v63 = vadd.f32 %v7172_v3, %v5370_v22  ;;  %v4506_v61 = vld [vmem:[#allocation4 + $0x9d0] sm:$0xff]  ;;  %v10227_v33 = vld [vmem:[%s8280_s6 + $0xe0] sm:$0xff]  ;;  %v7071_v11 = vpop.f32.mrb[129].mxu1 }
 0x3f1   : > { %v7072_v52 = vadd.f32 %v7071_v11, %v7070_v19  ;;  %v7073_v28 = vpop.f32.mrb[130].mxu1  ;;  %v4666_v44 = vpack.c.bf16 %v4506_v61, %v4496_v9  ;;  %v5381_v11 = vadd.f32 %v7069_v6, %v10186_v20 }
 0x3f2   : > { %v7074_v53 = vpop.f32.mrb[131].mxu1 }
 0x3f3   : > { %v7075_v3 = vadd.f32 %v7074_v53, %v7073_v28  ;;  %v7076_v9 = vpop.f32.mrb[132].mxu1  ;;  %v10248_v53 = vld [vmem:[%s8280_s6 + $0xf0] sm:$0xff] }
 0x3f4   : > { %v7077_v6 = vpop.f32.mrb[133].mxu1 }
 0x3f5   : > { %5786 = vmatmul.mubr.bf16.gmra.mrb[232].mxu1 %v4656_v62  ;;  %v7177_v62 = vpop.f32.mrb[189].mxu0  ;;  %v7079_v50 = vpop.f32.mrb[134].mxu1  ;;  %v5389_v15 = vadd.f32 %v7075_v3, %v10186_v20 }
 0x3f6   : > { %5793 = vmatprep.mubr.bf16.mxu1 %v4667_v37  ;;  %v7178_v22 = vadd.f32 %v7177_v62, %v7176_v16  ;;  %v7179_v36 = vpop.f32.mrb[190].mxu0  ;;  %v4478_v37 = vld [vmem:[#allocation4 + $0x8f0] sm:$0xff] }
 0x3f7   : > { %5939 = vmatmul.mubr.bf16.gmra.mrb[36].mxu0 %v4648_v25  ;;  %v10235_v25 = vld [vmem:[#allocation2 + $0x8] sm:$0xff]  ;;  %v4658_v19 = vpack.c.bf16 %v4488_v18, %v4478_v37  ;;  %v4210_v16 = vld [vmem:[#allocation4 + $0x90] sm:$0xff]  ;;  %v10251_v18 = vld [vmem:[%s8280_s6 + $0xf8] sm:$0xff] }
 0x3f8   : > { %5946 = vmatprep.mubr.bf16.mxu0 %v4659_v1  ;;  %v4669_v7 = vpack.c.bf16 %v10235_v25, %v10235_v25  ;;  %v7180_v1 = vpop.f32.mrb[191].mxu0  ;;  %v10240_v31 = vadd.f32 %v7178_v22, %v5378_v55  ;;  %v4498_v62 = vld [vmem:[#allocation4 + $0x990] sm:$0xff]  ;;  %v7078_v55 = vadd.f32 %v7077_v6, %v7076_v9  ;;  %v4220_v9 = vld [vmem:[#allocation4 + $0xe0] sm:$0xff] }
 0x3f9   : > { %v7181_v61 = vadd.f32 %v7180_v1, %v7179_v36  ;;  %v7182_v22 = vpop.f32.mrb[192].mxu0  ;;  %v4520_v36 = vpack.c.bf16 %v4210_v16, %v4200_v59  ;;  %v4668_v37 = vpack.c.bf16 %v10235_v25, %v4498_v62  ;;  %v5386_v1 = vadd.f32 %v7072_v52, %v10186_v20  ;;  %v4230_v52 = vld [vmem:[#allocation4 + $0x130] sm:$0xff] }
 0x3fa   : > { %v7183_v60 = vpop.f32.mrb[193].mxu0  ;;  %v4530_v3 = vpack.c.bf16 %v4230_v52, %v4220_v9 }
 0x3fb   : > { %v10245_v28 = vadd.f32 %v7181_v61, %v5381_v11  ;;  %v7185_v11 = vpop.f32.mrb[194].mxu0 }
 0x3fc   : > { %v7186_v61 = vpop.f32.mrb[195].mxu0 }
 0x3fd   : > { %5794 = vmatmul.mubr.bf16.gmra.mrb[236].mxu1 %v4666_v44  ;;  %v7187_v44 = vadd.f32 %v7186_v61, %v7185_v11  ;;  %v4240_v61 = vld [vmem:[#allocation4 + $0x180] sm:$0xff] }
 0x3fe   : > { %5995 = vmatprep.mubr.bf16.mxu1 %v4521_v35  ;;  %v7080_v35 = vpop.f32.mrb[135].mxu1 }
 0x3ff   : > { %5947 = vmatmul.mubr.bf16.gmra.mrb[40].mxu0 %v4658_v19  ;;  %v7081_v19 = vadd.f32 %v7080_v35, %v7079_v50  ;;  %v10263_v59 = vadd.f32 %v7187_v44, %v5389_v15  ;;  %v7082_v16 = vpop.f32.mrb[136].mxu1 }
 0x400   : > { %5954 = vmatprep.mubr.bf16.mxu0 %v4669_v7  ;;  %v7184_v7 = vadd.f32 %v7183_v60, %v7182_v22  ;;  %v7083_v62 = vpop.f32.mrb[137].mxu1  ;;  %v7188_v22 = vpop.f32.mrb[196].mxu0 }
 0x401   : > { %v7084_v6 = vadd.f32 %v7083_v62, %v7082_v16  ;;  %v7085_v50 = vpop.f32.mrb[138].mxu1  ;;  %v7189_v60 = vpop.f32.mrb[197].mxu0  ;;  %v5397_v10 = vadd.f32 %v7081_v19, %v10186_v20  ;;  %v4250_v16 = vld [vmem:[#allocation4 + $0x1d0] sm:$0xff] }
 0x402   : > { %v10258_v0 = vadd.f32 %v7184_v7, %v5386_v1  ;;  %v7086_v35 = vpop.f32.mrb[139].mxu1  ;;  %v7190_v1 = vadd.f32 %v7189_v60, %v7188_v22  ;;  %v7191_v11 = vpop.f32.mrb[198].mxu0  ;;  %v4540_v60 = vpack.c.bf16 %v4250_v16, %v4240_v61 }
 0x403   : > { %v7087_v7 = vadd.f32 %v7086_v35, %v7085_v50  ;;  %v7192_v13 = vpop.f32.mrb[199].mxu0  ;;  %v5402_v19 = vadd.f32 %v7084_v6, %v10186_v20 }
 0x404   : > { %v7193_v15 = vadd.f32 %v7192_v13, %v7191_v11  ;;  %v10611_v11 = vpack.c.bf16 %v10117_v23, %v10114_v32 }
 0x405   : > { %5996 = vmatmul.mubr.bf16.vlgmr.msra.gmra.mrb[240].mxu1 %v4520_v36  ;;  %v5394_v36 = vadd.f32 %v7078_v55, %v10186_v20  ;;  %v5405_v17 = vadd.f32 %v7087_v7, %v10186_v20 }
 0x406   : > { %6003 = vmatprep.mubr.bf16.mxu1 %v4531_v45  ;;  %v10272_v44 = vadd.f32 %v7193_v15, %v5397_v10  ;;  %v4260_v15 = vld [vmem:[#allocation4 + $0x220] sm:$0xff] }
 0x407   : > { %5955 = vmatmul.mubr.bf16.gmra.mrb[44].mxu0 %v4668_v37  ;;  %v10267_v45 = vadd.f32 %v7190_v1, %v5394_v36  ;;  %v7088_v37 = vpop.f32.mrb[140].mxu1 }
 0x408   : > { %v7089_v55 = vpop.f32.mrb[141].mxu1 }
 0x409   : > { %v7090_v9 = vadd.f32 %v7089_v55, %v7088_v37  ;;  %v7091_v62 = vpop.f32.mrb[142].mxu1  ;;  %v4270_v37 = vld [vmem:[#allocation4 + $0x270] sm:$0xff] }
 0x40a   : > { %v7092_v50 = vpop.f32.mrb[143].mxu1 }
 0x40b   : > { %v5410_v7 = vadd.f32 %v7090_v9, %v10186_v20 }
 0x40c   : > { %v7194_v52 = vpop.f32.mrb[200].mxu0 }
 0x40d   : > { %6004 = vmatmul.mubr.bf16.gmra.mrb[244].mxu1 %v4530_v3  ;;  %v7195_v22 = vpop.f32.mrb[201].mxu0  ;;  %v7093_v3 = vadd.f32 %v7092_v50, %v7091_v62 }
 0x40e   : > { %6011 = vmatprep.mubr.bf16.mxu1 %v4541_v58  ;;  %v7196_v35 = vadd.f32 %v7195_v22, %v7194_v52  ;;  %v7197_v36 = vpop.f32.mrb[202].mxu0  ;;  %v4550_v22 = vpack.c.bf16 %v4270_v37, %v4260_v15 }
 0x40f   : > { %v7198_v1 = vpop.f32.mrb[203].mxu0  ;;  %v5413_v32 = vadd.f32 %v7093_v3, %v10186_v20 }
 0x410   : > { %v10276_v34 = vadd.f32 %v7196_v35, %v5402_v19  ;;  %v7199_v58 = vadd.f32 %v7198_v1, %v7197_v36  ;;  %v10612_v1 = vpack.c.bf16 %v10125_v39, %v10122_v2 }
 0x412   : > { %v10281_v13 = vadd.f32 %v7199_v58, %v5405_v17 }
 0x414   : > { %v7200_v16 = vpop.f32.mrb[204].mxu0 }
 0x415   : > { %6012 = vmatmul.mubr.bf16.gmra.mrb[248].mxu1 %v4540_v60  ;;  %v7201_v52 = vpop.f32.mrb[205].mxu0 }
 0x416   : > { %6019 = vmatprep.mubr.bf16.mxu1 %v10611_v11  ;;  %v7094_v10 = vpop.f32.mrb[144].mxu1  ;;  %v7202_v50 = vadd.f32 %v7201_v52, %v7200_v16  ;;  %v7203_v19 = vpop.f32.mrb[206].mxu0  ;;  %v4280_v11 = vld [vmem:[#allocation4 + $0x2c0] sm:$0xff] }
 0x417   : > { %v7095_v6 = vpop.f32.mrb[145].mxu1  ;;  %v7204_v35 = vpop.f32.mrb[207].mxu0 }
 0x418   : > { %v7096_v61 = vadd.f32 %v7095_v6, %v7094_v10  ;;  %v7097_v55 = vpop.f32.mrb[146].mxu1  ;;  %v10285_v23 = vadd.f32 %v7202_v50, %v5410_v7  ;;  %v7205_v36 = vadd.f32 %v7204_v35, %v7203_v19  ;;  %v4290_v10 = vld [vmem:[#allocation4 + $0x310] sm:$0xff]  ;;  %v10613_v35 = vpack.c.bf16 %v10133_v4, %v10130_v5 }
 0x419   : > { %v7098_v62 = vpop.f32.mrb[147].mxu1  ;;  %v4560_v52 = vpack.c.bf16 %v4290_v10, %v4280_v11 }
 0x41a   : > { %v7099_v60 = vadd.f32 %v7098_v62, %v7097_v55  ;;  %v10290_v17 = vadd.f32 %v7205_v36, %v5413_v32  ;;  %v5418_v3 = vadd.f32 %v7096_v61, %v10186_v20 }
 0x41c   : > { %v5421_v2 = vadd.f32 %v7099_v60, %v10186_v20 }
 0x41d   : > { %6020 = vmatmul.mubr.bf16.gmra.mrb[252].mxu1 %v4550_v22 }
 0x41e   : > { %6027 = vmatprep.mubr.bf16.mxu1 %v10612_v1  ;;  %v7100_v58 = vpop.f32.mrb[148].mxu1  ;;  %v4300_v1 = vld [vmem:[#allocation4 + $0x360] sm:$0xff] }
 0x41f   : > { %v7101_v9 = vpop.f32.mrb[149].mxu1 }
 0x420   : > { %v7102_v15 = vadd.f32 %v7101_v9, %v7100_v58  ;;  %v7103_v6 = vpop.f32.mrb[150].mxu1  ;;  %v4310_v58 = vld [vmem:[#allocation4 + $0x3b0] sm:$0xff] }
 0x421   : > { %v7104_v55 = vpop.f32.mrb[151].mxu1 }
 0x422   : > { %v7206_v37 = vpop.f32.mrb[208].mxu0  ;;  %v7105_v22 = vadd.f32 %v7104_v55, %v7103_v6  ;;  %v5426_v60 = vadd.f32 %v7102_v15, %v10186_v20 }
 0x423   : > { %v7207_v16 = vpop.f32.mrb[209].mxu0 }
 0x424   : > { %v7208_v62 = vadd.f32 %v7207_v16, %v7206_v37  ;;  %v7209_v7 = vpop.f32.mrb[210].mxu0  ;;  %v4570_v16 = vpack.c.bf16 %v4310_v58, %v4300_v1  ;;  %v5429_v5 = vadd.f32 %v7105_v22, %v10186_v20 }
 0x425   : > { %v7210_v50 = vpop.f32.mrb[211].mxu0  ;;  %6028 = vmatmul.mubr.bf16.gmra.mrb[0].mxu1 %v4560_v52 }
 0x426   : > { %v10294_v39 = vadd.f32 %v7208_v62, %v5418_v3  ;;  %v7211_v19 = vadd.f32 %v7210_v50, %v7209_v7  ;;  %6035 = vmatprep.mubr.bf16.mxu1 %v10613_v35  ;;  %v10614_v50 = vpack.c.bf16 %v10141_v24, %v10138_v47  ;;  %v4320_v35 = vld [vmem:[#allocation4 + $0x400] sm:$0xff] }
 0x428   : > { %v10299_v32 = vadd.f32 %v7211_v19, %v5421_v2  ;;  %v7106_v36 = vpop.f32.mrb[152].mxu1 }
 0x429   : > { %v7107_v61 = vpop.f32.mrb[153].mxu1 }
 0x42a   : > { %v7108_v11 = vadd.f32 %v7107_v61, %v7106_v36  ;;  %v7212_v10 = vpop.f32.mrb[212].mxu0  ;;  %v7109_v9 = vpop.f32.mrb[154].mxu1  ;;  %v4330_v36 = vld [vmem:[#allocation4 + $0x450] sm:$0xff] }
 0x42b   : > { %v7213_v37 = vpop.f32.mrb[213].mxu0  ;;  %v7110_v6 = vpop.f32.mrb[155].mxu1 }
 0x42c   : > { %v7214_v55 = vadd.f32 %v7213_v37, %v7212_v10  ;;  %v7111_v52 = vadd.f32 %v7110_v6, %v7109_v9  ;;  %v7215_v3 = vpop.f32.mrb[214].mxu0  ;;  %v4580_v37 = vpack.c.bf16 %v4330_v36, %v4320_v35  ;;  %v5434_v22 = vadd.f32 %v7108_v11, %v10186_v20 }
 0x42d   : > { %v7216_v62 = vpop.f32.mrb[215].mxu0  ;;  %6036 = vmatmul.mubr.bf16.gmra.mrb[4].mxu1 %v4570_v16 }
 0x42e   : > { %v10303_v4 = vadd.f32 %v7214_v55, %v5426_v60  ;;  %v7217_v7 = vadd.f32 %v7216_v62, %v7215_v3  ;;  %6043 = vmatprep.mubr.bf16.mxu1 %v10614_v50  ;;  %v5437_v47 = vadd.f32 %v7111_v52, %v10186_v20  ;;  %v10615_v62 = vpack.c.bf16 %v10149_v29, %v10146_v30  ;;  %v4340_v50 = vld [vmem:[#allocation4 + $0x4a0] sm:$0xff] }
 0x430   : > { %v10308_v2 = vadd.f32 %v7217_v7, %v5429_v5  ;;  %v7112_v19 = vpop.f32.mrb[156].mxu1 }
 0x431   : > { %v7113_v15 = vpop.f32.mrb[157].mxu1 }
 0x432   : > { %v7114_v1 = vadd.f32 %v7113_v15, %v7112_v19  ;;  %v7218_v58 = vpop.f32.mrb[216].mxu0  ;;  %v7115_v61 = vpop.f32.mrb[158].mxu1  ;;  %v4350_v19 = vld [vmem:[#allocation4 + $0x4f0] sm:$0xff] }
 0x433   : > { %v7219_v10 = vpop.f32.mrb[217].mxu0  ;;  %v7116_v9 = vpop.f32.mrb[159].mxu1 }
 0x434   : > { %v7220_v6 = vadd.f32 %v7219_v10, %v7218_v58  ;;  %v7117_v16 = vadd.f32 %v7116_v9, %v7115_v61  ;;  %v7221_v60 = vpop.f32.mrb[218].mxu0  ;;  %v4590_v10 = vpack.c.bf16 %v4350_v19, %v4340_v50  ;;  %v5442_v52 = vadd.f32 %v7114_v1, %v10186_v20 }
 0x435   : > { %v7222_v55 = vpop.f32.mrb[219].mxu0  ;;  %6044 = vmatmul.mubr.bf16.gmra.mrb[8].mxu1 %v4580_v37 }
 0x436   : > { %v10312_v24 = vadd.f32 %v7220_v6, %v5434_v22  ;;  %v7223_v3 = vadd.f32 %v7222_v55, %v7221_v60  ;;  %6051 = vmatprep.mubr.bf16.mxu1 %v10615_v62  ;;  %v5445_v30 = vadd.f32 %v7117_v16, %v10186_v20  ;;  %v10616_v55 = vpack.c.bf16 %v10157_v48, %v10154_v42  ;;  %v4360_v62 = vld [vmem:[#allocation4 + $0x540] sm:$0xff] }
 0x438   : > { %v10317_v5 = vadd.f32 %v7223_v3, %v5437_v47  ;;  %v7118_v7 = vpop.f32.mrb[160].mxu1 }
 0x439   : > { %v7119_v11 = vpop.f32.mrb[161].mxu1 }
 0x43a   : > { %v7120_v35 = vadd.f32 %v7119_v11, %v7118_v7  ;;  %v7224_v36 = vpop.f32.mrb[220].mxu0  ;;  %v7121_v15 = vpop.f32.mrb[162].mxu1  ;;  %v4370_v7 = vld [vmem:[#allocation4 + $0x590] sm:$0xff] }
 0x43b   : > { %v7225_v58 = vpop.f32.mrb[221].mxu0  ;;  %v7122_v61 = vpop.f32.mrb[163].mxu1 }
 0x43c   : > { %v7226_v9 = vadd.f32 %v7225_v58, %v7224_v36  ;;  %v7123_v37 = vadd.f32 %v7122_v61, %v7121_v15  ;;  %v7227_v22 = vpop.f32.mrb[222].mxu0  ;;  %v4600_v58 = vpack.c.bf16 %v4370_v7, %v4360_v62  ;;  %v5450_v16 = vadd.f32 %v7120_v35, %v10186_v20 }
 0x43d   : > { %v7228_v6 = vpop.f32.mrb[223].mxu0  ;;  %6052 = vmatmul.mubr.bf16.gmra.mrb[12].mxu1 %v4590_v10 }
 0x43e   : > { %v10321_v29 = vadd.f32 %v7226_v9, %v5442_v52  ;;  %v7229_v60 = vadd.f32 %v7228_v6, %v7227_v22  ;;  %6059 = vmatprep.mubr.bf16.mxu1 %v10616_v55  ;;  %v5453_v42 = vadd.f32 %v7123_v37, %v10186_v20  ;;  %v10617_v6 = vpack.c.bf16 %v10165_v8, %v10162_v51  ;;  %v4380_v55 = vld [vmem:[#allocation4 + $0x5e0] sm:$0xff] }
 0x440   : > { %v10326_v47 = vadd.f32 %v7229_v60, %v5445_v30  ;;  %v7124_v3 = vpop.f32.mrb[164].mxu1 }
 0x441   : > { %v7125_v1 = vpop.f32.mrb[165].mxu1 }
 0x442   : > { %v7126_v50 = vadd.f32 %v7125_v1, %v7124_v3  ;;  %v7230_v19 = vpop.f32.mrb[224].mxu0  ;;  %v7127_v11 = vpop.f32.mrb[166].mxu1  ;;  %v4390_v3 = vld [vmem:[#allocation4 + $0x630] sm:$0xff] }
 0x443   : > { %v7231_v36 = vpop.f32.mrb[225].mxu0  ;;  %v7128_v15 = vpop.f32.mrb[167].mxu1 }
 0x444   : > { %v7232_v61 = vadd.f32 %v7231_v36, %v7230_v19  ;;  %v7129_v10 = vadd.f32 %v7128_v15, %v7127_v11  ;;  %v7233_v52 = vpop.f32.mrb[226].mxu0  ;;  %v4610_v36 = vpack.c.bf16 %v4390_v3, %v4380_v55  ;;  %v5458_v37 = vadd.f32 %v7126_v50, %v10186_v20 }
 0x445   : > { %v7234_v9 = vpop.f32.mrb[227].mxu0  ;;  %6060 = vmatmul.mubr.bf16.gmra.mrb[16].mxu1 %v4600_v58 }
 0x446   : > { %v10330_v48 = vadd.f32 %v7232_v61, %v5450_v16  ;;  %v7235_v22 = vadd.f32 %v7234_v9, %v7233_v52  ;;  %6067 = vmatprep.mubr.bf16.mxu1 %v10617_v6  ;;  %v5461_v51 = vadd.f32 %v7129_v10, %v10186_v20  ;;  %v10618_v9 = vpack.c.bf16 %v10173_v49, %v10170_v26  ;;  %v4400_v6 = vld [vmem:[#allocation4 + $0x680] sm:$0xff] }
 0x448   : > { %v10335_v30 = vadd.f32 %v7235_v22, %v5453_v42  ;;  %v7130_v60 = vpop.f32.mrb[168].mxu1 }
 0x449   : > { %v7131_v35 = vpop.f32.mrb[169].mxu1 }
 0x44a   : > { %v7132_v62 = vadd.f32 %v7131_v35, %v7130_v60  ;;  %v7236_v7 = vpop.f32.mrb[228].mxu0  ;;  %v7133_v1 = vpop.f32.mrb[170].mxu1  ;;  %v4410_v60 = vld [vmem:[#allocation4 + $0x6d0] sm:$0xff] }
 0x44b   : > { %v7237_v19 = vpop.f32.mrb[229].mxu0  ;;  %v7134_v11 = vpop.f32.mrb[171].mxu1 }
 0x44c   : > { %v7238_v15 = vadd.f32 %v7237_v19, %v7236_v7  ;;  %v7135_v58 = vadd.f32 %v7134_v11, %v7133_v1  ;;  %v7239_v16 = vpop.f32.mrb[230].mxu0  ;;  %v4620_v19 = vpack.c.bf16 %v4410_v60, %v4400_v6  ;;  %v5466_v10 = vadd.f32 %v7132_v62, %v10186_v20 }
 0x44d   : > { %v7240_v61 = vpop.f32.mrb[231].mxu0  ;;  %6068 = vmatmul.mubr.bf16.gmra.mrb[20].mxu1 %v4610_v36 }
 0x44e   : > { %v10339_v8 = vadd.f32 %v7238_v15, %v5458_v37  ;;  %v7241_v52 = vadd.f32 %v7240_v61, %v7239_v16  ;;  %6075 = vmatprep.mubr.bf16.mxu1 %v10618_v9  ;;  %v5469_v26 = vadd.f32 %v7135_v58, %v10186_v20  ;;  %v10619_v61 = vpack.c.bf16 %v10181_v38, %v10178_v43  ;;  %v4420_v9 = vld [vmem:[#allocation4 + $0x720] sm:$0xff] }
 0x450   : > { %v10344_v42 = vadd.f32 %v7241_v52, %v5461_v51  ;;  %v7136_v22 = vpop.f32.mrb[172].mxu1 }
 0x451   : > { %v7137_v50 = vpop.f32.mrb[173].mxu1 }
 0x452   : > { %v7138_v55 = vadd.f32 %v7137_v50, %v7136_v22  ;;  %v7242_v3 = vpop.f32.mrb[232].mxu0  ;;  %v7139_v35 = vpop.f32.mrb[174].mxu1  ;;  %v4430_v22 = vld [vmem:[#allocation4 + $0x770] sm:$0xff] }
 0x453   : > { %v7243_v7 = vpop.f32.mrb[233].mxu0  ;;  %v7140_v1 = vpop.f32.mrb[175].mxu1 }
 0x454   : > { %v7244_v11 = vadd.f32 %v7243_v7, %v7242_v3  ;;  %v7141_v36 = vadd.f32 %v7140_v1, %v7139_v35  ;;  %v7245_v37 = vpop.f32.mrb[234].mxu0  ;;  %v4630_v7 = vpack.c.bf16 %v4430_v22, %v4420_v9  ;;  %v5474_v58 = vadd.f32 %v7138_v55, %v10186_v20 }
 0x455   : > { %v7246_v15 = vpop.f32.mrb[235].mxu0  ;;  %6076 = vmatmul.mubr.bf16.gmra.mrb[24].mxu1 %v4620_v19 }
 0x456   : > { %v10348_v49 = vadd.f32 %v7244_v11, %v5466_v10  ;;  %v7247_v16 = vadd.f32 %v7246_v15, %v7245_v37  ;;  %6083 = vmatprep.mubr.bf16.mxu1 %v10619_v61  ;;  %v5477_v11 = vadd.f32 %v7141_v36, %v10186_v20 }
 0x458   : > { %v10353_v51 = vadd.f32 %v7247_v16, %v5469_v26  ;;  %v7270_v52 = vpop.f32.mrb[176].mxu1  ;;  %v10620_v16 = vpack.c.bf16 %v10202_v56, %v10199_v27 }
 0x459   : > { %v7271_v62 = vpop.f32.mrb[177].mxu1 }
 0x45a   : > { %v7248_v6 = vpop.f32.mrb[236].mxu0  ;;  %v7272_v60 = vadd.f32 %v7271_v62, %v7270_v52  ;;  %v7273_v50 = vpop.f32.mrb[178].mxu1  ;;  %v4450_v52 = vld [vmem:[#allocation4 + $0x810] sm:$0xff] }
 0x45b   : > { %v7249_v3 = vpop.f32.mrb[237].mxu0  ;;  %v7274_v35 = vpop.f32.mrb[179].mxu1 }
 0x45c   : > { %v5676_v1 = vadd.f32 %v7272_v60, %v10194_v54  ;;  %v7250_v19 = vadd.f32 %v7249_v3, %v7248_v6  ;;  %v7251_v10 = vpop.f32.mrb[238].mxu0  ;;  %v7275_v43 = vadd.f32 %v7274_v35, %v7273_v50  ;;  %v4440_v54 = vld [vmem:[#allocation4 + $0x7c0] sm:$0xff] }
 0x45d   : > { %v7252_v38 = vpop.f32.mrb[239].mxu0  ;;  %6084 = vmatmul.mubr.bf16.gmra.mrb[28].mxu1 %v4630_v7  ;;  %v4640_v36 = vpack.c.bf16 %v4450_v52, %v4440_v54 }
 0x45e   : > { %v10358_v37 = vadd.f32 %v7250_v19, %v5474_v58  ;;  %v5679_v15 = vadd.f32 %v7275_v43, %v10196_v40  ;;  %v7253_v26 = vadd.f32 %v7252_v38, %v7251_v10  ;;  %6091 = vmatprep.mubr.bf16.mxu1 %v10620_v16  ;;  %v10621_v19 = vpack.c.bf16 %v10216_v46, %v10213_v12  ;;  %v4460_v38 = vld [vmem:[#allocation4 + $0x860] sm:$0xff] }
 0x460   : > { %v10364_v61 = vadd.f32 %v7253_v26, %v5477_v11  ;;  %v7276_v55 = vpop.f32.mrb[180].mxu1  ;;  %v4470_v11 = vld [vmem:[#allocation4 + $0x8b0] sm:$0xff] }
 0x461   : > { %v7277_v9 = vpop.f32.mrb[181].mxu1 }
 0x462   : > { %v7278_v22 = vadd.f32 %v7277_v9, %v7276_v55  ;;  %v7382_v62 = vpop.f32.mrb[240].mxu0  ;;  %v7279_v6 = vpop.f32.mrb[182].mxu1 }
 0x463   : > { %v7383_v60 = vpop.f32.mrb[241].mxu0  ;;  %v7280_v20 = vpop.f32.mrb[183].mxu1 }
 0x464   : > { %v5684_v50 = vadd.f32 %v7278_v22, %v10208_v14  ;;  %v7384_v40 = vadd.f32 %v7383_v60, %v7382_v62  ;;  %v7281_v3 = vadd.f32 %v7280_v20, %v7279_v6  ;;  %v7385_v35 = vpop.f32.mrb[242].mxu0  ;;  %v10622_v60 = vpack.c.bf16 %v10230_v41, %v10227_v33 }
 0x465   : > { %v7386_v7 = vpop.f32.mrb[243].mxu0  ;;  %6092 = vmatmul.mubr.bf16.gmra.mrb[32].mxu1 %v4640_v36 }
 0x466   : > { %v10367_v27 = vadd.f32 %v7384_v40, %v5676_v1  ;;  %v5687_v56 = vadd.f32 %v7281_v3, %v10210_v57  ;;  %v7387_v58 = vadd.f32 %v7386_v7, %v7385_v35  ;;  %6099 = vmatprep.mubr.bf16.mxu1 %v10621_v19  ;;  %v4650_v1 = vpack.c.bf16 %v4470_v11, %v4460_v38  ;;  %v4480_v40 = vld [vmem:[#allocation4 + $0x900] sm:$0xff]  ;;  %v4490_v3 = vld [vmem:[#allocation4 + $0x950] sm:$0xff] }
 0x468   : > { %v10373_v10 = vadd.f32 %v7387_v58, %v5679_v15  ;;  %v7282_v43 = vpop.f32.mrb[184].mxu1 }
 0x469   : > { %v7283_v14 = vpop.f32.mrb[185].mxu1 }
 0x46a   : > { %v7284_v26 = vadd.f32 %v7283_v14, %v7282_v43  ;;  %v7388_v16 = vpop.f32.mrb[244].mxu0  ;;  %v7285_v55 = vpop.f32.mrb[186].mxu1 }
 0x46b   : > { %v7389_v54 = vpop.f32.mrb[245].mxu0  ;;  %v7286_v52 = vpop.f32.mrb[187].mxu1 }
 0x46c   : > { %v5692_v9 = vadd.f32 %v7284_v26, %v10222_v63  ;;  %v7390_v57 = vadd.f32 %v7389_v54, %v7388_v16  ;;  %v7287_v22 = vadd.f32 %v7286_v52, %v7285_v55  ;;  %v7391_v62 = vpop.f32.mrb[246].mxu0  ;;  %v10623_v16 = vpack.c.bf16 %v10251_v18, %v10248_v53  ;;  %v4510_v55 = vld [vmem:[#allocation4 + $0x9f0] sm:$0xff] }
 0x46d   : > { %v7392_v6 = vpop.f32.mrb[247].mxu0  ;;  %6100 = vmatmul.mubr.bf16.gmra.mrb[36].mxu1 %v4650_v1 }
 0x46e   : > { %v10376_v12 = vadd.f32 %v7390_v57, %v5684_v50  ;;  %v5695_v46 = vadd.f32 %v7287_v22, %v10224_v21  ;;  %v7393_v15 = vadd.f32 %v7392_v6, %v7391_v62  ;;  %6107 = vmatprep.mubr.bf16.mxu1 %v10622_v60  ;;  %v4660_v50 = vpack.c.bf16 %v4490_v3, %v4480_v40 }
 0x470   : > { %v10382_v20 = vadd.f32 %v7393_v15, %v5687_v56  ;;  %v7288_v36 = vpop.f32.mrb[188].mxu1 }
 0x471   : > { %v7289_v63 = vpop.f32.mrb[189].mxu1 }
 0x472   : > { %v7290_v35 = vadd.f32 %v7289_v63, %v7288_v36  ;;  %v7394_v7 = vpop.f32.mrb[248].mxu0  ;;  %v7291_v58 = vpop.f32.mrb[190].mxu1 }
 0x473   : > { %v7395_v19 = vpop.f32.mrb[249].mxu0  ;;  %v7292_v43 = vpop.f32.mrb[191].mxu1 }
 0x474   : > { %v5700_v38 = vadd.f32 %v7290_v35, %v10240_v31  ;;  %v7396_v21 = vadd.f32 %v7395_v19, %v7394_v7  ;;  %v7293_v11 = vadd.f32 %v7292_v43, %v7291_v58  ;;  %v7397_v14 = vpop.f32.mrb[250].mxu0  ;;  %v4670_v31 = vpack.c.bf16 %v4510_v55, %v10235_v25 }
 0x475   : > { %v7398_v26 = vpop.f32.mrb[251].mxu0  ;;  %6108 = vmatmul.mubr.bf16.gmra.mrb[40].mxu1 %v4660_v50 }
 0x476   : > { %v10385_v33 = vadd.f32 %v7396_v21, %v5692_v9  ;;  %v5703_v41 = vadd.f32 %v7293_v11, %v10245_v28  ;;  %v7399_v56 = vadd.f32 %v7398_v26, %v7397_v14  ;;  %6115 = vmatprep.mubr.bf16.mxu1 %v10623_v16 }
 0x478   : > { %v10391_v54 = vadd.f32 %v7399_v56, %v5695_v46  ;;  %v7294_v52 = vpop.f32.mrb[192].mxu1 }
 0x479   : > { %v7295_v1 = vpop.f32.mrb[193].mxu1 }
 0x47a   : > { %v7296_v57 = vadd.f32 %v7295_v1, %v7294_v52  ;;  %v7400_v22 = vpop.f32.mrb[252].mxu0  ;;  %v7297_v62 = vpop.f32.mrb[194].mxu1 }
 0x47b   : > { %v7401_v6 = vpop.f32.mrb[253].mxu0  ;;  %v7298_v9 = vpop.f32.mrb[195].mxu1 }
 0x47c   : > { %v5708_v15 = vadd.f32 %v7296_v57, %v10258_v0  ;;  %v7402_v28 = vadd.f32 %v7401_v6, %v7400_v22  ;;  %v7299_v60 = vadd.f32 %v7298_v9, %v7297_v62  ;;  %v7403_v36 = vpop.f32.mrb[254].mxu0 }
 0x47d   : > { %v7404_v40 = vpop.f32.mrb[255].mxu0  ;;  %6116 = vmatmul.mubr.bf16.gmra.mrb[44].mxu1 %v4670_v31 }
 0x47e   : > { %v10395_v53 = vadd.f32 %v7402_v28, %v5700_v38  ;;  %v5711_v18 = vadd.f32 %v7299_v60, %v10263_v59  ;;  %v7405_v46 = vadd.f32 %v7404_v40, %v7403_v36 }
 0x480   : > { %v10398_v3 = vadd.f32 %v7405_v46, %v5703_v41  ;;  %v7300_v25 = vpop.f32.mrb[196].mxu1 }
 0x481   : > { %v7301_v63 = vpop.f32.mrb[197].mxu1 }
 0x482   : > { %v7302_v35 = vadd.f32 %v7301_v63, %v7300_v25  ;;  %v7406_v7 = vpop.f32.mrb[0].mxu0  ;;  %v7303_v58 = vpop.f32.mrb[198].mxu1 }
 0x483   : > { %v7407_v19 = vpop.f32.mrb[1].mxu0  ;;  %v7304_v43 = vpop.f32.mrb[199].mxu1 }
 0x484   : > { %v5716_v0 = vadd.f32 %v7302_v35, %v10267_v45  ;;  %v7408_v50 = vadd.f32 %v7407_v19, %v7406_v7  ;;  %v7305_v21 = vadd.f32 %v7304_v43, %v7303_v58  ;;  %v7409_v11 = vpop.f32.mrb[2].mxu0 }
 0x485   : > { %v7410_v14 = vpop.f32.mrb[3].mxu0 }
 0x486   : > { %v10401_v38 = vadd.f32 %v7408_v50, %v5708_v15  ;;  %v5719_v59 = vadd.f32 %v7305_v21, %v10272_v44  ;;  %v7411_v26 = vadd.f32 %v7410_v14, %v7409_v11 }
 0x488   : > { %v10404_v41 = vadd.f32 %v7411_v26, %v5711_v18  ;;  %v7306_v56 = vpop.f32.mrb[200].mxu1 }
 0x489   : > { %v7307_v16 = vpop.f32.mrb[201].mxu1 }
 0x48a   : > { %v7308_v55 = vadd.f32 %v7307_v16, %v7306_v56  ;;  %v7412_v52 = vpop.f32.mrb[4].mxu0  ;;  %v7309_v1 = vpop.f32.mrb[202].mxu1 }
 0x48b   : > { %v7413_v31 = vpop.f32.mrb[5].mxu0  ;;  %v7310_v57 = vpop.f32.mrb[203].mxu1 }
 0x48c   : > { %v5724_v45 = vadd.f32 %v7308_v55, %v10276_v34  ;;  %v7414_v22 = vadd.f32 %v7413_v31, %v7412_v52  ;;  %v7311_v62 = vadd.f32 %v7310_v57, %v7309_v1  ;;  %v7415_v6 = vpop.f32.mrb[6].mxu0 }
 0x48d   : > { %v7416_v9 = vpop.f32.mrb[7].mxu0 }
 0x48e   : > { %v10407_v15 = vadd.f32 %v7414_v22, %v5716_v0  ;;  %v5727_v44 = vadd.f32 %v7311_v62, %v10281_v13  ;;  %v7417_v28 = vadd.f32 %v7416_v9, %v7415_v6 }
 0x490   : > { %v10410_v60 = vadd.f32 %v7417_v28, %v5719_v59  ;;  %v7312_v36 = vpop.f32.mrb[204].mxu1 }
 0x491   : > { %v7313_v40 = vpop.f32.mrb[205].mxu1 }
 0x492   : > { %v7314_v18 = vadd.f32 %v7313_v40, %v7312_v36  ;;  %v7418_v46 = vpop.f32.mrb[8].mxu0  ;;  %v7315_v25 = vpop.f32.mrb[206].mxu1 }
 0x493   : > { %v7419_v63 = vpop.f32.mrb[9].mxu0  ;;  %v7316_v35 = vpop.f32.mrb[207].mxu1 }
 0x494   : > { %v5732_v34 = vadd.f32 %v7314_v18, %v10285_v23  ;;  %v7420_v7 = vadd.f32 %v7419_v63, %v7418_v46  ;;  %v7317_v58 = vadd.f32 %v7316_v35, %v7315_v25  ;;  %v7421_v19 = vpop.f32.mrb[10].mxu0 }
 0x495   : > { %v7422_v43 = vpop.f32.mrb[11].mxu0 }
 0x496   : > { %v10413_v0 = vadd.f32 %v7420_v7, %v5724_v45  ;;  %v5735_v13 = vadd.f32 %v7317_v58, %v10290_v17  ;;  %v7423_v50 = vadd.f32 %v7422_v43, %v7421_v19 }
 0x498   : > { %v10416_v21 = vadd.f32 %v7423_v50, %v5727_v44  ;;  %v7318_v11 = vpop.f32.mrb[208].mxu1 }
 0x499   : > { %v7319_v14 = vpop.f32.mrb[209].mxu1 }
 0x49a   : > { %v7320_v59 = vadd.f32 %v7319_v14, %v7318_v11  ;;  %v7424_v26 = vpop.f32.mrb[12].mxu0  ;;  %v7321_v56 = vpop.f32.mrb[210].mxu1 }
 0x49b   : > { %v7425_v16 = vpop.f32.mrb[13].mxu0  ;;  %v7322_v55 = vpop.f32.mrb[211].mxu1 }
 0x49c   : > { %v5740_v23 = vadd.f32 %v7320_v59, %v10294_v39  ;;  %v7426_v52 = vadd.f32 %v7425_v16, %v7424_v26  ;;  %v7323_v1 = vadd.f32 %v7322_v55, %v7321_v56  ;;  %v7427_v31 = vpop.f32.mrb[14].mxu0 }
 0x49d   : > { %v7428_v57 = vpop.f32.mrb[15].mxu0 }
 0x49e   : > { %v10419_v45 = vadd.f32 %v7426_v52, %v5732_v34  ;;  %v5743_v17 = vadd.f32 %v7323_v1, %v10299_v32  ;;  %v7429_v22 = vadd.f32 %v7428_v57, %v7427_v31 }
 0x4a0   : > { %v10422_v62 = vadd.f32 %v7429_v22, %v5735_v13  ;;  %v7324_v6 = vpop.f32.mrb[212].mxu1 }
 0x4a1   : > { %v7325_v9 = vpop.f32.mrb[213].mxu1 }
 0x4a2   : > { %v7326_v44 = vadd.f32 %v7325_v9, %v7324_v6  ;;  %v7430_v28 = vpop.f32.mrb[16].mxu0  ;;  %v7327_v36 = vpop.f32.mrb[214].mxu1 }
 0x4a3   : > { %v7431_v40 = vpop.f32.mrb[17].mxu0  ;;  %v7328_v18 = vpop.f32.mrb[215].mxu1 }
 0x4a4   : > { %v5748_v39 = vadd.f32 %v7326_v44, %v10303_v4  ;;  %v7432_v46 = vadd.f32 %v7431_v40, %v7430_v28  ;;  %v7329_v25 = vadd.f32 %v7328_v18, %v7327_v36  ;;  %v7433_v63 = vpop.f32.mrb[18].mxu0 }
 0x4a5   : > { %v7434_v35 = vpop.f32.mrb[19].mxu0 }
 0x4a6   : > { %v10425_v34 = vadd.f32 %v7432_v46, %v5740_v23  ;;  %v5751_v32 = vadd.f32 %v7329_v25, %v10308_v2  ;;  %v7435_v7 = vadd.f32 %v7434_v35, %v7433_v63 }
 0x4a8   : > { %v10428_v58 = vadd.f32 %v7435_v7, %v5743_v17  ;;  %v7330_v19 = vpop.f32.mrb[216].mxu1 }
 0x4a9   : > { %v7331_v43 = vpop.f32.mrb[217].mxu1 }
 0x4aa   : > { %v7332_v13 = vadd.f32 %v7331_v43, %v7330_v19  ;;  %v7436_v50 = vpop.f32.mrb[20].mxu0  ;;  %v7333_v11 = vpop.f32.mrb[218].mxu1 }
 0x4ab   : > { %v7437_v14 = vpop.f32.mrb[21].mxu0  ;;  %v7334_v59 = vpop.f32.mrb[219].mxu1 }
 0x4ac   : > { %v5756_v4 = vadd.f32 %v7332_v13, %v10312_v24  ;;  %v7438_v26 = vadd.f32 %v7437_v14, %v7436_v50  ;;  %v7335_v56 = vadd.f32 %v7334_v59, %v7333_v11  ;;  %v7439_v16 = vpop.f32.mrb[22].mxu0 }
 0x4ad   : > { %v7440_v55 = vpop.f32.mrb[23].mxu0 }
 0x4ae   : > { %v10431_v23 = vadd.f32 %v7438_v26, %v5748_v39  ;;  %v5759_v2 = vadd.f32 %v7335_v56, %v10317_v5  ;;  %v7441_v52 = vadd.f32 %v7440_v55, %v7439_v16 }
 0x4b0   : > { %v10434_v1 = vadd.f32 %v7441_v52, %v5751_v32  ;;  %v7336_v31 = vpop.f32.mrb[220].mxu1 }
 0x4b1   : > { %v7337_v57 = vpop.f32.mrb[221].mxu1 }
 0x4b2   : > { %v7338_v17 = vadd.f32 %v7337_v57, %v7336_v31  ;;  %v7442_v22 = vpop.f32.mrb[24].mxu0  ;;  %v7339_v6 = vpop.f32.mrb[222].mxu1 }
 0x4b3   : > { %v7443_v9 = vpop.f32.mrb[25].mxu0  ;;  %v7340_v44 = vpop.f32.mrb[223].mxu1 }
 0x4b4   : > { %v5764_v24 = vadd.f32 %v7338_v17, %v10321_v29  ;;  %v7444_v28 = vadd.f32 %v7443_v9, %v7442_v22  ;;  %v7341_v36 = vadd.f32 %v7340_v44, %v7339_v6  ;;  %v7445_v40 = vpop.f32.mrb[26].mxu0 }
 0x4b5   : > { %v7446_v18 = vpop.f32.mrb[27].mxu0 }
 0x4b6   : > { %v10437_v39 = vadd.f32 %v7444_v28, %v5756_v4  ;;  %v5767_v5 = vadd.f32 %v7341_v36, %v10326_v47  ;;  %v7447_v46 = vadd.f32 %v7446_v18, %v7445_v40 }
 0x4b8   : > { %v10440_v25 = vadd.f32 %v7447_v46, %v5759_v2  ;;  %v7342_v63 = vpop.f32.mrb[224].mxu1 }
 0x4b9   : > { %v7343_v35 = vpop.f32.mrb[225].mxu1 }
 0x4ba   : > { %v7344_v32 = vadd.f32 %v7343_v35, %v7342_v63  ;;  %v7448_v7 = vpop.f32.mrb[28].mxu0  ;;  %v7345_v19 = vpop.f32.mrb[226].mxu1 }
 0x4bb   : > { %v7449_v43 = vpop.f32.mrb[29].mxu0  ;;  %v7346_v13 = vpop.f32.mrb[227].mxu1 }
 0x4bc   : > { %v5772_v29 = vadd.f32 %v7344_v32, %v10330_v48  ;;  %v7450_v50 = vadd.f32 %v7449_v43, %v7448_v7  ;;  %v7347_v11 = vadd.f32 %v7346_v13, %v7345_v19  ;;  %v7451_v14 = vpop.f32.mrb[30].mxu0 }
 0x4bd   : > { %v7452_v59 = vpop.f32.mrb[31].mxu0 }
 0x4be   : > { %v10443_v4 = vadd.f32 %v7450_v50, %v5764_v24  ;;  %v5775_v47 = vadd.f32 %v7347_v11, %v10335_v30  ;;  %v7453_v26 = vadd.f32 %v7452_v59, %v7451_v14 }
 0x4c0   : > { %v10446_v56 = vadd.f32 %v7453_v26, %v5767_v5  ;;  %v7348_v16 = vpop.f32.mrb[228].mxu1 }
 0x4c1   : > { %v7349_v55 = vpop.f32.mrb[229].mxu1 }
 0x4c2   : > { %v7350_v2 = vadd.f32 %v7349_v55, %v7348_v16  ;;  %v7454_v52 = vpop.f32.mrb[32].mxu0  ;;  %v7351_v31 = vpop.f32.mrb[230].mxu1 }
 0x4c3   : > { %v7455_v57 = vpop.f32.mrb[33].mxu0  ;;  %v7352_v17 = vpop.f32.mrb[231].mxu1 }
 0x4c4   : > { %v5780_v48 = vadd.f32 %v7350_v2, %v10339_v8  ;;  %v7456_v22 = vadd.f32 %v7455_v57, %v7454_v52  ;;  %v7353_v6 = vadd.f32 %v7352_v17, %v7351_v31  ;;  %v7457_v9 = vpop.f32.mrb[34].mxu0 }
 0x4c5   : > { %v7458_v44 = vpop.f32.mrb[35].mxu0 }
 0x4c6   : > { %v10449_v24 = vadd.f32 %v7456_v22, %v5772_v29  ;;  %v5783_v30 = vadd.f32 %v7353_v6, %v10344_v42  ;;  %v7459_v28 = vadd.f32 %v7458_v44, %v7457_v9 }
 0x4c8   : > { %v10452_v36 = vadd.f32 %v7459_v28, %v5775_v47  ;;  %v7354_v40 = vpop.f32.mrb[232].mxu1 }
 0x4c9   : > { %v7355_v18 = vpop.f32.mrb[233].mxu1 }
 0x4ca   : > { %v7356_v5 = vadd.f32 %v7355_v18, %v7354_v40  ;;  %v7460_v46 = vpop.f32.mrb[36].mxu0  ;;  %v7357_v63 = vpop.f32.mrb[234].mxu1 }
 0x4cb   : > { %v7461_v35 = vpop.f32.mrb[37].mxu0  ;;  %v7358_v32 = vpop.f32.mrb[235].mxu1 }
 0x4cc   : > { %v5788_v8 = vadd.f32 %v7356_v5, %v10348_v49  ;;  %v7462_v7 = vadd.f32 %v7461_v35, %v7460_v46  ;;  %v7359_v19 = vadd.f32 %v7358_v32, %v7357_v63  ;;  %v7463_v43 = vpop.f32.mrb[38].mxu0 }
 0x4cd   : > { %v7464_v13 = vpop.f32.mrb[39].mxu0 }
 0x4ce   : > { %v10455_v29 = vadd.f32 %v7462_v7, %v5780_v48  ;;  %v5791_v42 = vadd.f32 %v7359_v19, %v10353_v51  ;;  %v7465_v50 = vadd.f32 %v7464_v13, %v7463_v43 }
 0x4d0   : > { %v10458_v11 = vadd.f32 %v7465_v50, %v5783_v30  ;;  %v7360_v14 = vpop.f32.mrb[236].mxu1 }
 0x4d1   : > { %v7361_v59 = vpop.f32.mrb[237].mxu1 }
 0x4d2   : > { %v7362_v47 = vadd.f32 %v7361_v59, %v7360_v14  ;;  %v7466_v26 = vpop.f32.mrb[40].mxu0  ;;  %v7363_v16 = vpop.f32.mrb[238].mxu1 }
 0x4d3   : > { %v7467_v55 = vpop.f32.mrb[41].mxu0  ;;  %v7364_v2 = vpop.f32.mrb[239].mxu1 }
 0x4d4   : > { %v5796_v49 = vadd.f32 %v7362_v47, %v10358_v37  ;;  %v7468_v52 = vadd.f32 %v7467_v55, %v7466_v26  ;;  %v7365_v31 = vadd.f32 %v7364_v2, %v7363_v16  ;;  %v7469_v57 = vpop.f32.mrb[42].mxu0 }
 0x4d5   : > { %v7470_v17 = vpop.f32.mrb[43].mxu0 }
 0x4d6   : > { %v10461_v48 = vadd.f32 %v7468_v52, %v5788_v8  ;;  %v5799_v51 = vadd.f32 %v7365_v31, %v10364_v61  ;;  %v7471_v22 = vadd.f32 %v7470_v17, %v7469_v57 }
 0x4d8   : > { %v10464_v6 = vadd.f32 %v7471_v22, %v5791_v42  ;;  %v7494_v9 = vpop.f32.mrb[240].mxu1 }
 0x4d9   : > { %v7495_v44 = vpop.f32.mrb[241].mxu1 }
 0x4da   : > { %v7472_v30 = vpop.f32.mrb[44].mxu0  ;;  %v7496_v28 = vadd.f32 %v7495_v44, %v7494_v9  ;;  %v7497_v40 = vpop.f32.mrb[242].mxu1 }
 0x4db   : > { %v7473_v18 = vpop.f32.mrb[45].mxu0  ;;  %v7498_v5 = vpop.f32.mrb[243].mxu1 }
 0x4dc   : > { %v5998_v37 = vadd.f32 %v7496_v28, %v10367_v27  ;;  %v7474_v46 = vadd.f32 %v7473_v18, %v7472_v30  ;;  %v7475_v63 = vpop.f32.mrb[46].mxu0  ;;  %v7499_v35 = vadd.f32 %v7498_v5, %v7497_v40 }
 0x4dd   : > { %v7476_v32 = vpop.f32.mrb[47].mxu0 }
 0x4de   : > { %v6124_v8 = vmax.f32 %v5998_v37, 0.0  ;;  %v10467_v7 = vadd.f32 %v7474_v46, %v5796_v49  ;;  %v6001_v61 = vadd.f32 %v7499_v35, %v10373_v10  ;;  %v7477_v19 = vadd.f32 %v7476_v32, %v7475_v63 }
 0x4e0   : > { %6156 = vst [vmem:[%s10472_s11] sm:$0xff] %v6124_v8  ;;  %v6125_v43 = vmax.f32 %v6001_v61, 0.0  ;;  %v10475_v27 = vadd.f32 %v7477_v19, %v5799_v51  ;;  %v7500_v13 = vpop.f32.mrb[244].mxu1 }
 0x4e1   : > { %v7501_v42 = vpop.f32.mrb[245].mxu1 }
 0x4e2   : > { %6157 = vst [vmem:[%s10472_s11 + $0x8] sm:$0xff] %v6125_v43  ;;  %v7502_v50 = vadd.f32 %v7501_v42, %v7500_v13  ;;  %v7503_v14 = vpop.f32.mrb[246].mxu1 }
 0x4e3   : > { %v7504_v59 = vpop.f32.mrb[247].mxu1 }
 0x4e4   : > { %v6006_v10 = vadd.f32 %v7502_v50, %v10376_v12  ;;  %v7505_v47 = vadd.f32 %v7504_v59, %v7503_v14 }
 0x4e6   : > { %v6126_v26 = vmax.f32 %v6006_v10, 0.0  ;;  %v6009_v16 = vadd.f32 %v7505_v47, %v10382_v20 }
 0x4e8   : > { %6158 = vst [vmem:[%s10472_s11 + $0x10] sm:$0xff] %v6126_v26  ;;  %v6127_v55 = vmax.f32 %v6009_v16, 0.0  ;;  %v7506_v2 = vpop.f32.mrb[248].mxu1 }
 0x4e9   : > { %v7507_v49 = vpop.f32.mrb[249].mxu1 }
 0x4ea   : > { %6159 = vst [vmem:[%s10472_s11 + $0x18] sm:$0xff] %v6127_v55  ;;  %v7508_v52 = vadd.f32 %v7507_v49, %v7506_v2  ;;  %v7509_v31 = vpop.f32.mrb[250].mxu1 }
 0x4eb   : > { %v7510_v57 = vpop.f32.mrb[251].mxu1 }
 0x4ec   : > { %v6014_v17 = vadd.f32 %v7508_v52, %v10385_v33  ;;  %v7511_v51 = vadd.f32 %v7510_v57, %v7509_v31 }
 0x4ee   : > { %v6128_v22 = vmax.f32 %v6014_v17, 0.0  ;;  %v6017_v12 = vadd.f32 %v7511_v51, %v10391_v54 }
 0x4f0   : > { %6160 = vst [vmem:[%s10472_s11 + $0x20] sm:$0xff] %v6128_v22  ;;  %v6129_v9 = vmax.f32 %v6017_v12, 0.0  ;;  %v7512_v20 = vpop.f32.mrb[252].mxu1 }
 0x4f1   : > { %v7513_v44 = vpop.f32.mrb[253].mxu1 }
 0x4f2   : > { %6161 = vst [vmem:[%s10472_s11 + $0x28] sm:$0xff] %v6129_v9  ;;  %v7514_v30 = vadd.f32 %v7513_v44, %v7512_v20  ;;  %v7515_v28 = vpop.f32.mrb[254].mxu1 }
 0x4f3   : > { %v7516_v40 = vpop.f32.mrb[255].mxu1 }
 0x4f4   : > { %v6022_v18 = vadd.f32 %v7514_v30, %v10395_v53  ;;  %v7517_v5 = vadd.f32 %v7516_v40, %v7515_v28 }
 0x4f6   : > { %v6130_v37 = vmax.f32 %v6022_v18, 0.0  ;;  %v6025_v33 = vadd.f32 %v7517_v5, %v10398_v3 }
 0x4f8   : > { %6162 = vst [vmem:[%s10472_s11 + $0x30] sm:$0xff] %v6130_v37  ;;  %v6131_v46 = vmax.f32 %v6025_v33, 0.0  ;;  %v7518_v54 = vpop.f32.mrb[0].mxu1 }
 0x4f9   : > { %v7519_v63 = vpop.f32.mrb[1].mxu1 }
 0x4fa   : > { %6163 = vst [vmem:[%s10472_s11 + $0x38] sm:$0xff] %v6131_v46  ;;  %v7520_v35 = vadd.f32 %v7519_v63, %v7518_v54  ;;  %v7521_v32 = vpop.f32.mrb[2].mxu1 }
 0x4fb   : > { %v7522_v8 = vpop.f32.mrb[3].mxu1 }
 0x4fc   : > { %v6030_v61 = vadd.f32 %v7520_v35, %v10401_v38  ;;  %v7523_v19 = vadd.f32 %v7522_v8, %v7521_v32 }
 0x4fe   : > { %v6132_v43 = vmax.f32 %v6030_v61, 0.0  ;;  %v6033_v53 = vadd.f32 %v7523_v19, %v10404_v41 }
 0x500   : > { %6164 = vst [vmem:[%s10472_s11 + $0x40] sm:$0xff] %v6132_v43  ;;  %v6133_v13 = vmax.f32 %v6033_v53, 0.0  ;;  %v7524_v3 = vpop.f32.mrb[4].mxu1 }
 0x501   : > { %v7525_v42 = vpop.f32.mrb[5].mxu1 }
 0x502   : > { %6165 = vst [vmem:[%s10472_s11 + $0x48] sm:$0xff] %v6133_v13  ;;  %v7526_v50 = vadd.f32 %v7525_v42, %v7524_v3  ;;  %v7527_v14 = vpop.f32.mrb[6].mxu1 }
 0x503   : > { %v7528_v59 = vpop.f32.mrb[7].mxu1 }
 0x504   : > { %v6038_v10 = vadd.f32 %v7526_v50, %v10407_v15  ;;  %v7529_v47 = vadd.f32 %v7528_v59, %v7527_v14 }
 0x506   : > { %v6134_v26 = vmax.f32 %v6038_v10, 0.0  ;;  %v6041_v38 = vadd.f32 %v7529_v47, %v10410_v60 }
 0x508   : > { %6166 = vst [vmem:[%s10472_s11 + $0x50] sm:$0xff] %v6134_v26  ;;  %v6135_v16 = vmax.f32 %v6041_v38, 0.0  ;;  %v7530_v41 = vpop.f32.mrb[8].mxu1 }
 0x509   : > { %v7531_v55 = vpop.f32.mrb[9].mxu1 }
 0x50a   : > { %6167 = vst [vmem:[%s10472_s11 + $0x58] sm:$0xff] %v6135_v16  ;;  %v7532_v2 = vadd.f32 %v7531_v55, %v7530_v41  ;;  %v7533_v49 = vpop.f32.mrb[10].mxu1 }
 0x50b   : > { %v7534_v52 = vpop.f32.mrb[11].mxu1 }
 0x50c   : > { %v6046_v31 = vadd.f32 %v7532_v2, %v10413_v0  ;;  %v7535_v57 = vadd.f32 %v7534_v52, %v7533_v49 }
 0x50e   : > { %v6136_v17 = vmax.f32 %v6046_v31, 0.0  ;;  %v6049_v15 = vadd.f32 %v7535_v57, %v10416_v21 }
 0x510   : > { %6168 = vst [vmem:[%s10472_s11 + $0x60] sm:$0xff] %v6136_v17  ;;  %v6137_v51 = vmax.f32 %v6049_v15, 0.0  ;;  %v7536_v60 = vpop.f32.mrb[12].mxu1 }
 0x511   : > { %v7537_v22 = vpop.f32.mrb[13].mxu1 }
 0x512   : > { %6169 = vst [vmem:[%s10472_s11 + $0x68] sm:$0xff] %v6137_v51  ;;  %v7538_v12 = vadd.f32 %v7537_v22, %v7536_v60  ;;  %v7539_v9 = vpop.f32.mrb[14].mxu1 }
 0x513   : > { %v7540_v20 = vpop.f32.mrb[15].mxu1 }
 0x514   : > { %v6054_v44 = vadd.f32 %v7538_v12, %v10419_v45  ;;  %v7541_v30 = vadd.f32 %v7540_v20, %v7539_v9 }
 0x516   : > { %v6138_v28 = vmax.f32 %v6054_v44, 0.0  ;;  %v6057_v0 = vadd.f32 %v7541_v30, %v10422_v62 }
 0x518   : > { %6170 = vst [vmem:[%s10472_s11 + $0x70] sm:$0xff] %v6138_v28  ;;  %v6139_v40 = vmax.f32 %v6057_v0, 0.0  ;;  %v7542_v21 = vpop.f32.mrb[16].mxu1 }
 0x519   : > { %v7543_v18 = vpop.f32.mrb[17].mxu1 }
 0x51a   : > { %6171 = vst [vmem:[%s10472_s11 + $0x78] sm:$0xff] %v6139_v40  ;;  %v7544_v5 = vadd.f32 %v7543_v18, %v7542_v21  ;;  %v7545_v37 = vpop.f32.mrb[18].mxu1 }
 0x51b   : > { %v7546_v33 = vpop.f32.mrb[19].mxu1 }
 0x51c   : > { %v6062_v46 = vadd.f32 %v7544_v5, %v10425_v34  ;;  %v7547_v54 = vadd.f32 %v7546_v33, %v7545_v37 }
 0x51e   : > { %v6140_v63 = vmax.f32 %v6062_v46, 0.0  ;;  %v6065_v45 = vadd.f32 %v7547_v54, %v10428_v58 }
 0x520   : > { %6172 = vst [vmem:[%s10472_s11 + $0x80] sm:$0xff] %v6140_v63  ;;  %v6141_v35 = vmax.f32 %v6065_v45, 0.0  ;;  %v7548_v62 = vpop.f32.mrb[20].mxu1 }
 0x521   : > { %v7549_v32 = vpop.f32.mrb[21].mxu1 }
 0x522   : > { %6173 = vst [vmem:[%s10472_s11 + $0x88] sm:$0xff] %v6141_v35  ;;  %v7550_v8 = vadd.f32 %v7549_v32, %v7548_v62  ;;  %v7551_v61 = vpop.f32.mrb[22].mxu1 }
 0x523   : > { %v7552_v19 = vpop.f32.mrb[23].mxu1 }
 0x524   : > { %v6070_v43 = vadd.f32 %v7550_v8, %v10431_v23  ;;  %v7553_v53 = vadd.f32 %v7552_v19, %v7551_v61 }
 0x526   : > { %v6142_v13 = vmax.f32 %v6070_v43, 0.0  ;;  %v6073_v34 = vadd.f32 %v7553_v53, %v10434_v1 }
 0x528   : > { %6174 = vst [vmem:[%s10472_s11 + $0x90] sm:$0xff] %v6142_v13  ;;  %v6143_v3 = vmax.f32 %v6073_v34, 0.0  ;;  %v7554_v58 = vpop.f32.mrb[24].mxu1 }
 0x529   : > { %v7555_v42 = vpop.f32.mrb[25].mxu1 }
 0x52a   : > { %6175 = vst [vmem:[%s10472_s11 + $0x98] sm:$0xff] %v6143_v3  ;;  %v7556_v50 = vadd.f32 %v7555_v42, %v7554_v58  ;;  %v7557_v14 = vpop.f32.mrb[26].mxu1 }
 0x52b   : > { %v7558_v59 = vpop.f32.mrb[27].mxu1 }
 0x52c   : > { %v6078_v10 = vadd.f32 %v7556_v50, %v10437_v39  ;;  %v7559_v47 = vadd.f32 %v7558_v59, %v7557_v14 }
 0x52e   : > { %v6144_v26 = vmax.f32 %v6078_v10, 0.0  ;;  %v6081_v23 = vadd.f32 %v7559_v47, %v10440_v25 }
 0x530   : > { %6176 = vst [vmem:[%s10472_s11 + $0xa0] sm:$0xff] %v6144_v26  ;;  %v6145_v38 = vmax.f32 %v6081_v23, 0.0  ;;  %v7560_v1 = vpop.f32.mrb[28].mxu1 }
 0x531   : > { %v7561_v16 = vpop.f32.mrb[29].mxu1 }
 0x532   : > { %6177 = vst [vmem:[%s10472_s11 + $0xa8] sm:$0xff] %v6145_v38  ;;  %v7562_v41 = vadd.f32 %v7561_v16, %v7560_v1  ;;  %v7563_v55 = vpop.f32.mrb[30].mxu1 }
 0x533   : > { %v7564_v2 = vpop.f32.mrb[31].mxu1 }
 0x534   : > { %v6086_v49 = vadd.f32 %v7562_v41, %v10443_v4  ;;  %v7565_v52 = vadd.f32 %v7564_v2, %v7563_v55 }
 0x536   : > { %v6146_v31 = vmax.f32 %v6086_v49, 0.0  ;;  %v6089_v39 = vadd.f32 %v7565_v52, %v10446_v56 }
 0x538   : > { %6178 = vst [vmem:[%s10472_s11 + $0xb0] sm:$0xff] %v6146_v31  ;;  %v6147_v57 = vmax.f32 %v6089_v39, 0.0  ;;  %v7566_v25 = vpop.f32.mrb[32].mxu1 }
 0x539   : > { %v7567_v17 = vpop.f32.mrb[33].mxu1 }
 0x53a   : > { %6179 = vst [vmem:[%s10472_s11 + $0xb8] sm:$0xff] %v6147_v57  ;;  %v7568_v15 = vadd.f32 %v7567_v17, %v7566_v25  ;;  %v7569_v51 = vpop.f32.mrb[34].mxu1 }
 0x53b   : > { %v7570_v60 = vpop.f32.mrb[35].mxu1 }
 0x53c   : > { %v6094_v22 = vadd.f32 %v7568_v15, %v10449_v24  ;;  %v7571_v12 = vadd.f32 %v7570_v60, %v7569_v51 }
 0x53e   : > { %v6148_v9 = vmax.f32 %v6094_v22, 0.0  ;;  %v6097_v4 = vadd.f32 %v7571_v12, %v10452_v36 }
 0x540   : > { %6180 = vst [vmem:[%s10472_s11 + $0xc0] sm:$0xff] %v6148_v9  ;;  %v6149_v20 = vmax.f32 %v6097_v4, 0.0  ;;  %v7572_v56 = vpop.f32.mrb[36].mxu1 }
 0x541   : > { %v7573_v44 = vpop.f32.mrb[37].mxu1 }
 0x542   : > { %6181 = vst [vmem:[%s10472_s11 + $0xc8] sm:$0xff] %v6149_v20  ;;  %v7574_v30 = vadd.f32 %v7573_v44, %v7572_v56  ;;  %v7575_v28 = vpop.f32.mrb[38].mxu1 }
 0x543   : > { %v7576_v0 = vpop.f32.mrb[39].mxu1 }
 0x544   : > { %v6102_v40 = vadd.f32 %v7574_v30, %v10455_v29  ;;  %v7577_v21 = vadd.f32 %v7576_v0, %v7575_v28 }
 0x546   : > { %v6150_v18 = vmax.f32 %v6102_v40, 0.0  ;;  %v6105_v24 = vadd.f32 %v7577_v21, %v10458_v11 }
 0x548   : > { %6182 = vst [vmem:[%s10472_s11 + $0xd0] sm:$0xff] %v6150_v18  ;;  %v6151_v5 = vmax.f32 %v6105_v24, 0.0  ;;  %v7578_v36 = vpop.f32.mrb[40].mxu1 }
 0x549   : > { %v7579_v37 = vpop.f32.mrb[41].mxu1 }
 0x54a   : > { %6183 = vst [vmem:[%s10472_s11 + $0xd8] sm:$0xff] %v6151_v5  ;;  %v7580_v33 = vadd.f32 %v7579_v37, %v7578_v36  ;;  %v7581_v46 = vpop.f32.mrb[42].mxu1 }
 0x54b   : > { %v7582_v54 = vpop.f32.mrb[43].mxu1 }
 0x54c   : > { %v6110_v63 = vadd.f32 %v7580_v33, %v10461_v48  ;;  %v7583_v45 = vadd.f32 %v7582_v54, %v7581_v46 }
 0x54e   : > { %v6152_v29 = vmax.f32 %v6110_v63, 0.0  ;;  %v6113_v35 = vadd.f32 %v7583_v45, %v10464_v6 }
 0x550   : > { %6184 = vst [vmem:[%s10472_s11 + $0xe0] sm:$0xff] %v6152_v29  ;;  %v6153_v11 = vmax.f32 %v6113_v35, 0.0  ;;  %v7584_v62 = vpop.f32.mrb[44].mxu1 }
 0x551   : > { %v7585_v32 = vpop.f32.mrb[45].mxu1 }
 0x552   : > { %6185 = vst [vmem:[%s10472_s11 + $0xe8] sm:$0xff] %v6153_v11  ;;  %v7586_v8 = vadd.f32 %v7585_v32, %v7584_v62  ;;  %v7587_v61 = vpop.f32.mrb[46].mxu1 }
 0x553   : > { %v7588_v19 = vpop.f32.mrb[47].mxu1 }
 0x554   : > { %v6118_v43 = vadd.f32 %v7586_v8, %v10467_v7  ;;  %v7589_v53 = vadd.f32 %v7588_v19, %v7587_v61 }
 0x556   : > { %v6154_v48 = vmax.f32 %v6118_v43, 0.0  ;;  %v6121_v6 = vadd.f32 %v7589_v53, %v10475_v27 }
 0x558   : > { %6186 = vst [vmem:[%s10472_s11 + $0xf0] sm:$0xff] %v6154_v48  ;;  %v6155_v13 = vmax.f32 %v6121_v6, 0.0 }
 0x55a   : > { %6187 = vst [vmem:[%s10472_s11 + $0xf8] sm:$0xff] %v6155_v13 }
 0x55b   : > { %8001 = shalt.err (!%p7998_p2)
}
 0x55c   : > { %s8002_s6 = scalar_lea.hbm %s10541_s9, 4096  ;;  %s8006_s8 = scalar_lea.hbm %s10594_s5, 8192 }
 0x55d   : > { %p8003_p13 = scmp.ne.s32.totalorder %s10541_s9, %s8002_s6  ;;  %p8007_p4 = scmp.lt.u32.totalorder %s10541_s9, %s10594_s5 }
 0x55e   : > { %p8008_p5 = scmp.lt.u32.totalorder %s8006_s8, %s8002_s6  ;;  %p8010_p11 = scmp.lt.u32.totalorder %s8002_s6, %s10541_s9 }
 0x55f   : > { %p8004_p6 = pnand %p8003_p13, %p10624_p0 }
 0x560   : > { %p8009_p8 = por %p8008_p5, %p8007_p4 }
 0x561   : > { %p8005_p10 = pneg %p8004_p6 }
 0x562   : > { %p8011_p1 = por %p8010_p11, %p8009_p8 }
 0x564   : > { %p8012_p3 = pnand %p8011_p1, %p8005_p10 }
 0x566   : > { %8015 = shalt.err (!%p8012_p3)
}
 0x567   : > { %s8070_s28 = smov 128   ;;  %s8071_s15 = smov 8  }
 0x568   : > { %7664 = dma.vmem_to_hbm [thread:$0]  (%p10624_p0), %s10543_s30, 4096, %s10541_s9, %s6189_s12, %s8070_s28, %s8070_s28, %s8071_s15  }
 0x569 PF: > { %s6217_s16 = sand.u32 1, %s8046_s18   ;;  %p10625_p7 = scmp.ne.s32.totalorder %s10599_s25, 0 }
 0x56a   : > { %p10626_p9 = scmp.ge.s32.totalorder %s8058_s21, 2  ;;  %s6218_s13 = scalar_lea.sflag [#allocation7], %s6217_s16 }
 0x56c   : > { %p7678_p12 = pnand %p10626_p9, %p10625_p7 }
 0x56e   : > { %8041 = dma.done.wait (!%p7678_p12), %s6218_s13, 4096  }
 0x56f   : > { %8043 = vsyncadd (!%p7678_p12), %s6218_s13, 4294963200  ;;  %p19_p2 = scmp.ge.s32.totalorder %s8212_s14, 4   ;;  %s10627_s18 = smov %s8050_s19 }
 0x570   : > { %s10628_s19 = smov %s8054_s20  ;;  %s10629_s20 = smov %s8228_s27 }
 0x571   : > { %s10630_s21 = smov %s8212_s14  ;;  %21 = sbr.rel (!%p19_p2) target bundleno = 6 (0x6), region = 99 }
 0x578   :  { %6223 = vsyncpa [#allocation6], 1 }
 0x579   :  { %6225 = vsyncpa [#allocation6 + $0x1], 1 }
 0x57a   :  { %6226 = vsyncpa [#allocation9], 1 }
 0x57b   :  { %6227 = vsyncpa [#allocation7], 1 }
 0x57c   :  { %6229 = vsyncpa [#allocation7 + $0x1], 1 }

</bundles_post_ra>
